<compile_context>
chip_gen: v7x
topology: tpu7x:2x2x1
jax: 0.10.0
libtpu: 0.0.40
codegen_flags: <defaults>
</compile_context>

<pallas_src>
import functools

import jax
import jax.numpy as jnp
from jax.experimental import pallas as pl
from jax.experimental.pallas import tpu as pltpu


# ----------------------------- Pallas kernels ------------------------------ #

def _conv_relu_pool_kernel(x_ref, w_ref, b_ref, o_ref, ybuf, *, H, W):
    """Fused conv(5x5, pad=2, single im2col matmul) + bias + ReLU + maxpool(3,2,pad=1).

    x_ref: (1, H*W, K)        bf16 im2col patches for one image (K = 25*Cin, padded)
    w_ref: (K, Cout)          bf16 per-tap weights stacked along K (dy, dx, cin order)
    b_ref: (1, Cout)          f32
    o_ref: (1, Ho, Wo, Cout)  bf16 pooled output
    ybuf : (H+2, W+2, Cout)   f32 VMEM scratch — zero-padded ReLU'd conv output
    """
    C = o_ref.shape[-1]
    Ho = (H - 1) // 2 + 1
    Wo = (W - 1) // 2 + 1

    # Convolution as one MXU matmul (bf16 in, f32 accumulate) + bias + ReLU.
    y = jnp.dot(x_ref[0], w_ref[...], preferred_element_type=jnp.float32)
    y = jnp.maximum(y + b_ref[...], 0.0)                        # (H*W, C) f32

    # Zero-padded copy of the activation (ReLU >= 0, so 0-pad never wins the max).
    ybuf[...] = jnp.zeros_like(ybuf)
    for h in range(H):
        ybuf[h + 1, 1:W + 1, :] = y[h * W:(h + 1) * W, :]

    # Row pooling: output row oy = max over padded rows {2oy, 2oy+1, 2oy+2}.
    # Stride-2 selection via contiguous slab read + leading-dim regroup (no strided loads).
    rmax = None
    for dy in range(3):
        slab = ybuf[dy:dy + 2 * Ho, :, :]                       # (2*Ho, W+2, C)
        rows = slab.reshape(Ho, 2, W + 2, C)[:, 0]              # rows dy, dy+2, ...
        rmax = rows if rmax is None else jnp.maximum(rmax, rows)

    # Column pooling: output col ox = max over padded cols {2ox, 2ox+1, 2ox+2}.
    # Stores hit the VMEM-resident output block; HBM writeback stays one dense slab.
    for ox in range(Wo):
        o_ref[0, :, ox, :] = jnp.max(
            rmax[:, 2 * ox:2 * ox + 3, :], axis=1).astype(o_ref.dtype)


def _mlp_kernel(x_ref, w1_ref, b1_ref, w2_ref, b2_ref, w3_ref, b3_ref, o_ref):
    """Fused fc1(+ReLU) -> fc2(+ReLU) -> fc3.  bf16 matmuls, f32 accumulation."""
    h = jnp.dot(x_ref[...], w1_ref[...], preferred_element_type=jnp.float32) + b1_ref[...]
    h = jnp.maximum(h, 0.0).astype(w2_ref.dtype)
    h = jnp.dot(h, w2_ref[...], preferred_element_type=jnp.float32) + b2_ref[...]
    h = jnp.maximum(h, 0.0).astype(w3_ref.dtype)
    o_ref[...] = (jnp.dot(h, w3_ref[...], preferred_element_type=jnp.float32)
                  + b3_ref[...]).astype(o_ref.dtype)


# ------------------------------ JAX wrappers -------------------------------- #

def _im2col_5x5_p2(x_nhwc, k_pad):
    """5x5 / pad=2 im2col (XLA glue): (N,H,W,Cin) -> (N, H*W, k_pad) bf16.

    Tap order is (dy, dx, cin), matching the (kh, kw, Cin, Cout) weight reshape."""
    N, H, W, Cin = x_nhwc.shape
    xp = jnp.pad(x_nhwc.astype(jnp.bfloat16), ((0, 0), (2, 2), (2, 2), (0, 0)))
    taps = [xp[:, dy:dy + H, dx:dx + W, :] for dy in range(5) for dx in range(5)]
    patches = jnp.concatenate(taps, axis=-1).reshape(N, H * W, 25 * Cin)
    if 25 * Cin < k_pad:
        patches = jnp.pad(patches, ((0, 0), (0, 0), (0, k_pad - 25 * Cin)))
    return patches


def conv5x5_relu_pool(x_nhwc, w_km, b_1c):
    """maxpool(3,2,pad=1)(relu(conv2d(x, w, b, 5x5, padding=2))) — one fused kernel."""
    N, H, W, _ = x_nhwc.shape
    K, Cout = w_km.shape
    Ho = (H - 1) // 2 + 1
    Wo = (W - 1) // 2 + 1
    patches = _im2col_5x5_p2(x_nhwc, K)                         # (N, H*W, K) bf16

    return pl.pallas_call(
        functools.partial(_conv_relu_pool_kernel, H=H, W=W),
        out_shape=jax.ShapeDtypeStruct((N, Ho, Wo, Cout), jnp.bfloat16),
        grid_spec=pltpu.PrefetchScalarGridSpec(
            num_scalar_prefetch=0,
            grid=(N,),
            in_specs=[
                pl.BlockSpec((1, H * W, K), lambda n: (n, 0, 0)),
                pl.BlockSpec((K, Cout), lambda n: (0, 0)),
                pl.BlockSpec((1, Cout), lambda n: (0, 0)),
            ],
            out_specs=pl.BlockSpec((1, Ho, Wo, Cout), lambda n: (n, 0, 0, 0)),
            scratch_shapes=[pltpu.VMEM((H + 2, W + 2, Cout), jnp.float32)],
        ),
        # Batch images are independent -> v7x's two TensorCores can split them.
        compiler_params=pltpu.CompilerParams(dimension_semantics=("parallel",)),
    )(patches, w_km, b_1c)


def fused_mlp(x, w1, b1, w2, b2, w3, b3):
    """relu(x@w1+b1) -> relu(@w2+b2) -> @w3+b3 in a single pallas_call."""
    N = x.shape[0]
    Dout = w3.shape[1]

    def full(a):
        return pl.BlockSpec(a.shape, lambda i: (0, 0))

    return pl.pallas_call(
        _mlp_kernel,
        out_shape=jax.ShapeDtypeStruct((N, Dout), jnp.float32),
        grid_spec=pltpu.PrefetchScalarGridSpec(
            num_scalar_prefetch=0,
            grid=(1,),
            in_specs=[full(x), full(w1), full(b1), full(w2), full(b2), full(w3), full(b3)],
            out_specs=pl.BlockSpec((N, Dout), lambda i: (0, 0)),
        ),
    )(x, w1, b1, w2, b2, w3, b3)


# ------------------------------- parameters --------------------------------- #

def init_params(key):
    """Deterministic PyTorch-like (uniform +-1/sqrt(fan_in)) init, PyTorch layouts."""
    ks = jax.random.split(key, 10)

    def u(k, shape, fan_in):
        bound = 1.0 / float(fan_in) ** 0.5
        return jax.random.uniform(k, shape, jnp.float32, -bound, bound)

    return {
        "conv1_w": u(ks[0], (64, 3, 5, 5), 3 * 5 * 5),
        "conv1_b": u(ks[1], (64,), 3 * 5 * 5),
        "conv2_w": u(ks[2], (64, 64, 5, 5), 64 * 5 * 5),
        "conv2_b": u(ks[3], (64,), 64 * 5 * 5),
        "fc1_w": u(ks[4], (384, 64 * 6 * 6), 64 * 6 * 6),
        "fc1_b": u(ks[5], (384,), 64 * 6 * 6),
        "fc2_w": u(ks[6], (192, 384), 384),
        "fc2_b": u(ks[7], (192,), 384),
        "fc3_w": u(ks[8], (10, 192), 192),
        "fc3_b": u(ks[9], (10,), 192),
    }


def prepare_params(p):
    """One-time conversion of PyTorch-layout weights into kernel-ready layouts:
    im2col conv weights (K padded to x128, bf16), transposed bf16 FC weights,
    and fc1 columns permuted to consume the NHWC-flattened activation directly."""
    def conv_w(w):
        cout, cin, kh, kw = w.shape
        k = kh * kw * cin
        k_pad = ((k + 127) // 128) * 128
        wk = jnp.transpose(w, (2, 3, 1, 0)).reshape(k, cout)    # rows in (dy, dx, cin) order
        if k_pad > k:
            wk = jnp.pad(wk, ((0, k_pad - k), (0, 0)))
        return wk.astype(jnp.bfloat16)

    def vec(b):
        return b.reshape(1, -1).astype(jnp.float32)

    # fc1 consumed an NCHW-flattened vector in PyTorch; permute its columns to NHWC order.
    fc1_w = p["fc1_w"].reshape(384, 64, 6, 6).transpose(0, 2, 3, 1).reshape(384, 64 * 6 * 6)
    return {
        "conv1_w": conv_w(p["conv1_w"]), "conv1_b": vec(p["conv1_b"]),
        "conv2_w": conv_w(p["conv2_w"]), "conv2_b": vec(p["conv2_b"]),
        "fc1_w": jnp.transpose(fc1_w).astype(jnp.bfloat16), "fc1_b": vec(p["fc1_b"]),
        "fc2_w": jnp.transpose(p["fc2_w"]).astype(jnp.bfloat16), "fc2_b": vec(p["fc2_b"]),
        "fc3_w": jnp.transpose(p["fc3_w"]).astype(jnp.bfloat16), "fc3_b": vec(p["fc3_b"]),
    }


# ------------------------------- Net forward -------------------------------- #

def net_forward(params, x_nchw):
    """Forward pass of `Net` (params must come from prepare_params)."""
    x = jnp.transpose(x_nchw, (0, 2, 3, 1))                     # NCHW -> NHWC (C on lanes)
    x = conv5x5_relu_pool(x, params["conv1_w"], params["conv1_b"])   # (N, 12, 12, 64)
    x = conv5x5_relu_pool(x, params["conv2_w"], params["conv2_b"])   # (N, 6, 6, 64)
    x = x.reshape(x.shape[0], -1)   # NHWC flatten; fc1_w columns pre-permuted to match
    return fused_mlp(x, params["fc1_w"], params["fc1_b"],
                     params["fc2_w"], params["fc2_b"],
                     params["fc3_w"], params["fc3_b"])


if __name__ == "__main__":
    key = jax.random.PRNGKey(0)
    pkey, xkey = jax.random.split(key)
    params = prepare_params(init_params(pkey))
    # fc1 expects 64*6*6 features => 24x24 spatial input (24 -pool-> 12 -pool-> 6)
    x = jax.random.normal(xkey, (2, 3, 24, 24), jnp.float32)
    out = jax.block_until_ready(jax.jit(net_forward)(params, x))
    assert out.shape == (2, 10) and out.dtype == jnp.float32
    print("KERNEL_OK")
</pallas_src>

<mosaic_0001>
module attributes {stable_mosaic.version = 11 : i64} {
  func.func @_conv_relu_pool_kernel(%arg0: i32, %arg1: memref<1x576x128xbf16, #tpu.memory_space<vmem>>, %arg2: memref<128x64xbf16, #tpu.memory_space<vmem>>, %arg3: memref<1x64xf32, #tpu.memory_space<vmem>>, %arg4: memref<1x12x12x64xbf16, #tpu.memory_space<vmem>>, %arg5: memref<26x26x64xf32, #tpu.memory_space<vmem>>) attributes {dimension_semantics = [#tpu.dimension_semantics<parallel>], iteration_bounds = array<i64: 2>, scalar_prefetch = 0 : i64, scratch_operands = 1 : i64, tpu.core_type = #tpu.core_type<tc>, window_params = [{transform_indices = @transform_0, window_bounds = array<i64: 1, 576, 128>}, {pipeline_mode = #tpu.pipeline_mode<synchronous>, transform_indices = @transform_1, window_bounds = array<i64: 128, 64>}, {pipeline_mode = #tpu.pipeline_mode<synchronous>, transform_indices = @transform_2, window_bounds = array<i64: 1, 64>}, {transform_indices = @transform_3, window_bounds = array<i64: 1, 12, 12, 64>}]} {
    %c0 = arith.constant 0 : index
    %c0_0 = arith.constant 0 : index
    %c0_1 = arith.constant 0 : index
    %0 = vector.load %arg1[%c0, %c0_0, %c0_1] : memref<1x576x128xbf16, #tpu.memory_space<vmem>>, vector<1x576x128xbf16>
    %1 = vector.shape_cast %0 : vector<1x576x128xbf16> to vector<576x128xbf16>
    %c0_2 = arith.constant 0 : index
    %c0_3 = arith.constant 0 : index
    %2 = vector.load %arg2[%c0_2, %c0_3] : memref<128x64xbf16, #tpu.memory_space<vmem>>, vector<128x64xbf16>
    %cst = arith.constant dense<0.000000e+00> : vector<576x64xf32>
    %3 = tpu.matmul %1, %2, %cst {dimension_numbers = #tpu.dot_dimension_numbers<[1], [0], [0], [1], [0, 0, 1, 1], [], []>} : vector<576x128xbf16>, vector<128x64xbf16>, vector<576x64xf32> -> vector<576x64xf32>
    %c0_4 = arith.constant 0 : index
    %c0_5 = arith.constant 0 : index
    %4 = vector.load %arg3[%c0_4, %c0_5] : memref<1x64xf32, #tpu.memory_space<vmem>>, vector<1x64xf32>
    %5 = vector.broadcast %4 : vector<1x64xf32> to vector<576x64xf32>
    %6 = arith.addf %3, %5 : vector<576x64xf32>
    %cst_6 = arith.constant 0.000000e+00 : f32
    %7 = vector.broadcast %cst_6 : f32 to vector<576x64xf32>
    %8 = arith.maximumf %6, %7 : vector<576x64xf32>
    %cst_7 = arith.constant 0.000000e+00 : f32
    %9 = vector.broadcast %cst_7 : f32 to vector<26x26x64xf32>
    %c0_8 = arith.constant 0 : index
    %c0_9 = arith.constant 0 : index
    %c0_10 = arith.constant 0 : index
    %10 = vector.load %arg5[%c0_8, %c0_9, %c0_10] : memref<26x26x64xf32, #tpu.memory_space<vmem>>, vector<26x26x64xf32>
    tpu.vector_store %arg5[%c0_8, %c0_9, %c0_10], %9 {strides = array<i32>} : memref<26x26x64xf32, #tpu.memory_space<vmem>>, vector<26x26x64xf32>,
    %11 = vector.extract_strided_slice %8 {offsets = [0, 0], sizes = [24, 64], strides = [1, 1]} : vector<576x64xf32> to vector<24x64xf32>
    %c1 = arith.constant 1 : index
    %c1_11 = arith.constant 1 : index
    %c0_12 = arith.constant 0 : index
    %12 = vector.load %arg5[%c1, %c1_11, %c0_12] : memref<26x26x64xf32, #tpu.memory_space<vmem>>, vector<1x24x64xf32>
    %13 = vector.shape_cast %12 : vector<1x24x64xf32> to vector<24x64xf32>
    %14 = vector.shape_cast %11 : vector<24x64xf32> to vector<1x24x64xf32>
    tpu.vector_store %arg5[%c1, %c1_11, %c0_12], %14 {strides = array<i32>} : memref<26x26x64xf32, #tpu.memory_space<vmem>>, vector<1x24x64xf32>,
    %15 = vector.extract_strided_slice %8 {offsets = [24, 0], sizes = [24, 64], strides = [1, 1]} : vector<576x64xf32> to vector<24x64xf32>
    %c2 = arith.constant 2 : index
    %c1_13 = arith.constant 1 : index
    %c0_14 = arith.constant 0 : index
    %16 = vector.load %arg5[%c2, %c1_13, %c0_14] : memref<26x26x64xf32, #tpu.memory_space<vmem>>, vector<1x24x64xf32>
    %17 = vector.shape_cast %16 : vector<1x24x64xf32> to vector<24x64xf32>
    %18 = vector.shape_cast %15 : vector<24x64xf32> to vector<1x24x64xf32>
    tpu.vector_store %arg5[%c2, %c1_13, %c0_14], %18 {strides = array<i32>} : memref<26x26x64xf32, #tpu.memory_space<vmem>>, vector<1x24x64xf32>,
    %19 = vector.extract_strided_slice %8 {offsets = [48, 0], sizes = [24, 64], strides = [1, 1]} : vector<576x64xf32> to vector<24x64xf32>
    %c3 = arith.constant 3 : index
    %c1_15 = arith.constant 1 : index
    %c0_16 = arith.constant 0 : index
    %20 = vector.load %arg5[%c3, %c1_15, %c0_16] : memref<26x26x64xf32, #tpu.memory_space<vmem>>, vector<1x24x64xf32>
    %21 = vector.shape_cast %20 : vector<1x24x64xf32> to vector<24x64xf32>
    %22 = vector.shape_cast %19 : vector<24x64xf32> to vector<1x24x64xf32>
    tpu.vector_store %arg5[%c3, %c1_15, %c0_16], %22 {strides = array<i32>} : memref<26x26x64xf32, #tpu.memory_space<vmem>>, vector<1x24x64xf32>,
    %23 = vector.extract_strided_slice %8 {offsets = [72, 0], sizes = [24, 64], strides = [1, 1]} : vector<576x64xf32> to vector<24x64xf32>
    %c4 = arith.constant 4 : index
    %c1_17 = arith.constant 1 : index
    %c0_18 = arith.constant 0 : index
    %24 = vector.load %arg5[%c4, %c1_17, %c0_18] : memref<26x26x64xf32, #tpu.memory_space<vmem>>, vector<1x24x64xf32>
    %25 = vector.shape_cast %24 : vector<1x24x64xf32> to vector<24x64xf32>
    %26 = vector.shape_cast %23 : vector<24x64xf32> to vector<1x24x64xf32>
    tpu.vector_store %arg5[%c4, %c1_17, %c0_18], %26 {strides = array<i32>} : memref<26x26x64xf32, #tpu.memory_space<vmem>>, vector<1x24x64xf32>,
    %27 = vector.extract_strided_slice %8 {offsets = [96, 0], sizes = [24, 64], strides = [1, 1]} : vector<576x64xf32> to vector<24x64xf32>
    %c5 = arith.constant 5 : index
    %c1_19 = arith.constant 1 : index
    %c0_20 = arith.constant 0 : index
    %28 = vector.load %arg5[%c5, %c1_19, %c0_20] : memref<26x26x64xf32, #tpu.memory_space<vmem>>, vector<1x24x64xf32>
    %29 = vector.shape_cast %28 : vector<1x24x64xf32> to vector<24x64xf32>
    %30 = vector.shape_cast %27 : vector<24x64xf32> to vector<1x24x64xf32>
    tpu.vector_store %arg5[%c5, %c1_19, %c0_20], %30 {strides = array<i32>} : memref<26x26x64xf32, #tpu.memory_space<vmem>>, vector<1x24x64xf32>,
    %31 = vector.extract_strided_slice %8 {offsets = [120, 0], sizes = [24, 64], strides = [1, 1]} : vector<576x64xf32> to vector<24x64xf32>
    %c6 = arith.constant 6 : index
    %c1_21 = arith.constant 1 : index
    %c0_22 = arith.constant 0 : index
    %32 = vector.load %arg5[%c6, %c1_21, %c0_22] : memref<26x26x64xf32, #tpu.memory_space<vmem>>, vector<1x24x64xf32>
    %33 = vector.shape_cast %32 : vector<1x24x64xf32> to vector<24x64xf32>
    %34 = vector.shape_cast %31 : vector<24x64xf32> to vector<1x24x64xf32>
    tpu.vector_store %arg5[%c6, %c1_21, %c0_22], %34 {strides = array<i32>} : memref<26x26x64xf32, #tpu.memory_space<vmem>>, vector<1x24x64xf32>,
    %35 = vector.extract_strided_slice %8 {offsets = [144, 0], sizes = [24, 64], strides = [1, 1]} : vector<576x64xf32> to vector<24x64xf32>
    %c7 = arith.constant 7 : index
    %c1_23 = arith.constant 1 : index
    %c0_24 = arith.constant 0 : index
    %36 = vector.load %arg5[%c7, %c1_23, %c0_24] : memref<26x26x64xf32, #tpu.memory_space<vmem>>, vector<1x24x64xf32>
    %37 = vector.shape_cast %36 : vector<1x24x64xf32> to vector<24x64xf32>
    %38 = vector.shape_cast %35 : vector<24x64xf32> to vector<1x24x64xf32>
    tpu.vector_store %arg5[%c7, %c1_23, %c0_24], %38 {strides = array<i32>} : memref<26x26x64xf32, #tpu.memory_space<vmem>>, vector<1x24x64xf32>,
    %39 = vector.extract_strided_slice %8 {offsets = [168, 0], sizes = [24, 64], strides = [1, 1]} : vector<576x64xf32> to vector<24x64xf32>
    %c8 = arith.constant 8 : index
    %c1_25 = arith.constant 1 : index
    %c0_26 = arith.constant 0 : index
    %40 = vector.load %arg5[%c8, %c1_25, %c0_26] : memref<26x26x64xf32, #tpu.memory_space<vmem>>, vector<1x24x64xf32>
    %41 = vector.shape_cast %40 : vector<1x24x64xf32> to vector<24x64xf32>
    %42 = vector.shape_cast %39 : vector<24x64xf32> to vector<1x24x64xf32>
    tpu.vector_store %arg5[%c8, %c1_25, %c0_26], %42 {strides = array<i32>} : memref<26x26x64xf32, #tpu.memory_space<vmem>>, vector<1x24x64xf32>,
    %43 = vector.extract_strided_slice %8 {offsets = [192, 0], sizes = [24, 64], strides = [1, 1]} : vector<576x64xf32> to vector<24x64xf32>
    %c9 = arith.constant 9 : index
    %c1_27 = arith.constant 1 : index
    %c0_28 = arith.constant 0 : index
    %44 = vector.load %arg5[%c9, %c1_27, %c0_28] : memref<26x26x64xf32, #tpu.memory_space<vmem>>, vector<1x24x64xf32>
    %45 = vector.shape_cast %44 : vector<1x24x64xf32> to vector<24x64xf32>
    %46 = vector.shape_cast %43 : vector<24x64xf32> to vector<1x24x64xf32>
    tpu.vector_store %arg5[%c9, %c1_27, %c0_28], %46 {strides = array<i32>} : memref<26x26x64xf32, #tpu.memory_space<vmem>>, vector<1x24x64xf32>,
    %47 = vector.extract_strided_slice %8 {offsets = [216, 0], sizes = [24, 64], strides = [1, 1]} : vector<576x64xf32> to vector<24x64xf32>
    %c10 = arith.constant 10 : index
    %c1_29 = arith.constant 1 : index
    %c0_30 = arith.constant 0 : index
    %48 = vector.load %arg5[%c10, %c1_29, %c0_30] : memref<26x26x64xf32, #tpu.memory_space<vmem>>, vector<1x24x64xf32>
    %49 = vector.shape_cast %48 : vector<1x24x64xf32> to vector<24x64xf32>
    %50 = vector.shape_cast %47 : vector<24x64xf32> to vector<1x24x64xf32>
    tpu.vector_store %arg5[%c10, %c1_29, %c0_30], %50 {strides = array<i32>} : memref<26x26x64xf32, #tpu.memory_space<vmem>>, vector<1x24x64xf32>,
    %51 = vector.extract_strided_slice %8 {offsets = [240, 0], sizes = [24, 64], strides = [1, 1]} : vector<576x64xf32> to vector<24x64xf32>
    %c11 = arith.constant 11 : index
    %c1_31 = arith.constant 1 : index
    %c0_32 = arith.constant 0 : index
    %52 = vector.load %arg5[%c11, %c1_31, %c0_32] : memref<26x26x64xf32, #tpu.memory_space<vmem>>, vector<1x24x64xf32>
    %53 = vector.shape_cast %52 : vector<1x24x64xf32> to vector<24x64xf32>
    %54 = vector.shape_cast %51 : vector<24x64xf32> to vector<1x24x64xf32>
    tpu.vector_store %arg5[%c11, %c1_31, %c0_32], %54 {strides = array<i32>} : memref<26x26x64xf32, #tpu.memory_space<vmem>>, vector<1x24x64xf32>,
    %55 = vector.extract_strided_slice %8 {offsets = [264, 0], sizes = [24, 64], strides = [1, 1]} : vector<576x64xf32> to vector<24x64xf32>
    %c12 = arith.constant 12 : index
    %c1_33 = arith.constant 1 : index
    %c0_34 = arith.constant 0 : index
    %56 = vector.load %arg5[%c12, %c1_33, %c0_34] : memref<26x26x64xf32, #tpu.memory_space<vmem>>, vector<1x24x64xf32>
    %57 = vector.shape_cast %56 : vector<1x24x64xf32> to vector<24x64xf32>
    %58 = vector.shape_cast %55 : vector<24x64xf32> to vector<1x24x64xf32>
    tpu.vector_store %arg5[%c12, %c1_33, %c0_34], %58 {strides = array<i32>} : memref<26x26x64xf32, #tpu.memory_space<vmem>>, vector<1x24x64xf32>,
    %59 = vector.extract_strided_slice %8 {offsets = [288, 0], sizes = [24, 64], strides = [1, 1]} : vector<576x64xf32> to vector<24x64xf32>
    %c13 = arith.constant 13 : index
    %c1_35 = arith.constant 1 : index
    %c0_36 = arith.constant 0 : index
    %60 = vector.load %arg5[%c13, %c1_35, %c0_36] : memref<26x26x64xf32, #tpu.memory_space<vmem>>, vector<1x24x64xf32>
    %61 = vector.shape_cast %60 : vector<1x24x64xf32> to vector<24x64xf32>
    %62 = vector.shape_cast %59 : vector<24x64xf32> to vector<1x24x64xf32>
    tpu.vector_store %arg5[%c13, %c1_35, %c0_36], %62 {strides = array<i32>} : memref<26x26x64xf32, #tpu.memory_space<vmem>>, vector<1x24x64xf32>,
    %63 = vector.extract_strided_slice %8 {offsets = [312, 0], sizes = [24, 64], strides = [1, 1]} : vector<576x64xf32> to vector<24x64xf32>
    %c14 = arith.constant 14 : index
    %c1_37 = arith.constant 1 : index
    %c0_38 = arith.constant 0 : index
    %64 = vector.load %arg5[%c14, %c1_37, %c0_38] : memref<26x26x64xf32, #tpu.memory_space<vmem>>, vector<1x24x64xf32>
    %65 = vector.shape_cast %64 : vector<1x24x64xf32> to vector<24x64xf32>
    %66 = vector.shape_cast %63 : vector<24x64xf32> to vector<1x24x64xf32>
    tpu.vector_store %arg5[%c14, %c1_37, %c0_38], %66 {strides = array<i32>} : memref<26x26x64xf32, #tpu.memory_space<vmem>>, vector<1x24x64xf32>,
    %67 = vector.extract_strided_slice %8 {offsets = [336, 0], sizes = [24, 64], strides = [1, 1]} : vector<576x64xf32> to vector<24x64xf32>
    %c15 = arith.constant 15 : index
    %c1_39 = arith.constant 1 : index
    %c0_40 = arith.constant 0 : index
    %68 = vector.load %arg5[%c15, %c1_39, %c0_40] : memref<26x26x64xf32, #tpu.memory_space<vmem>>, vector<1x24x64xf32>
    %69 = vector.shape_cast %68 : vector<1x24x64xf32> to vector<24x64xf32>
    %70 = vector.shape_cast %67 : vector<24x64xf32> to vector<1x24x64xf32>
    tpu.vector_store %arg5[%c15, %c1_39, %c0_40], %70 {strides = array<i32>} : memref<26x26x64xf32, #tpu.memory_space<vmem>>, vector<1x24x64xf32>,
    %71 = vector.extract_strided_slice %8 {offsets = [360, 0], sizes = [24, 64], strides = [1, 1]} : vector<576x64xf32> to vector<24x64xf32>
    %c16 = arith.constant 16 : index
    %c1_41 = arith.constant 1 : index
    %c0_42 = arith.constant 0 : index
    %72 = vector.load %arg5[%c16, %c1_41, %c0_42] : memref<26x26x64xf32, #tpu.memory_space<vmem>>, vector<1x24x64xf32>
    %73 = vector.shape_cast %72 : vector<1x24x64xf32> to vector<24x64xf32>
    %74 = vector.shape_cast %71 : vector<24x64xf32> to vector<1x24x64xf32>
    tpu.vector_store %arg5[%c16, %c1_41, %c0_42], %74 {strides = array<i32>} : memref<26x26x64xf32, #tpu.memory_space<vmem>>, vector<1x24x64xf32>,
    %75 = vector.extract_strided_slice %8 {offsets = [384, 0], sizes = [24, 64], strides = [1, 1]} : vector<576x64xf32> to vector<24x64xf32>
    %c17 = arith.constant 17 : index
    %c1_43 = arith.constant 1 : index
    %c0_44 = arith.constant 0 : index
    %76 = vector.load %arg5[%c17, %c1_43, %c0_44] : memref<26x26x64xf32, #tpu.memory_space<vmem>>, vector<1x24x64xf32>
    %77 = vector.shape_cast %76 : vector<1x24x64xf32> to vector<24x64xf32>
    %78 = vector.shape_cast %75 : vector<24x64xf32> to vector<1x24x64xf32>
    tpu.vector_store %arg5[%c17, %c1_43, %c0_44], %78 {strides = array<i32>} : memref<26x26x64xf32, #tpu.memory_space<vmem>>, vector<1x24x64xf32>,
    %79 = vector.extract_strided_slice %8 {offsets = [408, 0], sizes = [24, 64], strides = [1, 1]} : vector<576x64xf32> to vector<24x64xf32>
    %c18 = arith.constant 18 : index
    %c1_45 = arith.constant 1 : index
    %c0_46 = arith.constant 0 : index
    %80 = vector.load %arg5[%c18, %c1_45, %c0_46] : memref<26x26x64xf32, #tpu.memory_space<vmem>>, vector<1x24x64xf32>
    %81 = vector.shape_cast %80 : vector<1x24x64xf32> to vector<24x64xf32>
    %82 = vector.shape_cast %79 : vector<24x64xf32> to vector<1x24x64xf32>
    tpu.vector_store %arg5[%c18, %c1_45, %c0_46], %82 {strides = array<i32>} : memref<26x26x64xf32, #tpu.memory_space<vmem>>, vector<1x24x64xf32>,
    %83 = vector.extract_strided_slice %8 {offsets = [432, 0], sizes = [24, 64], strides = [1, 1]} : vector<576x64xf32> to vector<24x64xf32>
    %c19 = arith.constant 19 : index
    %c1_47 = arith.constant 1 : index
    %c0_48 = arith.constant 0 : index
    %84 = vector.load %arg5[%c19, %c1_47, %c0_48] : memref<26x26x64xf32, #tpu.memory_space<vmem>>, vector<1x24x64xf32>
    %85 = vector.shape_cast %84 : vector<1x24x64xf32> to vector<24x64xf32>
    %86 = vector.shape_cast %83 : vector<24x64xf32> to vector<1x24x64xf32>
    tpu.vector_store %arg5[%c19, %c1_47, %c0_48], %86 {strides = array<i32>} : memref<26x26x64xf32, #tpu.memory_space<vmem>>, vector<1x24x64xf32>,
    %87 = vector.extract_strided_slice %8 {offsets = [456, 0], sizes = [24, 64], strides = [1, 1]} : vector<576x64xf32> to vector<24x64xf32>
    %c20 = arith.constant 20 : index
    %c1_49 = arith.constant 1 : index
    %c0_50 = arith.constant 0 : index
    %88 = vector.load %arg5[%c20, %c1_49, %c0_50] : memref<26x26x64xf32, #tpu.memory_space<vmem>>, vector<1x24x64xf32>
    %89 = vector.shape_cast %88 : vector<1x24x64xf32> to vector<24x64xf32>
    %90 = vector.shape_cast %87 : vector<24x64xf32> to vector<1x24x64xf32>
    tpu.vector_store %arg5[%c20, %c1_49, %c0_50], %90 {strides = array<i32>} : memref<26x26x64xf32, #tpu.memory_space<vmem>>, vector<1x24x64xf32>,
    %91 = vector.extract_strided_slice %8 {offsets = [480, 0], sizes = [24, 64], strides = [1, 1]} : vector<576x64xf32> to vector<24x64xf32>
    %c21 = arith.constant 21 : index
    %c1_51 = arith.constant 1 : index
    %c0_52 = arith.constant 0 : index
    %92 = vector.load %arg5[%c21, %c1_51, %c0_52] : memref<26x26x64xf32, #tpu.memory_space<vmem>>, vector<1x24x64xf32>
    %93 = vector.shape_cast %92 : vector<1x24x64xf32> to vector<24x64xf32>
    %94 = vector.shape_cast %91 : vector<24x64xf32> to vector<1x24x64xf32>
    tpu.vector_store %arg5[%c21, %c1_51, %c0_52], %94 {strides = array<i32>} : memref<26x26x64xf32, #tpu.memory_space<vmem>>, vector<1x24x64xf32>,
    %95 = vector.extract_strided_slice %8 {offsets = [504, 0], sizes = [24, 64], strides = [1, 1]} : vector<576x64xf32> to vector<24x64xf32>
    %c22 = arith.constant 22 : index
    %c1_53 = arith.constant 1 : index
    %c0_54 = arith.constant 0 : index
    %96 = vector.load %arg5[%c22, %c1_53, %c0_54] : memref<26x26x64xf32, #tpu.memory_space<vmem>>, vector<1x24x64xf32>
    %97 = vector.shape_cast %96 : vector<1x24x64xf32> to vector<24x64xf32>
    %98 = vector.shape_cast %95 : vector<24x64xf32> to vector<1x24x64xf32>
    tpu.vector_store %arg5[%c22, %c1_53, %c0_54], %98 {strides = array<i32>} : memref<26x26x64xf32, #tpu.memory_space<vmem>>, vector<1x24x64xf32>,
    %99 = vector.extract_strided_slice %8 {offsets = [528, 0], sizes = [24, 64], strides = [1, 1]} : vector<576x64xf32> to vector<24x64xf32>
    %c23 = arith.constant 23 : index
    %c1_55 = arith.constant 1 : index
    %c0_56 = arith.constant 0 : index
    %100 = vector.load %arg5[%c23, %c1_55, %c0_56] : memref<26x26x64xf32, #tpu.memory_space<vmem>>, vector<1x24x64xf32>
    %101 = vector.shape_cast %100 : vector<1x24x64xf32> to vector<24x64xf32>
    %102 = vector.shape_cast %99 : vector<24x64xf32> to vector<1x24x64xf32>
    tpu.vector_store %arg5[%c23, %c1_55, %c0_56], %102 {strides = array<i32>} : memref<26x26x64xf32, #tpu.memory_space<vmem>>, vector<1x24x64xf32>,
    %103 = vector.extract_strided_slice %8 {offsets = [552, 0], sizes = [24, 64], strides = [1, 1]} : vector<576x64xf32> to vector<24x64xf32>
    %c24 = arith.constant 24 : index
    %c1_57 = arith.constant 1 : index
    %c0_58 = arith.constant 0 : index
    %104 = vector.load %arg5[%c24, %c1_57, %c0_58] : memref<26x26x64xf32, #tpu.memory_space<vmem>>, vector<1x24x64xf32>
    %105 = vector.shape_cast %104 : vector<1x24x64xf32> to vector<24x64xf32>
    %106 = vector.shape_cast %103 : vector<24x64xf32> to vector<1x24x64xf32>
    tpu.vector_store %arg5[%c24, %c1_57, %c0_58], %106 {strides = array<i32>} : memref<26x26x64xf32, #tpu.memory_space<vmem>>, vector<1x24x64xf32>,
    %c0_59 = arith.constant 0 : index
    %c0_60 = arith.constant 0 : index
    %c0_61 = arith.constant 0 : index
    %107 = vector.load %arg5[%c0_59, %c0_60, %c0_61] : memref<26x26x64xf32, #tpu.memory_space<vmem>>, vector<24x26x64xf32>
    %108 = vector.shape_cast %107 : vector<24x26x64xf32> to vector<12x2x26x64xf32>
    %109 = vector.extract_strided_slice %108 {offsets = [0, 0, 0, 0], sizes = [12, 1, 26, 64], strides = [1, 1, 1, 1]} : vector<12x2x26x64xf32> to vector<12x1x26x64xf32>
    %110 = vector.shape_cast %109 : vector<12x1x26x64xf32> to vector<12x26x64xf32>
    %c1_62 = arith.constant 1 : index
    %c0_63 = arith.constant 0 : index
    %c0_64 = arith.constant 0 : index
    %111 = vector.load %arg5[%c1_62, %c0_63, %c0_64] : memref<26x26x64xf32, #tpu.memory_space<vmem>>, vector<24x26x64xf32>
    %112 = vector.shape_cast %111 : vector<24x26x64xf32> to vector<12x2x26x64xf32>
    %113 = vector.extract_strided_slice %112 {offsets = [0, 0, 0, 0], sizes = [12, 1, 26, 64], strides = [1, 1, 1, 1]} : vector<12x2x26x64xf32> to vector<12x1x26x64xf32>
    %114 = vector.shape_cast %113 : vector<12x1x26x64xf32> to vector<12x26x64xf32>
    %115 = arith.maximumf %110, %114 : vector<12x26x64xf32>
    %c2_65 = arith.constant 2 : index
    %c0_66 = arith.constant 0 : index
    %c0_67 = arith.constant 0 : index
    %116 = vector.load %arg5[%c2_65, %c0_66, %c0_67] : memref<26x26x64xf32, #tpu.memory_space<vmem>>, vector<24x26x64xf32>
    %117 = vector.shape_cast %116 : vector<24x26x64xf32> to vector<12x2x26x64xf32>
    %118 = vector.extract_strided_slice %117 {offsets = [0, 0, 0, 0], sizes = [12, 1, 26, 64], strides = [1, 1, 1, 1]} : vector<12x2x26x64xf32> to vector<12x1x26x64xf32>
    %119 = vector.shape_cast %118 : vector<12x1x26x64xf32> to vector<12x26x64xf32>
    %120 = arith.maximumf %115, %119 : vector<12x26x64xf32>
    %121 = vector.extract_strided_slice %120 {offsets = [0, 0, 0], sizes = [12, 3, 64], strides = [1, 1, 1]} : vector<12x26x64xf32> to vector<12x3x64xf32>
    %cst_68 = arith.constant dense<0xFF800000> : vector<12x64xf32>
    %122 = vector.multi_reduction <maximumf>, %121, %cst_68 [1] : vector<12x3x64xf32> to vector<12x64xf32>
    %123 = arith.truncf %122 : vector<12x64xf32> to vector<12x64xbf16>
    %c0_69 = arith.constant 0 : index
    %c0_70 = arith.constant 0 : index
    %c0_71 = arith.constant 0 : index
    %c0_72 = arith.constant 0 : index
    %124 = vector.load %arg4[%c0_69, %c0_70, %c0_71, %c0_72] : memref<1x12x12x64xbf16, #tpu.memory_space<vmem>>, vector<1x12x1x64xbf16>
    %125 = vector.shape_cast %124 : vector<1x12x1x64xbf16> to vector<12x64xbf16>
    %126 = vector.shape_cast %123 : vector<12x64xbf16> to vector<1x12x1x64xbf16>
    tpu.vector_store %arg4[%c0_69, %c0_70, %c0_71, %c0_72], %126 {strides = array<i32>} : memref<1x12x12x64xbf16, #tpu.memory_space<vmem>>, vector<1x12x1x64xbf16>,
    %127 = vector.extract_strided_slice %120 {offsets = [0, 2, 0], sizes = [12, 3, 64], strides = [1, 1, 1]} : vector<12x26x64xf32> to vector<12x3x64xf32>
    %cst_73 = arith.constant dense<0xFF800000> : vector<12x64xf32>
    %128 = vector.multi_reduction <maximumf>, %127, %cst_73 [1] : vector<12x3x64xf32> to vector<12x64xf32>
    %129 = arith.truncf %128 : vector<12x64xf32> to vector<12x64xbf16>
    %c0_74 = arith.constant 0 : index
    %c0_75 = arith.constant 0 : index
    %c1_76 = arith.constant 1 : index
    %c0_77 = arith.constant 0 : index
    %130 = vector.load %arg4[%c0_74, %c0_75, %c1_76, %c0_77] : memref<1x12x12x64xbf16, #tpu.memory_space<vmem>>, vector<1x12x1x64xbf16>
    %131 = vector.shape_cast %130 : vector<1x12x1x64xbf16> to vector<12x64xbf16>
    %132 = vector.shape_cast %129 : vector<12x64xbf16> to vector<1x12x1x64xbf16>
    tpu.vector_store %arg4[%c0_74, %c0_75, %c1_76, %c0_77], %132 {strides = array<i32>} : memref<1x12x12x64xbf16, #tpu.memory_space<vmem>>, vector<1x12x1x64xbf16>,
    %133 = vector.extract_strided_slice %120 {offsets = [0, 4, 0], sizes = [12, 3, 64], strides = [1, 1, 1]} : vector<12x26x64xf32> to vector<12x3x64xf32>
    %cst_78 = arith.constant dense<0xFF800000> : vector<12x64xf32>
    %134 = vector.multi_reduction <maximumf>, %133, %cst_78 [1] : vector<12x3x64xf32> to vector<12x64xf32>
    %135 = arith.truncf %134 : vector<12x64xf32> to vector<12x64xbf16>
    %c0_79 = arith.constant 0 : index
    %c0_80 = arith.constant 0 : index
    %c2_81 = arith.constant 2 : index
    %c0_82 = arith.constant 0 : index
    %136 = vector.load %arg4[%c0_79, %c0_80, %c2_81, %c0_82] : memref<1x12x12x64xbf16, #tpu.memory_space<vmem>>, vector<1x12x1x64xbf16>
    %137 = vector.shape_cast %136 : vector<1x12x1x64xbf16> to vector<12x64xbf16>
    %138 = vector.shape_cast %135 : vector<12x64xbf16> to vector<1x12x1x64xbf16>
    tpu.vector_store %arg4[%c0_79, %c0_80, %c2_81, %c0_82], %138 {strides = array<i32>} : memref<1x12x12x64xbf16, #tpu.memory_space<vmem>>, vector<1x12x1x64xbf16>,
    %139 = vector.extract_strided_slice %120 {offsets = [0, 6, 0], sizes = [12, 3, 64], strides = [1, 1, 1]} : vector<12x26x64xf32> to vector<12x3x64xf32>
    %cst_83 = arith.constant dense<0xFF800000> : vector<12x64xf32>
    %140 = vector.multi_reduction <maximumf>, %139, %cst_83 [1] : vector<12x3x64xf32> to vector<12x64xf32>
    %141 = arith.truncf %140 : vector<12x64xf32> to vector<12x64xbf16>
    %c0_84 = arith.constant 0 : index
    %c0_85 = arith.constant 0 : index
    %c3_86 = arith.constant 3 : index
    %c0_87 = arith.constant 0 : index
    %142 = vector.load %arg4[%c0_84, %c0_85, %c3_86, %c0_87] : memref<1x12x12x64xbf16, #tpu.memory_space<vmem>>, vector<1x12x1x64xbf16>
    %143 = vector.shape_cast %142 : vector<1x12x1x64xbf16> to vector<12x64xbf16>
    %144 = vector.shape_cast %141 : vector<12x64xbf16> to vector<1x12x1x64xbf16>
    tpu.vector_store %arg4[%c0_84, %c0_85, %c3_86, %c0_87], %144 {strides = array<i32>} : memref<1x12x12x64xbf16, #tpu.memory_space<vmem>>, vector<1x12x1x64xbf16>,
    %145 = vector.extract_strided_slice %120 {offsets = [0, 8, 0], sizes = [12, 3, 64], strides = [1, 1, 1]} : vector<12x26x64xf32> to vector<12x3x64xf32>
    %cst_88 = arith.constant dense<0xFF800000> : vector<12x64xf32>
    %146 = vector.multi_reduction <maximumf>, %145, %cst_88 [1] : vector<12x3x64xf32> to vector<12x64xf32>
    %147 = arith.truncf %146 : vector<12x64xf32> to vector<12x64xbf16>
    %c0_89 = arith.constant 0 : index
    %c0_90 = arith.constant 0 : index
    %c4_91 = arith.constant 4 : index
    %c0_92 = arith.constant 0 : index
    %148 = vector.load %arg4[%c0_89, %c0_90, %c4_91, %c0_92] : memref<1x12x12x64xbf16, #tpu.memory_space<vmem>>, vector<1x12x1x64xbf16>
    %149 = vector.shape_cast %148 : vector<1x12x1x64xbf16> to vector<12x64xbf16>
    %150 = vector.shape_cast %147 : vector<12x64xbf16> to vector<1x12x1x64xbf16>
    tpu.vector_store %arg4[%c0_89, %c0_90, %c4_91, %c0_92], %150 {strides = array<i32>} : memref<1x12x12x64xbf16, #tpu.memory_space<vmem>>, vector<1x12x1x64xbf16>,
    %151 = vector.extract_strided_slice %120 {offsets = [0, 10, 0], sizes = [12, 3, 64], strides = [1, 1, 1]} : vector<12x26x64xf32> to vector<12x3x64xf32>
    %cst_93 = arith.constant dense<0xFF800000> : vector<12x64xf32>
    %152 = vector.multi_reduction <maximumf>, %151, %cst_93 [1] : vector<12x3x64xf32> to vector<12x64xf32>
    %153 = arith.truncf %152 : vector<12x64xf32> to vector<12x64xbf16>
    %c0_94 = arith.constant 0 : index
    %c0_95 = arith.constant 0 : index
    %c5_96 = arith.constant 5 : index
    %c0_97 = arith.constant 0 : index
    %154 = vector.load %arg4[%c0_94, %c0_95, %c5_96, %c0_97] : memref<1x12x12x64xbf16, #tpu.memory_space<vmem>>, vector<1x12x1x64xbf16>
    %155 = vector.shape_cast %154 : vector<1x12x1x64xbf16> to vector<12x64xbf16>
    %156 = vector.shape_cast %153 : vector<12x64xbf16> to vector<1x12x1x64xbf16>
    tpu.vector_store %arg4[%c0_94, %c0_95, %c5_96, %c0_97], %156 {strides = array<i32>} : memref<1x12x12x64xbf16, #tpu.memory_space<vmem>>, vector<1x12x1x64xbf16>,
    %157 = vector.extract_strided_slice %120 {offsets = [0, 12, 0], sizes = [12, 3, 64], strides = [1, 1, 1]} : vector<12x26x64xf32> to vector<12x3x64xf32>
    %cst_98 = arith.constant dense<0xFF800000> : vector<12x64xf32>
    %158 = vector.multi_reduction <maximumf>, %157, %cst_98 [1] : vector<12x3x64xf32> to vector<12x64xf32>
    %159 = arith.truncf %158 : vector<12x64xf32> to vector<12x64xbf16>
    %c0_99 = arith.constant 0 : index
    %c0_100 = arith.constant 0 : index
    %c6_101 = arith.constant 6 : index
    %c0_102 = arith.constant 0 : index
    %160 = vector.load %arg4[%c0_99, %c0_100, %c6_101, %c0_102] : memref<1x12x12x64xbf16, #tpu.memory_space<vmem>>, vector<1x12x1x64xbf16>
    %161 = vector.shape_cast %160 : vector<1x12x1x64xbf16> to vector<12x64xbf16>
    %162 = vector.shape_cast %159 : vector<12x64xbf16> to vector<1x12x1x64xbf16>
    tpu.vector_store %arg4[%c0_99, %c0_100, %c6_101, %c0_102], %162 {strides = array<i32>} : memref<1x12x12x64xbf16, #tpu.memory_space<vmem>>, vector<1x12x1x64xbf16>,
    %163 = vector.extract_strided_slice %120 {offsets = [0, 14, 0], sizes = [12, 3, 64], strides = [1, 1, 1]} : vector<12x26x64xf32> to vector<12x3x64xf32>
    %cst_103 = arith.constant dense<0xFF800000> : vector<12x64xf32>
    %164 = vector.multi_reduction <maximumf>, %163, %cst_103 [1] : vector<12x3x64xf32> to vector<12x64xf32>
    %165 = arith.truncf %164 : vector<12x64xf32> to vector<12x64xbf16>
    %c0_104 = arith.constant 0 : index
    %c0_105 = arith.constant 0 : index
    %c7_106 = arith.constant 7 : index
    %c0_107 = arith.constant 0 : index
    %166 = vector.load %arg4[%c0_104, %c0_105, %c7_106, %c0_107] : memref<1x12x12x64xbf16, #tpu.memory_space<vmem>>, vector<1x12x1x64xbf16>
    %167 = vector.shape_cast %166 : vector<1x12x1x64xbf16> to vector<12x64xbf16>
    %168 = vector.shape_cast %165 : vector<12x64xbf16> to vector<1x12x1x64xbf16>
    tpu.vector_store %arg4[%c0_104, %c0_105, %c7_106, %c0_107], %168 {strides = array<i32>} : memref<1x12x12x64xbf16, #tpu.memory_space<vmem>>, vector<1x12x1x64xbf16>,
    %169 = vector.extract_strided_slice %120 {offsets = [0, 16, 0], sizes = [12, 3, 64], strides = [1, 1, 1]} : vector<12x26x64xf32> to vector<12x3x64xf32>
    %cst_108 = arith.constant dense<0xFF800000> : vector<12x64xf32>
    %170 = vector.multi_reduction <maximumf>, %169, %cst_108 [1] : vector<12x3x64xf32> to vector<12x64xf32>
    %171 = arith.truncf %170 : vector<12x64xf32> to vector<12x64xbf16>
    %c0_109 = arith.constant 0 : index
    %c0_110 = arith.constant 0 : index
    %c8_111 = arith.constant 8 : index
    %c0_112 = arith.constant 0 : index
    %172 = vector.load %arg4[%c0_109, %c0_110, %c8_111, %c0_112] : memref<1x12x12x64xbf16, #tpu.memory_space<vmem>>, vector<1x12x1x64xbf16>
    %173 = vector.shape_cast %172 : vector<1x12x1x64xbf16> to vector<12x64xbf16>
    %174 = vector.shape_cast %171 : vector<12x64xbf16> to vector<1x12x1x64xbf16>
    tpu.vector_store %arg4[%c0_109, %c0_110, %c8_111, %c0_112], %174 {strides = array<i32>} : memref<1x12x12x64xbf16, #tpu.memory_space<vmem>>, vector<1x12x1x64xbf16>,
    %175 = vector.extract_strided_slice %120 {offsets = [0, 18, 0], sizes = [12, 3, 64], strides = [1, 1, 1]} : vector<12x26x64xf32> to vector<12x3x64xf32>
    %cst_113 = arith.constant dense<0xFF800000> : vector<12x64xf32>
    %176 = vector.multi_reduction <maximumf>, %175, %cst_113 [1] : vector<12x3x64xf32> to vector<12x64xf32>
    %177 = arith.truncf %176 : vector<12x64xf32> to vector<12x64xbf16>
    %c0_114 = arith.constant 0 : index
    %c0_115 = arith.constant 0 : index
    %c9_116 = arith.constant 9 : index
    %c0_117 = arith.constant 0 : index
    %178 = vector.load %arg4[%c0_114, %c0_115, %c9_116, %c0_117] : memref<1x12x12x64xbf16, #tpu.memory_space<vmem>>, vector<1x12x1x64xbf16>
    %179 = vector.shape_cast %178 : vector<1x12x1x64xbf16> to vector<12x64xbf16>
    %180 = vector.shape_cast %177 : vector<12x64xbf16> to vector<1x12x1x64xbf16>
    tpu.vector_store %arg4[%c0_114, %c0_115, %c9_116, %c0_117], %180 {strides = array<i32>} : memref<1x12x12x64xbf16, #tpu.memory_space<vmem>>, vector<1x12x1x64xbf16>,
    %181 = vector.extract_strided_slice %120 {offsets = [0, 20, 0], sizes = [12, 3, 64], strides = [1, 1, 1]} : vector<12x26x64xf32> to vector<12x3x64xf32>
    %cst_118 = arith.constant dense<0xFF800000> : vector<12x64xf32>
    %182 = vector.multi_reduction <maximumf>, %181, %cst_118 [1] : vector<12x3x64xf32> to vector<12x64xf32>
    %183 = arith.truncf %182 : vector<12x64xf32> to vector<12x64xbf16>
    %c0_119 = arith.constant 0 : index
    %c0_120 = arith.constant 0 : index
    %c10_121 = arith.constant 10 : index
    %c0_122 = arith.constant 0 : index
    %184 = vector.load %arg4[%c0_119, %c0_120, %c10_121, %c0_122] : memref<1x12x12x64xbf16, #tpu.memory_space<vmem>>, vector<1x12x1x64xbf16>
    %185 = vector.shape_cast %184 : vector<1x12x1x64xbf16> to vector<12x64xbf16>
    %186 = vector.shape_cast %183 : vector<12x64xbf16> to vector<1x12x1x64xbf16>
    tpu.vector_store %arg4[%c0_119, %c0_120, %c10_121, %c0_122], %186 {strides = array<i32>} : memref<1x12x12x64xbf16, #tpu.memory_space<vmem>>, vector<1x12x1x64xbf16>,
    %187 = vector.extract_strided_slice %120 {offsets = [0, 22, 0], sizes = [12, 3, 64], strides = [1, 1, 1]} : vector<12x26x64xf32> to vector<12x3x64xf32>
    %cst_123 = arith.constant dense<0xFF800000> : vector<12x64xf32>
    %188 = vector.multi_reduction <maximumf>, %187, %cst_123 [1] : vector<12x3x64xf32> to vector<12x64xf32>
    %189 = arith.truncf %188 : vector<12x64xf32> to vector<12x64xbf16>
    %c0_124 = arith.constant 0 : index
    %c0_125 = arith.constant 0 : index
    %c11_126 = arith.constant 11 : index
    %c0_127 = arith.constant 0 : index
    %190 = vector.load %arg4[%c0_124, %c0_125, %c11_126, %c0_127] : memref<1x12x12x64xbf16, #tpu.memory_space<vmem>>, vector<1x12x1x64xbf16>
    %191 = vector.shape_cast %190 : vector<1x12x1x64xbf16> to vector<12x64xbf16>
    %192 = vector.shape_cast %189 : vector<12x64xbf16> to vector<1x12x1x64xbf16>
    tpu.vector_store %arg4[%c0_124, %c0_125, %c11_126, %c0_127], %192 {strides = array<i32>} : memref<1x12x12x64xbf16, #tpu.memory_space<vmem>>, vector<1x12x1x64xbf16>,
    return
  }
  func.func @transform_0(%arg0: i32) -> (i32, i32, i32) {
    %c0_i32 = arith.constant 0 : i32
    %c0_i32_0 = arith.constant 0 : i32
    %c0_i32_1 = arith.constant 0 : i32
    return %arg0, %c0_i32, %c0_i32_0 : i32, i32, i32
  }
  func.func @transform_1(%arg0: i32) -> (i32, i32) {
    %c0_i32 = arith.constant 0 : i32
    %c0_i32_0 = arith.constant 0 : i32
    %c0_i32_1 = arith.constant 0 : i32
    return %c0_i32, %c0_i32_0 : i32, i32
  }
  func.func @transform_2(%arg0: i32) -> (i32, i32) {
    %c0_i32 = arith.constant 0 : i32
    %c0_i32_0 = arith.constant 0 : i32
    %c0_i32_1 = arith.constant 0 : i32
    return %c0_i32, %c0_i32_0 : i32, i32
  }
  func.func @transform_3(%arg0: i32) -> (i32, i32, i32, i32) {
    %c0_i32 = arith.constant 0 : i32
    %c0_i32_0 = arith.constant 0 : i32
    %c0_i32_1 = arith.constant 0 : i32
    %c0_i32_2 = arith.constant 0 : i32
    return %arg0, %c0_i32, %c0_i32_0, %c0_i32_1 : i32, i32, i32, i32
  }
}

module attributes {stable_mosaic.version = 11 : i64} {
  func.func @_conv_relu_pool_kernel(%arg0: i32, %arg1: memref<1x144x1664xbf16, #tpu.memory_space<vmem>>, %arg2: memref<1664x64xbf16, #tpu.memory_space<vmem>>, %arg3: memref<1x64xf32, #tpu.memory_space<vmem>>, %arg4: memref<1x6x6x64xbf16, #tpu.memory_space<vmem>>, %arg5: memref<14x14x64xf32, #tpu.memory_space<vmem>>) attributes {dimension_semantics = [#tpu.dimension_semantics<parallel>], iteration_bounds = array<i64: 2>, scalar_prefetch = 0 : i64, scratch_operands = 1 : i64, tpu.core_type = #tpu.core_type<tc>, window_params = [{transform_indices = @transform_0, window_bounds = array<i64: 1, 144, 1664>}, {pipeline_mode = #tpu.pipeline_mode<synchronous>, transform_indices = @transform_1, window_bounds = array<i64: 1664, 64>}, {pipeline_mode = #tpu.pipeline_mode<synchronous>, transform_indices = @transform_2, window_bounds = array<i64: 1, 64>}, {transform_indices = @transform_3, window_bounds = array<i64: 1, 6, 6, 64>}]} {
    %c0 = arith.constant 0 : index
    %c0_0 = arith.constant 0 : index
    %c0_1 = arith.constant 0 : index
    %0 = vector.load %arg1[%c0, %c0_0, %c0_1] : memref<1x144x1664xbf16, #tpu.memory_space<vmem>>, vector<1x144x1664xbf16>
    %1 = vector.shape_cast %0 : vector<1x144x1664xbf16> to vector<144x1664xbf16>
    %c0_2 = arith.constant 0 : index
    %c0_3 = arith.constant 0 : index
    %2 = vector.load %arg2[%c0_2, %c0_3] : memref<1664x64xbf16, #tpu.memory_space<vmem>>, vector<1664x64xbf16>
    %cst = arith.constant dense<0.000000e+00> : vector<144x64xf32>
    %3 = tpu.matmul %1, %2, %cst {dimension_numbers = #tpu.dot_dimension_numbers<[1], [0], [0], [1], [0, 0, 1, 1], [], []>} : vector<144x1664xbf16>, vector<1664x64xbf16>, vector<144x64xf32> -> vector<144x64xf32>
    %c0_4 = arith.constant 0 : index
    %c0_5 = arith.constant 0 : index
    %4 = vector.load %arg3[%c0_4, %c0_5] : memref<1x64xf32, #tpu.memory_space<vmem>>, vector<1x64xf32>
    %5 = vector.broadcast %4 : vector<1x64xf32> to vector<144x64xf32>
    %6 = arith.addf %3, %5 : vector<144x64xf32>
    %cst_6 = arith.constant 0.000000e+00 : f32
    %7 = vector.broadcast %cst_6 : f32 to vector<144x64xf32>
    %8 = arith.maximumf %6, %7 : vector<144x64xf32>
    %cst_7 = arith.constant 0.000000e+00 : f32
    %9 = vector.broadcast %cst_7 : f32 to vector<14x14x64xf32>
    %c0_8 = arith.constant 0 : index
    %c0_9 = arith.constant 0 : index
    %c0_10 = arith.constant 0 : index
    %10 = vector.load %arg5[%c0_8, %c0_9, %c0_10] : memref<14x14x64xf32, #tpu.memory_space<vmem>>, vector<14x14x64xf32>
    tpu.vector_store %arg5[%c0_8, %c0_9, %c0_10], %9 {strides = array<i32>} : memref<14x14x64xf32, #tpu.memory_space<vmem>>, vector<14x14x64xf32>,
    %11 = vector.extract_strided_slice %8 {offsets = [0, 0], sizes = [12, 64], strides = [1, 1]} : vector<144x64xf32> to vector<12x64xf32>
    %c1 = arith.constant 1 : index
    %c1_11 = arith.constant 1 : index
    %c0_12 = arith.constant 0 : index
    %12 = vector.load %arg5[%c1, %c1_11, %c0_12] : memref<14x14x64xf32, #tpu.memory_space<vmem>>, vector<1x12x64xf32>
    %13 = vector.shape_cast %12 : vector<1x12x64xf32> to vector<12x64xf32>
    %14 = vector.shape_cast %11 : vector<12x64xf32> to vector<1x12x64xf32>
    tpu.vector_store %arg5[%c1, %c1_11, %c0_12], %14 {strides = array<i32>} : memref<14x14x64xf32, #tpu.memory_space<vmem>>, vector<1x12x64xf32>,
    %15 = vector.extract_strided_slice %8 {offsets = [12, 0], sizes = [12, 64], strides = [1, 1]} : vector<144x64xf32> to vector<12x64xf32>
    %c2 = arith.constant 2 : index
    %c1_13 = arith.constant 1 : index
    %c0_14 = arith.constant 0 : index
    %16 = vector.load %arg5[%c2, %c1_13, %c0_14] : memref<14x14x64xf32, #tpu.memory_space<vmem>>, vector<1x12x64xf32>
    %17 = vector.shape_cast %16 : vector<1x12x64xf32> to vector<12x64xf32>
    %18 = vector.shape_cast %15 : vector<12x64xf32> to vector<1x12x64xf32>
    tpu.vector_store %arg5[%c2, %c1_13, %c0_14], %18 {strides = array<i32>} : memref<14x14x64xf32, #tpu.memory_space<vmem>>, vector<1x12x64xf32>,
    %19 = vector.extract_strided_slice %8 {offsets = [24, 0], sizes = [12, 64], strides = [1, 1]} : vector<144x64xf32> to vector<12x64xf32>
    %c3 = arith.constant 3 : index
    %c1_15 = arith.constant 1 : index
    %c0_16 = arith.constant 0 : index
    %20 = vector.load %arg5[%c3, %c1_15, %c0_16] : memref<14x14x64xf32, #tpu.memory_space<vmem>>, vector<1x12x64xf32>
    %21 = vector.shape_cast %20 : vector<1x12x64xf32> to vector<12x64xf32>
    %22 = vector.shape_cast %19 : vector<12x64xf32> to vector<1x12x64xf32>
    tpu.vector_store %arg5[%c3, %c1_15, %c0_16], %22 {strides = array<i32>} : memref<14x14x64xf32, #tpu.memory_space<vmem>>, vector<1x12x64xf32>,
    %23 = vector.extract_strided_slice %8 {offsets = [36, 0], sizes = [12, 64], strides = [1, 1]} : vector<144x64xf32> to vector<12x64xf32>
    %c4 = arith.constant 4 : index
    %c1_17 = arith.constant 1 : index
    %c0_18 = arith.constant 0 : index
    %24 = vector.load %arg5[%c4, %c1_17, %c0_18] : memref<14x14x64xf32, #tpu.memory_space<vmem>>, vector<1x12x64xf32>
    %25 = vector.shape_cast %24 : vector<1x12x64xf32> to vector<12x64xf32>
    %26 = vector.shape_cast %23 : vector<12x64xf32> to vector<1x12x64xf32>
    tpu.vector_store %arg5[%c4, %c1_17, %c0_18], %26 {strides = array<i32>} : memref<14x14x64xf32, #tpu.memory_space<vmem>>, vector<1x12x64xf32>,
    %27 = vector.extract_strided_slice %8 {offsets = [48, 0], sizes = [12, 64], strides = [1, 1]} : vector<144x64xf32> to vector<12x64xf32>
    %c5 = arith.constant 5 : index
    %c1_19 = arith.constant 1 : index
    %c0_20 = arith.constant 0 : index
    %28 = vector.load %arg5[%c5, %c1_19, %c0_20] : memref<14x14x64xf32, #tpu.memory_space<vmem>>, vector<1x12x64xf32>
    %29 = vector.shape_cast %28 : vector<1x12x64xf32> to vector<12x64xf32>
    %30 = vector.shape_cast %27 : vector<12x64xf32> to vector<1x12x64xf32>
    tpu.vector_store %arg5[%c5, %c1_19, %c0_20], %30 {strides = array<i32>} : memref<14x14x64xf32, #tpu.memory_space<vmem>>, vector<1x12x64xf32>,
    %31 = vector.extract_strided_slice %8 {offsets = [60, 0], sizes = [12, 64], strides = [1, 1]} : vector<144x64xf32> to vector<12x64xf32>
    %c6 = arith.constant 6 : index
    %c1_21 = arith.constant 1 : index
    %c0_22 = arith.constant 0 : index
    %32 = vector.load %arg5[%c6, %c1_21, %c0_22] : memref<14x14x64xf32, #tpu.memory_space<vmem>>, vector<1x12x64xf32>
    %33 = vector.shape_cast %32 : vector<1x12x64xf32> to vector<12x64xf32>
    %34 = vector.shape_cast %31 : vector<12x64xf32> to vector<1x12x64xf32>
    tpu.vector_store %arg5[%c6, %c1_21, %c0_22], %34 {strides = array<i32>} : memref<14x14x64xf32, #tpu.memory_space<vmem>>, vector<1x12x64xf32>,
    %35 = vector.extract_strided_slice %8 {offsets = [72, 0], sizes = [12, 64], strides = [1, 1]} : vector<144x64xf32> to vector<12x64xf32>
    %c7 = arith.constant 7 : index
    %c1_23 = arith.constant 1 : index
    %c0_24 = arith.constant 0 : index
    %36 = vector.load %arg5[%c7, %c1_23, %c0_24] : memref<14x14x64xf32, #tpu.memory_space<vmem>>, vector<1x12x64xf32>
    %37 = vector.shape_cast %36 : vector<1x12x64xf32> to vector<12x64xf32>
    %38 = vector.shape_cast %35 : vector<12x64xf32> to vector<1x12x64xf32>
    tpu.vector_store %arg5[%c7, %c1_23, %c0_24], %38 {strides = array<i32>} : memref<14x14x64xf32, #tpu.memory_space<vmem>>, vector<1x12x64xf32>,
    %39 = vector.extract_strided_slice %8 {offsets = [84, 0], sizes = [12, 64], strides = [1, 1]} : vector<144x64xf32> to vector<12x64xf32>
    %c8 = arith.constant 8 : index
    %c1_25 = arith.constant 1 : index
    %c0_26 = arith.constant 0 : index
    %40 = vector.load %arg5[%c8, %c1_25, %c0_26] : memref<14x14x64xf32, #tpu.memory_space<vmem>>, vector<1x12x64xf32>
    %41 = vector.shape_cast %40 : vector<1x12x64xf32> to vector<12x64xf32>
    %42 = vector.shape_cast %39 : vector<12x64xf32> to vector<1x12x64xf32>
    tpu.vector_store %arg5[%c8, %c1_25, %c0_26], %42 {strides = array<i32>} : memref<14x14x64xf32, #tpu.memory_space<vmem>>, vector<1x12x64xf32>,
    %43 = vector.extract_strided_slice %8 {offsets = [96, 0], sizes = [12, 64], strides = [1, 1]} : vector<144x64xf32> to vector<12x64xf32>
    %c9 = arith.constant 9 : index
    %c1_27 = arith.constant 1 : index
    %c0_28 = arith.constant 0 : index
    %44 = vector.load %arg5[%c9, %c1_27, %c0_28] : memref<14x14x64xf32, #tpu.memory_space<vmem>>, vector<1x12x64xf32>
    %45 = vector.shape_cast %44 : vector<1x12x64xf32> to vector<12x64xf32>
    %46 = vector.shape_cast %43 : vector<12x64xf32> to vector<1x12x64xf32>
    tpu.vector_store %arg5[%c9, %c1_27, %c0_28], %46 {strides = array<i32>} : memref<14x14x64xf32, #tpu.memory_space<vmem>>, vector<1x12x64xf32>,
    %47 = vector.extract_strided_slice %8 {offsets = [108, 0], sizes = [12, 64], strides = [1, 1]} : vector<144x64xf32> to vector<12x64xf32>
    %c10 = arith.constant 10 : index
    %c1_29 = arith.constant 1 : index
    %c0_30 = arith.constant 0 : index
    %48 = vector.load %arg5[%c10, %c1_29, %c0_30] : memref<14x14x64xf32, #tpu.memory_space<vmem>>, vector<1x12x64xf32>
    %49 = vector.shape_cast %48 : vector<1x12x64xf32> to vector<12x64xf32>
    %50 = vector.shape_cast %47 : vector<12x64xf32> to vector<1x12x64xf32>
    tpu.vector_store %arg5[%c10, %c1_29, %c0_30], %50 {strides = array<i32>} : memref<14x14x64xf32, #tpu.memory_space<vmem>>, vector<1x12x64xf32>,
    %51 = vector.extract_strided_slice %8 {offsets = [120, 0], sizes = [12, 64], strides = [1, 1]} : vector<144x64xf32> to vector<12x64xf32>
    %c11 = arith.constant 11 : index
    %c1_31 = arith.constant 1 : index
    %c0_32 = arith.constant 0 : index
    %52 = vector.load %arg5[%c11, %c1_31, %c0_32] : memref<14x14x64xf32, #tpu.memory_space<vmem>>, vector<1x12x64xf32>
    %53 = vector.shape_cast %52 : vector<1x12x64xf32> to vector<12x64xf32>
    %54 = vector.shape_cast %51 : vector<12x64xf32> to vector<1x12x64xf32>
    tpu.vector_store %arg5[%c11, %c1_31, %c0_32], %54 {strides = array<i32>} : memref<14x14x64xf32, #tpu.memory_space<vmem>>, vector<1x12x64xf32>,
    %55 = vector.extract_strided_slice %8 {offsets = [132, 0], sizes = [12, 64], strides = [1, 1]} : vector<144x64xf32> to vector<12x64xf32>
    %c12 = arith.constant 12 : index
    %c1_33 = arith.constant 1 : index
    %c0_34 = arith.constant 0 : index
    %56 = vector.load %arg5[%c12, %c1_33, %c0_34] : memref<14x14x64xf32, #tpu.memory_space<vmem>>, vector<1x12x64xf32>
    %57 = vector.shape_cast %56 : vector<1x12x64xf32> to vector<12x64xf32>
    %58 = vector.shape_cast %55 : vector<12x64xf32> to vector<1x12x64xf32>
    tpu.vector_store %arg5[%c12, %c1_33, %c0_34], %58 {strides = array<i32>} : memref<14x14x64xf32, #tpu.memory_space<vmem>>, vector<1x12x64xf32>,
    %c0_35 = arith.constant 0 : index
    %c0_36 = arith.constant 0 : index
    %c0_37 = arith.constant 0 : index
    %59 = vector.load %arg5[%c0_35, %c0_36, %c0_37] : memref<14x14x64xf32, #tpu.memory_space<vmem>>, vector<12x14x64xf32>
    %60 = vector.shape_cast %59 : vector<12x14x64xf32> to vector<6x2x14x64xf32>
    %61 = vector.extract_strided_slice %60 {offsets = [0, 0, 0, 0], sizes = [6, 1, 14, 64], strides = [1, 1, 1, 1]} : vector<6x2x14x64xf32> to vector<6x1x14x64xf32>
    %62 = vector.shape_cast %61 : vector<6x1x14x64xf32> to vector<6x14x64xf32>
    %c1_38 = arith.constant 1 : index
    %c0_39 = arith.constant 0 : index
    %c0_40 = arith.constant 0 : index
    %63 = vector.load %arg5[%c1_38, %c0_39, %c0_40] : memref<14x14x64xf32, #tpu.memory_space<vmem>>, vector<12x14x64xf32>
    %64 = vector.shape_cast %63 : vector<12x14x64xf32> to vector<6x2x14x64xf32>
    %65 = vector.extract_strided_slice %64 {offsets = [0, 0, 0, 0], sizes = [6, 1, 14, 64], strides = [1, 1, 1, 1]} : vector<6x2x14x64xf32> to vector<6x1x14x64xf32>
    %66 = vector.shape_cast %65 : vector<6x1x14x64xf32> to vector<6x14x64xf32>
    %67 = arith.maximumf %62, %66 : vector<6x14x64xf32>
    %c2_41 = arith.constant 2 : index
    %c0_42 = arith.constant 0 : index
    %c0_43 = arith.constant 0 : index
    %68 = vector.load %arg5[%c2_41, %c0_42, %c0_43] : memref<14x14x64xf32, #tpu.memory_space<vmem>>, vector<12x14x64xf32>
    %69 = vector.shape_cast %68 : vector<12x14x64xf32> to vector<6x2x14x64xf32>
    %70 = vector.extract_strided_slice %69 {offsets = [0, 0, 0, 0], sizes = [6, 1, 14, 64], strides = [1, 1, 1, 1]} : vector<6x2x14x64xf32> to vector<6x1x14x64xf32>
    %71 = vector.shape_cast %70 : vector<6x1x14x64xf32> to vector<6x14x64xf32>
    %72 = arith.maximumf %67, %71 : vector<6x14x64xf32>
    %73 = vector.extract_strided_slice %72 {offsets = [0, 0, 0], sizes = [6, 3, 64], strides = [1, 1, 1]} : vector<6x14x64xf32> to vector<6x3x64xf32>
    %cst_44 = arith.constant dense<0xFF800000> : vector<6x64xf32>
    %74 = vector.multi_reduction <maximumf>, %73, %cst_44 [1] : vector<6x3x64xf32> to vector<6x64xf32>
    %75 = arith.truncf %74 : vector<6x64xf32> to vector<6x64xbf16>
    %c0_45 = arith.constant 0 : index
    %c0_46 = arith.constant 0 : index
    %c0_47 = arith.constant 0 : index
    %c0_48 = arith.constant 0 : index
    %76 = vector.load %arg4[%c0_45, %c0_46, %c0_47, %c0_48] : memref<1x6x6x64xbf16, #tpu.memory_space<vmem>>, vector<1x6x1x64xbf16>
    %77 = vector.shape_cast %76 : vector<1x6x1x64xbf16> to vector<6x64xbf16>
    %78 = vector.shape_cast %75 : vector<6x64xbf16> to vector<1x6x1x64xbf16>
    tpu.vector_store %arg4[%c0_45, %c0_46, %c0_47, %c0_48], %78 {strides = array<i32>} : memref<1x6x6x64xbf16, #tpu.memory_space<vmem>>, vector<1x6x1x64xbf16>,
    %79 = vector.extract_strided_slice %72 {offsets = [0, 2, 0], sizes = [6, 3, 64], strides = [1, 1, 1]} : vector<6x14x64xf32> to vector<6x3x64xf32>
    %cst_49 = arith.constant dense<0xFF800000> : vector<6x64xf32>
    %80 = vector.multi_reduction <maximumf>, %79, %cst_49 [1] : vector<6x3x64xf32> to vector<6x64xf32>
    %81 = arith.truncf %80 : vector<6x64xf32> to vector<6x64xbf16>
    %c0_50 = arith.constant 0 : index
    %c0_51 = arith.constant 0 : index
    %c1_52 = arith.constant 1 : index
    %c0_53 = arith.constant 0 : index
    %82 = vector.load %arg4[%c0_50, %c0_51, %c1_52, %c0_53] : memref<1x6x6x64xbf16, #tpu.memory_space<vmem>>, vector<1x6x1x64xbf16>
    %83 = vector.shape_cast %82 : vector<1x6x1x64xbf16> to vector<6x64xbf16>
    %84 = vector.shape_cast %81 : vector<6x64xbf16> to vector<1x6x1x64xbf16>
    tpu.vector_store %arg4[%c0_50, %c0_51, %c1_52, %c0_53], %84 {strides = array<i32>} : memref<1x6x6x64xbf16, #tpu.memory_space<vmem>>, vector<1x6x1x64xbf16>,
    %85 = vector.extract_strided_slice %72 {offsets = [0, 4, 0], sizes = [6, 3, 64], strides = [1, 1, 1]} : vector<6x14x64xf32> to vector<6x3x64xf32>
    %cst_54 = arith.constant dense<0xFF800000> : vector<6x64xf32>
    %86 = vector.multi_reduction <maximumf>, %85, %cst_54 [1] : vector<6x3x64xf32> to vector<6x64xf32>
    %87 = arith.truncf %86 : vector<6x64xf32> to vector<6x64xbf16>
    %c0_55 = arith.constant 0 : index
    %c0_56 = arith.constant 0 : index
    %c2_57 = arith.constant 2 : index
    %c0_58 = arith.constant 0 : index
    %88 = vector.load %arg4[%c0_55, %c0_56, %c2_57, %c0_58] : memref<1x6x6x64xbf16, #tpu.memory_space<vmem>>, vector<1x6x1x64xbf16>
    %89 = vector.shape_cast %88 : vector<1x6x1x64xbf16> to vector<6x64xbf16>
    %90 = vector.shape_cast %87 : vector<6x64xbf16> to vector<1x6x1x64xbf16>
    tpu.vector_store %arg4[%c0_55, %c0_56, %c2_57, %c0_58], %90 {strides = array<i32>} : memref<1x6x6x64xbf16, #tpu.memory_space<vmem>>, vector<1x6x1x64xbf16>,
    %91 = vector.extract_strided_slice %72 {offsets = [0, 6, 0], sizes = [6, 3, 64], strides = [1, 1, 1]} : vector<6x14x64xf32> to vector<6x3x64xf32>
    %cst_59 = arith.constant dense<0xFF800000> : vector<6x64xf32>
    %92 = vector.multi_reduction <maximumf>, %91, %cst_59 [1] : vector<6x3x64xf32> to vector<6x64xf32>
    %93 = arith.truncf %92 : vector<6x64xf32> to vector<6x64xbf16>
    %c0_60 = arith.constant 0 : index
    %c0_61 = arith.constant 0 : index
    %c3_62 = arith.constant 3 : index
    %c0_63 = arith.constant 0 : index
    %94 = vector.load %arg4[%c0_60, %c0_61, %c3_62, %c0_63] : memref<1x6x6x64xbf16, #tpu.memory_space<vmem>>, vector<1x6x1x64xbf16>
    %95 = vector.shape_cast %94 : vector<1x6x1x64xbf16> to vector<6x64xbf16>
    %96 = vector.shape_cast %93 : vector<6x64xbf16> to vector<1x6x1x64xbf16>
    tpu.vector_store %arg4[%c0_60, %c0_61, %c3_62, %c0_63], %96 {strides = array<i32>} : memref<1x6x6x64xbf16, #tpu.memory_space<vmem>>, vector<1x6x1x64xbf16>,
    %97 = vector.extract_strided_slice %72 {offsets = [0, 8, 0], sizes = [6, 3, 64], strides = [1, 1, 1]} : vector<6x14x64xf32> to vector<6x3x64xf32>
    %cst_64 = arith.constant dense<0xFF800000> : vector<6x64xf32>
    %98 = vector.multi_reduction <maximumf>, %97, %cst_64 [1] : vector<6x3x64xf32> to vector<6x64xf32>
    %99 = arith.truncf %98 : vector<6x64xf32> to vector<6x64xbf16>
    %c0_65 = arith.constant 0 : index
    %c0_66 = arith.constant 0 : index
    %c4_67 = arith.constant 4 : index
    %c0_68 = arith.constant 0 : index
    %100 = vector.load %arg4[%c0_65, %c0_66, %c4_67, %c0_68] : memref<1x6x6x64xbf16, #tpu.memory_space<vmem>>, vector<1x6x1x64xbf16>
    %101 = vector.shape_cast %100 : vector<1x6x1x64xbf16> to vector<6x64xbf16>
    %102 = vector.shape_cast %99 : vector<6x64xbf16> to vector<1x6x1x64xbf16>
    tpu.vector_store %arg4[%c0_65, %c0_66, %c4_67, %c0_68], %102 {strides = array<i32>} : memref<1x6x6x64xbf16, #tpu.memory_space<vmem>>, vector<1x6x1x64xbf16>,
    %103 = vector.extract_strided_slice %72 {offsets = [0, 10, 0], sizes = [6, 3, 64], strides = [1, 1, 1]} : vector<6x14x64xf32> to vector<6x3x64xf32>
    %cst_69 = arith.constant dense<0xFF800000> : vector<6x64xf32>
    %104 = vector.multi_reduction <maximumf>, %103, %cst_69 [1] : vector<6x3x64xf32> to vector<6x64xf32>
    %105 = arith.truncf %104 : vector<6x64xf32> to vector<6x64xbf16>
    %c0_70 = arith.constant 0 : index
    %c0_71 = arith.constant 0 : index
    %c5_72 = arith.constant 5 : index
    %c0_73 = arith.constant 0 : index
    %106 = vector.load %arg4[%c0_70, %c0_71, %c5_72, %c0_73] : memref<1x6x6x64xbf16, #tpu.memory_space<vmem>>, vector<1x6x1x64xbf16>
    %107 = vector.shape_cast %106 : vector<1x6x1x64xbf16> to vector<6x64xbf16>
    %108 = vector.shape_cast %105 : vector<6x64xbf16> to vector<1x6x1x64xbf16>
    tpu.vector_store %arg4[%c0_70, %c0_71, %c5_72, %c0_73], %108 {strides = array<i32>} : memref<1x6x6x64xbf16, #tpu.memory_space<vmem>>, vector<1x6x1x64xbf16>,
    return
  }
  func.func @transform_0(%arg0: i32) -> (i32, i32, i32) {
    %c0_i32 = arith.constant 0 : i32
    %c0_i32_0 = arith.constant 0 : i32
    %c0_i32_1 = arith.constant 0 : i32
    return %arg0, %c0_i32, %c0_i32_0 : i32, i32, i32
  }
  func.func @transform_1(%arg0: i32) -> (i32, i32) {
    %c0_i32 = arith.constant 0 : i32
    %c0_i32_0 = arith.constant 0 : i32
    %c0_i32_1 = arith.constant 0 : i32
    return %c0_i32, %c0_i32_0 : i32, i32
  }
  func.func @transform_2(%arg0: i32) -> (i32, i32) {
    %c0_i32 = arith.constant 0 : i32
    %c0_i32_0 = arith.constant 0 : i32
    %c0_i32_1 = arith.constant 0 : i32
    return %c0_i32, %c0_i32_0 : i32, i32
  }
  func.func @transform_3(%arg0: i32) -> (i32, i32, i32, i32) {
    %c0_i32 = arith.constant 0 : i32
    %c0_i32_0 = arith.constant 0 : i32
    %c0_i32_1 = arith.constant 0 : i32
    %c0_i32_2 = arith.constant 0 : i32
    return %arg0, %c0_i32, %c0_i32_0, %c0_i32_1 : i32, i32, i32, i32
  }
}

module attributes {stable_mosaic.version = 11 : i64} {
  func.func @_mlp_kernel(%arg0: i32, %arg1: memref<2x2304xbf16, #tpu.memory_space<vmem>>, %arg2: memref<2304x384xbf16, #tpu.memory_space<vmem>>, %arg3: memref<1x384xf32, #tpu.memory_space<vmem>>, %arg4: memref<384x192xbf16, #tpu.memory_space<vmem>>, %arg5: memref<1x192xf32, #tpu.memory_space<vmem>>, %arg6: memref<192x10xbf16, #tpu.memory_space<vmem>>, %arg7: memref<1x10xf32, #tpu.memory_space<vmem>>, %arg8: memref<2x10xf32, #tpu.memory_space<vmem>>) attributes {dimension_semantics = [#tpu.dimension_semantics<arbitrary>], iteration_bounds = array<i64: 1>, scalar_prefetch = 0 : i64, scratch_operands = 0 : i64, tpu.core_type = #tpu.core_type<tc>, window_params = [{pipeline_mode = #tpu.pipeline_mode<synchronous>, transform_indices = @transform_0, window_bounds = array<i64: 2, 2304>}, {pipeline_mode = #tpu.pipeline_mode<synchronous>, transform_indices = @transform_1, window_bounds = array<i64: 2304, 384>}, {pipeline_mode = #tpu.pipeline_mode<synchronous>, transform_indices = @transform_2, window_bounds = array<i64: 1, 384>}, {pipeline_mode = #tpu.pipeline_mode<synchronous>, transform_indices = @transform_3, window_bounds = array<i64: 384, 192>}, {pipeline_mode = #tpu.pipeline_mode<synchronous>, transform_indices = @transform_4, window_bounds = array<i64: 1, 192>}, {pipeline_mode = #tpu.pipeline_mode<synchronous>, transform_indices = @transform_5, window_bounds = array<i64: 192, 10>}, {pipeline_mode = #tpu.pipeline_mode<synchronous>, transform_indices = @transform_6, window_bounds = array<i64: 1, 10>}, {pipeline_mode = #tpu.pipeline_mode<synchronous>, transform_indices = @transform_7, window_bounds = array<i64: 2, 10>}]} {
    %c0 = arith.constant 0 : index
    %c0_0 = arith.constant 0 : index
    %0 = vector.load %arg1[%c0, %c0_0] : memref<2x2304xbf16, #tpu.memory_space<vmem>>, vector<2x2304xbf16>
    %c0_1 = arith.constant 0 : index
    %c0_2 = arith.constant 0 : index
    %1 = vector.load %arg2[%c0_1, %c0_2] : memref<2304x384xbf16, #tpu.memory_space<vmem>>, vector<2304x384xbf16>
    %cst = arith.constant dense<0.000000e+00> : vector<2x384xf32>
    %2 = tpu.matmul %0, %1, %cst {dimension_numbers = #tpu.dot_dimension_numbers<[1], [0], [0], [1], [0, 0, 1, 1], [], []>} : vector<2x2304xbf16>, vector<2304x384xbf16>, vector<2x384xf32> -> vector<2x384xf32>
    %c0_3 = arith.constant 0 : index
    %c0_4 = arith.constant 0 : index
    %3 = vector.load %arg3[%c0_3, %c0_4] : memref<1x384xf32, #tpu.memory_space<vmem>>, vector<1x384xf32>
    %4 = vector.broadcast %3 : vector<1x384xf32> to vector<2x384xf32>
    %5 = arith.addf %2, %4 : vector<2x384xf32>
    %cst_5 = arith.constant 0.000000e+00 : f32
    %6 = vector.broadcast %cst_5 : f32 to vector<2x384xf32>
    %7 = arith.maximumf %5, %6 : vector<2x384xf32>
    %8 = arith.truncf %7 : vector<2x384xf32> to vector<2x384xbf16>
    %c0_6 = arith.constant 0 : index
    %c0_7 = arith.constant 0 : index
    %9 = vector.load %arg4[%c0_6, %c0_7] : memref<384x192xbf16, #tpu.memory_space<vmem>>, vector<384x192xbf16>
    %cst_8 = arith.constant dense<0.000000e+00> : vector<2x192xf32>
    %10 = tpu.matmul %8, %9, %cst_8 {dimension_numbers = #tpu.dot_dimension_numbers<[1], [0], [0], [1], [0, 0, 1, 1], [], []>} : vector<2x384xbf16>, vector<384x192xbf16>, vector<2x192xf32> -> vector<2x192xf32>
    %c0_9 = arith.constant 0 : index
    %c0_10 = arith.constant 0 : index
    %11 = vector.load %arg5[%c0_9, %c0_10] : memref<1x192xf32, #tpu.memory_space<vmem>>, vector<1x192xf32>
    %12 = vector.broadcast %11 : vector<1x192xf32> to vector<2x192xf32>
    %13 = arith.addf %10, %12 : vector<2x192xf32>
    %cst_11 = arith.constant 0.000000e+00 : f32
    %14 = vector.broadcast %cst_11 : f32 to vector<2x192xf32>
    %15 = arith.maximumf %13, %14 : vector<2x192xf32>
    %16 = arith.truncf %15 : vector<2x192xf32> to vector<2x192xbf16>
    %c0_12 = arith.constant 0 : index
    %c0_13 = arith.constant 0 : index
    %17 = vector.load %arg6[%c0_12, %c0_13] : memref<192x10xbf16, #tpu.memory_space<vmem>>, vector<192x10xbf16>
    %cst_14 = arith.constant dense<0.000000e+00> : vector<2x10xf32>
    %18 = tpu.matmul %16, %17, %cst_14 {dimension_numbers = #tpu.dot_dimension_numbers<[1], [0], [0], [1], [0, 0, 1, 1], [], []>} : vector<2x192xbf16>, vector<192x10xbf16>, vector<2x10xf32> -> vector<2x10xf32>
    %c0_15 = arith.constant 0 : index
    %c0_16 = arith.constant 0 : index
    %19 = vector.load %arg7[%c0_15, %c0_16] : memref<1x10xf32, #tpu.memory_space<vmem>>, vector<1x10xf32>
    %20 = vector.broadcast %19 : vector<1x10xf32> to vector<2x10xf32>
    %21 = arith.addf %18, %20 : vector<2x10xf32>
    %c0_17 = arith.constant 0 : index
    %c0_18 = arith.constant 0 : index
    %22 = vector.load %arg8[%c0_17, %c0_18] : memref<2x10xf32, #tpu.memory_space<vmem>>, vector<2x10xf32>
    tpu.vector_store %arg8[%c0_17, %c0_18], %21 {strides = array<i32>} : memref<2x10xf32, #tpu.memory_space<vmem>>, vector<2x10xf32>,
    return
  }
  func.func @transform_0(%arg0: i32) -> (i32, i32) {
    %c0_i32 = arith.constant 0 : i32
    %c0_i32_0 = arith.constant 0 : i32
    %c0_i32_1 = arith.constant 0 : i32
    return %c0_i32, %c0_i32_0 : i32, i32
  }
  func.func @transform_1(%arg0: i32) -> (i32, i32) {
    %c0_i32 = arith.constant 0 : i32
    %c0_i32_0 = arith.constant 0 : i32
    %c0_i32_1 = arith.constant 0 : i32
    return %c0_i32, %c0_i32_0 : i32, i32
  }
  func.func @transform_2(%arg0: i32) -> (i32, i32) {
    %c0_i32 = arith.constant 0 : i32
    %c0_i32_0 = arith.constant 0 : i32
    %c0_i32_1 = arith.constant 0 : i32
    return %c0_i32, %c0_i32_0 : i32, i32
  }
  func.func @transform_3(%arg0: i32) -> (i32, i32) {
    %c0_i32 = arith.constant 0 : i32
    %c0_i32_0 = arith.constant 0 : i32
    %c0_i32_1 = arith.constant 0 : i32
    return %c0_i32, %c0_i32_0 : i32, i32
  }
  func.func @transform_4(%arg0: i32) -> (i32, i32) {
    %c0_i32 = arith.constant 0 : i32
    %c0_i32_0 = arith.constant 0 : i32
    %c0_i32_1 = arith.constant 0 : i32
    return %c0_i32, %c0_i32_0 : i32, i32
  }
  func.func @transform_5(%arg0: i32) -> (i32, i32) {
    %c0_i32 = arith.constant 0 : i32
    %c0_i32_0 = arith.constant 0 : i32
    %c0_i32_1 = arith.constant 0 : i32
    return %c0_i32, %c0_i32_0 : i32, i32
  }
  func.func @transform_6(%arg0: i32) -> (i32, i32) {
    %c0_i32 = arith.constant 0 : i32
    %c0_i32_0 = arith.constant 0 : i32
    %c0_i32_1 = arith.constant 0 : i32
    return %c0_i32, %c0_i32_0 : i32, i32
  }
  func.func @transform_7(%arg0: i32) -> (i32, i32) {
    %c0_i32 = arith.constant 0 : i32
    %c0_i32_0 = arith.constant 0 : i32
    %c0_i32_1 = arith.constant 0 : i32
    return %c0_i32, %c0_i32_0 : i32, i32
  }
}

</mosaic_0001>

<bundles_post_ra>
// kernel: net_forward.3
= control target key start
LH: loop header
LB: loop body
LE: loop exit
PB: predicated region body
PF: predicated region fallthrough
CT: control target
= control target key end

     0   :  { %s3400_s12 = smov 0   ;;  %s5272_s0 = inlined_call_operand.vmem [shape: bf16[2,576,128], index: 0, kind: input, shape index: {}]   ;;  %s5273_s1 = inlined_call_operand.vmem [shape: bf16[128,64], index: 1, kind: input, shape index: {}]   ;;  %s5274_s2 = inlined_call_operand.vmem [shape: f32[1,64], index: 2, kind: input, shape index: {}]   ;;  %s5275_s3 = inlined_call_operand.vmem [shape: bf16[2,12,12,64], index: 3, kind: output, shape index: {}]  }
   0x1 LB: > { %s3102_s13 = sadd.s32 4294967295, %s3377_s12   ;;  %p3106_p0 = scmp.ge.s32.totalorder %s3377_s12, 1  ;;  %s3377_s12 = sphi %s3400_s12, %s13_s12  }
   0x2   : > { %p137_p1 = scmp.lt.s32.totalorder %s3377_s12, 3 }
   0x4   : > { %p138_p2 = pnand %p3106_p0, %p137_p1 }
   0x6   : > { %141 = sbr.rel (%p138_p2) target bundleno = 695 (0x2b7), region = 32 }
   0xd   : > { %v3315_v0 = vld [vmem:[%s5273_s1] sm:$0xff]   ;;  %p161_p3 = scmp.lt.s32.totalorder %s3102_s13, 1  ;;  %v3316_v1 = vld [vmem:[%s5273_s1 + $0x8] sm:$0xff]   ;;  %v3317_v2 = vld [vmem:[%s5273_s1 + $0x10] sm:$0xff]   ;;  %vm5276_vm0 = vcmask 523264   ;;  %vm928_vm1 = vcmask 517120  }
   0xe   : > { %3200 = vmatprep.subr.bf16.mxu0 %v3315_v0  ;;  %3288 = vmatprep.subr.bf16.mxu1 %v3315_v0  ;;  %v3318_v3 = vld [vmem:[%s5273_s1 + $0x18] sm:$0xff]   ;;  %v3319_v6 = vld [vmem:[%s5273_s1 + $0x20] sm:$0xff]   ;;  %v3320_v7 = vld [vmem:[%s5273_s1 + $0x28] sm:$0xff]   ;;  %v3379_v44 = vmov 0.0   ;;  %vm1366_vm2 = vcmask 518144   ;;  %vm5277_vm3 = vcmask 520194  }
   0xf   : > { %s5437_s13 = smov (!%p161_p3, %s3102_s13), 1  ;;  %3201 = vmatpush3.bf16.msra.mxu0 %v3315_v0  ;;  %3296 = vmatpush3.bf16.msra.mxu1 %v3315_v0  ;;  %v3321_v8 = vld [vmem:[%s5273_s1 + $0x30] sm:$0xff]   ;;  %v3322_v9 = vld [vmem:[%s5273_s1 + $0x38] sm:$0xff]   ;;  %929 = vst.msk [vmem:[#allocation2 + $0x18] sm:$0x3] %vm928_vm1, %v3379_v44  ;;  %vm5278_vm4 = vcmask 522244  }
  0x10   : > { %3202 = vmatprep.subr.bf16.mxu0 %v3316_v1  ;;  %3289 = vmatprep.subr.bf16.mxu1 %v3316_v1  ;;  %s3304_s20 = smul.u32 288, %s5437_s13  ;;  %932 = vst.msk [vmem:[#allocation2 + $0x30] sm:$0xff] %vm5276_vm0, %v3379_v44  ;;  %925 = vst.msk [vmem:[#allocation2] sm:$0xff] %vm5276_vm0, %v3379_v44  ;;  %v3679_v45 = vld [vmem:[%s5274_s2] ss:$0 sm:$0xff]  ;;  %vm5279_vm5 = vcmask 523270  }
  0x11   : > { %933 = vst.msk [vmem:[#allocation2 + $0x38] sm:$0x3] %vm928_vm1, %v3379_v44  ;;  %937 = vst.msk [vmem:[#allocation2 + $0x58] sm:$0x3] %vm928_vm1, %v3379_v44  ;;  %vm1463_vm6 = vcmask 516096   ;;  %s3305_s9 = smul.u32 96, %s5437_s13 }
  0x12   : > { %s3423_s23 = scalar_lea.vmem %s5272_s0, %s3304_s20  ;;  %926 = vst.msk [vmem:[#allocation2 + $0x8] sm:$0xff] %vm5276_vm0, %v3379_v44  ;;  %927 = vst.msk [vmem:[#allocation2 + $0x10] sm:$0xff] %vm5276_vm0, %v3379_v44  ;;  %vm1464_vm7 = vsmask.f32 256  ;;  %vm1734_vm8 = vcmask 517121   ;;  %vm2029_vm10 = vcmask 518146  }
  0x13   : > { %3203 = vmatpush3.bf16.msra.mxu0 %v3316_v1  ;;  %3297 = vmatpush3.bf16.msra.mxu1 %v3316_v1  ;;  %v3323_v4 = vld [vmem:[%s3423_s23] sm:$0xff]   ;;  %v3324_v5 = vld [vmem:[%s3423_s23 + $0x90] sm:$0xff]   ;;  %v3325_v10 = vld [vmem:[%s3423_s23 + $0x8] sm:$0xff]   ;;  %930 = vst.msk [vmem:[#allocation2 + $0x20] sm:$0xff] %vm5276_vm0, %v3379_v44  ;;  %vm1735_vm9 = vsmask.f32 1280  ;;  %s3761_s14 = scalar_lea.vmem %s5275_s3, %s3305_s9 }
  0x14   : > { %3204 = vmatprep.subr.bf16.mxu0 %v3317_v2  ;;  %3290 = vmatprep.subr.bf16.mxu1 %v3317_v2  ;;  %v3326_v11 = vld [vmem:[%s3423_s23 + $0x98] sm:$0xff]   ;;  %v3327_v12 = vld [vmem:[%s3423_s23 + $0x10] sm:$0xff]   ;;  %v3328_v13 = vld [vmem:[%s3423_s23 + $0xa0] sm:$0xff]   ;;  %931 = vst.msk [vmem:[#allocation2 + $0x28] sm:$0xff] %vm5276_vm0, %v3379_v44  ;;  %vm2030_vm11 = vsmask.f32 2304 }
  0x15   : > { %3216 = vmatprep.mubr.bf16.mxu0 %v3323_v4  ;;  %3252 = vmatprep.mubr.bf16.mxu1 %v3324_v5  ;;  %v3329_v14 = vld [vmem:[%s3423_s23 + $0x18] sm:$0xff]   ;;  %v3330_v15 = vld [vmem:[%s3423_s23 + $0xa8] sm:$0xff]   ;;  %v3331_v16 = vld [vmem:[%s3423_s23 + $0x20] sm:$0xff]   ;;  %934 = vst.msk [vmem:[#allocation2 + $0x40] sm:$0xff] %vm5276_vm0, %v3379_v44  ;;  %vm2298_vm12 = vcmask 519171  }
  0x16   : > { %v3332_v17 = vld [vmem:[%s3423_s23 + $0xb0] sm:$0xff]   ;;  %v3333_v18 = vld [vmem:[%s3423_s23 + $0x28] sm:$0xff]   ;;  %v3334_v19 = vld [vmem:[%s3423_s23 + $0xb8] sm:$0xff]   ;;  %935 = vst.msk [vmem:[#allocation2 + $0x48] sm:$0xff] %vm5276_vm0, %v3379_v44  ;;  %vm2299_vm13 = vsmask.f32 3328 }
  0x17   : > { %3205 = vmatpush3.bf16.msra.mxu0 %v3317_v2  ;;  %3298 = vmatpush3.bf16.msra.mxu1 %v3317_v2  ;;  %v3335_v20 = vld [vmem:[%s3423_s23 + $0x30] sm:$0xff]   ;;  %v3336_v21 = vld [vmem:[%s3423_s23 + $0xc0] sm:$0xff]   ;;  %v3337_v22 = vld [vmem:[%s3423_s23 + $0x38] sm:$0xff]   ;;  %936 = vst.msk [vmem:[#allocation2 + $0x50] sm:$0xff] %vm5276_vm0, %v3379_v44  ;;  %vm1599_vm14 = vsmask.f32 7938 }
  0x18   : > { %3206 = vmatprep.subr.bf16.mxu0 %v3318_v3  ;;  %3291 = vmatprep.subr.bf16.mxu1 %v3318_v3  ;;  %v3338_v23 = vld [vmem:[%s3423_s23 + $0xc8] sm:$0xff]   ;;  %v3339_v24 = vld [vmem:[%s3423_s23 + $0x40] sm:$0xff]   ;;  %v3340_v25 = vld [vmem:[%s3423_s23 + $0xd0] sm:$0xff]   ;;  %938 = vst.msk [vmem:[#allocation2 + $0x60] sm:$0xff] %vm5276_vm0, %v3379_v44  ;;  %vm1895_vm15 = vsmask.f32 7942 }
  0x19   : > { %v3341_v26 = vld [vmem:[%s3423_s23 + $0x48] sm:$0xff]   ;;  %v3342_v27 = vld [vmem:[%s3423_s23 + $0xd8] sm:$0xff]   ;;  %v3343_v28 = vld [vmem:[%s3423_s23 + $0x50] sm:$0xff]   ;;  %939 = vst.msk [vmem:[#allocation2 + $0x68] sm:$0xff] %vm5276_vm0, %v3379_v44 }
  0x1a   : > { %v3344_v29 = vld [vmem:[%s3423_s23 + $0xe0] sm:$0xff]   ;;  %v3345_v30 = vld [vmem:[%s3423_s23 + $0x58] sm:$0xff]   ;;  %v3346_v31 = vld [vmem:[%s3423_s23 + $0xe8] sm:$0xff]   ;;  %940 = vst.msk [vmem:[#allocation2 + $0x70] sm:$0xff] %vm5276_vm0, %v3379_v44 }
  0x1b   : > { %3207 = vmatpush3.bf16.msra.mxu0 %v3318_v3  ;;  %3299 = vmatpush3.bf16.msra.mxu1 %v3318_v3  ;;  %v3347_v32 = vld [vmem:[%s3423_s23 + $0x60] sm:$0xff]   ;;  %v3348_v33 = vld [vmem:[%s3423_s23 + $0xf0] sm:$0xff]   ;;  %v3349_v34 = vld [vmem:[%s3423_s23 + $0x68] sm:$0xff]   ;;  %941 = vst.msk [vmem:[#allocation2 + $0x78] sm:$0x3] %vm928_vm1, %v3379_v44 }
  0x1c   : > { %3208 = vmatprep.subr.bf16.mxu0 %v3319_v6  ;;  %3292 = vmatprep.subr.bf16.mxu1 %v3319_v6  ;;  %v3350_v35 = vld [vmem:[%s3423_s23 + $0xf8] sm:$0xff]   ;;  %v3351_v36 = vld [vmem:[%s3423_s23 + $0x70] sm:$0xff]   ;;  %v3352_v37 = vld [vmem:[%s3423_s23 + $0x100] sm:$0xff]   ;;  %942 = vst.msk [vmem:[#allocation2 + $0x80] sm:$0xff] %vm5276_vm0, %v3379_v44 }
  0x1d   : > { %v3353_v38 = vld [vmem:[%s3423_s23 + $0x78] sm:$0xff]   ;;  %v3354_v39 = vld [vmem:[%s3423_s23 + $0x108] sm:$0xff]   ;;  %v3355_v40 = vld [vmem:[%s3423_s23 + $0x80] sm:$0xff]   ;;  %943 = vst.msk [vmem:[#allocation2 + $0x88] sm:$0xff] %vm5276_vm0, %v3379_v44 }
  0x1e   : > { %v3356_v41 = vld [vmem:[%s3423_s23 + $0x110] sm:$0xff]   ;;  %v3357_v42 = vld [vmem:[%s3423_s23 + $0x88] sm:$0xff]   ;;  %v3358_v43 = vld [vmem:[%s3423_s23 + $0x118] sm:$0xff]   ;;  %944 = vst.msk [vmem:[#allocation2 + $0x90] sm:$0xff] %vm5276_vm0, %v3379_v44 }
  0x1f   : > { %3209 = vmatpush3.bf16.msra.mxu0 %v3319_v6  ;;  %3300 = vmatpush3.bf16.msra.mxu1 %v3319_v6  ;;  %945 = vst.msk [vmem:[#allocation2 + $0x98] sm:$0x3] %vm928_vm1, %v3379_v44  ;;  %949 = vst.msk [vmem:[#allocation2 + $0xb8] sm:$0x3] %vm928_vm1, %v3379_v44 }
  0x20   : > { %3210 = vmatprep.subr.bf16.mxu0 %v3320_v7  ;;  %3293 = vmatprep.subr.bf16.mxu1 %v3320_v7  ;;  %946 = vst.msk [vmem:[#allocation2 + $0xa0] sm:$0xff] %vm5276_vm0, %v3379_v44  ;;  %947 = vst.msk [vmem:[#allocation2 + $0xa8] sm:$0xff] %vm5276_vm0, %v3379_v44 }
  0x21   : > { %948 = vst.msk [vmem:[#allocation2 + $0xb0] sm:$0xff] %vm5276_vm0, %v3379_v44  ;;  %950 = vst.msk [vmem:[#allocation2 + $0xc0] sm:$0xff] %vm5276_vm0, %v3379_v44 }
  0x22   : > { %951 = vst.msk [vmem:[#allocation2 + $0xc8] sm:$0xff] %vm5276_vm0, %v3379_v44  ;;  %952 = vst.msk [vmem:[#allocation2 + $0xd0] sm:$0xff] %vm5276_vm0, %v3379_v44 }
  0x23   : > { %3211 = vmatpush3.bf16.msra.mxu0 %v3320_v7  ;;  %3301 = vmatpush3.bf16.msra.mxu1 %v3320_v7  ;;  %953 = vst.msk [vmem:[#allocation2 + $0xd8] sm:$0x3] %vm928_vm1, %v3379_v44  ;;  %957 = vst.msk [vmem:[#allocation2 + $0xf8] sm:$0x3] %vm928_vm1, %v3379_v44 }
  0x24   : > { %3212 = vmatprep.subr.bf16.mxu0 %v3321_v8  ;;  %3294 = vmatprep.subr.bf16.mxu1 %v3321_v8  ;;  %954 = vst.msk [vmem:[#allocation2 + $0xe0] sm:$0xff] %vm5276_vm0, %v3379_v44  ;;  %955 = vst.msk [vmem:[#allocation2 + $0xe8] sm:$0xff] %vm5276_vm0, %v3379_v44 }
  0x25   : > { %956 = vst.msk [vmem:[#allocation2 + $0xf0] sm:$0xff] %vm5276_vm0, %v3379_v44  ;;  %958 = vst.msk [vmem:[#allocation2 + $0x100] sm:$0xff] %vm5276_vm0, %v3379_v44 }
  0x26   : > { %959 = vst.msk [vmem:[#allocation2 + $0x108] sm:$0xff] %vm5276_vm0, %v3379_v44  ;;  %960 = vst.msk [vmem:[#allocation2 + $0x110] sm:$0xff] %vm5276_vm0, %v3379_v44 }
  0x27   : > { %3213 = vmatpush3.bf16.msra.mxu0 %v3321_v8  ;;  %3302 = vmatpush3.bf16.msra.mxu1 %v3321_v8  ;;  %961 = vst.msk [vmem:[#allocation2 + $0x118] sm:$0x3] %vm928_vm1, %v3379_v44  ;;  %965 = vst.msk [vmem:[#allocation2 + $0x138] sm:$0x3] %vm928_vm1, %v3379_v44 }
  0x28   : > { %3214 = vmatprep.subr.bf16.mxu0 %v3322_v9  ;;  %3295 = vmatprep.subr.bf16.mxu1 %v3322_v9  ;;  %962 = vst.msk [vmem:[#allocation2 + $0x120] sm:$0xff] %vm5276_vm0, %v3379_v44  ;;  %963 = vst.msk [vmem:[#allocation2 + $0x128] sm:$0xff] %vm5276_vm0, %v3379_v44 }
  0x29   : > { %964 = vst.msk [vmem:[#allocation2 + $0x130] sm:$0xff] %vm5276_vm0, %v3379_v44  ;;  %966 = vst.msk [vmem:[#allocation2 + $0x140] sm:$0xff] %vm5276_vm0, %v3379_v44 }
  0x2a   : > { %967 = vst.msk [vmem:[#allocation2 + $0x148] sm:$0xff] %vm5276_vm0, %v3379_v44  ;;  %968 = vst.msk [vmem:[#allocation2 + $0x150] sm:$0xff] %vm5276_vm0, %v3379_v44 }
  0x2b   : > { %3215 = vmatpush3.bf16.msra.mxu0 %v3322_v9  ;;  %3303 = vmatpush3.bf16.msra.mxu1 %v3322_v9  ;;  %969 = vst.msk [vmem:[#allocation2 + $0x158] sm:$0x3] %vm928_vm1, %v3379_v44  ;;  %973 = vst.msk [vmem:[#allocation2 + $0x178] sm:$0x3] %vm928_vm1, %v3379_v44 }
  0x2c   : > { %970 = vst.msk [vmem:[#allocation2 + $0x160] sm:$0xff] %vm5276_vm0, %v3379_v44  ;;  %971 = vst.msk [vmem:[#allocation2 + $0x168] sm:$0xff] %vm5276_vm0, %v3379_v44 }
  0x2d   : > { %972 = vst.msk [vmem:[#allocation2 + $0x170] sm:$0xff] %vm5276_vm0, %v3379_v44  ;;  %974 = vst.msk [vmem:[#allocation2 + $0x180] sm:$0xff] %vm5276_vm0, %v3379_v44 }
  0x2e   : > { %3217 = vmatmul.mubr.bf16.vlgmr.msra.gmra.mrb[0].mxu0 %v3325_v10  ;;  %3253 = vmatmul.mubr.bf16.vlgmr.msra.gmra.mrb[0].mxu1 %v3326_v11  ;;  %975 = vst.msk [vmem:[#allocation2 + $0x188] sm:$0xff] %vm5276_vm0, %v3379_v44  ;;  %976 = vst.msk [vmem:[#allocation2 + $0x190] sm:$0xff] %vm5276_vm0, %v3379_v44 }
  0x2f   : > { %3220 = vmatprep.mubr.bf16.mxu0 %v3327_v12  ;;  %3256 = vmatprep.mubr.bf16.mxu1 %v3328_v13  ;;  %977 = vst.msk [vmem:[#allocation2 + $0x198] sm:$0x3] %vm928_vm1, %v3379_v44  ;;  %981 = vst.msk [vmem:[#allocation2 + $0x1b8] sm:$0x3] %vm928_vm1, %v3379_v44 }
  0x30   : > { %978 = vst.msk [vmem:[#allocation2 + $0x1a0] sm:$0xff] %vm5276_vm0, %v3379_v44  ;;  %979 = vst.msk [vmem:[#allocation2 + $0x1a8] sm:$0xff] %vm5276_vm0, %v3379_v44 }
  0x31   : > { %980 = vst.msk [vmem:[#allocation2 + $0x1b0] sm:$0xff] %vm5276_vm0, %v3379_v44  ;;  %982 = vst.msk [vmem:[#allocation2 + $0x1c0] sm:$0xff] %vm5276_vm0, %v3379_v44 }
  0x32   : > { %983 = vst.msk [vmem:[#allocation2 + $0x1c8] sm:$0xff] %vm5276_vm0, %v3379_v44  ;;  %984 = vst.msk [vmem:[#allocation2 + $0x1d0] sm:$0xff] %vm5276_vm0, %v3379_v44 }
  0x33   : > { %985 = vst.msk [vmem:[#allocation2 + $0x1d8] sm:$0x3] %vm928_vm1, %v3379_v44  ;;  %989 = vst.msk [vmem:[#allocation2 + $0x1f8] sm:$0x3] %vm928_vm1, %v3379_v44 }
  0x34   : > { %986 = vst.msk [vmem:[#allocation2 + $0x1e0] sm:$0xff] %vm5276_vm0, %v3379_v44  ;;  %987 = vst.msk [vmem:[#allocation2 + $0x1e8] sm:$0xff] %vm5276_vm0, %v3379_v44 }
  0x35   : > { %988 = vst.msk [vmem:[#allocation2 + $0x1f0] sm:$0xff] %vm5276_vm0, %v3379_v44  ;;  %990 = vst.msk [vmem:[#allocation2 + $0x200] sm:$0xff] %vm5276_vm0, %v3379_v44 }
  0x36   : > { %3221 = vmatmul.mubr.bf16.gmra.mrb[4].mxu0 %v3329_v14  ;;  %3257 = vmatmul.mubr.bf16.gmra.mrb[4].mxu1 %v3330_v15  ;;  %991 = vst.msk [vmem:[#allocation2 + $0x208] sm:$0xff] %vm5276_vm0, %v3379_v44  ;;  %992 = vst.msk [vmem:[#allocation2 + $0x210] sm:$0xff] %vm5276_vm0, %v3379_v44 }
  0x37   : > { %3224 = vmatprep.mubr.bf16.mxu0 %v3331_v16  ;;  %3260 = vmatprep.mubr.bf16.mxu1 %v3332_v17  ;;  %993 = vst.msk [vmem:[#allocation2 + $0x218] sm:$0x3] %vm928_vm1, %v3379_v44  ;;  %997 = vst.msk [vmem:[#allocation2 + $0x238] sm:$0x3] %vm928_vm1, %v3379_v44  ;;  %v1126_v16 = vld [vmem:[#allocation2] sm:$0xff] }
  0x38   : > { %994 = vst.msk [vmem:[#allocation2 + $0x220] sm:$0xff] %vm5276_vm0, %v3379_v44  ;;  %995 = vst.msk [vmem:[#allocation2 + $0x228] sm:$0xff] %vm5276_vm0, %v3379_v44 }
  0x39   : > { %996 = vst.msk [vmem:[#allocation2 + $0x230] sm:$0xff] %vm5276_vm0, %v3379_v44  ;;  %998 = vst.msk [vmem:[#allocation2 + $0x240] sm:$0xff] %vm5276_vm0, %v3379_v44 }
  0x3a   : > { %999 = vst.msk [vmem:[#allocation2 + $0x248] sm:$0xff] %vm5276_vm0, %v3379_v44  ;;  %1000 = vst.msk [vmem:[#allocation2 + $0x250] sm:$0xff] %vm5276_vm0, %v3379_v44 }
  0x3b   : > { %1001 = vst.msk [vmem:[#allocation2 + $0x258] sm:$0x3] %vm928_vm1, %v3379_v44  ;;  %1005 = vst.msk [vmem:[#allocation2 + $0x278] sm:$0x3] %vm928_vm1, %v3379_v44 }
  0x3c   : > { %1002 = vst.msk [vmem:[#allocation2 + $0x260] sm:$0xff] %vm5276_vm0, %v3379_v44  ;;  %1003 = vst.msk [vmem:[#allocation2 + $0x268] sm:$0xff] %vm5276_vm0, %v3379_v44 }
  0x3d   : > { %1004 = vst.msk [vmem:[#allocation2 + $0x270] sm:$0xff] %vm5276_vm0, %v3379_v44  ;;  %1006 = vst.msk [vmem:[#allocation2 + $0x280] sm:$0xff] %vm5276_vm0, %v3379_v44 }
  0x3e   : > { %3225 = vmatmul.mubr.bf16.gmra.mrb[8].mxu0 %v3333_v18  ;;  %3261 = vmatmul.mubr.bf16.gmra.mrb[8].mxu1 %v3334_v19  ;;  %1007 = vst.msk [vmem:[#allocation2 + $0x288] sm:$0xff] %vm5276_vm0, %v3379_v44  ;;  %1008 = vst.msk [vmem:[#allocation2 + $0x290] sm:$0xff] %vm5276_vm0, %v3379_v44 }
  0x3f   : > { %3228 = vmatprep.mubr.bf16.mxu0 %v3335_v20  ;;  %3264 = vmatprep.mubr.bf16.mxu1 %v3336_v21  ;;  %1009 = vst.msk [vmem:[#allocation2 + $0x298] sm:$0x3] %vm928_vm1, %v3379_v44  ;;  %1013 = vst.msk [vmem:[#allocation2 + $0x2b8] sm:$0x3] %vm928_vm1, %v3379_v44 }
  0x40   : > { %1010 = vst.msk [vmem:[#allocation2 + $0x2a0] sm:$0xff] %vm5276_vm0, %v3379_v44  ;;  %1011 = vst.msk [vmem:[#allocation2 + $0x2a8] sm:$0xff] %vm5276_vm0, %v3379_v44 }
  0x41   : > { %1012 = vst.msk [vmem:[#allocation2 + $0x2b0] sm:$0xff] %vm5276_vm0, %v3379_v44  ;;  %1014 = vst.msk [vmem:[#allocation2 + $0x2c0] sm:$0xff] %vm5276_vm0, %v3379_v44 }
  0x42   : > { %1015 = vst.msk [vmem:[#allocation2 + $0x2c8] sm:$0xff] %vm5276_vm0, %v3379_v44  ;;  %1016 = vst.msk [vmem:[#allocation2 + $0x2d0] sm:$0xff] %vm5276_vm0, %v3379_v44 }
  0x43   : > { %1017 = vst.msk [vmem:[#allocation2 + $0x2d8] sm:$0x3] %vm928_vm1, %v3379_v44  ;;  %1021 = vst.msk [vmem:[#allocation2 + $0x2f8] sm:$0x3] %vm928_vm1, %v3379_v44 }
  0x44   : > { %1018 = vst.msk [vmem:[#allocation2 + $0x2e0] sm:$0xff] %vm5276_vm0, %v3379_v44  ;;  %1019 = vst.msk [vmem:[#allocation2 + $0x2e8] sm:$0xff] %vm5276_vm0, %v3379_v44 }
  0x45   : > { %1020 = vst.msk [vmem:[#allocation2 + $0x2f0] sm:$0xff] %vm5276_vm0, %v3379_v44  ;;  %1022 = vst.msk [vmem:[#allocation2 + $0x300] sm:$0xff] %vm5276_vm0, %v3379_v44 }
  0x46   : > { %3229 = vmatmul.mubr.bf16.gmra.mrb[12].mxu0 %v3337_v22  ;;  %3265 = vmatmul.mubr.bf16.gmra.mrb[12].mxu1 %v3338_v23  ;;  %1023 = vst.msk [vmem:[#allocation2 + $0x308] sm:$0xff] %vm5276_vm0, %v3379_v44  ;;  %1024 = vst.msk [vmem:[#allocation2 + $0x310] sm:$0xff] %vm5276_vm0, %v3379_v44 }
  0x47   : > { %3232 = vmatprep.mubr.bf16.mxu0 %v3339_v24  ;;  %3268 = vmatprep.mubr.bf16.mxu1 %v3340_v25  ;;  %1025 = vst.msk [vmem:[#allocation2 + $0x318] sm:$0x3] %vm928_vm1, %v3379_v44  ;;  %vm3781_vm1 = vmand %vm1463_vm6, %vm1464_vm7  ;;  %vm2164_vm7 = vsmask.f32 7946 }
  0x4e   : > { %3233 = vmatmul.mubr.bf16.gmra.mrb[16].mxu0 %v3341_v26  ;;  %3269 = vmatmul.mubr.bf16.gmra.mrb[16].mxu1 %v3342_v27 }
  0x4f   : > { %3236 = vmatprep.mubr.bf16.mxu0 %v3343_v28  ;;  %3272 = vmatprep.mubr.bf16.mxu1 %v3344_v29 }
  0x56   : > { %3237 = vmatmul.mubr.bf16.gmra.mrb[20].mxu0 %v3345_v30  ;;  %3273 = vmatmul.mubr.bf16.gmra.mrb[20].mxu1 %v3346_v31 }
  0x57   : > { %3240 = vmatprep.mubr.bf16.mxu0 %v3347_v32  ;;  %3276 = vmatprep.mubr.bf16.mxu1 %v3348_v33 }
  0x5e   : > { %3241 = vmatmul.mubr.bf16.gmra.mrb[24].mxu0 %v3349_v34  ;;  %3277 = vmatmul.mubr.bf16.gmra.mrb[24].mxu1 %v3350_v35 }
  0x5f   : > { %3244 = vmatprep.mubr.bf16.mxu0 %v3351_v36  ;;  %3280 = vmatprep.mubr.bf16.mxu1 %v3352_v37  ;;  %v1127_v37 = vld [vmem:[#allocation2 + $0x8] sm:$0xff] }
  0x66   : > { %3245 = vmatmul.mubr.bf16.gmra.mrb[28].mxu0 %v3353_v38  ;;  %3281 = vmatmul.mubr.bf16.gmra.mrb[28].mxu1 %v3354_v39 }
  0x67   : > { %3248 = vmatprep.mubr.bf16.mxu0 %v3355_v40  ;;  %3284 = vmatprep.mubr.bf16.mxu1 %v3356_v41 }
  0x6e   : > { %3249 = vmatmul.mubr.bf16.gmra.mrb[32].mxu0 %v3357_v42  ;;  %3285 = vmatmul.mubr.bf16.gmra.mrb[32].mxu1 %v3358_v43 }
 0x101   : > { %v3218_v46 = vpop.f32.mrb[0].mxu0  ;;  %v3254_v47 = vpop.f32.mrb[0].mxu1 }
 0x102   : > { %v574_v48 = vadd.f32 %v3218_v46, %v3679_v45  ;;  %v718_v49 = vadd.f32 %v3254_v47, %v3679_v45  ;;  %v565_v50 = vpop.f32.mrb[1].mxu0  ;;  %v709_v51 = vpop.f32.mrb[1].mxu1 }
 0x103   : > { %v566_v52 = vadd.f32 %v3679_v45, %v565_v50  ;;  %v710_v53 = vadd.f32 %v3679_v45, %v709_v51  ;;  %v3219_v54 = vpop.f32.mrb[2].mxu0  ;;  %v3255_v55 = vpop.f32.mrb[2].mxu1 }
 0x104   : > { %v854_v56 = vmax.f32 %v574_v48, 0.0  ;;  %v890_v57 = vmax.f32 %v718_v49, 0.0  ;;  %v577_v58 = vadd.f32 %v3219_v54, %v3679_v45  ;;  %v721_v59 = vadd.f32 %v3255_v55, %v3679_v45  ;;  %v568_v60 = vpop.f32.mrb[3].mxu0  ;;  %v712_v61 = vpop.f32.mrb[3].mxu1 }
 0x105   : > { %v852_v62 = vmax.f32 %v566_v52, 0.0  ;;  %v888_v63 = vmax.f32 %v710_v53, 0.0  ;;  %v569_v0 = vadd.f32 %v3679_v45, %v568_v60  ;;  %v713_v1 = vadd.f32 %v3679_v45, %v712_v61 }
 0x106   : > { %1033 = vst.msk [vmem:[#allocation2 + $0x31] sm:$0xff] %vm5276_vm0, %v854_v56  ;;  %1081 = vst.msk [vmem:[#allocation2 + $0x1b1] sm:$0xff] %vm5276_vm0, %v890_v57  ;;  %v855_v2 = vmax.f32 %v577_v58, 0.0  ;;  %v891_v3 = vmax.f32 %v721_v59, 0.0 }
 0x107   : > { %1031 = vst.msk [vmem:[#allocation2 + $0x21] sm:$0xff] %vm5276_vm0, %v852_v62  ;;  %1079 = vst.msk [vmem:[#allocation2 + $0x1a1] sm:$0xff] %vm5276_vm0, %v888_v63  ;;  %v853_v4 = vmax.f32 %v569_v0, 0.0  ;;  %v889_v5 = vmax.f32 %v713_v1, 0.0  ;;  %v3735_v63 = vld [vmem:[#allocation2 + $0x18] sm:$0x3] }
 0x108   : > { %1035 = vst.msk [vmem:[#allocation2 + $0x41] sm:$0xff] %vm5276_vm0, %v855_v2  ;;  %1083 = vst.msk [vmem:[#allocation2 + $0x1c1] sm:$0xff] %vm5276_vm0, %v891_v3 }
 0x109   : > { %1032 = vst.msk [vmem:[#allocation2 + $0x29] sm:$0xff] %vm5276_vm0, %v853_v4  ;;  %1080 = vst.msk [vmem:[#allocation2 + $0x1a9] sm:$0xff] %vm5276_vm0, %v889_v5  ;;  %v3222_v6 = vpop.f32.mrb[4].mxu0  ;;  %v3258_v7 = vpop.f32.mrb[4].mxu1 }
 0x10a   : > { %v590_v8 = vadd.f32 %v3222_v6, %v3679_v45  ;;  %v734_v9 = vadd.f32 %v3258_v7, %v3679_v45  ;;  %v581_v10 = vpop.f32.mrb[5].mxu0  ;;  %v725_v11 = vpop.f32.mrb[5].mxu1 }
 0x10b   : > { %v582_v12 = vadd.f32 %v3679_v45, %v581_v10  ;;  %v726_v13 = vadd.f32 %v3679_v45, %v725_v11  ;;  %v3223_v14 = vpop.f32.mrb[6].mxu0  ;;  %v3259_v15 = vpop.f32.mrb[6].mxu1 }
 0x10c   : > { %v858_v17 = vmax.f32 %v590_v8, 0.0  ;;  %v894_v18 = vmax.f32 %v734_v9, 0.0  ;;  %v593_v19 = vadd.f32 %v3223_v14, %v3679_v45  ;;  %v737_v20 = vadd.f32 %v3259_v15, %v3679_v45  ;;  %v584_v21 = vpop.f32.mrb[7].mxu0  ;;  %v728_v22 = vpop.f32.mrb[7].mxu1  ;;  %v1128_v15 = vld [vmem:[#allocation2 + $0x10] sm:$0xff] }
 0x10d   : > { %v856_v23 = vmax.f32 %v582_v12, 0.0  ;;  %v892_v24 = vmax.f32 %v726_v13, 0.0  ;;  %v585_v25 = vadd.f32 %v3679_v45, %v584_v21  ;;  %v729_v26 = vadd.f32 %v3679_v45, %v728_v22  ;;  %v3741_v3 = vld [vmem:[#allocation2 + $0x38] sm:$0x3] }
 0x10e   : > { %v1174_v27 = vld [vmem:[#allocation2 + $0x20] sm:$0xff]  ;;  %1039 = vst.msk [vmem:[#allocation2 + $0x61] sm:$0xff] %vm5276_vm0, %v858_v17  ;;  %1087 = vst.msk [vmem:[#allocation2 + $0x1e1] sm:$0xff] %vm5276_vm0, %v894_v18  ;;  %v859_v28 = vmax.f32 %v593_v19, 0.0  ;;  %v895_v29 = vmax.f32 %v737_v20, 0.0  ;;  %v1225_v19 = vmax.f32 %v3735_v63, %v3741_v3 }
 0x10f   : > { %v1222_v30 = vmax.f32 %v1126_v16, %v1174_v27  ;;  %v3707_v31 = vld [vmem:[#allocation2 + $0x40] sm:$0xff]  ;;  %1036 = vst.msk [vmem:[#allocation2 + $0x49] sm:$0xff] %vm5276_vm0, %v856_v23  ;;  %1084 = vst.msk [vmem:[#allocation2 + $0x1c9] sm:$0xff] %vm5276_vm0, %v892_v24  ;;  %v857_v32 = vmax.f32 %v585_v25, 0.0  ;;  %v893_v33 = vmax.f32 %v729_v26, 0.0 }
 0x110   : > { %1040 = vst.msk [vmem:[#allocation2 + $0x69] sm:$0xff] %vm5276_vm0, %v859_v28  ;;  %1088 = vst.msk [vmem:[#allocation2 + $0x1e9] sm:$0xff] %vm5276_vm0, %v895_v29  ;;  %v1175_v38 = vld [vmem:[#allocation2 + $0x28] sm:$0xff]  ;;  %v1176_v16 = vld [vmem:[#allocation2 + $0x30] sm:$0xff] }
 0x111   : > { %v1318_v34 = vmax.f32 %v1222_v30, %v3707_v31  ;;  %1037 = vst.msk [vmem:[#allocation2 + $0x51] sm:$0xff] %vm5276_vm0, %v857_v32  ;;  %1085 = vst.msk [vmem:[#allocation2 + $0x1d1] sm:$0xff] %vm5276_vm0, %v893_v33  ;;  %v3226_v35 = vpop.f32.mrb[8].mxu0  ;;  %v3262_v36 = vpop.f32.mrb[8].mxu1  ;;  %v1223_v55 = vmax.f32 %v1127_v37, %v1175_v38  ;;  %v1224_v33 = vmax.f32 %v1128_v15, %v1176_v16 }
 0x112   : > { %v606_v39 = vadd.f32 %v3226_v35, %v3679_v45  ;;  %v750_v40 = vadd.f32 %v3262_v36, %v3679_v45  ;;  %v597_v41 = vpop.f32.mrb[9].mxu0  ;;  %v741_v42 = vpop.f32.mrb[9].mxu1 }
 0x113   : > { %v1367_v43 = vsel %vm1366_vm2, %v1318_v34, -inf  ;;  %v1503_v44 = vsel %vm5277_vm3, %v1318_v34, -inf  ;;  %v1638_v46 = vsel %vm5278_vm4, %v1318_v34, -inf  ;;  %v3721_v47 = vpop.f32.mrb[10].mxu0  ;;  %v3723_v48 = vpop.f32.mrb[10].mxu1  ;;  %v598_v57 = vadd.f32 %v3679_v45, %v597_v41 }
 0x114   : > { %v1368_v49 = vrot.slane %v1367_v43, 4  ;;  %v1504_v50 = vrot.slane %v1503_v44, 4  ;;  %v1639_v51 = vrot.slane %v1638_v46, 4  ;;  %v862_v52 = vmax.f32 %v606_v39, 0.0  ;;  %v3725_v53 = vpop.f32.mrb[11].mxu0  ;;  %v3727_v54 = vpop.f32.mrb[11].mxu1 }
 0x115   : > { %v898_v56 = vmax.f32 %v750_v40, 0.0  ;;  %v742_v58 = vadd.f32 %v3679_v45, %v741_v42  ;;  %v860_v1 = vmax.f32 %v598_v57, 0.0  ;;  %v1774_v7 = vsel %vm5279_vm5, %v1318_v34, -inf  ;;  %v1466_v41 = vld [vmem:[%s3761_s14] sm:$0x1] }
 0x116   : > { %v1369_v59 = vmax.f32 %v1367_v43, %v1368_v49  ;;  %v1505_v60 = vmax.f32 %v1503_v44, %v1504_v50  ;;  %v1640_v61 = vmax.f32 %v1638_v46, %v1639_v51  ;;  %v3732_v62 = vld [vmem:[#allocation2 + $0x48] sm:$0xff]  ;;  %1044 = vst.msk [vmem:[#allocation2 + $0x89] sm:$0xff] %vm5276_vm0, %v862_v52  ;;  %v1737_v50 = vld [vmem:[%s3761_s14] sm:$0x2] }
 0x117   : > { %v3738_v0 = vmax.f32 %v1223_v55, %v3732_v62  ;;  %1092 = vst.msk [vmem:[#allocation2 + $0x209] sm:$0xff] %vm5276_vm0, %v898_v56  ;;  %v896_v2 = vmax.f32 %v742_v58, 0.0  ;;  %1041 = vst.msk [vmem:[#allocation2 + $0x71] sm:$0xff] %vm5276_vm0, %v860_v1  ;;  %v3851_v3 = vld [vmem:[#allocation2 + $0x60] sm:$0xff] }
 0x118   : > { %v1370_v4 = vrot.slane %v1369_v59, 2  ;;  %v1506_v5 = vrot.slane %v1505_v60, 2  ;;  %v1641_v6 = vrot.slane %v1640_v61, 2  ;;  %v3765_v23 = vld [vmem:[#allocation2 + $0x50] sm:$0xff] }
 0x119   : > { %v1776_v8 = vsel %vm1463_vm6, %v3738_v0, -inf  ;;  %v1933_v9 = vsel %vm1366_vm2, %v3738_v0, -inf  ;;  %v2068_v10 = vsel %vm5277_vm3, %v3738_v0, -inf  ;;  %v2202_v11 = vsel %vm5278_vm4, %v3738_v0, -inf  ;;  %1089 = vst.msk [vmem:[#allocation2 + $0x1f1] sm:$0xff] %vm5276_vm0, %v896_v2  ;;  %v3754_v18 = vpop.f32.mrb[12].mxu0  ;;  %vm3792_vm0 = vmand %vm1734_vm8, %vm1735_vm9 }
 0x11a   : > { %v1371_v12 = vmax.f32 %v1369_v59, %v1370_v4  ;;  %v1507_v13 = vmax.f32 %v1505_v60, %v1506_v5  ;;  %v1642_v14 = vmax.f32 %v1640_v61, %v1641_v6  ;;  %v1777_v17 = vmax.f32 %v1774_v7, %v1776_v8  ;;  %v3767_v24 = vpop.f32.mrb[12].mxu1  ;;  %v3769_v25 = vpop.f32.mrb[13].mxu0  ;;  %vm3828_vm9 = vmand %vm2029_vm10, %vm2030_vm11 }
 0x11b   : > { %v1934_v20 = vrot.slane %v1933_v9, 4  ;;  %v2069_v21 = vrot.slane %v2068_v10, 4  ;;  %v2203_v22 = vrot.slane %v2202_v11, 4  ;;  %v3771_v30 = vpop.f32.mrb[13].mxu1  ;;  %v3773_v32 = vpop.f32.mrb[14].mxu0  ;;  %v1320_v56 = vmax.f32 %v1224_v33, %v3765_v23  ;;  %vm3847_vm11 = vmand %vm1463_vm6, %vm1599_vm14 }
 0x11c   : > { %v1372_v26 = vrot.slane %v1371_v12, 1  ;;  %v1508_v27 = vrot.slane %v1507_v13, 1  ;;  %v1643_v28 = vrot.slane %v1642_v14, 1  ;;  %v1778_v29 = vrot.slane %v1777_v17, 4  ;;  %v3775_v37 = vpop.f32.mrb[14].mxu1  ;;  %v3777_v38 = vpop.f32.mrb[15].mxu0 }
 0x11d   : > { %v1935_v34 = vmax.f32 %v1933_v9, %v1934_v20  ;;  %v2070_v35 = vmax.f32 %v2068_v10, %v2069_v21  ;;  %v2204_v36 = vmax.f32 %v2202_v11, %v2203_v22  ;;  %v3788_v46 = vpop.f32.mrb[15].mxu1  ;;  %v2337_v60 = vsel %vm5279_vm5, %v3738_v0, -inf  ;;  %v1273_v10 = vld [vmem:[#allocation2 + $0x58] sm:$0x3] }
 0x11e   : > { %v1373_v39 = vmax.f32 %v1371_v12, %v1372_v26  ;;  %v3786_v42 = vmax.f32 %v1507_v13, %v1508_v27  ;;  %v1644_v43 = vmax.f32 %v1642_v14, %v1643_v28  ;;  %v1779_v44 = vmax.f32 %v1777_v17, %v1778_v29 }
 0x11f   : > { %v1936_v51 = vrot.slane %v1935_v34, 2  ;;  %v2071_v52 = vrot.slane %v2070_v35, 2  ;;  %v2205_v55 = vrot.slane %v2204_v36, 2  ;;  %v2338_v0 = vsel %vm1463_vm6, %v1320_v56, -inf }
 0x120   : > { %v1451_v57 = vpack.c.bf16 %v1373_v39, %v1373_v39  ;;  %v1722_v58 = vpack.c.bf16 %v1644_v43, %v1644_v43  ;;  %v1780_v59 = vrot.slane %v1779_v44, 2  ;;  %v1587_v61 = vpack.c.bf16 %v3786_v42, %v3786_v42 }
 0x121   : > { %v1937_v1 = vmax.f32 %v1935_v34, %v1936_v51  ;;  %v2072_v2 = vmax.f32 %v2070_v35, %v2071_v52  ;;  %v2206_v4 = vmax.f32 %v2204_v36, %v2205_v55  ;;  %v3802_v5 = vpop.f32.mrb[16].mxu0  ;;  %v3804_v6 = vpop.f32.mrb[16].mxu1  ;;  %v2339_v16 = vmax.f32 %v2337_v60, %v2338_v0  ;;  %v2032_v34 = vld [vmem:[%s3761_s14] sm:$0x4] }
 0x122   : > { %v1467_v7 = vsel %vm3781_vm1, %v1451_v57, %v1466_v41  ;;  %v1738_v8 = vsel %vm3792_vm0, %v1722_v58, %v1737_v50  ;;  %v1781_v9 = vmax.f32 %v1779_v44, %v1780_v59  ;;  %v3811_v11 = vpop.f32.mrb[17].mxu0  ;;  %v3813_v12 = vpop.f32.mrb[17].mxu1  ;;  %v2495_v21 = vsel %vm1366_vm2, %v1320_v56, -inf  ;;  %v2301_v50 = vld [vmem:[%s3761_s14] sm:$0x8] }
 0x123   : > { %1468 = vst [vmem:[%s3761_s14] sm:$0x1] %v1467_v7  ;;  %1739 = vst [vmem:[%s3761_s14] sm:$0x2] %v1738_v8  ;;  %v1938_v13 = vrot.slane %v1937_v1, 1  ;;  %v2073_v14 = vrot.slane %v2072_v2, 1  ;;  %v2207_v15 = vrot.slane %v2206_v4, 1  ;;  %v3817_v17 = vpop.f32.mrb[18].mxu0  ;;  %v1321_v36 = vmax.f32 %v1225_v19, %v1273_v10 }
 0x124   : > { %v1782_v20 = vrot.slane %v1781_v9, 1  ;;  %v2627_v22 = vsel %vm5277_vm3, %v1320_v56, -inf  ;;  %v2759_v26 = vsel %vm5278_vm4, %v1320_v56, -inf  ;;  %v3822_v27 = vpop.f32.mrb[18].mxu1  ;;  %v3824_v28 = vpop.f32.mrb[19].mxu0  ;;  %v2340_v39 = vrot.slane %v2339_v16, 4  ;;  %vm3840_vm4 = vmand %vm2298_vm12, %vm2299_vm13 }
 0x125   : > { %v1939_v29 = vmax.f32 %v1937_v1, %v1938_v13  ;;  %v2208_v35 = vmax.f32 %v2206_v4, %v2207_v15  ;;  %vm2457_vm3 = vsmask.f32 7950  ;;  %v3836_v41 = vpop.f32.mrb[19].mxu1  ;;  %v2496_v51 = vrot.slane %v2495_v21, 4  ;;  %vm3857_vm13 = vmand %vm1734_vm8, %vm1895_vm15 }
 0x126   : > { %v1783_v43 = vmax.f32 %v1781_v9, %v1782_v20  ;;  %v2628_v52 = vrot.slane %v2627_v22, 4  ;;  %v2760_v55 = vrot.slane %v2759_v26, 4  ;;  %v3853_v57 = vmax.f32 %v2072_v2, %v2073_v14  ;;  %v3861_v9 = vld [vmem:[#allocation2 + $0x1e0] sm:$0xff]  ;;  %v3868_v14 = vld [vmem:[#allocation2 + $0x70] sm:$0xff]  ;;  %vm3914_vm8 = vmand %vm2029_vm10, %vm2164_vm7 }
 0x127   : > { %v2017_v19 = vpack.c.bf16 %v1939_v29, %v1939_v29  ;;  %v2286_v58 = vpack.c.bf16 %v2208_v35, %v2208_v35  ;;  %v2341_v59 = vmax.f32 %v2339_v16, %v2340_v39  ;;  %v2497_v4 = vmax.f32 %v2495_v21, %v2496_v51  ;;  %v3883_v29 = vld [vmem:[#allocation2 + $0x1c0] sm:$0xff]  ;;  %vm3922_vm14 = vmand %vm2298_vm12, %vm2457_vm3 }
 0x128   : > { %v1883_v60 = vpack.c.bf16 %v1783_v43, %v1783_v43  ;;  %v2629_v7 = vmax.f32 %v2627_v22, %v2628_v52  ;;  %v2761_v8 = vmax.f32 %v2759_v26, %v2760_v55  ;;  %v2891_v13 = vsel %vm5279_vm5, %v1320_v56, -inf }
 0x129   : > { %v2033_v2 = vsel %vm3828_vm9, %v2017_v19, %v2032_v34  ;;  %v2302_v10 = vsel %vm3840_vm4, %v2286_v58, %v2301_v50  ;;  %v2342_v0 = vrot.slane %v2341_v59, 2  ;;  %v2498_v21 = vrot.slane %v2497_v4, 2  ;;  %v3887_v43 = vpop.f32.mrb[20].mxu0  ;;  %v3889_v50 = vpop.f32.mrb[20].mxu1 }
 0x12a   : > { %v1601_v15 = vld [vmem:[%s3761_s14] sm:$0x1]  ;;  %v1897_v20 = vld [vmem:[%s3761_s14] sm:$0x2]  ;;  %2034 = vst [vmem:[%s3761_s14] sm:$0x4] %v2033_v2  ;;  %2303 = vst [vmem:[%s3761_s14] sm:$0x8] %v2302_v10  ;;  %v609_v26 = vadd.f32 %v3721_v47, %v3679_v45  ;;  %v2152_v42 = vpack.c.bf16 %v3853_v57, %v3853_v57 }
 0x12b   : > { %v2630_v22 = vrot.slane %v2629_v7, 2  ;;  %v1602_v56 = vsel %vm3847_vm11, %v1587_v61, %v1601_v15  ;;  %v1898_v34 = vsel %vm3857_vm13, %v1883_v60, %v1897_v20  ;;  %v2343_v35 = vmax.f32 %v2341_v59, %v2342_v0  ;;  %v3898_v52 = vpop.f32.mrb[21].mxu0  ;;  %v3900_v55 = vpop.f32.mrb[21].mxu1  ;;  %v3902_v60 = vld [vmem:[#allocation2 + $0x78] sm:$0x3] }
 0x12c   : > { %v2762_v39 = vrot.slane %v2761_v8, 2  ;;  %1603 = vst [vmem:[%s3761_s14] sm:$0x1] %v1602_v56  ;;  %1899 = vst [vmem:[%s3761_s14] sm:$0x2] %v1898_v34  ;;  %v2499_v61 = vmax.f32 %v2497_v4, %v2498_v21  ;;  %v2892_v51 = vsel %vm1463_vm6, %v1321_v36, -inf  ;;  %v3906_v10 = vpop.f32.mrb[22].mxu0  ;;  %v3908_v0 = vpop.f32.mrb[22].mxu1  ;;  %v753_v15 = vadd.f32 %v3723_v48, %v3679_v45 }
 0x12d   : > { %v2344_v19 = vrot.slane %v2343_v35, 1  ;;  %v2893_v59 = vmax.f32 %v2891_v13, %v2892_v51  ;;  %5292 = vst [vmem:[#allocation3_spill] sm:$0xff] %v3908_v0  ;;  %v2631_v4 = vmax.f32 %v2629_v7, %v2630_v22  ;;  %v863_v36 = vmax.f32 %v609_v26, 0.0  ;;  %v1133_v13 = vld [vmem:[#allocation2 + $0x58] sm:$0x3] }
 0x12e   : > { %v2763_v58 = vmax.f32 %v2761_v8, %v2762_v39  ;;  %v2500_v57 = vrot.slane %v2499_v61, 1  ;;  %v601_v34 = vadd.f32 %v3679_v45, %v3725_v53  ;;  %v2591_v22 = vld [vmem:[%s3761_s14 + $0x4] sm:$0x1]  ;;  %v1229_v26 = vmax.f32 %v1133_v13, %v3902_v60  ;;  %v2855_v60 = vld [vmem:[%s3761_s14 + $0x4] sm:$0x2] }
 0x12f   : > { %v2345_v20 = vmax.f32 %v2343_v35, %v2344_v19  ;;  %v2894_v56 = vrot.slane %v2893_v59, 4  ;;  %vm5297_vm10 = vcmask 523264   ;;  %v899_v35 = vmax.f32 %v753_v15, 0.0 }
 0x130   : > { %v2764_v21 = vrot.slane %v2763_v58, 1  ;;  %v2501_v48 = vmax.f32 %v2499_v61, %v2500_v57  ;;  %1045 = vst.msk [vmem:[#allocation2 + $0x91] sm:$0xff] %vm5297_vm10, %v863_v36  ;;  %v745_v39 = vadd.f32 %v3679_v45, %v3727_v54  ;;  %v861_v2 = vmax.f32 %v601_v34, 0.0  ;;  %vm5298_vm3 = vmmov %vm5297_vm10 }
 0x131   : > { %v2166_v51 = vld [vmem:[%s3761_s14] sm:$0x4]  ;;  %v2445_v53 = vpack.c.bf16 %v2345_v20, %v2345_v20  ;;  %v2459_v19 = vld [vmem:[%s3761_s14] sm:$0x8]  ;;  %v2895_v16 = vmax.f32 %v2893_v59, %v2894_v56  ;;  %v2632_v0 = vrot.slane %v2631_v4, 1  ;;  %1093 = vst.msk [vmem:[#allocation2 + $0x211] sm:$0xff] %vm5298_vm3, %v899_v35  ;;  %vm5299_vm12 = vmmov %vm5298_vm3  ;;  %v766_v20 = vadd.f32 %v3767_v24, %v3679_v45 }
 0x132   : > { %v2765_v47 = vmax.f32 %v2763_v58, %v2764_v21  ;;  %v2167_v61 = vsel %vm3914_vm8, %v2152_v42, %v2166_v51  ;;  %v2579_v57 = vpack.c.bf16 %v2501_v48, %v2501_v48  ;;  %v897_v36 = vmax.f32 %v745_v39, 0.0  ;;  %1043 = vst.msk [vmem:[#allocation2 + $0x81] sm:$0xff] %vm5299_vm12, %v861_v2  ;;  %v1204_v59 = vld [vmem:[#allocation2 + $0x1f0] sm:$0xff]  ;;  %vm5300_vm15 = vmmov %vm5298_vm3  ;;  %v3953_v21 = vld [vmem:[#allocation2 + $0x1c8] sm:$0xff] }
 0x133   : > { %2168 = vst [vmem:[%s3761_s14] sm:$0x4] %v2167_v61  ;;  %v2460_v54 = vsel %vm3922_vm14, %v2445_v53, %v2459_v19  ;;  %v2896_v13 = vrot.slane %v2895_v16, 2  ;;  %v622_v58 = vadd.f32 %v3754_v18, %v3679_v45  ;;  %v758_v2 = vadd.f32 %v3679_v45, %v3771_v30  ;;  %v3962_v24 = vld [vmem:[#allocation2 + $0x1e8] sm:$0xff]  ;;  %v1205_v61 = vld [vmem:[#allocation2 + $0x1f8] sm:$0x3]  ;;  %vm5301_vm7 = vmmov %vm5298_vm3 }
 0x134   : > { %v2843_v15 = vpack.c.bf16 %v2765_v47, %v2765_v47  ;;  %2461 = vst [vmem:[%s3761_s14] sm:$0x8] %v2460_v54  ;;  %v2592_v42 = vsel %vm3781_vm1, %v2579_v57, %v2591_v22  ;;  %1091 = vst.msk [vmem:[#allocation2 + $0x201] sm:$0xff] %vm5300_vm15, %v897_v36  ;;  %v614_v47 = vadd.f32 %v3679_v45, %v3769_v25  ;;  %v3960_v22 = vld [vmem:[#allocation2 + $0x68] sm:$0xff]  ;;  %v1156_v25 = vld [vmem:[#allocation2 + $0x1d0] sm:$0xff]  ;;  %v902_v35 = vmax.f32 %v766_v20, 0.0 }
 0x135   : > { %2593 = vst [vmem:[%s3761_s14 + $0x4] sm:$0x1] %v2592_v42  ;;  %v2897_v56 = vmax.f32 %v2895_v16, %v2896_v13  ;;  %v866_v34 = vmax.f32 %v622_v58, 0.0  ;;  %v625_v48 = vadd.f32 %v3773_v32, %v3679_v45  ;;  %v900_v30 = vmax.f32 %v758_v2, 0.0  ;;  %vm5303_vm10 = vmmov %vm5298_vm3  ;;  %v1157_v13 = vld [vmem:[#allocation2 + $0x1d8] sm:$0x3] }
 0x136   : > { %v2856_v18 = vsel %vm3792_vm0, %v2843_v15, %v2855_v60  ;;  %v864_v39 = vmax.f32 %v614_v47, 0.0  ;;  %v769_v51 = vadd.f32 %v3775_v37, %v3679_v45  ;;  %v2633_v53 = vmax.f32 %v2631_v4, %v2632_v0  ;;  %1097 = vst.msk [vmem:[#allocation2 + $0x231] sm:$0xff] %vm5303_vm10, %v902_v35  ;;  %vm5304_vm12 = vmmov %vm5298_vm3 }
 0x137   : > { %2857 = vst [vmem:[%s3761_s14 + $0x4] sm:$0x2] %v2856_v18  ;;  %v2898_v19 = vrot.slane %v2897_v56, 1  ;;  %v1252_v16 = vmax.f32 %v1156_v25, %v1204_v59  ;;  %v3967_v57 = vld [vmem:[#allocation2 + $0x90] sm:$0xff]  ;;  %v1277_v60 = vld [vmem:[#allocation2 + $0x98] sm:$0x3]  ;;  %v617_v32 = vadd.f32 %v3679_v45, %v3777_v38  ;;  %v5302_v36 = vmax.f32 %v3765_v23, %v3868_v14  ;;  %vm5307_vm10 = vmmov %vm5298_vm3 }
 0x138   : > { %1049 = vst.msk [vmem:[#allocation2 + $0xb1] sm:$0xff] %vm5301_vm7, %v866_v34  ;;  %v1325_v15 = vmax.f32 %v1229_v26, %v1277_v60  ;;  %v867_v37 = vmax.f32 %v625_v48, 0.0  ;;  %v903_v0 = vmax.f32 %v769_v51, 0.0  ;;  %v3985_v23 = vld [vmem:[#allocation2 + $0x210] sm:$0xff]  ;;  %v1253_v26 = vmax.f32 %v1157_v13, %v1205_v61  ;;  %v3996_v34 = vpop.f32.mrb[23].mxu0 }
 0x139   : > { %v3976_v54 = vmax.f32 %v5302_v36, %v3967_v57  ;;  %1047 = vst.msk [vmem:[#allocation2 + $0xa1] sm:$0xff] %vm5298_vm3, %v864_v39  ;;  %v2899_v38 = vmax.f32 %v2897_v56, %v2898_v19  ;;  %v865_v14 = vmax.f32 %v617_v32, 0.0  ;;  %vm5305_vm15 = vcmask 520194   ;;  %v1301_v56 = vld [vmem:[#allocation2 + $0x218] sm:$0x3]  ;;  %5309 = vst [vmem:[#allocation4_spill] sm:$0xff] %v3996_v34 }
 0x13a   : > { %1095 = vst.msk [vmem:[#allocation2 + $0x221] sm:$0xff] %vm5304_vm12, %v900_v30  ;;  %vm5306_vm7 = vcmask 522244   ;;  %v2711_v20 = vpack.c.bf16 %v2633_v53, %v2633_v53  ;;  %vm5308_vm12 = vmmov %vm5298_vm3  ;;  %v2901_v39 = vsel %vm1463_vm6, %v1325_v15, -inf  ;;  %v4003_v30 = vmax.f32 %v1252_v16, %v3985_v23 }
 0x13b   : > { %v2502_v58 = vsel %vm1366_vm2, %v3976_v54, -inf  ;;  %v2634_v42 = vsel %vm5305_vm15, %v3976_v54, -inf  ;;  %v2766_v59 = vsel %vm5306_vm7, %v3976_v54, -inf  ;;  %1051 = vst.msk [vmem:[#allocation2 + $0xc1] sm:$0xff] %vm5307_vm10, %v867_v37  ;;  %v2999_v25 = vpack.c.bf16 %v2899_v38, %v2899_v38  ;;  %vm5312_vm10 = vmmov %vm5305_vm15 }
 0x13c   : > { %1099 = vst.msk [vmem:[#allocation2 + $0x241] sm:$0xff] %vm5298_vm3, %v903_v0  ;;  %v2503_v47 = vrot.slane %v2502_v58, 4  ;;  %v2635_v2 = vrot.slane %v2634_v42, 4  ;;  %v2767_v18 = vrot.slane %v2766_v59, 4  ;;  %v2723_v48 = vld [vmem:[%s3761_s14 + $0x4] sm:$0x1]  ;;  %v1349_v37 = vmax.f32 %v1253_v26, %v1301_v56  ;;  %vm5313_vm3 = vmmov %vm5306_vm7 }
 0x13d   : > { %1048 = vst.msk [vmem:[#allocation2 + $0xa9] sm:$0xff] %vm5308_vm12, %v865_v14  ;;  %v2900_v35 = vsel %vm5279_vm5, %v3976_v54, -inf  ;;  %v2724_v51 = vsel %vm3847_vm11, %v2711_v20, %v2723_v48  ;;  %v2544_v0 = vsel %vm1366_vm2, %v4003_v30, -inf  ;;  %vm5316_vm12 = vmmov %vm5312_vm10 }
 0x13e   : > { %v3011_v53 = vld [vmem:[%s3761_s14 + $0x4] sm:$0x2]  ;;  %v2504_v19 = vmax.f32 %v2502_v58, %v2503_v47  ;;  %v2636_v61 = vmax.f32 %v2634_v42, %v2635_v2  ;;  %v2768_v60 = vmax.f32 %v2766_v59, %v2767_v18  ;;  %2725 = vst [vmem:[%s3761_s14 + $0x4] sm:$0x1] %v2724_v51  ;;  %v2902_v36 = vmax.f32 %v2900_v35, %v2901_v39 }
 0x13f   : > { %v3012_v32 = vsel %vm3857_vm13, %v2999_v25, %v3011_v53  ;;  %v2545_v13 = vrot.slane %v2544_v0, 4  ;;  %v2676_v58 = vsel %vm5305_vm15, %v4003_v30, -inf  ;;  %v2808_v42 = vsel %vm5306_vm7, %v4003_v30, -inf  ;;  %vm5317_vm15 = vmmov %vm5313_vm3 }
 0x140   : > { %3013 = vst [vmem:[%s3761_s14 + $0x4] sm:$0x2] %v3012_v32  ;;  %v2505_v15 = vrot.slane %v2504_v19, 2  ;;  %v2637_v16 = vrot.slane %v2636_v61, 2  ;;  %v2769_v38 = vrot.slane %v2768_v60, 2  ;;  %v2903_v14 = vrot.slane %v2902_v36, 4  ;;  %vm5318_vm7 = vmmov %vm5312_vm10 }
 0x141   : > { %v2954_v59 = vsel %vm5279_vm5, %v4003_v30, -inf  ;;  %v2546_v2 = vmax.f32 %v2544_v0, %v2545_v13  ;;  %v2677_v56 = vrot.slane %v2676_v58, 4  ;;  %v2809_v48 = vrot.slane %v2808_v42, 4 }
 0x142   : > { %v2506_v20 = vmax.f32 %v2504_v19, %v2505_v15  ;;  %v2638_v26 = vmax.f32 %v2636_v61, %v2637_v16  ;;  %v2770_v47 = vmax.f32 %v2768_v60, %v2769_v38  ;;  %v2904_v18 = vmax.f32 %v2902_v36, %v2903_v14  ;;  %v2594_v60 = vld [vmem:[%s3761_s14 + $0xc] sm:$0x1]  ;;  %v2858_v15 = vld [vmem:[%s3761_s14 + $0xc] sm:$0x2]  ;;  %v4027_v14 = vld [vmem:[#allocation2 + $0x80] sm:$0xff] }
 0x143   : > { %v2955_v25 = vsel %vm1463_vm6, %v1349_v37, -inf  ;;  %v2547_v53 = vrot.slane %v2546_v2, 2  ;;  %v2678_v45 = vmax.f32 %v2676_v58, %v2677_v56  ;;  %v2810_v4 = vmax.f32 %v2808_v42, %v2809_v48 }
 0x144   : > { %v2507_v35 = vrot.slane %v2506_v20, 1  ;;  %v2639_v39 = vrot.slane %v2638_v26, 1  ;;  %v2771_v51 = vrot.slane %v2770_v47, 1  ;;  %v2905_v32 = vrot.slane %v2904_v18, 2 }
 0x145   : > { %v2956_v34 = vmax.f32 %v2954_v59, %v2955_v25  ;;  %v4023_v19 = vsel %vm1463_vm6, %v3976_v54, -inf  ;;  %v2548_v0 = vmax.f32 %v2546_v2, %v2547_v53  ;;  %v2679_v38 = vrot.slane %v2678_v45, 2 }
 0x146   : > { %v2508_v61 = vmax.f32 %v2506_v20, %v2507_v35  ;;  %v2772_v36 = vmax.f32 %v2770_v47, %v2771_v51  ;;  %v2906_v16 = vmax.f32 %v2904_v18, %v2905_v32  ;;  %v2811_v37 = vrot.slane %v2810_v4, 2  ;;  %v4029_v47 = vld [vmem:[#allocation2 + $0x88] sm:$0xff] }
 0x147   : > { %v2957_v13 = vrot.slane %v2956_v34, 4  ;;  %v2640_v42 = vmax.f32 %v2638_v26, %v2639_v39  ;;  %v2549_v56 = vrot.slane %v2548_v0, 1  ;;  %v2680_v48 = vmax.f32 %v2678_v45, %v2679_v38 }
 0x148   : > { %v2580_v58 = vpack.c.bf16 %v2508_v61, %v2508_v61  ;;  %v2844_v59 = vpack.c.bf16 %v2772_v36, %v2772_v36  ;;  %v2907_v54 = vrot.slane %v2906_v16, 1  ;;  %v2812_v20 = vmax.f32 %v2810_v4, %v2811_v37  ;;  %v2612_v4 = vld [vmem:[%s3761_s14 + $0x3c] sm:$0x1]  ;;  %v2876_v37 = vld [vmem:[%s3761_s14 + $0x3c] sm:$0x2] }
 0x149   : > { %v2958_v25 = vmax.f32 %v2956_v34, %v2957_v13  ;;  %v2550_v35 = vmax.f32 %v2548_v0, %v2549_v56  ;;  %v5310_v51 = vmax.f32 %v3707_v31, %v3851_v3  ;;  %v2681_v34 = vrot.slane %v2680_v48, 1 }
 0x14a   : > { %v2595_v2 = vsel %vm3781_vm1, %v2580_v58, %v2594_v60  ;;  %v2859_v18 = vsel %vm3792_vm0, %v2844_v59, %v2858_v15  ;;  %v2908_v45 = vmax.f32 %v2906_v16, %v2907_v54  ;;  %v2813_v39 = vrot.slane %v2812_v20, 1 }
 0x14b   : > { %v1322_v26 = vmax.f32 %v5310_v51, %v4027_v14  ;;  %2596 = vst [vmem:[%s3761_s14 + $0xc] sm:$0x1] %v2595_v2  ;;  %2860 = vst [vmem:[%s3761_s14 + $0xc] sm:$0x2] %v2859_v18  ;;  %v2959_v53 = vrot.slane %v2958_v25, 2  ;;  %v2586_v32 = vpack.c.bf16 %v2550_v35, %v2550_v35  ;;  %v5311_v61 = vmax.f32 %v3732_v62, %v3960_v22  ;;  %v4062_v35 = vld [vmem:[#allocation2 + $0x208] sm:$0xff] }
 0x14c   : > { %v2712_v3 = vpack.c.bf16 %v2640_v42, %v2640_v42  ;;  %v2682_v0 = vmax.f32 %v2680_v48, %v2681_v34  ;;  %v2814_v15 = vmax.f32 %v2812_v20, %v2813_v39  ;;  %v3000_v56 = vpack.c.bf16 %v2908_v45, %v2908_v45  ;;  %v4055_v42 = vld [vmem:[#allocation2 + $0x200] sm:$0xff]  ;;  %v4057_v48 = vpop.f32.mrb[23].mxu1 }
 0x14d   : > { %v4046_v60 = vmax.f32 %v5311_v61, %v4029_v47  ;;  %v1374_v36 = vsel %vm1366_vm2, %v1322_v26, -inf  ;;  %v1510_v31 = vsel %vm5312_vm10, %v1322_v26, -inf  ;;  %v2960_v16 = vmax.f32 %v2958_v25, %v2959_v53  ;;  %vm5319_vm10 = vmmov %vm5313_vm3 }
 0x14e   : > { %v2613_v38 = vsel %vm3781_vm1, %v2586_v32, %v2612_v4  ;;  %v1375_v13 = vrot.slane %v1374_v36, 4  ;;  %v1511_v58 = vrot.slane %v1510_v31, 4  ;;  %v1645_v59 = vsel %vm5313_vm3, %v1322_v26, -inf  ;;  %vm5320_vm3 = vmmov %vm5318_vm7 }
 0x14f   : > { %2614 = vst [vmem:[%s3761_s14 + $0x3c] sm:$0x1] %v2613_v38  ;;  %v2850_v62 = vpack.c.bf16 %v2814_v15, %v2814_v15  ;;  %v2961_v22 = vrot.slane %v2960_v16, 1  ;;  %v1646_v54 = vrot.slane %v1645_v59, 4  ;;  %v1784_v2 = vsel %vm5279_vm5, %v1322_v26, -inf }
 0x150   : > { %v1376_v20 = vmax.f32 %v1374_v36, %v1375_v13  ;;  %v1512_v25 = vmax.f32 %v1510_v31, %v1511_v58  ;;  %v1785_v18 = vsel %vm1463_vm6, %v4046_v60, -inf  ;;  %v2718_v51 = vpack.c.bf16 %v2682_v0, %v2682_v0 }
 0x151   : > { %v2877_v45 = vsel %vm3792_vm0, %v2850_v62, %v2876_v37  ;;  %v1647_v4 = vmax.f32 %v1645_v59, %v1646_v54  ;;  %v1786_v34 = vmax.f32 %v1784_v2, %v1785_v18  ;;  %v2962_v32 = vmax.f32 %v2960_v16, %v2961_v22 }
 0x152   : > { %v2726_v39 = vld [vmem:[%s3761_s14 + $0xc] sm:$0x1]  ;;  %v3014_v53 = vld [vmem:[%s3761_s14 + $0xc] sm:$0x2]  ;;  %2878 = vst [vmem:[%s3761_s14 + $0x3c] sm:$0x2] %v2877_v45  ;;  %v5314_v26 = vmax.f32 %v3883_v29, %v3861_v9  ;;  %v5315_v16 = vmax.f32 %v3953_v21, %v3962_v24 }
 0x153   : > { %v1377_v61 = vrot.slane %v1376_v20, 2  ;;  %v1513_v36 = vrot.slane %v1512_v25, 2  ;;  %v2727_v0 = vsel %vm3847_vm11, %v2712_v3, %v2726_v39  ;;  %v3015_v15 = vsel %vm3857_vm13, %v3000_v56, %v3014_v53 }
 0x154   : > { %v4073_v31 = vmax.f32 %v5314_v26, %v4055_v42  ;;  %v1648_v38 = vrot.slane %v1647_v4, 2  ;;  %v4083_v37 = vmax.f32 %v5315_v16, %v4062_v35  ;;  %2728 = vst [vmem:[%s3761_s14 + $0xc] sm:$0x1] %v2727_v0  ;;  %3016 = vst [vmem:[%s3761_s14 + $0xc] sm:$0x2] %v3015_v15  ;;  %v1787_v29 = vrot.slane %v1786_v34, 4 }
 0x155   : > { %v1378_v13 = vmax.f32 %v1376_v20, %v1377_v61  ;;  %v1514_v9 = vmax.f32 %v1512_v25, %v1513_v36  ;;  %v1940_v58 = vsel %vm1366_vm2, %v4046_v60, -inf  ;;  %v2075_v56 = vsel %vm5316_vm12, %v4046_v60, -inf  ;;  %v1469_v26 = vld [vmem:[%s3761_s14 + $0x8] sm:$0x1]  ;;  %vm5321_vm12 = vmmov %vm5319_vm10 }
 0x156   : > { %v1649_v3 = vmax.f32 %v1647_v4, %v1648_v38  ;;  %v1941_v59 = vrot.slane %v1940_v58, 4  ;;  %v2209_v21 = vsel %vm5317_vm15, %v4046_v60, -inf  ;;  %v2744_v24 = vld [vmem:[%s3761_s14 + $0x3c] sm:$0x1]  ;;  %v1788_v54 = vmax.f32 %v1786_v34, %v1787_v29  ;;  %vm5324_vm15 = vmmov %vm5320_vm3 }
 0x157   : > { %v1379_v62 = vrot.slane %v1378_v13, 1  ;;  %v1515_v22 = vrot.slane %v1514_v9, 1  ;;  %v2076_v20 = vrot.slane %v2075_v56, 4  ;;  %v2745_v25 = vsel %vm3847_vm11, %v2718_v51, %v2744_v24 }
 0x158   : > { %v1650_v2 = vrot.slane %v1649_v3, 1  ;;  %v1942_v18 = vmax.f32 %v1940_v58, %v1941_v59  ;;  %v2210_v45 = vrot.slane %v2209_v21, 4  ;;  %2746 = vst [vmem:[%s3761_s14 + $0x3c] sm:$0x1] %v2745_v25  ;;  %v3006_v4 = vpack.c.bf16 %v2962_v32, %v2962_v32  ;;  %v1740_v58 = vld [vmem:[%s3761_s14 + $0x8] sm:$0x2] }
 0x159   : > { %v1380_v39 = vmax.f32 %v1378_v13, %v1379_v62  ;;  %v1789_v53 = vrot.slane %v1788_v54, 2  ;;  %v2077_v61 = vmax.f32 %v2075_v56, %v2076_v20  ;;  %v3032_v36 = vld [vmem:[%s3761_s14 + $0x3c] sm:$0x2]  ;;  %v2346_v34 = vsel %vm5279_vm5, %v4046_v60, -inf }
 0x15a   : > { %v1651_v0 = vmax.f32 %v1649_v3, %v1650_v2  ;;  %v1943_v15 = vrot.slane %v1942_v18, 2  ;;  %v2211_v38 = vmax.f32 %v2209_v21, %v2210_v45  ;;  %v3033_v51 = vsel %vm3857_vm13, %v3006_v4, %v3032_v36 }
 0x15b   : > { %v1452_v16 = vpack.c.bf16 %v1380_v39, %v1380_v39  ;;  %v1516_v29 = vmax.f32 %v1514_v9, %v1515_v22  ;;  %v1790_v32 = vmax.f32 %v1788_v54, %v1789_v53  ;;  %3034 = vst [vmem:[%s3761_s14 + $0x3c] sm:$0x2] %v3033_v51  ;;  %v2078_v56 = vrot.slane %v2077_v61, 2 }
 0x15c   : > { %v1723_v13 = vpack.c.bf16 %v1651_v0, %v1651_v0  ;;  %v1944_v59 = vmax.f32 %v1942_v18, %v1943_v15  ;;  %v2212_v24 = vrot.slane %v2211_v38, 2  ;;  %v2348_v62 = vmax.f32 %v2346_v34, %v4023_v19 }
 0x15d   : > { %v1470_v3 = vsel %vm3781_vm1, %v1452_v16, %v1469_v26  ;;  %v1791_v21 = vrot.slane %v1790_v32, 1  ;;  %v1416_v60 = vsel %vm1366_vm2, %v4073_v31, -inf  ;;  %v2079_v54 = vmax.f32 %v2077_v61, %v2078_v56  ;;  %v2035_v26 = vld [vmem:[%s3761_s14 + $0x8] sm:$0x4] }
 0x15e   : > { %1471 = vst [vmem:[%s3761_s14 + $0x8] sm:$0x1] %v1470_v3  ;;  %v1741_v9 = vsel %vm3792_vm0, %v1723_v13, %v1740_v58  ;;  %v1945_v22 = vrot.slane %v1944_v59, 1  ;;  %v2213_v20 = vmax.f32 %v2211_v38, %v2212_v24  ;;  %v2349_v2 = vrot.slane %v2348_v62, 4  ;;  %v2304_v58 = vld [vmem:[%s3761_s14 + $0x8] sm:$0x8] }
 0x15f   : > { %1742 = vst [vmem:[%s3761_s14 + $0x8] sm:$0x2] %v1741_v9  ;;  %v1792_v25 = vmax.f32 %v1790_v32, %v1791_v21  ;;  %v1417_v18 = vrot.slane %v1416_v60, 4  ;;  %v1552_v45 = vsel %vm5318_vm7, %v4073_v31, -inf  ;;  %v2080_v4 = vrot.slane %v2079_v54, 1  ;;  %vm5325_vm7 = vmmov %vm5319_vm10 }
 0x160   : > { %v1946_v19 = vmax.f32 %v1944_v59, %v1945_v22  ;;  %v2214_v39 = vrot.slane %v2213_v20, 1  ;;  %v1553_v53 = vrot.slane %v1552_v45, 4  ;;  %v1588_v36 = vpack.c.bf16 %v1516_v29, %v1516_v29 }
 0x161   : > { %v2350_v0 = vmax.f32 %v2348_v62, %v2349_v2  ;;  %v1418_v15 = vmax.f32 %v1416_v60, %v1417_v18  ;;  %v1687_v61 = vsel %vm5319_vm10, %v4073_v31, -inf  ;;  %v1884_v38 = vpack.c.bf16 %v1792_v25, %v1792_v25  ;;  %vm5326_vm10 = vmmov %vm5320_vm3 }
 0x162   : > { %v2018_v34 = vpack.c.bf16 %v1946_v19, %v1946_v19  ;;  %v2215_v51 = vmax.f32 %v2213_v20, %v2214_v39  ;;  %v1554_v16 = vmax.f32 %v1552_v45, %v1553_v53  ;;  %v1688_v59 = vrot.slane %v1687_v61, 4 }
 0x163   : > { %v2351_v32 = vrot.slane %v2350_v0, 2  ;;  %v1419_v13 = vrot.slane %v1418_v15, 2  ;;  %v1838_v29 = vsel %vm5279_vm5, %v4073_v31, -inf  ;;  %v2081_v24 = vmax.f32 %v2079_v54, %v2080_v4 }
 0x164   : > { %v2036_v56 = vsel %vm3828_vm9, %v2018_v34, %v2035_v26  ;;  %v2287_v3 = vpack.c.bf16 %v2215_v51, %v2215_v51  ;;  %v1555_v21 = vrot.slane %v1554_v16, 2  ;;  %v1689_v22 = vmax.f32 %v1687_v61, %v1688_v59 }
 0x165   : > { %v1604_v62 = vld [vmem:[%s3761_s14 + $0x8] sm:$0x1]  ;;  %2037 = vst [vmem:[%s3761_s14 + $0x8] sm:$0x4] %v2036_v56  ;;  %v2352_v60 = vmax.f32 %v2350_v0, %v2351_v32  ;;  %v1420_v9 = vmax.f32 %v1418_v15, %v1419_v13  ;;  %v1839_v20 = vsel %vm1463_vm6, %v4083_v37, -inf  ;;  %v2401_v53 = vsel %vm1463_vm6, %v4003_v30, -inf }
 0x166   : > { %v1605_v31 = vsel %vm3847_vm11, %v1588_v36, %v1604_v62  ;;  %v1900_v25 = vld [vmem:[%s3761_s14 + $0x8] sm:$0x2]  ;;  %v2305_v2 = vsel %vm3840_vm4, %v2287_v3, %v2304_v58  ;;  %v1556_v54 = vmax.f32 %v1554_v16, %v1555_v21  ;;  %v1840_v18 = vmax.f32 %v1838_v29, %v1839_v20  ;;  %v1487_v16 = vld [vmem:[%s3761_s14 + $0x38] sm:$0x1] }
 0x167   : > { %1606 = vst [vmem:[%s3761_s14 + $0x8] sm:$0x1] %v1605_v31  ;;  %v1901_v45 = vsel %vm3857_vm13, %v1884_v38, %v1900_v25  ;;  %2306 = vst [vmem:[%s3761_s14 + $0x8] sm:$0x8] %v2305_v2  ;;  %v2353_v19 = vrot.slane %v2352_v60, 1  ;;  %v1421_v4 = vrot.slane %v1420_v9, 1  ;;  %v2153_v51 = vpack.c.bf16 %v2081_v24, %v2081_v24 }
 0x168   : > { %v1690_v39 = vrot.slane %v1689_v22, 2  ;;  %1902 = vst [vmem:[%s3761_s14 + $0x8] sm:$0x2] %v1901_v45  ;;  %v1841_v36 = vrot.slane %v1840_v18, 4  ;;  %v1982_v26 = vsel %vm1366_vm2, %v4083_v37, -inf  ;;  %v2117_v0 = vsel %vm5320_vm3, %v4083_v37, -inf  ;;  %vm5329_vm3 = vmmov %vm5325_vm7 }
 0x169   : > { %v2354_v15 = vmax.f32 %v2352_v60, %v2353_v19  ;;  %v1422_v61 = vmax.f32 %v1420_v9, %v1421_v4  ;;  %v1983_v38 = vrot.slane %v1982_v26, 4  ;;  %v2118_v32 = vrot.slane %v2117_v0, 4  ;;  %v1758_v31 = vld [vmem:[%s3761_s14 + $0x38] sm:$0x2] }
 0x16a   : > { %v1691_v34 = vmax.f32 %v1689_v22, %v1690_v39  ;;  %v1842_v58 = vmax.f32 %v1840_v18, %v1841_v36  ;;  %v2251_v30 = vsel %vm5321_vm12, %v4083_v37, -inf  ;;  %v1557_v59 = vrot.slane %v1556_v54, 1  ;;  %v4158_v39 = vpop.f32.mrb[24].mxu0  ;;  %v4160_v36 = vpop.f32.mrb[24].mxu1 }
 0x16b   : > { %v1458_v13 = vpack.c.bf16 %v1422_v61, %v1422_v61  ;;  %v1984_v56 = vmax.f32 %v1982_v26, %v1983_v38  ;;  %v2446_v21 = vpack.c.bf16 %v2354_v15, %v2354_v15  ;;  %v2119_v60 = vmax.f32 %v2117_v0, %v2118_v32  ;;  %v4164_v38 = vpop.f32.mrb[25].mxu0 }
 0x16c   : > { %v1692_v29 = vrot.slane %v1691_v34, 1  ;;  %v2169_v3 = vld [vmem:[%s3761_s14 + $0x8] sm:$0x4]  ;;  %v1843_v62 = vrot.slane %v1842_v58, 2  ;;  %v2252_v9 = vrot.slane %v2251_v30, 4  ;;  %v2400_v4 = vsel %vm5279_vm5, %v4083_v37, -inf }
 0x16d   : > { %v2170_v24 = vsel %vm3914_vm8, %v2153_v51, %v2169_v3  ;;  %v1488_v22 = vsel %vm3781_vm1, %v1458_v13, %v1487_v16  ;;  %v1985_v25 = vrot.slane %v1984_v56, 2  ;;  %v2120_v45 = vrot.slane %v2119_v60, 2  ;;  %v4166_v51 = vpop.f32.mrb[25].mxu1  ;;  %v4169_v13 = vpop.f32.mrb[26].mxu0 }
 0x16e   : > { %v1693_v20 = vmax.f32 %v1691_v34, %v1692_v29  ;;  %2171 = vst [vmem:[%s3761_s14 + $0x8] sm:$0x4] %v2170_v24  ;;  %v2462_v2 = vld [vmem:[%s3761_s14 + $0x8] sm:$0x8]  ;;  %1489 = vst [vmem:[%s3761_s14 + $0x38] sm:$0x1] %v1488_v22  ;;  %v1844_v18 = vmax.f32 %v1842_v58, %v1843_v62  ;;  %v2253_v19 = vmax.f32 %v2251_v30, %v2252_v9 }
 0x16f   : > { %v2463_v26 = vsel %vm3922_vm14, %v2446_v21, %v2462_v2  ;;  %v1986_v15 = vmax.f32 %v1984_v56, %v1985_v25  ;;  %v2402_v61 = vmax.f32 %v2400_v4, %v2401_v53  ;;  %v1182_v34 = vld [vmem:[#allocation2 + $0xa0] sm:$0xff]  ;;  %v1558_v16 = vmax.f32 %v1556_v54, %v1557_v59  ;;  %v4175_v21 = vpop.f32.mrb[26].mxu1 }
 0x170   : > { %v1729_v0 = vpack.c.bf16 %v1693_v20, %v1693_v20  ;;  %2464 = vst [vmem:[%s3761_s14 + $0x8] sm:$0x8] %v2463_v26  ;;  %v1845_v58 = vrot.slane %v1844_v18, 1  ;;  %v2121_v37 = vmax.f32 %v2119_v60, %v2120_v45  ;;  %v2254_v32 = vrot.slane %v2253_v19, 2  ;;  %v1206_v30 = vld [vmem:[#allocation2 + $0x220] sm:$0xff] }
 0x171   : > { %v1987_v3 = vrot.slane %v1986_v15, 1  ;;  %v2403_v53 = vrot.slane %v2402_v61, 4  ;;  %v4173_v56 = vld [vmem:[#allocation2 + $0xc0] sm:$0xff]  ;;  %v1230_v59 = vmax.f32 %v4027_v14, %v1182_v34  ;;  %v1594_v2 = vpack.c.bf16 %v1558_v16, %v1558_v16  ;;  %v2053_v14 = vld [vmem:[%s3761_s14 + $0x38] sm:$0x4]  ;;  %v4208_v16 = vpop.f32.mrb[27].mxu0 }
 0x172   : > { %v1759_v29 = vsel %vm3792_vm0, %v1729_v0, %v1758_v31  ;;  %v1846_v62 = vmax.f32 %v1844_v18, %v1845_v58  ;;  %v2255_v54 = vmax.f32 %v2253_v19, %v2254_v32  ;;  %v1162_v60 = vld [vmem:[#allocation2 + $0x240] sm:$0xff]  ;;  %v1254_v31 = vmax.f32 %v4055_v42, %v1206_v30  ;;  %5322 = vst [vmem:[#allocation5_spill] sm:$0xff] %v4208_v16  ;;  %v4210_v58 = vpop.f32.mrb[27].mxu1  ;;  %v2322_v30 = vld [vmem:[%s3761_s14 + $0x38] sm:$0x8] }
 0x173   : > { %1760 = vst [vmem:[%s3761_s14 + $0x38] sm:$0x2] %v1759_v29  ;;  %v4182_v9 = vld [vmem:[%s5274_s2] ss:$0 sm:$0xff]  ;;  %v1988_v22 = vmax.f32 %v1986_v15, %v1987_v3  ;;  %v2404_v20 = vmax.f32 %v2402_v61, %v2403_v53  ;;  %v2122_v18 = vrot.slane %v2121_v37, 1  ;;  %v4195_v19 = vmax.f32 %v1230_v59, %v4173_v56  ;;  %5323 = vst [vmem:[#allocation6_spill] sm:$0xff] %v4210_v58 }
 0x174   : > { %v4186_v24 = vadd.f32 %v4182_v9, %v3788_v46  ;;  %v4191_v25 = vadd.f32 %v4182_v9, %v3802_v5  ;;  %v2256_v45 = vrot.slane %v2255_v54, 1  ;;  %v4198_v0 = vmax.f32 %v1254_v31, %v1162_v60 }
 0x175   : > { %v1622_v4 = vld [vmem:[%s3761_s14 + $0x38] sm:$0x1]  ;;  %v2024_v46 = vpack.c.bf16 %v1988_v22, %v1988_v22  ;;  %v2405_v26 = vrot.slane %v2404_v20, 2  ;;  %v4202_v42 = vadd.f32 %v4182_v9, %v3804_v6  ;;  %v1890_v15 = vpack.c.bf16 %v1846_v62, %v1846_v62 }
 0x176   : > { %v1623_v5 = vsel %vm3847_vm11, %v1594_v2, %v1622_v4  ;;  %v2257_v61 = vmax.f32 %v2255_v54, %v2256_v45  ;;  %v1381_v34 = vsel %vm1366_vm2, %v4195_v19, -inf  ;;  %v1517_v3 = vsel %vm5324_vm15, %v4195_v19, -inf }
 0x177   : > { %1624 = vst [vmem:[%s3761_s14 + $0x38] sm:$0x1] %v1623_v5  ;;  %v2054_v32 = vsel %vm3828_vm9, %v2024_v46, %v2053_v14  ;;  %v2406_v6 = vmax.f32 %v2404_v20, %v2405_v26  ;;  %v1382_v29 = vrot.slane %v1381_v34, 4  ;;  %v2123_v53 = vmax.f32 %v2121_v37, %v2122_v18 }
 0x178   : > { %2055 = vst [vmem:[%s3761_s14 + $0x38] sm:$0x4] %v2054_v32  ;;  %v2293_v62 = vpack.c.bf16 %v2257_v61, %v2257_v61  ;;  %v1518_v54 = vrot.slane %v1517_v3, 4  ;;  %v1652_v59 = vsel %vm5325_vm7, %v4195_v19, -inf  ;;  %v1423_v20 = vsel %vm1366_vm2, %v4198_v0, -inf  ;;  %v4232_v61 = vpop.f32.mrb[28].mxu0 }
 0x179   : > { %v2407_v22 = vrot.slane %v2406_v6, 1  ;;  %v1383_v31 = vmax.f32 %v1381_v34, %v1382_v29  ;;  %v1653_v2 = vrot.slane %v1652_v59, 4  ;;  %v1424_v37 = vrot.slane %v1423_v20, 4  ;;  %5327 = vst [vmem:[#allocation7_spill] sm:$0xff] %v4232_v61  ;;  %v4234_v34 = vpop.f32.mrb[28].mxu1 }
 0x17a   : > { %v1918_v60 = vld [vmem:[%s3761_s14 + $0x38] sm:$0x2]  ;;  %v2323_v45 = vsel %vm3840_vm4, %v2293_v62, %v2322_v30  ;;  %v1519_v4 = vmax.f32 %v1517_v3, %v1518_v54  ;;  %v1559_v5 = vsel %vm5326_vm10, %v4198_v0, -inf  ;;  %5328 = vst [vmem:[#allocation8_spill] sm:$0xff] %v4234_v34  ;;  %v1694_v30 = vsel %vm5329_vm3, %v4198_v0, -inf }
 0x17b   : > { %v1919_v14 = vsel %vm3857_vm13, %v1890_v15, %v1918_v60  ;;  %2324 = vst [vmem:[%s3761_s14 + $0x38] sm:$0x8] %v2323_v45  ;;  %v2408_v18 = vmax.f32 %v2406_v6, %v2407_v22  ;;  %v1384_v46 = vrot.slane %v1383_v31, 2  ;;  %v1654_v26 = vmax.f32 %v1652_v59, %v1653_v2  ;;  %v4241_v45 = vld [vmem:[#allocation2 + $0xb8] sm:$0x3] }
 0x17c   : > { %1920 = vst [vmem:[%s3761_s14 + $0x38] sm:$0x2] %v1919_v14  ;;  %v1520_v32 = vrot.slane %v1519_v4, 2  ;;  %v1425_v15 = vmax.f32 %v1423_v20, %v1424_v37  ;;  %v1560_v29 = vrot.slane %v1559_v5, 4  ;;  %v1695_v54 = vrot.slane %v1694_v30, 4 }
 0x17d   : > { %v1385_v3 = vmax.f32 %v1383_v31, %v1384_v46  ;;  %v1655_v62 = vrot.slane %v1654_v26, 2  ;;  %v630_v6 = vadd.f32 %v4182_v9, %v3811_v11  ;;  %v2159_v59 = vpack.c.bf16 %v2123_v53, %v2123_v53  ;;  %v4244_v46 = vld [vmem:[#allocation2 + $0x98] sm:$0x3] }
 0x17e   : > { %v2452_v60 = vpack.c.bf16 %v2408_v18, %v2408_v18  ;;  %v1426_v22 = vrot.slane %v1425_v15, 2  ;;  %v1561_v2 = vmax.f32 %v1559_v5, %v1560_v29  ;;  %v1696_v37 = vmax.f32 %v1694_v30, %v1695_v54  ;;  %v4249_v5 = vld [vmem:[#allocation2 + $0x238] sm:$0x3] }
 0x17f   : > { %v2187_v14 = vld [vmem:[%s3761_s14 + $0x38] sm:$0x4]  ;;  %v1386_v34 = vrot.slane %v1385_v3, 1  ;;  %v1656_v20 = vmax.f32 %v1654_v26, %v1655_v62  ;;  %v901_v31 = vmax.f32 %v4186_v24, 0.0  ;;  %v1521_v61 = vmax.f32 %v1519_v4, %v1520_v32  ;;  %v1472_v62 = vld [vmem:[%s3761_s14 + $0x10] sm:$0x1] }
 0x180   : > { %v2188_v11 = vsel %vm3914_vm8, %v2159_v59, %v2187_v14  ;;  %v1427_v53 = vmax.f32 %v1425_v15, %v1426_v22  ;;  %v1562_v18 = vrot.slane %v1561_v2, 2  ;;  %v1697_v16 = vrot.slane %v1696_v37, 2  ;;  %v4258_v54 = vld [vmem:[#allocation2 + $0x218] sm:$0x3] }
 0x181   : > { %2189 = vst [vmem:[%s3761_s14 + $0x38] sm:$0x4] %v2188_v11  ;;  %v1387_v29 = vmax.f32 %v1385_v3, %v1386_v34  ;;  %v1657_v58 = vrot.slane %v1656_v20, 1  ;;  %vm5330_vm12 = vcmask 523264   ;;  %v870_v26 = vmax.f32 %v4191_v25, 0.0 }
 0x182   : > { %1096 = vst.msk [vmem:[#allocation2 + $0x229] sm:$0xff] %vm5330_vm12, %v901_v31  ;;  %v2480_v24 = vld [vmem:[%s3761_s14 + $0x38] sm:$0x8]  ;;  %v1428_v4 = vrot.slane %v1427_v53, 1  ;;  %v1563_v32 = vmax.f32 %v1561_v2, %v1562_v18  ;;  %v906_v15 = vmax.f32 %v4202_v42, 0.0  ;;  %v1698_v25 = vmax.f32 %v1696_v37, %v1697_v16  ;;  %vm5331_vm15 = vmmov %vm5330_vm12  ;;  %v1183_v37 = vld [vmem:[#allocation2 + $0xa8] sm:$0xff] }
 0x183   : > { %v2481_v34 = vsel %vm3922_vm14, %v2452_v60, %v2480_v24  ;;  %v1453_v3 = vpack.c.bf16 %v1387_v29, %v1387_v29  ;;  %v1658_v59 = vmax.f32 %v1656_v20, %v1657_v58  ;;  %1055 = vst.msk [vmem:[#allocation2 + $0xe1] sm:$0xff] %vm5331_vm15, %v870_v26  ;;  %v1522_v14 = vrot.slane %v1521_v61, 1  ;;  %v1743_v2 = vld [vmem:[%s3761_s14 + $0x10] sm:$0x2]  ;;  %vm5332_vm7 = vmmov %vm5330_vm12  ;;  %v1490_v18 = vld [vmem:[%s3761_s14 + $0x40] sm:$0x1] }
 0x184   : > { %2482 = vst [vmem:[%s3761_s14 + $0x38] sm:$0x8] %v2481_v34  ;;  %v1429_v31 = vmax.f32 %v1427_v53, %v1428_v4  ;;  %1103 = vst.msk [vmem:[#allocation2 + $0x261] sm:$0xff] %vm5332_vm7, %v906_v15  ;;  %v868_v42 = vmax.f32 %v630_v6, 0.0  ;;  %v1699_v29 = vrot.slane %v1698_v25, 1  ;;  %v774_v16 = vadd.f32 %v4182_v9, %v3813_v12  ;;  %v4274_v53 = vld [vmem:[#allocation2 + $0xb0] sm:$0xff] }
 0x185   : > { %v1473_v11 = vsel %vm3781_vm1, %v1453_v3, %v1472_v62  ;;  %v1724_v60 = vpack.c.bf16 %v1658_v59, %v1658_v59  ;;  %v1564_v20 = vrot.slane %v1563_v32, 1  ;;  %vm5333_vm10 = vmmov %vm5332_vm7  ;;  %v641_v6 = vadd.f32 %v4182_v9, %v3817_v17  ;;  %v4281_v24 = vpop.f32.mrb[29].mxu0  ;;  %v1761_v59 = vld [vmem:[%s3761_s14 + $0x40] sm:$0x2] }
 0x186   : > { %1474 = vst [vmem:[%s3761_s14 + $0x10] sm:$0x1] %v1473_v11  ;;  %v1459_v58 = vpack.c.bf16 %v1429_v31, %v1429_v31  ;;  %1052 = vst.msk [vmem:[#allocation2 + $0xc9] sm:$0xff] %vm5333_vm10, %v868_v42  ;;  %v785_v26 = vadd.f32 %v4182_v9, %v3822_v27  ;;  %v1700_v62 = vmax.f32 %v1698_v25, %v1699_v29  ;;  %v904_v4 = vmax.f32 %v774_v16, 0.0 }
 0x187   : > { %v1744_v12 = vsel %vm3792_vm0, %v1724_v60, %v1743_v2  ;;  %v633_v15 = vadd.f32 %v4182_v9, %v3824_v28  ;;  %v1523_v34 = vmax.f32 %v1521_v61, %v1522_v14  ;;  %v871_v17 = vmax.f32 %v641_v6, 0.0  ;;  %vm5334_vm3 = vmmov %vm5332_vm7  ;;  %v4296_v28 = vpop.f32.mrb[29].mxu1 }
 0x188   : > { %1745 = vst [vmem:[%s3761_s14 + $0x10] sm:$0x2] %v1744_v12  ;;  %v1491_v3 = vsel %vm3781_vm1, %v1459_v58, %v1490_v18  ;;  %v907_v31 = vmax.f32 %v785_v26, 0.0  ;;  %v1730_v27 = vpack.c.bf16 %v1700_v62, %v1700_v62  ;;  %v1231_v42 = vmax.f32 %v4029_v47, %v1183_v37  ;;  %1100 = vst.msk [vmem:[#allocation2 + $0x249] sm:$0xff] %vm5334_vm3, %v904_v4  ;;  %v5338_v62 = vld [vmem:[#allocation3_spill] sm:$0xff]  ;;  %v4382_v2 = vpop.f32.mrb[30].mxu1 }
 0x189   : > { %1492 = vst [vmem:[%s3761_s14 + $0x40] sm:$0x1] %v1491_v3  ;;  %v869_v25 = vmax.f32 %v633_v15, 0.0  ;;  %vm5335_vm12 = vmmov %vm5334_vm3  ;;  %v777_v61 = vadd.f32 %v4182_v9, %v3836_v41  ;;  %v654_v47 = vadd.f32 %v4182_v9, %v3887_v43  ;;  %v798_v14 = vadd.f32 %v4182_v9, %v3889_v50  ;;  %v1207_v43 = vld [vmem:[#allocation2 + $0x228] sm:$0xff]  ;;  %v4316_v58 = vld [vmem:[#allocation2 + $0x230] sm:$0xff] }
 0x18a   : > { %1056 = vst.msk [vmem:[#allocation2 + $0xe9] sm:$0xff] %vm5335_vm12, %v871_v17  ;;  %vm5336_vm15 = vmmov %vm5334_vm3  ;;  %v646_v11 = vadd.f32 %v4182_v9, %v3898_v52  ;;  %v1565_v60 = vmax.f32 %v1563_v32, %v1564_v20  ;;  %v1762_v18 = vsel %vm3792_vm0, %v1730_v27, %v1761_v59  ;;  %v790_v29 = vadd.f32 %v4182_v9, %v3900_v55 }
 0x18b   : > { %1104 = vst.msk [vmem:[#allocation2 + $0x269] sm:$0xff] %vm5336_vm15, %v907_v31  ;;  %vm5337_vm7 = vmmov %vm5334_vm3  ;;  %v657_v41 = vadd.f32 %v4182_v9, %v3906_v10  ;;  %v1589_v16 = vpack.c.bf16 %v1523_v34, %v1523_v34  ;;  %v905_v50 = vmax.f32 %v777_v61, 0.0  ;;  %v874_v52 = vmax.f32 %v654_v47, 0.0 }
 0x18c   : > { %1053 = vst.msk [vmem:[#allocation2 + $0xd1] sm:$0xff] %vm5337_vm7, %v869_v25  ;;  %1763 = vst [vmem:[%s3761_s14 + $0x40] sm:$0x2] %v1762_v18  ;;  %v910_v32 = vmax.f32 %v798_v14, 0.0  ;;  %v872_v6 = vmax.f32 %v646_v11, 0.0  ;;  %v908_v26 = vmax.f32 %v790_v29, 0.0  ;;  %v801_v55 = vadd.f32 %v4182_v9, %v5338_v62 }
 0x18d   : > { %v1607_v20 = vld [vmem:[%s3761_s14 + $0x10] sm:$0x1]  ;;  %v4319_v37 = vld [vmem:[#allocation2 + $0xc8] sm:$0xff]  ;;  %v875_v12 = vmax.f32 %v657_v41, 0.0  ;;  %v1793_v4 = vsel %vm5279_vm5, %v4195_v19, -inf  ;;  %v1847_v15 = vsel %vm5279_vm5, %v4198_v0, -inf  ;;  %vm5339_vm10 = vmmov %vm5334_vm3  ;;  %v1595_v3 = vpack.c.bf16 %v1565_v60, %v1565_v60 }
 0x18e   : > { %v1608_v10 = vsel %vm3847_vm11, %v1589_v16, %v1607_v20  ;;  %v4330_v34 = vmax.f32 %v1231_v42, %v4319_v37  ;;  %1101 = vst.msk [vmem:[#allocation2 + $0x251] sm:$0xff] %vm5339_vm10, %v905_v50  ;;  %vm5340_vm12 = vmmov %vm5334_vm3  ;;  %v1255_v59 = vmax.f32 %v4062_v35, %v1207_v43  ;;  %v4339_v19 = vld [vmem:[#allocation2 + $0xe0] sm:$0xff]  ;;  %v911_v0 = vmax.f32 %v801_v55, 0.0  ;;  %v5346_v16 = vld [vmem:[#allocation4_spill] sm:$0xff] }
 0x18f   : > { %1060 = vst.msk [vmem:[#allocation2 + $0x109] sm:$0xff] %vm5334_vm3, %v874_v52  ;;  %1609 = vst [vmem:[%s3761_s14 + $0x10] sm:$0x1] %v1608_v10  ;;  %vm5344_vm10 = vcmask 520194   ;;  %v4355_v60 = vld [vmem:[#allocation2 + $0x248] sm:$0xff]  ;;  %v4366_v43 = vadd.f32 %v4182_v9, %v5346_v16  ;;  %v4370_v20 = vadd.f32 %v4182_v9, %v4057_v48 }
 0x190   : > { %1108 = vst.msk [vmem:[#allocation2 + $0x289] sm:$0xff] %vm5340_vm12, %v910_v32  ;;  %vm5341_vm15 = vmmov %vm5334_vm3  ;;  %v1625_v31 = vld [vmem:[%s3761_s14 + $0x40] sm:$0x1]  ;;  %v1794_v27 = vsel %vm1463_vm6, %v4330_v34, -inf  ;;  %v1947_v35 = vsel %vm1366_vm2, %v4330_v34, -inf  ;;  %v2082_v42 = vsel %vm5344_vm10, %v4330_v34, -inf  ;;  %v4362_v41 = vmax.f32 %v1255_v59, %v4355_v60 }
 0x191   : > { %1057 = vst.msk [vmem:[#allocation2 + $0xf1] sm:$0xff] %vm5341_vm15, %v872_v6  ;;  %vm5342_vm7 = vmmov %vm5334_vm3  ;;  %v1626_v61 = vsel %vm3847_vm11, %v1595_v3, %v1625_v31  ;;  %v1795_v47 = vmax.f32 %v1793_v4, %v1794_v27  ;;  %v1948_v14 = vrot.slane %v1947_v35, 4  ;;  %v2083_v11 = vrot.slane %v2082_v42, 4 }
 0x192   : > { %1105 = vst.msk [vmem:[#allocation2 + $0x271] sm:$0xff] %vm5342_vm7, %v908_v26  ;;  %vm5343_vm5 = vmmov %vm5334_vm3  ;;  %vm5345_vm3 = vcmask 522244   ;;  %v1848_v26 = vsel %vm1463_vm6, %v4362_v41, -inf  ;;  %vm5349_vm7 = vcmask 523270  }
 0x193   : > { %1061 = vst.msk [vmem:[#allocation2 + $0x111] sm:$0xff] %vm5343_vm5, %v875_v12  ;;  %v2216_v25 = vsel %vm5345_vm3, %v4330_v34, -inf  ;;  %1109 = vst.msk [vmem:[#allocation2 + $0x291] sm:$0xff] %vm5343_vm5, %v911_v0  ;;  %v1796_v50 = vrot.slane %v1795_v47, 4  ;;  %v1949_v52 = vmax.f32 %v1947_v35, %v1948_v14  ;;  %v2084_v32 = vmax.f32 %v2082_v42, %v2083_v11 }
 0x194   : > { %1627 = vst [vmem:[%s3761_s14 + $0x40] sm:$0x1] %v1626_v61  ;;  %v2217_v29 = vrot.slane %v2216_v25, 4  ;;  %v1989_v12 = vsel %vm1366_vm2, %v4362_v41, -inf  ;;  %vm5347_vm12 = vmmov %vm5344_vm10  ;;  %v1849_v3 = vmax.f32 %v1847_v15, %v1848_v26  ;;  %v4380_v15 = vpop.f32.mrb[30].mxu0 }
 0x195   : > { %v2124_v62 = vsel %vm5347_vm12, %v4362_v41, -inf  ;;  %v1797_v55 = vmax.f32 %v1795_v47, %v1796_v50  ;;  %v1950_v10 = vrot.slane %v1949_v52, 2  ;;  %v2085_v4 = vrot.slane %v2084_v32, 2  ;;  %vm5348_vm15 = vmmov %vm5345_vm3 }
 0x196   : > { %v2218_v6 = vmax.f32 %v2216_v25, %v2217_v29  ;;  %v1990_v0 = vrot.slane %v1989_v12, 4  ;;  %v2125_v31 = vrot.slane %v2124_v62, 4  ;;  %v2258_v48 = vsel %vm5348_vm15, %v4362_v41, -inf  ;;  %vm5350_vm10 = vmmov %vm5349_vm7 }
 0x197   : > { %v1798_v27 = vrot.slane %v1797_v55, 2  ;;  %v1951_v35 = vmax.f32 %v1949_v52, %v1950_v10  ;;  %v2086_v42 = vmax.f32 %v2084_v32, %v2085_v4  ;;  %v1850_v25 = vrot.slane %v1849_v3, 4  ;;  %vm5354_vm3 = vmmov %vm5347_vm12 }
 0x198   : > { %v2219_v59 = vrot.slane %v2218_v6, 2  ;;  %v1991_v14 = vmax.f32 %v1989_v12, %v1990_v0  ;;  %v2126_v11 = vmax.f32 %v2124_v62, %v2125_v31  ;;  %v2259_v29 = vrot.slane %v2258_v48, 4  ;;  %v2038_v62 = vld [vmem:[%s3761_s14 + $0x10] sm:$0x4]  ;;  %vm5355_vm5 = vmmov %vm5348_vm15 }
 0x199   : > { %v1799_v16 = vmax.f32 %v1797_v55, %v1798_v27  ;;  %v1952_v47 = vrot.slane %v1951_v35, 1  ;;  %v2087_v50 = vrot.slane %v2086_v42, 1  ;;  %v1851_v18 = vmax.f32 %v1849_v3, %v1850_v25  ;;  %v2307_v27 = vld [vmem:[%s3761_s14 + $0x10] sm:$0x8]  ;;  %vm5356_vm12 = vmmov %vm5349_vm7 }
 0x19a   : > { %v2220_v61 = vmax.f32 %v2218_v6, %v2219_v59  ;;  %v1992_v22 = vrot.slane %v1991_v14, 2  ;;  %v2127_v17 = vrot.slane %v2126_v11, 2  ;;  %v2260_v30 = vmax.f32 %v2258_v48, %v2259_v29  ;;  %v4387_v59 = vpop.f32.mrb[31].mxu0  ;;  %vm5357_vm15 = vmmov %vm5354_vm3 }
 0x19b   : > { %v1800_v52 = vrot.slane %v1799_v16, 1  ;;  %v1953_v32 = vmax.f32 %v1951_v35, %v1952_v47  ;;  %v4384_v6 = vmax.f32 %v2086_v42, %v2087_v50  ;;  %v1852_v12 = vrot.slane %v1851_v18, 2  ;;  %v1903_v35 = vld [vmem:[%s3761_s14 + $0x10] sm:$0x2]  ;;  %v1281_v47 = vld [vmem:[#allocation2 + $0xd8] sm:$0x3] }
 0x19c   : > { %v2221_v26 = vrot.slane %v2220_v61, 1  ;;  %v1993_v10 = vmax.f32 %v1991_v14, %v1992_v22  ;;  %v2128_v4 = vmax.f32 %v2126_v11, %v2127_v17  ;;  %v2261_v3 = vrot.slane %v2260_v30, 2  ;;  %v4397_v17 = vld [vmem:[#allocation2 + $0xd0] sm:$0xff]  ;;  %v4399_v14 = vpop.f32.mrb[31].mxu1 }
 0x19d   : > { %v1801_v0 = vmax.f32 %v1799_v16, %v1800_v52  ;;  %v2019_v31 = vpack.c.bf16 %v1953_v32, %v1953_v32  ;;  %v1853_v48 = vmax.f32 %v1851_v18, %v1852_v12  ;;  %v4392_v25 = vadd.f32 %v4182_v9, %v4158_v39 }
 0x19e   : > { %v2222_v55 = vmax.f32 %v2220_v61, %v2221_v26  ;;  %v2355_v29 = vsel %vm5349_vm7, %v4330_v34, -inf  ;;  %v1994_v61 = vrot.slane %v1993_v10, 1  ;;  %v2262_v22 = vmax.f32 %v2260_v30, %v2261_v3  ;;  %v4405_v34 = vld [vmem:[#allocation2 + $0x250] sm:$0xff]  ;;  %vm5359_vm7 = vmmov %vm5355_vm5 }
 0x19f   : > { %v1885_v11 = vpack.c.bf16 %v1801_v0, %v1801_v0  ;;  %v2039_v18 = vsel %vm3828_vm9, %v2019_v31, %v2038_v62  ;;  %v2154_v39 = vpack.c.bf16 %v4384_v6, %v4384_v6  ;;  %v1854_v16 = vrot.slane %v1853_v48, 1  ;;  %v2056_v62 = vld [vmem:[%s3761_s14 + $0x40] sm:$0x4] }
 0x1a0   : > { %v2288_v42 = vpack.c.bf16 %v2222_v55, %v2222_v55  ;;  %2040 = vst [vmem:[%s3761_s14 + $0x10] sm:$0x4] %v2039_v18  ;;  %v1995_v50 = vmax.f32 %v1993_v10, %v1994_v61  ;;  %v2129_v26 = vrot.slane %v2128_v4, 1  ;;  %v2263_v52 = vrot.slane %v2262_v22, 1  ;;  %v1921_v10 = vld [vmem:[%s3761_s14 + $0x40] sm:$0x2] }
 0x1a1   : > { %v1904_v32 = vsel %vm3857_vm13, %v1885_v11, %v1903_v35  ;;  %v1855_v12 = vmax.f32 %v1853_v48, %v1854_v16  ;;  %v2409_v6 = vsel %vm5350_vm10, %v4362_v41, -inf  ;;  %v5351_v55 = vmax.f32 %v3967_v57, %v4274_v53  ;;  %v2325_v61 = vld [vmem:[%s3761_s14 + $0x40] sm:$0x8] }
 0x1a2   : > { %v2308_v30 = vsel %vm3840_vm4, %v2288_v42, %v2307_v27  ;;  %1905 = vst [vmem:[%s3761_s14 + $0x10] sm:$0x2] %v1904_v32  ;;  %v2025_v0 = vpack.c.bf16 %v1995_v50, %v1995_v50  ;;  %v2264_v31 = vmax.f32 %v2262_v22, %v2263_v52  ;;  %v5352_v27 = vmax.f32 %v4244_v46, %v4241_v45 }
 0x1a3   : > { %2309 = vst [vmem:[%s3761_s14 + $0x10] sm:$0x8] %v2308_v30  ;;  %v1328_v3 = vmax.f32 %v5351_v55, %v4397_v17  ;;  %v5353_v48 = vmax.f32 %v3985_v23, %v4316_v58  ;;  %v1891_v42 = vpack.c.bf16 %v1855_v12, %v1855_v12 }
 0x1a4   : > { %v1329_v35 = vmax.f32 %v5352_v27, %v1281_v47  ;;  %v2057_v45 = vsel %vm3828_vm9, %v2025_v0, %v2056_v62  ;;  %v2294_v46 = vpack.c.bf16 %v2264_v31, %v2264_v31 }
 0x1a5   : > { %v4429_v41 = vmax.f32 %v5353_v48, %v4405_v34  ;;  %v2356_v57 = vsel %vm1463_vm6, %v1328_v3, -inf  ;;  %v2509_v53 = vsel %vm1366_vm2, %v1328_v3, -inf  ;;  %v2641_v22 = vsel %vm5354_vm3, %v1328_v3, -inf  ;;  %2058 = vst [vmem:[%s3761_s14 + $0x40] sm:$0x4] %v2057_v45 }
 0x1a6   : > { %v2357_v11 = vmax.f32 %v2355_v29, %v2356_v57  ;;  %v2510_v18 = vrot.slane %v2509_v53, 4  ;;  %v1922_v23 = vsel %vm3857_vm13, %v1891_v42, %v1921_v10  ;;  %v2642_v58 = vrot.slane %v2641_v22, 4 }
 0x1a7   : > { %v2773_v16 = vsel %vm5355_vm5, %v1328_v3, -inf  ;;  %v2909_v47 = vsel %vm5356_vm12, %v1328_v3, -inf  ;;  %1923 = vst [vmem:[%s3761_s14 + $0x40] sm:$0x2] %v1922_v23  ;;  %v2326_v30 = vsel %vm3840_vm4, %v2294_v46, %v2325_v61  ;;  %v2172_v12 = vld [vmem:[%s3761_s14 + $0x10] sm:$0x4]  ;;  %v2130_v29 = vmax.f32 %v2128_v4, %v2129_v26  ;;  %vm5360_vm12 = vmmov %vm5350_vm10 }
 0x1a8   : > { %v2358_v50 = vrot.slane %v2357_v11, 4  ;;  %v2511_v52 = vmax.f32 %v2509_v53, %v2510_v18  ;;  %v2774_v32 = vrot.slane %v2773_v16, 4  ;;  %2327 = vst [vmem:[%s3761_s14 + $0x40] sm:$0x8] %v2326_v30  ;;  %v2643_v62 = vmax.f32 %v2641_v22, %v2642_v58 }
 0x1a9   : > { %v2910_v55 = vsel %vm1463_vm6, %v1329_v35, -inf  ;;  %v2410_v10 = vsel %vm1463_vm6, %v4429_v41, -inf  ;;  %v2173_v3 = vsel %vm3914_vm8, %v2154_v39, %v2172_v12  ;;  %v2551_v4 = vsel %vm1366_vm2, %v4429_v41, -inf }
 0x1aa   : > { %v2359_v0 = vmax.f32 %v2357_v11, %v2358_v50  ;;  %v2512_v31 = vrot.slane %v2511_v52, 2  ;;  %v2775_v27 = vmax.f32 %v2773_v16, %v2774_v32  ;;  %2174 = vst [vmem:[%s3761_s14 + $0x10] sm:$0x4] %v2173_v3  ;;  %v2644_v48 = vrot.slane %v2643_v62, 2 }
 0x1ab   : > { %v2911_v42 = vmax.f32 %v2909_v47, %v2910_v55  ;;  %v2411_v61 = vmax.f32 %v2409_v6, %v2410_v10  ;;  %v2552_v53 = vrot.slane %v2551_v4, 4  ;;  %v2160_v22 = vpack.c.bf16 %v2130_v29, %v2130_v29  ;;  %v1305_v6 = vld [vmem:[#allocation2 + $0x258] sm:$0x3]  ;;  %v2597_v10 = vld [vmem:[%s3761_s14 + $0x14] sm:$0x1] }
 0x1ac   : > { %v2360_v26 = vrot.slane %v2359_v0, 2  ;;  %v2513_v57 = vmax.f32 %v2511_v52, %v2512_v31  ;;  %v2776_v35 = vrot.slane %v2775_v27, 2  ;;  %v2683_v39 = vsel %vm5357_vm15, %v4429_v41, -inf  ;;  %v2190_v11 = vld [vmem:[%s3761_s14 + $0x40] sm:$0x4]  ;;  %vm5361_vm15 = vmmov %vm5354_vm3 }
 0x1ad   : > { %v2912_v45 = vrot.slane %v2911_v42, 4  ;;  %v2412_v46 = vrot.slane %v2411_v61, 4  ;;  %v2553_v16 = vmax.f32 %v2551_v4, %v2552_v53  ;;  %v2191_v47 = vsel %vm3914_vm8, %v2160_v22, %v2190_v11  ;;  %v2861_v53 = vld [vmem:[%s3761_s14 + $0x14] sm:$0x2] }
 0x1ae   : > { %v2361_v18 = vmax.f32 %v2359_v0, %v2360_v26  ;;  %v2514_v23 = vrot.slane %v2513_v57, 1  ;;  %v2777_v58 = vmax.f32 %v2775_v27, %v2776_v35  ;;  %v2645_v30 = vmax.f32 %v2643_v62, %v2644_v48  ;;  %2192 = vst [vmem:[%s3761_s14 + $0x40] sm:$0x4] %v2191_v47  ;;  %v4472_v47 = vpop.f32.mrb[32].mxu0 }
 0x1af   : > { %v2913_v50 = vmax.f32 %v2911_v42, %v2912_v45  ;;  %v2413_v52 = vmax.f32 %v2411_v61, %v2412_v46  ;;  %v2554_v55 = vrot.slane %v2553_v16, 2  ;;  %v5358_v0 = vmax.f32 %v4258_v54, %v4249_v5  ;;  %v2465_v61 = vld [vmem:[%s3761_s14 + $0x10] sm:$0x8] }
 0x1b0   : > { %v2362_v32 = vrot.slane %v2361_v18, 1  ;;  %v2515_v12 = vmax.f32 %v2513_v57, %v2514_v23  ;;  %v2778_v29 = vrot.slane %v2777_v58, 1  ;;  %v2684_v4 = vrot.slane %v2683_v39, 4  ;;  %v1188_v23 = vld [vmem:[#allocation2 + $0xf0] sm:$0xff] }
 0x1b1   : > { %v2914_v3 = vrot.slane %v2913_v50, 2  ;;  %v1353_v31 = vmax.f32 %v5358_v0, %v1305_v6  ;;  %v2414_v27 = vrot.slane %v2413_v52, 2  ;;  %v2555_v42 = vmax.f32 %v2553_v16, %v2554_v55  ;;  %v4481_v55 = vpop.f32.mrb[33].mxu0 }
 0x1b2   : > { %v2363_v26 = vmax.f32 %v2361_v18, %v2362_v32  ;;  %v2581_v62 = vpack.c.bf16 %v2515_v12, %v2515_v12  ;;  %v2779_v48 = vmax.f32 %v2777_v58, %v2778_v29  ;;  %v2646_v35 = vrot.slane %v2645_v30, 1  ;;  %v2615_v12 = vld [vmem:[%s3761_s14 + $0x44] sm:$0x1] }
 0x1b3   : > { %v2915_v22 = vmax.f32 %v2913_v50, %v2914_v3  ;;  %v2415_v57 = vmax.f32 %v2413_v52, %v2414_v27  ;;  %v2685_v45 = vmax.f32 %v2683_v39, %v2684_v4  ;;  %v2556_v54 = vrot.slane %v2555_v42, 1  ;;  %v4474_v39 = vpop.f32.mrb[32].mxu1 }
 0x1b4   : > { %v2447_v46 = vpack.c.bf16 %v2363_v26, %v2363_v26  ;;  %v2598_v11 = vsel %vm3781_vm1, %v2581_v62, %v2597_v10  ;;  %v2845_v5 = vpack.c.bf16 %v2779_v48, %v2779_v48  ;;  %v2815_v16 = vsel %vm5359_vm7, %v4429_v41, -inf  ;;  %v4483_v10 = vpop.f32.mrb[33].mxu1  ;;  %v1189_v26 = vld [vmem:[#allocation2 + $0xf8] sm:$0x3]  ;;  %v1212_v62 = vld [vmem:[#allocation2 + $0x270] sm:$0xff]  ;;  %v4489_v48 = vpop.f32.mrb[34].mxu0  ;;  %vm5362_vm7 = vmmov %vm5355_vm5 }
 0x1b5   : > { %2599 = vst [vmem:[%s3761_s14 + $0x14] sm:$0x1] %v2598_v11  ;;  %v2916_v18 = vrot.slane %v2915_v22, 1  ;;  %v2416_v58 = vrot.slane %v2415_v57, 1  ;;  %v2686_v6 = vrot.slane %v2685_v45, 2  ;;  %v2557_v32 = vmax.f32 %v2555_v42, %v2556_v54 }
 0x1b6   : > { %v2466_v50 = vsel %vm3922_vm14, %v2447_v46, %v2465_v61  ;;  %v2862_v52 = vsel %vm3792_vm0, %v2845_v5, %v2861_v53  ;;  %v2816_v29 = vrot.slane %v2815_v16, 4  ;;  %v2647_v3 = vmax.f32 %v2645_v30, %v2646_v35  ;;  %v2483_v61 = vld [vmem:[%s3761_s14 + $0x40] sm:$0x8]  ;;  %v1141_v5 = vld [vmem:[#allocation2 + $0xd8] sm:$0x3] }
 0x1b7   : > { %2467 = vst [vmem:[%s3761_s14 + $0x10] sm:$0x8] %v2466_v50  ;;  %2863 = vst [vmem:[%s3761_s14 + $0x14] sm:$0x2] %v2862_v52  ;;  %v2417_v0 = vmax.f32 %v2415_v57, %v2416_v58  ;;  %v2687_v27 = vmax.f32 %v2685_v45, %v2686_v6  ;;  %v2963_v4 = vsel %vm5350_vm10, %v4429_v41, -inf  ;;  %v2587_v42 = vpack.c.bf16 %v2557_v32, %v2557_v32  ;;  %v1144_v41 = vld [vmem:[#allocation2 + $0x110] sm:$0xff] }
 0x1b8   : > { %v2817_v53 = vmax.f32 %v2815_v16, %v2816_v29  ;;  %v2964_v46 = vsel %vm1463_vm6, %v1353_v31, -inf  ;;  %v1236_v11 = vmax.f32 %v4397_v17, %v1188_v23  ;;  %v2917_v30 = vmax.f32 %v2915_v22, %v2916_v18  ;;  %v1285_v54 = vld [vmem:[#allocation2 + $0x118] sm:$0x3]  ;;  %v1168_v31 = vld [vmem:[#allocation2 + $0x290] sm:$0xff] }
 0x1b9   : > { %v2453_v35 = vpack.c.bf16 %v2417_v0, %v2417_v0  ;;  %v2688_v57 = vrot.slane %v2687_v27, 1  ;;  %v2965_v45 = vmax.f32 %v2963_v4, %v2964_v46  ;;  %v2616_v58 = vsel %vm3781_vm1, %v2587_v42, %v2615_v12 }
 0x1ba   : > { %v2818_v6 = vrot.slane %v2817_v53, 2  ;;  %v1237_v50 = vmax.f32 %v1141_v5, %v1189_v26  ;;  %v1260_v16 = vmax.f32 %v4405_v34, %v1212_v62  ;;  %v2713_v52 = vpack.c.bf16 %v2647_v3, %v2647_v3  ;;  %2617 = vst [vmem:[%s3761_s14 + $0x44] sm:$0x1] %v2616_v58  ;;  %v2879_v58 = vld [vmem:[%s3761_s14 + $0x44] sm:$0x2] }
 0x1bb   : > { %v2484_v17 = vsel %vm3922_vm14, %v2453_v35, %v2483_v61  ;;  %v2689_v22 = vmax.f32 %v2687_v27, %v2688_v57  ;;  %v2966_v23 = vrot.slane %v2965_v45, 4  ;;  %v4502_v29 = vmax.f32 %v1236_v11, %v1144_v41  ;;  %v1213_v11 = vld [vmem:[#allocation2 + $0x278] sm:$0x3] }
 0x1bc   : > { %v2729_v18 = vld [vmem:[%s3761_s14 + $0x14] sm:$0x1]  ;;  %2485 = vst [vmem:[%s3761_s14 + $0x40] sm:$0x8] %v2484_v17  ;;  %v2819_v32 = vmax.f32 %v2817_v53, %v2818_v6  ;;  %v1333_v12 = vmax.f32 %v1237_v50, %v1285_v54  ;;  %v4506_v0 = vadd.f32 %v4182_v9, %v4160_v36  ;;  %v3001_v3 = vpack.c.bf16 %v2917_v30, %v2917_v30  ;;  %v1165_v54 = vld [vmem:[#allocation2 + $0x258] sm:$0x3] }
 0x1bd   : > { %v2730_v34 = vsel %vm3847_vm11, %v2713_v52, %v2729_v18  ;;  %v2967_v4 = vmax.f32 %v2965_v45, %v2966_v23  ;;  %v4510_v26 = vmax.f32 %v1260_v16, %v1168_v31  ;;  %v2719_v62 = vpack.c.bf16 %v2689_v22, %v2689_v22 }
 0x1be   : > { %2731 = vst [vmem:[%s3761_s14 + $0x14] sm:$0x1] %v2730_v34  ;;  %v3017_v27 = vld [vmem:[%s3761_s14 + $0x14] sm:$0x2]  ;;  %v2820_v61 = vrot.slane %v2819_v32, 1  ;;  %v2516_v42 = vsel %vm1366_vm2, %v4502_v29, -inf  ;;  %v1261_v22 = vmax.f32 %v1165_v54, %v1213_v11 }
 0x1bf   : > { %v2648_v36 = vsel %vm5354_vm3, %v4502_v29, -inf  ;;  %v3018_v53 = vsel %vm3857_vm13, %v3001_v3, %v3017_v27  ;;  %v2968_v46 = vrot.slane %v2967_v4, 2  ;;  %v2517_v5 = vrot.slane %v2516_v42, 4  ;;  %v4532_v27 = vpop.f32.mrb[34].mxu1 }
 0x1c0   : > { %v2649_v30 = vrot.slane %v2648_v36, 4  ;;  %3019 = vst [vmem:[%s3761_s14 + $0x14] sm:$0x2] %v3018_v53  ;;  %v2821_v35 = vmax.f32 %v2819_v32, %v2820_v61  ;;  %v2780_v57 = vsel %vm5355_vm5, %v4502_v29, -inf  ;;  %v2918_v45 = vsel %vm5360_vm12, %v4502_v29, -inf }
 0x1c1   : > { %v2919_v41 = vsel %vm1463_vm6, %v1333_v12, -inf  ;;  %v2969_v6 = vmax.f32 %v2967_v4, %v2968_v46  ;;  %v2518_v50 = vmax.f32 %v2516_v42, %v2517_v5  ;;  %v2781_v31 = vrot.slane %v2780_v57, 4  ;;  %v2747_v52 = vld [vmem:[%s3761_s14 + $0x44] sm:$0x1] }
 0x1c2   : > { %v2650_v16 = vmax.f32 %v2648_v36, %v2649_v30  ;;  %v2851_v17 = vpack.c.bf16 %v2821_v35, %v2821_v35  ;;  %v2920_v23 = vmax.f32 %v2918_v45, %v2919_v41  ;;  %v2558_v18 = vsel %vm1366_vm2, %v4510_v26, -inf  ;;  %v1309_v36 = vld [vmem:[#allocation2 + $0x298] sm:$0x3] }
 0x1c3   : > { %v2748_v32 = vsel %vm3847_vm11, %v2719_v62, %v2747_v52  ;;  %v2970_v34 = vrot.slane %v2969_v6, 1  ;;  %v2519_v12 = vrot.slane %v2518_v50, 2  ;;  %v2782_v61 = vmax.f32 %v2780_v57, %v2781_v31 }
 0x1c4   : > { %v2651_v3 = vrot.slane %v2650_v16, 2  ;;  %2749 = vst [vmem:[%s3761_s14 + $0x44] sm:$0x1] %v2748_v32  ;;  %v2880_v4 = vsel %vm3792_vm0, %v2851_v17, %v2879_v58  ;;  %v2921_v42 = vrot.slane %v2920_v23, 4  ;;  %v2559_v53 = vrot.slane %v2558_v18, 4 }
 0x1c5   : > { %2881 = vst [vmem:[%s3761_s14 + $0x44] sm:$0x2] %v2880_v4  ;;  %v2971_v46 = vmax.f32 %v2969_v6, %v2970_v34  ;;  %v2520_v11 = vmax.f32 %v2518_v50, %v2519_v12  ;;  %v2690_v62 = vsel %vm5361_vm15, %v4510_v26, -inf  ;;  %v2783_v30 = vrot.slane %v2782_v61, 2 }
 0x1c6   : > { %v2652_v5 = vmax.f32 %v2650_v16, %v2651_v3  ;;  %v2922_v35 = vmax.f32 %v2920_v23, %v2921_v42  ;;  %v2560_v45 = vmax.f32 %v2558_v18, %v2559_v53  ;;  %v2691_v41 = vrot.slane %v2690_v62, 4  ;;  %v2600_v23 = vld [vmem:[%s3761_s14 + $0x1c] sm:$0x1] }
 0x1c7   : > { %v2521_v54 = vrot.slane %v2520_v11, 1  ;;  %v1357_v32 = vmax.f32 %v1261_v22, %v1309_v36  ;;  %v2822_v57 = vsel %vm5362_vm7, %v4510_v26, -inf  ;;  %v2784_v58 = vmax.f32 %v2782_v61, %v2783_v30 }
 0x1c8   : > { %v2653_v52 = vrot.slane %v2652_v5, 1  ;;  %v2923_v31 = vrot.slane %v2922_v35, 2  ;;  %v2561_v6 = vrot.slane %v2560_v45, 2  ;;  %v2692_v50 = vmax.f32 %v2690_v62, %v2691_v41 }
 0x1c9   : > { %v3007_v16 = vpack.c.bf16 %v2971_v46, %v2971_v46  ;;  %v2522_v17 = vmax.f32 %v2520_v11, %v2521_v54  ;;  %v2823_v34 = vrot.slane %v2822_v57, 4  ;;  %v2972_v12 = vsel %vm5350_vm10, %v4510_v26, -inf  ;;  %v4549_v54 = vpop.f32.mrb[35].mxu0 }
 0x1ca   : > { %v2785_v18 = vrot.slane %v2784_v58, 1  ;;  %v2924_v3 = vmax.f32 %v2922_v35, %v2923_v31  ;;  %v2562_v4 = vmax.f32 %v2560_v45, %v2561_v6  ;;  %v2693_v22 = vrot.slane %v2692_v50, 2  ;;  %v2864_v31 = vld [vmem:[%s3761_s14 + $0x1c] sm:$0x2] }
 0x1cb   : > { %v2582_v42 = vpack.c.bf16 %v2522_v17, %v2522_v17  ;;  %v4545_v61 = vmax.f32 %v2652_v5, %v2653_v52  ;;  %v2824_v36 = vmax.f32 %v2822_v57, %v2823_v34  ;;  %v2973_v53 = vsel %vm1463_vm6, %v1357_v32, -inf }
 0x1cc   : > { %v3035_v46 = vld [vmem:[%s3761_s14 + $0x44] sm:$0x2]  ;;  %v2786_v11 = vmax.f32 %v2784_v58, %v2785_v18  ;;  %v2925_v62 = vrot.slane %v2924_v3, 1  ;;  %v2563_v30 = vrot.slane %v2562_v4, 1  ;;  %v2694_v41 = vmax.f32 %v2692_v50, %v2693_v22  ;;  %v2618_v50 = vld [vmem:[%s3761_s14 + $0x4c] sm:$0x1] }
 0x1cd   : > { %v3036_v35 = vsel %vm3857_vm13, %v3007_v16, %v3035_v46  ;;  %v2601_v45 = vsel %vm3781_vm1, %v2582_v42, %v2600_v23  ;;  %v2825_v5 = vrot.slane %v2824_v36, 2  ;;  %v2974_v52 = vmax.f32 %v2972_v12, %v2973_v53 }
 0x1ce   : > { %3037 = vst [vmem:[%s3761_s14 + $0x44] sm:$0x2] %v3036_v35  ;;  %2602 = vst [vmem:[%s3761_s14 + $0x1c] sm:$0x1] %v2601_v45  ;;  %v2846_v32 = vpack.c.bf16 %v2786_v11, %v2786_v11  ;;  %v2564_v57 = vmax.f32 %v2562_v4, %v2563_v30  ;;  %v2695_v58 = vrot.slane %v2694_v41, 1  ;;  %v662_v6 = vadd.f32 %v4182_v9, %v4164_v38  ;;  %v5368_v35 = vld [vmem:[#allocation5_spill] sm:$0xff] }
 0x1cf   : > { %v2826_v17 = vmax.f32 %v2824_v36, %v2825_v5  ;;  %v2975_v34 = vrot.slane %v2974_v52, 4  ;;  %v873_v16 = vmax.f32 %v4366_v43, 0.0  ;;  %v909_v18 = vmax.f32 %v4370_v20, 0.0  ;;  %v2882_v30 = vld [vmem:[%s3761_s14 + $0x4c] sm:$0x2]  ;;  %v5370_v5 = vld [vmem:[#allocation7_spill] sm:$0xff] }
 0x1d0   : > { %v2714_v12 = vpack.c.bf16 %v4545_v61, %v4545_v61  ;;  %v2865_v23 = vsel %vm3792_vm0, %v2846_v32, %v2864_v31  ;;  %v2926_v22 = vmax.f32 %v2924_v3, %v2925_v62  ;;  %v2588_v4 = vpack.c.bf16 %v2564_v57, %v2564_v57  ;;  %v1187_v62 = vld [vmem:[#allocation2 + $0xe8] sm:$0xff]  ;;  %v5369_v31 = vld [vmem:[#allocation6_spill] sm:$0xff] }
 0x1d1   : > { %2866 = vst [vmem:[%s3761_s14 + $0x1c] sm:$0x2] %v2865_v23  ;;  %v2827_v42 = vrot.slane %v2826_v17, 1  ;;  %v2976_v53 = vmax.f32 %v2974_v52, %v2975_v34  ;;  %vm5363_vm3 = vcmask 523264   ;;  %v878_v38 = vmax.f32 %v4392_v25, 0.0  ;;  %v4601_v23 = vld [vmem:[#allocation2 + $0x268] sm:$0xff] }
 0x1d2   : > { %1059 = vst.msk [vmem:[#allocation2 + $0x101] sm:$0xff] %vm5363_vm3, %v873_v16  ;;  %vm5364_vm5 = vmmov %vm5363_vm3  ;;  %v914_v43 = vmax.f32 %v4506_v0, 0.0  ;;  %v2619_v20 = vsel %vm3781_vm1, %v2588_v4, %v2618_v50  ;;  %v2696_v61 = vmax.f32 %v2694_v41, %v2695_v58  ;;  %v876_v36 = vmax.f32 %v662_v6, 0.0 }
 0x1d3   : > { %1107 = vst.msk [vmem:[#allocation2 + $0x281] sm:$0xff] %vm5364_vm5, %v909_v18  ;;  %v806_v3 = vadd.f32 %v4182_v9, %v4166_v51  ;;  %2620 = vst [vmem:[%s3761_s14 + $0x4c] sm:$0x1] %v2619_v20  ;;  %v2828_v46 = vmax.f32 %v2826_v17, %v2827_v42  ;;  %v2977_v11 = vrot.slane %v2976_v53, 2  ;;  %v673_v25 = vadd.f32 %v4182_v9, %v4169_v13  ;;  %v4588_v51 = vld [vmem:[%s5274_s2] ss:$0 sm:$0xff] }
 0x1d4   : > { %vm5365_vm12 = vmmov %vm5363_vm3  ;;  %v817_v0 = vadd.f32 %v4182_v9, %v4175_v21  ;;  %v665_v45 = vadd.f32 %v4588_v51, %v5368_v35  ;;  %v809_v13 = vadd.f32 %v4588_v51, %v5369_v31  ;;  %v686_v21 = vadd.f32 %v4588_v51, %v5370_v5  ;;  %v1210_v9 = vld [vmem:[#allocation2 + $0x260] sm:$0xff] }
 0x1d5   : > { %1065 = vst.msk [vmem:[#allocation2 + $0x131] sm:$0xff] %vm5365_vm12, %v878_v38  ;;  %vm5366_vm15 = vmmov %vm5363_vm3  ;;  %v912_v41 = vmax.f32 %v806_v3, 0.0  ;;  %v2732_v52 = vld [vmem:[%s3761_s14 + $0x1c] sm:$0x1]  ;;  %v2852_v32 = vpack.c.bf16 %v2828_v46, %v2828_v46  ;;  %v2978_v57 = vmax.f32 %v2976_v53, %v2977_v11  ;;  %v879_v58 = vmax.f32 %v673_v25, 0.0 }
 0x1d6   : > { %1113 = vst.msk [vmem:[#allocation2 + $0x2b1] sm:$0xff] %vm5366_vm15, %v914_v43  ;;  %vm5367_vm7 = vmmov %vm5363_vm3  ;;  %v915_v6 = vmax.f32 %v817_v0, 0.0  ;;  %v2733_v50 = vsel %vm3847_vm11, %v2714_v12, %v2732_v52  ;;  %v877_v17 = vmax.f32 %v665_v45, 0.0  ;;  %v913_v34 = vmax.f32 %v809_v13, 0.0  ;;  %v3361_v12 = vld [vmem:[#allocation2 + $0x240] sm:$0xff] }
 0x1d7   : > { %1063 = vst.msk [vmem:[#allocation2 + $0x121] sm:$0xff] %vm5367_vm7, %v876_v36  ;;  %vm5371_vm10 = vmmov %vm5363_vm3  ;;  %v882_v16 = vmax.f32 %v686_v21, 0.0  ;;  %v1235_v18 = vmax.f32 %v4319_v37, %v1187_v62  ;;  %v3002_v4 = vpack.c.bf16 %v2926_v22, %v2926_v22  ;;  %v2883_v42 = vsel %vm3792_vm0, %v2852_v32, %v2882_v30 }
 0x1d8   : > { %1111 = vst.msk [vmem:[#allocation2 + $0x2a1] sm:$0xff] %vm5371_vm10, %v912_v41  ;;  %2734 = vst [vmem:[%s3761_s14 + $0x1c] sm:$0x1] %v2733_v50  ;;  %v2979_v53 = vrot.slane %v2978_v57, 1  ;;  %v1258_v38 = vmax.f32 %v3361_v12, %v1210_v9  ;;  %v3020_v43 = vld [vmem:[%s3761_s14 + $0x1c] sm:$0x2]  ;;  %v2720_v20 = vpack.c.bf16 %v2696_v61, %v2696_v61  ;;  %v5376_v61 = vmax.f32 %v4173_v56, %v4339_v19 }
 0x1d9   : > { %1067 = vst.msk [vmem:[#allocation2 + $0x141] sm:$0xff] %vm5363_vm3, %v879_v58  ;;  %vm5372_vm5 = vmmov %vm5363_vm3  ;;  %v4610_v37 = vld [vmem:[#allocation2 + $0x100] sm:$0xff]  ;;  %v4612_v36 = vld [vmem:[#allocation2 + $0x108] sm:$0xff]  ;;  %v3021_v22 = vsel %vm3857_vm13, %v3002_v4, %v3020_v43  ;;  %v1259_v0 = vmax.f32 %v4355_v60, %v4601_v23  ;;  %v2365_v62 = vsel %vm1463_vm6, %v4502_v29, -inf  ;;  %v4633_v30 = vsel %vm1463_vm6, %v4510_v26, -inf }
 0x1da   : > { %1115 = vst.msk [vmem:[#allocation2 + $0x2c1] sm:$0xff] %vm5372_vm5, %v915_v6  ;;  %2884 = vst [vmem:[%s3761_s14 + $0x4c] sm:$0x2] %v2883_v42  ;;  %v2980_v3 = vmax.f32 %v2978_v57, %v2979_v53  ;;  %v1330_v46 = vmax.f32 %v5376_v61, %v4610_v37  ;;  %v1331_v11 = vmax.f32 %v1235_v18, %v4612_v36  ;;  %v4624_v25 = vld [vmem:[#allocation2 + $0x280] sm:$0xff]  ;;  %v2750_v41 = vld [vmem:[%s3761_s14 + $0x4c] sm:$0x1] }
 0x1db   : > { %vm5373_vm12 = vmmov %vm5363_vm3  ;;  %3022 = vst [vmem:[%s3761_s14 + $0x1c] sm:$0x2] %v3021_v22  ;;  %v4637_v35 = vmax.f32 %v1258_v38, %v4624_v25  ;;  %v2751_v56 = vsel %vm3847_vm11, %v2720_v20, %v2750_v41  ;;  %vm5377_vm10 = vcmask 520194   ;;  %vm5379_vm5 = vcmask 523270  }
 0x1dc   : > { %1064 = vst.msk [vmem:[#allocation2 + $0x129] sm:$0xff] %vm5373_vm12, %v877_v17  ;;  %vm5374_vm15 = vmmov %vm5363_vm3  ;;  %v3008_v19 = vpack.c.bf16 %v2980_v3, %v2980_v3  ;;  %v1388_v45 = vsel %vm1366_vm2, %v1330_v46, -inf  ;;  %v1524_v31 = vsel %vm5377_vm10, %v1330_v46, -inf  ;;  %v1802_v26 = vsel %vm5379_vm5, %v1330_v46, -inf }
 0x1dd   : > { %1112 = vst.msk [vmem:[#allocation2 + $0x2a9] sm:$0xff] %vm5374_vm15, %v913_v34  ;;  %vm5375_vm7 = vmmov %vm5363_vm3  ;;  %v1389_v29 = vrot.slane %v1388_v45, 4  ;;  %v1525_v13 = vrot.slane %v1524_v31, 4  ;;  %vm5378_vm3 = vcmask 522244   ;;  %v1803_v9 = vsel %vm1463_vm6, %v1331_v11, -inf }
 0x1de   : > { %1071 = vst.msk [vmem:[#allocation2 + $0x161] sm:$0xff] %vm5375_vm7, %v882_v16  ;;  %2752 = vst [vmem:[%s3761_s14 + $0x4c] sm:$0x1] %v2751_v56  ;;  %v1659_v5 = vsel %vm5378_vm3, %v1330_v46, -inf  ;;  %v1954_v52 = vsel %vm1366_vm2, %v1331_v11, -inf  ;;  %v1804_v6 = vmax.f32 %v1802_v26, %v1803_v9 }
 0x1df   : > { %v1660_v21 = vrot.slane %v1659_v5, 4  ;;  %vm5380_vm12 = vmmov %vm5377_vm10  ;;  %v1390_v57 = vmax.f32 %v1388_v45, %v1389_v29  ;;  %v1526_v58 = vmax.f32 %v1524_v31, %v1525_v13  ;;  %v1955_v50 = vrot.slane %v1954_v52, 4 }
 0x1e0   : > { %v2089_v32 = vsel %vm5380_vm12, %v1331_v11, -inf  ;;  %vm5381_vm15 = vmmov %vm5378_vm3  ;;  %v1805_v38 = vrot.slane %v1804_v6, 4 }
 0x1e1   : > { %v3038_v17 = vld [vmem:[%s3761_s14 + $0x4c] sm:$0x2]  ;;  %v1661_v34 = vmax.f32 %v1659_v5, %v1660_v21  ;;  %v2090_v16 = vrot.slane %v2089_v32, 4  ;;  %v2223_v18 = vsel %vm5381_vm15, %v1331_v11, -inf  ;;  %vm5382_vm7 = vmmov %vm5379_vm5  ;;  %v1391_v53 = vrot.slane %v1390_v57, 2 }
 0x1e2   : > { %v2364_v4 = vsel %vm5382_vm7, %v1331_v11, -inf  ;;  %v3039_v42 = vsel %vm3857_vm13, %v3008_v19, %v3038_v17  ;;  %v1527_v12 = vrot.slane %v1526_v58, 2  ;;  %v1956_v20 = vmax.f32 %v1954_v52, %v1955_v50  ;;  %v1475_v50 = vld [vmem:[%s3761_s14 + $0x18] sm:$0x1]  ;;  %vm5383_vm12 = vmmov %vm5377_vm10 }
 0x1e3   : > { %3040 = vst [vmem:[%s3761_s14 + $0x4c] sm:$0x2] %v3039_v42  ;;  %v1662_v43 = vrot.slane %v1661_v34, 2  ;;  %v2091_v22 = vmax.f32 %v2089_v32, %v2090_v16  ;;  %v2224_v3 = vrot.slane %v2223_v18, 4  ;;  %v1392_v61 = vmax.f32 %v1390_v57, %v1391_v53  ;;  %v4655_v32 = vld [vmem:[#allocation2 + $0x288] sm:$0xff]  ;;  %vm5384_vm15 = vmmov %vm5378_vm3 }
 0x1e4   : > { %v1528_v46 = vmax.f32 %v1526_v58, %v1527_v12  ;;  %v1806_v41 = vmax.f32 %v1804_v6, %v1805_v38  ;;  %v2366_v56 = vmax.f32 %v2364_v4, %v2365_v62  ;;  %v1957_v31 = vrot.slane %v1956_v20, 2  ;;  %v1746_v53 = vld [vmem:[%s3761_s14 + $0x18] sm:$0x2]  ;;  %vm5385_vm7 = vmmov %vm5379_vm5 }
 0x1e5   : > { %v1663_v45 = vmax.f32 %v1661_v34, %v1662_v43  ;;  %v2092_v29 = vrot.slane %v2091_v22, 2  ;;  %v2225_v11 = vmax.f32 %v2223_v18, %v2224_v3  ;;  %v1393_v13 = vrot.slane %v1392_v61, 1 }
 0x1e6   : > { %v1529_v5 = vrot.slane %v1528_v46, 1  ;;  %v1807_v19 = vrot.slane %v1806_v41, 2  ;;  %v2367_v26 = vrot.slane %v2366_v56, 4  ;;  %v1958_v9 = vmax.f32 %v1956_v20, %v1957_v31 }
 0x1e7   : > { %v1664_v21 = vrot.slane %v1663_v45, 1  ;;  %v2093_v17 = vmax.f32 %v2091_v22, %v2092_v29  ;;  %v2226_v52 = vrot.slane %v2225_v11, 2  ;;  %v1394_v57 = vmax.f32 %v1392_v61, %v1393_v13  ;;  %v2310_v13 = vld [vmem:[%s3761_s14 + $0x18] sm:$0x8] }
 0x1e8   : > { %v1530_v58 = vmax.f32 %v1528_v46, %v1529_v5  ;;  %v1808_v6 = vmax.f32 %v1806_v41, %v1807_v19  ;;  %v2368_v62 = vmax.f32 %v2366_v56, %v2367_v26  ;;  %v1959_v16 = vrot.slane %v1958_v9, 1  ;;  %v2041_v56 = vld [vmem:[%s3761_s14 + $0x18] sm:$0x4] }
 0x1e9   : > { %v1665_v34 = vmax.f32 %v1663_v45, %v1664_v21  ;;  %v2094_v18 = vrot.slane %v2093_v17, 1  ;;  %v2227_v4 = vmax.f32 %v2225_v11, %v2226_v52  ;;  %v1454_v42 = vpack.c.bf16 %v1394_v57, %v1394_v57 }
 0x1ea   : > { %v1809_v12 = vrot.slane %v1808_v6, 1  ;;  %v2369_v38 = vrot.slane %v2368_v62, 2  ;;  %v4663_v43 = vmax.f32 %v1259_v0, %v4655_v32  ;;  %v1960_v22 = vmax.f32 %v1958_v9, %v1959_v16 }
 0x1eb   : > { %v1725_v20 = vpack.c.bf16 %v1665_v34, %v1665_v34  ;;  %v4665_v3 = vmax.f32 %v2093_v17, %v2094_v18  ;;  %v2228_v61 = vrot.slane %v2227_v4, 1  ;;  %v1476_v46 = vsel %vm3781_vm1, %v1454_v42, %v1475_v50 }
 0x1ec   : > { %v1810_v41 = vmax.f32 %v1808_v6, %v1809_v12  ;;  %v2370_v45 = vmax.f32 %v2368_v62, %v2369_v38  ;;  %v1430_v31 = vsel %vm1366_vm2, %v4637_v35, -inf  ;;  %1477 = vst [vmem:[%s3761_s14 + $0x18] sm:$0x1] %v1476_v46  ;;  %v1590_v60 = vpack.c.bf16 %v1530_v58, %v1530_v58 }
 0x1ed   : > { %v1747_v23 = vsel %vm3792_vm0, %v1725_v20, %v1746_v53  ;;  %v2020_v0 = vpack.c.bf16 %v1960_v22, %v1960_v22  ;;  %v2229_v29 = vmax.f32 %v2227_v4, %v2228_v61  ;;  %v2155_v11 = vpack.c.bf16 %v4665_v3, %v4665_v3 }
 0x1ee   : > { %1748 = vst [vmem:[%s3761_s14 + $0x18] sm:$0x2] %v1747_v23  ;;  %v2371_v5 = vrot.slane %v2370_v45, 1  ;;  %v1431_v19 = vrot.slane %v1430_v31, 4  ;;  %v1566_v26 = vsel %vm5377_vm10, %v4637_v35, -inf  ;;  %v1701_v52 = vsel %vm5378_vm3, %v4637_v35, -inf }
 0x1ef   : > { %v2042_v21 = vsel %vm3828_vm9, %v2020_v0, %v2041_v56  ;;  %v2289_v9 = vpack.c.bf16 %v2229_v29, %v2229_v29  ;;  %v1567_v17 = vrot.slane %v1566_v26, 4  ;;  %v1886_v57 = vpack.c.bf16 %v1810_v41, %v1810_v41 }
 0x1f0   : > { %2043 = vst [vmem:[%s3761_s14 + $0x18] sm:$0x4] %v2042_v21  ;;  %v1432_v58 = vmax.f32 %v1430_v31, %v1431_v19  ;;  %v1702_v6 = vrot.slane %v1701_v52, 4  ;;  %v1856_v62 = vsel %vm5379_vm5, %v4637_v35, -inf  ;;  %v1857_v16 = vsel %vm1463_vm6, %v4663_v43, -inf  ;;  %vm5387_vm5 = vmmov %vm5377_vm10 }
 0x1f1   : > { %v2311_v50 = vsel %vm3840_vm4, %v2289_v9, %v2310_v13  ;;  %v1568_v34 = vmax.f32 %v1566_v26, %v1567_v17  ;;  %v1996_v18 = vsel %vm1366_vm2, %v4663_v43, -inf  ;;  %v2372_v4 = vmax.f32 %v2370_v45, %v2371_v5 }
 0x1f2   : > { %2312 = vst [vmem:[%s3761_s14 + $0x18] sm:$0x8] %v2311_v50  ;;  %v1433_v42 = vrot.slane %v1432_v58, 2  ;;  %v1703_v53 = vmax.f32 %v1701_v52, %v1702_v6  ;;  %v1858_v12 = vmax.f32 %v1856_v62, %v1857_v16  ;;  %v1997_v20 = vrot.slane %v1996_v18, 4  ;;  %v1493_v62 = vld [vmem:[%s3761_s14 + $0x48] sm:$0x1] }
 0x1f3   : > { %v1569_v38 = vrot.slane %v1568_v34, 2  ;;  %v2131_v35 = vsel %vm5383_vm12, %v4663_v43, -inf  ;;  %v2265_v22 = vsel %vm5384_vm15, %v4663_v43, -inf  ;;  %v1610_v3 = vld [vmem:[%s3761_s14 + $0x18] sm:$0x1]  ;;  %v2448_v9 = vpack.c.bf16 %v2372_v4, %v2372_v4  ;;  %vm5388_vm12 = vmmov %vm5378_vm3 }
 0x1f4   : > { %v1434_v61 = vmax.f32 %v1432_v58, %v1433_v42  ;;  %v1704_v46 = vrot.slane %v1703_v53, 2  ;;  %v1859_v41 = vrot.slane %v1858_v12, 4  ;;  %v2132_v56 = vrot.slane %v2131_v35, 4 }
 0x1f5   : > { %v1611_v45 = vsel %vm3847_vm11, %v1590_v60, %v1610_v3  ;;  %v1906_v31 = vld [vmem:[%s3761_s14 + $0x18] sm:$0x2]  ;;  %v1570_v23 = vmax.f32 %v1568_v34, %v1569_v38  ;;  %v1998_v0 = vmax.f32 %v1996_v18, %v1997_v20  ;;  %v2266_v29 = vrot.slane %v2265_v22, 4  ;;  %v4711_v34 = vpop.f32.mrb[35].mxu1 }
 0x1f6   : > { %1612 = vst [vmem:[%s3761_s14 + $0x18] sm:$0x1] %v1611_v45  ;;  %v1907_v13 = vsel %vm3857_vm13, %v1886_v57, %v1906_v31  ;;  %v1435_v5 = vrot.slane %v1434_v61, 1  ;;  %v1705_v19 = vmax.f32 %v1703_v53, %v1704_v46  ;;  %v1860_v26 = vmax.f32 %v1858_v12, %v1859_v41 }
 0x1f7   : > { %1908 = vst [vmem:[%s3761_s14 + $0x18] sm:$0x2] %v1907_v13  ;;  %v2175_v21 = vld [vmem:[%s3761_s14 + $0x18] sm:$0x4]  ;;  %v1999_v17 = vrot.slane %v1998_v0, 2  ;;  %v2133_v52 = vmax.f32 %v2131_v35, %v2132_v56  ;;  %v2267_v60 = vmax.f32 %v2265_v22, %v2266_v29  ;;  %v1571_v18 = vrot.slane %v1570_v23, 1 }
 0x1f8   : > { %v2176_v58 = vsel %vm3914_vm8, %v2155_v11, %v2175_v21  ;;  %v1436_v6 = vmax.f32 %v1434_v61, %v1435_v5  ;;  %v1706_v50 = vrot.slane %v1705_v19, 1  ;;  %v1861_v57 = vrot.slane %v1860_v26, 2  ;;  %v1764_v35 = vld [vmem:[%s3761_s14 + $0x48] sm:$0x2]  ;;  %v1190_v5 = vld [vmem:[#allocation2 + $0x120] sm:$0xff] }
 0x1f9   : > { %2177 = vst [vmem:[%s3761_s14 + $0x18] sm:$0x4] %v2176_v58  ;;  %v2468_v16 = vld [vmem:[%s3761_s14 + $0x18] sm:$0x8]  ;;  %v2000_v42 = vmax.f32 %v1998_v0, %v1999_v17  ;;  %v2134_v4 = vrot.slane %v2133_v52, 2  ;;  %v2268_v53 = vrot.slane %v2267_v60, 2 }
 0x1fa   : > { %v2469_v12 = vsel %vm3922_vm14, %v2448_v9, %v2468_v16  ;;  %v1460_v38 = vpack.c.bf16 %v1436_v6, %v1436_v6  ;;  %v1707_v11 = vmax.f32 %v1705_v19, %v1706_v50  ;;  %v1862_v20 = vmax.f32 %v1860_v26, %v1861_v57  ;;  %v1214_v19 = vld [vmem:[#allocation2 + $0x2a0] sm:$0xff]  ;;  %v2059_v9 = vld [vmem:[%s3761_s14 + $0x48] sm:$0x4]  ;;  %v2328_v57 = vld [vmem:[%s3761_s14 + $0x48] sm:$0x8] }
 0x1fb   : > { %2470 = vst [vmem:[%s3761_s14 + $0x18] sm:$0x8] %v2469_v12  ;;  %v2001_v22 = vrot.slane %v2000_v42, 1  ;;  %v2135_v3 = vmax.f32 %v2133_v52, %v2134_v4  ;;  %v2269_v61 = vmax.f32 %v2267_v60, %v2268_v53  ;;  %v2418_v45 = vsel %vm5385_vm7, %v4663_v43, -inf  ;;  %v5386_v17 = vld [vmem:[#allocation8_spill] sm:$0xff] }
 0x1fc   : > { %v1494_v46 = vsel %vm3781_vm1, %v1460_v38, %v1493_v62  ;;  %v1731_v41 = vpack.c.bf16 %v1707_v11, %v1707_v11  ;;  %v1863_v56 = vrot.slane %v1862_v20, 1  ;;  %v2420_v13 = vmax.f32 %v2418_v45, %v4633_v30  ;;  %v1146_v62 = vld [vmem:[#allocation2 + $0x140] sm:$0xff] }
 0x1fd   : > { %1495 = vst [vmem:[%s3761_s14 + $0x48] sm:$0x1] %v1494_v46  ;;  %v2002_v31 = vmax.f32 %v2000_v42, %v2001_v22  ;;  %v2136_v0 = vrot.slane %v2135_v3, 1  ;;  %v2270_v29 = vrot.slane %v2269_v61, 1  ;;  %v1572_v26 = vmax.f32 %v1570_v23, %v1571_v18  ;;  %v1170_v23 = vld [vmem:[#allocation2 + $0x2c0] sm:$0xff] }
 0x1fe   : > { %v1765_v21 = vsel %vm3792_vm0, %v1731_v41, %v1764_v35  ;;  %v4730_v52 = vadd.f32 %v4588_v51, %v5386_v17  ;;  %v4734_v43 = vadd.f32 %v4588_v51, %v4281_v24  ;;  %v1864_v60 = vmax.f32 %v1862_v20, %v1863_v56 }
 0x1ff   : > { %1766 = vst [vmem:[%s3761_s14 + $0x48] sm:$0x2] %v1765_v21  ;;  %v2026_v30 = vpack.c.bf16 %v2002_v31, %v2002_v31  ;;  %v2271_v58 = vmax.f32 %v2269_v61, %v2270_v29  ;;  %v2421_v6 = vrot.slane %v2420_v13, 4  ;;  %v2137_v50 = vmax.f32 %v2135_v3, %v2136_v0 }
 0x200   : > { %v1238_v16 = vmax.f32 %v4610_v37, %v1190_v5  ;;  %v1262_v18 = vmax.f32 %v4624_v25, %v1214_v19  ;;  %v4742_v42 = vadd.f32 %v4588_v51, %v4296_v28  ;;  %v4748_v12 = vadd.f32 %v4588_v51, %v4380_v15 }
 0x201   : > { %v2060_v24 = vsel %vm3828_vm9, %v2026_v30, %v2059_v9  ;;  %v2295_v4 = vpack.c.bf16 %v2271_v58, %v2271_v58  ;;  %v2422_v53 = vmax.f32 %v2420_v13, %v2421_v6  ;;  %v4757_v25 = vadd.f32 %v4588_v51, %v4382_v2 }
 0x202   : > { %2061 = vst [vmem:[%s3761_s14 + $0x48] sm:$0x4] %v2060_v24  ;;  %v4751_v38 = vmax.f32 %v1238_v16, %v1146_v62  ;;  %v4753_v37 = vmax.f32 %v1262_v18, %v1170_v23  ;;  %v4761_v28 = vadd.f32 %v4588_v51, %v4387_v59  ;;  %v1596_v11 = vpack.c.bf16 %v1572_v26, %v1572_v26 }
 0x203   : > { %v1892_v20 = vpack.c.bf16 %v1864_v60, %v1864_v60  ;;  %v2329_v15 = vsel %vm3840_vm4, %v2295_v4, %v2328_v57  ;;  %v2423_v35 = vrot.slane %v2422_v53, 2  ;;  %v2161_v3 = vpack.c.bf16 %v2137_v50, %v2137_v50 }
 0x204   : > { %v1628_v22 = vld [vmem:[%s3761_s14 + $0x48] sm:$0x1]  ;;  %2330 = vst [vmem:[%s3761_s14 + $0x48] sm:$0x8] %v2329_v15  ;;  %v1395_v61 = vsel %vm1366_vm2, %v4751_v38, -inf  ;;  %v1531_v2 = vsel %vm5377_vm10, %v4751_v38, -inf  ;;  %v4789_v57 = vadd.f32 %v4588_v51, %v4399_v14 }
 0x205   : > { %v1666_v59 = vsel %vm5378_vm3, %v4751_v38, -inf  ;;  %v1629_v46 = vsel %vm3847_vm11, %v1596_v11, %v1628_v22  ;;  %v2424_v41 = vmax.f32 %v2422_v53, %v2423_v35  ;;  %v1396_v56 = vrot.slane %v1395_v61, 4  ;;  %v4795_v22 = vld [vmem:[#allocation2 + $0x138] sm:$0x3] }
 0x206   : > { %v1532_v45 = vrot.slane %v1531_v2, 4  ;;  %1630 = vst [vmem:[%s3761_s14 + $0x48] sm:$0x1] %v1629_v46  ;;  %v1924_v31 = vld [vmem:[%s3761_s14 + $0x48] sm:$0x2]  ;;  %v1667_v0 = vrot.slane %v1666_v59, 4 }
 0x207   : > { %v1437_v29 = vsel %vm1366_vm2, %v4753_v37, -inf  ;;  %v1573_v13 = vsel %vm5387_vm5, %v4753_v37, -inf  ;;  %v1708_v5 = vsel %vm5388_vm12, %v4753_v37, -inf  ;;  %v1925_v19 = vsel %vm3857_vm13, %v1892_v20, %v1924_v31 }
 0x208   : > { %v2425_v26 = vrot.slane %v2424_v41, 1  ;;  %v1397_v21 = vmax.f32 %v1395_v61, %v1396_v56  ;;  %v1533_v9 = vmax.f32 %v1531_v2, %v1532_v45  ;;  %1926 = vst [vmem:[%s3761_s14 + $0x48] sm:$0x2] %v1925_v19  ;;  %v1668_v17 = vmax.f32 %v1666_v59, %v1667_v0  ;;  %v4802_v45 = vld [vmem:[#allocation2 + $0x118] sm:$0x3] }
 0x209   : > { %v1438_v60 = vrot.slane %v1437_v29, 4  ;;  %v1574_v30 = vrot.slane %v1573_v13, 4  ;;  %v1709_v58 = vrot.slane %v1708_v5, 4  ;;  %v2193_v6 = vld [vmem:[%s3761_s14 + $0x48] sm:$0x4]  ;;  %v918_v14 = vmax.f32 %v4730_v52, 0.0 }
 0x20a   : > { %v2426_v62 = vmax.f32 %v2424_v41, %v2425_v26  ;;  %v1398_v23 = vrot.slane %v1397_v21, 2  ;;  %v1534_v50 = vrot.slane %v1533_v9, 2  ;;  %v2194_v16 = vsel %vm3914_vm8, %v2161_v3, %v2193_v6  ;;  %v1749_v6 = vld [vmem:[%s3761_s14 + $0x20] sm:$0x2] }
 0x20b   : > { %v1669_v18 = vrot.slane %v1668_v17, 2  ;;  %v1439_v24 = vmax.f32 %v1437_v29, %v1438_v60  ;;  %v1575_v4 = vmax.f32 %v1573_v13, %v1574_v30  ;;  %2195 = vst [vmem:[%s3761_s14 + $0x48] sm:$0x4] %v2194_v16  ;;  %v2486_v11 = vld [vmem:[%s3761_s14 + $0x48] sm:$0x8]  ;;  %v1710_v35 = vmax.f32 %v1708_v5, %v1709_v58 }
 0x20c   : > { %v2454_v53 = vpack.c.bf16 %v2426_v62, %v2426_v62  ;;  %v1399_v20 = vmax.f32 %v1397_v21, %v1398_v23  ;;  %v1535_v15 = vmax.f32 %v1533_v9, %v1534_v50  ;;  %v702_v56 = vadd.f32 %v4588_v51, %v4472_v47  ;;  %v1191_v13 = vld [vmem:[#allocation2 + $0x128] sm:$0xff]  ;;  %v1478_v47 = vld [vmem:[%s3761_s14 + $0x20] sm:$0x1] }
 0x20d   : > { %v1670_v61 = vmax.f32 %v1668_v17, %v1669_v18  ;;  %v1440_v2 = vrot.slane %v1439_v24, 2  ;;  %v1576_v59 = vrot.slane %v1575_v4, 2  ;;  %v1711_v41 = vrot.slane %v1710_v35, 2 }
 0x20e   : > { %v2487_v3 = vsel %vm3922_vm14, %v2454_v53, %v2486_v11  ;;  %v1400_v46 = vrot.slane %v1399_v20, 1  ;;  %v1536_v31 = vrot.slane %v1535_v15, 1  ;;  %vm5389_vm15 = vcmask 523264  }
 0x20f   : > { %2488 = vst [vmem:[%s3761_s14 + $0x48] sm:$0x8] %v2487_v3  ;;  %v1671_v0 = vrot.slane %v1670_v61, 1  ;;  %v1441_v29 = vmax.f32 %v1439_v24, %v1440_v2  ;;  %1119 = vst.msk [vmem:[#allocation2 + $0x2e1] sm:$0xff] %vm5389_vm15, %v918_v14  ;;  %v880_v52 = vmax.f32 %v4734_v43, 0.0  ;;  %v1241_v5 = vmax.f32 %v4802_v45, %v4795_v22 }
 0x210   : > { %v1401_v19 = vmax.f32 %v1399_v20, %v1400_v46  ;;  %v1712_v26 = vmax.f32 %v1710_v35, %v1711_v41  ;;  %v916_v21 = vmax.f32 %v4742_v42, 0.0  ;;  %v1577_v60 = vmax.f32 %v1575_v4, %v1576_v59  ;;  %vm5390_vm7 = vmmov %vm5389_vm15  ;;  %v1496_v24 = vld [vmem:[%s3761_s14 + $0x50] sm:$0x1]  ;;  %v1767_v35 = vld [vmem:[%s3761_s14 + $0x50] sm:$0x2] }
 0x211   : > { %v1672_v9 = vmax.f32 %v1670_v61, %v1671_v0  ;;  %v1442_v17 = vrot.slane %v1441_v29, 1  ;;  %1068 = vst.msk [vmem:[#allocation2 + $0x149] sm:$0xff] %vm5390_vm7, %v880_v52  ;;  %v883_v30 = vmax.f32 %v4748_v12, 0.0  ;;  %v1239_v43 = vmax.f32 %v4612_v36, %v1191_v13  ;;  %vm5391_vm10 = vmmov %vm5390_vm7  ;;  %v1215_v36 = vld [vmem:[#allocation2 + $0x2a8] sm:$0xff]  ;;  %v4833_v61 = vld [vmem:[#allocation2 + $0x2b8] sm:$0x3] }
 0x212   : > { %v1455_v58 = vpack.c.bf16 %v1401_v19, %v1401_v19  ;;  %v1713_v62 = vrot.slane %v1712_v26, 1  ;;  %1116 = vst.msk [vmem:[#allocation2 + $0x2c9] sm:$0xff] %vm5391_vm10, %v916_v21  ;;  %v919_v23 = vmax.f32 %v4757_v25, 0.0  ;;  %v4817_v42 = vmax.f32 %v1535_v15, %v1536_v31  ;;  %vm5392_vm3 = vmmov %vm5390_vm7 }
 0x213   : > { %v1726_v50 = vpack.c.bf16 %v1672_v9, %v1672_v9  ;;  %v1443_v16 = vmax.f32 %v1441_v29, %v1442_v17  ;;  %1072 = vst.msk [vmem:[#allocation2 + $0x169] sm:$0xff] %vm5392_vm3, %v883_v30  ;;  %v881_v18 = vmax.f32 %v4761_v28, 0.0  ;;  %vm5393_vm5 = vmmov %vm5392_vm3  ;;  %v917_v25 = vmax.f32 %v4789_v57, 0.0 }
 0x214   : > { %v1479_v12 = vsel %vm3781_vm1, %v1455_v58, %v1478_v47  ;;  %v1714_v4 = vmax.f32 %v1712_v26, %v1713_v62  ;;  %1120 = vst.msk [vmem:[#allocation2 + $0x2e9] sm:$0xff] %vm5393_vm5, %v919_v23  ;;  %v886_v53 = vmax.f32 %v702_v56, 0.0  ;;  %v1578_v15 = vrot.slane %v1577_v60, 1  ;;  %vm5394_vm12 = vmmov %vm5392_vm3  ;;  %v4849_v56 = vld [vmem:[#allocation2 + $0x298] sm:$0x3] }
 0x215   : > { %1480 = vst [vmem:[%s3761_s14 + $0x20] sm:$0x1] %v1479_v12  ;;  %v1750_v11 = vsel %vm3792_vm0, %v1726_v50, %v1749_v6  ;;  %v1461_v20 = vpack.c.bf16 %v1443_v16, %v1443_v16  ;;  %1069 = vst.msk [vmem:[#allocation2 + $0x151] sm:$0xff] %vm5394_vm12, %v881_v18  ;;  %v846_v28 = vadd.f32 %v4588_v51, %v4474_v39 }
 0x216   : > { %1751 = vst [vmem:[%s3761_s14 + $0x20] sm:$0x2] %v1750_v11  ;;  %v1732_v2 = vpack.c.bf16 %v1714_v4, %v1714_v4  ;;  %vm5395_vm15 = vmmov %vm5392_vm3  ;;  %v694_v57 = vadd.f32 %v4588_v51, %v4481_v55  ;;  %v838_v59 = vadd.f32 %v4588_v51, %v4483_v10  ;;  %v705_v14 = vadd.f32 %v4588_v51, %v4489_v48 }
 0x217   : > { %1117 = vst.msk [vmem:[#allocation2 + $0x2d1] sm:$0xff] %vm5395_vm15, %v917_v25  ;;  %vm5396_vm7 = vmmov %vm5392_vm3  ;;  %v1497_v39 = vsel %vm3781_vm1, %v1461_v20, %v1496_v24  ;;  %v1263_v3 = vmax.f32 %v4655_v32, %v1215_v36  ;;  %v922_v46 = vmax.f32 %v846_v28, 0.0  ;;  %v849_v41 = vadd.f32 %v4588_v51, %v4532_v27 }
 0x218   : > { %1076 = vst.msk [vmem:[#allocation2 + $0x189] sm:$0xff] %vm5396_vm7, %v886_v53  ;;  %1498 = vst [vmem:[%s3761_s14 + $0x50] sm:$0x1] %v1497_v39  ;;  %v1768_v55 = vsel %vm3792_vm0, %v1732_v2, %v1767_v35  ;;  %v4854_v31 = vld [vmem:[#allocation2 + $0x148] sm:$0xff]  ;;  %v884_v10 = vmax.f32 %v694_v57, 0.0  ;;  %v920_v0 = vmax.f32 %v838_v59, 0.0  ;;  %v1265_v29 = vmax.f32 %v4849_v56, %v4833_v61 }
 0x219   : > { %v887_v48 = vmax.f32 %v705_v14, 0.0  ;;  %v1579_v13 = vmax.f32 %v1577_v60, %v1578_v15  ;;  %1769 = vst [vmem:[%s3761_s14 + $0x50] sm:$0x2] %v1768_v55  ;;  %v4860_v32 = vmax.f32 %v1239_v43, %v4854_v31  ;;  %v1171_v27 = vld [vmem:[#allocation2 + $0x2c8] sm:$0xff]  ;;  %vm5397_vm10 = vmmov %vm5392_vm3  ;;  %v923_v52 = vmax.f32 %v849_v41, 0.0  ;;  %v1192_v55 = vld [vmem:[#allocation2 + $0x130] sm:$0xff] }
 0x21a   : > { %1124 = vst.msk [vmem:[#allocation2 + $0x309] sm:$0xff] %vm5397_vm10, %v922_v46  ;;  %v1591_v19 = vpack.c.bf16 %v4817_v42, %v4817_v42  ;;  %vm5398_vm3 = vcmask 523270   ;;  %v4869_v47 = vmax.f32 %v1263_v3, %v1171_v27  ;;  %vm5400_vm12 = vmmov %vm5396_vm7  ;;  %vm5402_vm10 = vcmask 520194  }
 0x21b   : > { %v1811_v26 = vsel %vm5398_vm3, %v4751_v38, -inf  ;;  %vm5399_vm5 = vmmov %vm5398_vm3  ;;  %1073 = vst.msk [vmem:[#allocation2 + $0x171] sm:$0xff] %vm5400_vm12, %v884_v10  ;;  %v1812_v9 = vsel %vm1463_vm6, %v4860_v32, -inf  ;;  %v1961_v17 = vsel %vm1366_vm2, %v4860_v32, -inf  ;;  %v2096_v38 = vsel %vm5402_vm10, %v4860_v32, -inf }
 0x21c   : > { %v1865_v21 = vsel %vm5399_vm5, %v4753_v37, -inf  ;;  %vm5401_vm15 = vmmov %vm5396_vm7  ;;  %1077 = vst.msk [vmem:[#allocation2 + $0x191] sm:$0xff] %vm5396_vm7, %v887_v48  ;;  %vm5403_vm3 = vcmask 522244   ;;  %v1613_v60 = vld [vmem:[%s3761_s14 + $0x20] sm:$0x1]  ;;  %v1813_v30 = vmax.f32 %v1811_v26, %v1812_v9  ;;  %v1962_v58 = vrot.slane %v1961_v17, 4 }
 0x21d   : > { %1121 = vst.msk [vmem:[#allocation2 + $0x2f1] sm:$0xff] %vm5401_vm15, %v920_v0  ;;  %v2230_v37 = vsel %vm5403_vm3, %v4860_v32, -inf  ;;  %vm5404_vm5 = vmmov %vm5396_vm7  ;;  %v2097_v6 = vrot.slane %v2096_v38, 4  ;;  %v1614_v43 = vsel %vm3847_vm11, %v1591_v19, %v1613_v60  ;;  %v1597_v23 = vpack.c.bf16 %v1579_v13, %v1579_v13 }
 0x21e   : > { %1125 = vst.msk [vmem:[#allocation2 + $0x311] sm:$0xff] %vm5404_vm5, %v923_v52  ;;  %v2231_v62 = vrot.slane %v2230_v37, 4  ;;  %v1866_v42 = vsel %vm1463_vm6, %v4869_v47, -inf  ;;  %v2003_v50 = vsel %vm1366_vm2, %v4869_v47, -inf  ;;  %1615 = vst [vmem:[%s3761_s14 + $0x20] sm:$0x1] %v1614_v43  ;;  %v1963_v18 = vmax.f32 %v1961_v17, %v1962_v58 }
 0x21f   : > { %v1814_v16 = vrot.slane %v1813_v30, 4  ;;  %v2098_v12 = vmax.f32 %v2096_v38, %v2097_v6  ;;  %v1631_v4 = vld [vmem:[%s3761_s14 + $0x50] sm:$0x1]  ;;  %v1867_v36 = vmax.f32 %v1865_v21, %v1866_v42  ;;  %v2004_v25 = vrot.slane %v2003_v50, 4  ;;  %vm5405_vm12 = vmmov %vm5402_vm10  ;;  %v2044_v43 = vld [vmem:[%s3761_s14 + $0x20] sm:$0x4] }
 0x220   : > { %v2232_v24 = vmax.f32 %v2230_v37, %v2231_v62  ;;  %v2138_v53 = vsel %vm5405_vm12, %v4869_v47, -inf  ;;  %vm5406_vm15 = vmmov %vm5403_vm3  ;;  %v1632_v20 = vsel %vm3847_vm11, %v1597_v23, %v1631_v4  ;;  %v1964_v35 = vrot.slane %v1963_v18, 2  ;;  %v3362_v37 = vld [vmem:[#allocation2 + $0x110] sm:$0xff]  ;;  %v2313_v4 = vld [vmem:[%s3761_s14 + $0x20] sm:$0x8] }
 0x221   : > { %v2272_v11 = vsel %vm5406_vm15, %v4869_v47, -inf  ;;  %v1815_v15 = vmax.f32 %v1813_v30, %v1814_v16  ;;  %v2099_v28 = vrot.slane %v2098_v12, 2  ;;  %1633 = vst [vmem:[%s3761_s14 + $0x50] sm:$0x1] %v1632_v20  ;;  %v1868_v57 = vrot.slane %v1867_v36, 4  ;;  %v1216_v62 = vld [vmem:[#allocation2 + $0x2b0] sm:$0xff]  ;;  %vm5409_vm3 = vmmov %vm5405_vm12 }
 0x222   : > { %v2233_v2 = vrot.slane %v2232_v24, 2  ;;  %v2005_v59 = vmax.f32 %v2003_v50, %v2004_v25  ;;  %v2139_v14 = vrot.slane %v2138_v53, 4  ;;  %v1965_v3 = vmax.f32 %v1963_v18, %v1964_v35  ;;  %v1909_v25 = vld [vmem:[%s3761_s14 + $0x20] sm:$0x2]  ;;  %v3363_v35 = vld [vmem:[#allocation2 + $0x290] sm:$0xff]  ;;  %vm5410_vm5 = vmmov %vm5406_vm15 }
 0x223   : > { %v1816_v39 = vrot.slane %v1815_v15, 2  ;;  %v2100_v46 = vmax.f32 %v2098_v12, %v2099_v28  ;;  %v2273_v41 = vrot.slane %v2272_v11, 4  ;;  %v1869_v0 = vmax.f32 %v1867_v36, %v1868_v57  ;;  %vm5412_vm15 = vmmov %vm5409_vm3 }
 0x224   : > { %v2234_v10 = vmax.f32 %v2232_v24, %v2233_v2  ;;  %v2006_v48 = vrot.slane %v2005_v59, 2  ;;  %v2140_v13 = vmax.f32 %v2138_v53, %v2139_v14  ;;  %v1966_v52 = vrot.slane %v1965_v3, 1 }
 0x225   : > { %v1817_v27 = vmax.f32 %v1815_v15, %v1816_v39  ;;  %v2101_v19 = vrot.slane %v2100_v46, 1  ;;  %v2274_v26 = vmax.f32 %v2272_v11, %v2273_v41  ;;  %v1870_v9 = vrot.slane %v1869_v0, 2  ;;  %v4905_v39 = vld [vmem:[#allocation2 + $0x150] sm:$0xff] }
 0x226   : > { %v2235_v21 = vrot.slane %v2234_v10, 1  ;;  %v2007_v17 = vmax.f32 %v2005_v59, %v2006_v48  ;;  %v2141_v38 = vrot.slane %v2140_v13, 2  ;;  %v1240_v60 = vmax.f32 %v3362_v37, %v1192_v55  ;;  %v2062_v59 = vld [vmem:[%s3761_s14 + $0x50] sm:$0x4] }
 0x227   : > { %v1818_v30 = vrot.slane %v1817_v27, 1  ;;  %v1967_v58 = vmax.f32 %v1965_v3, %v1966_v52  ;;  %v2275_v6 = vrot.slane %v2274_v26, 2  ;;  %v1871_v42 = vmax.f32 %v1869_v0, %v1870_v9  ;;  %v4910_v0 = vld [vmem:[#allocation2 + $0x2d0] sm:$0xff] }
 0x228   : > { %v2236_v23 = vmax.f32 %v2234_v10, %v2235_v21  ;;  %v2008_v50 = vrot.slane %v2007_v17, 1  ;;  %v2142_v16 = vmax.f32 %v2140_v13, %v2141_v38  ;;  %v2102_v24 = vmax.f32 %v2100_v46, %v2101_v19  ;;  %v1289_v10 = vld [vmem:[#allocation2 + $0x158] sm:$0x3]  ;;  %v1927_v52 = vld [vmem:[%s3761_s14 + $0x50] sm:$0x2] }
 0x229   : > { %v1819_v18 = vmax.f32 %v1817_v27, %v1818_v30  ;;  %v2021_v12 = vpack.c.bf16 %v1967_v58, %v1967_v58  ;;  %v2276_v36 = vmax.f32 %v2274_v26, %v2275_v6  ;;  %v1872_v11 = vrot.slane %v1871_v42, 1  ;;  %v2331_v9 = vld [vmem:[%s3761_s14 + $0x50] sm:$0x8] }
 0x22a   : > { %v2290_v53 = vpack.c.bf16 %v2236_v23, %v2236_v23  ;;  %v2009_v20 = vmax.f32 %v2007_v17, %v2008_v50  ;;  %v2143_v15 = vrot.slane %v2142_v16, 1  ;;  %v1264_v28 = vmax.f32 %v3363_v35, %v1216_v62 }
 0x22b   : > { %v1887_v2 = vpack.c.bf16 %v1819_v18, %v1819_v18  ;;  %v2045_v57 = vsel %vm3828_vm9, %v2021_v12, %v2044_v43  ;;  %v2277_v14 = vrot.slane %v2276_v36, 1  ;;  %v1873_v46 = vmax.f32 %v1871_v42, %v1872_v11 }
 0x22c   : > { %2046 = vst [vmem:[%s3761_s14 + $0x20] sm:$0x4] %v2045_v57  ;;  %v2314_v3 = vsel %vm3840_vm4, %v2290_v53, %v2313_v4  ;;  %v2027_v41 = vpack.c.bf16 %v2009_v20, %v2009_v20  ;;  %v2144_v55 = vmax.f32 %v2142_v16, %v2143_v15  ;;  %v2156_v13 = vpack.c.bf16 %v2102_v24, %v2102_v24 }
 0x22d   : > { %v1910_v48 = vsel %vm3857_vm13, %v1887_v2, %v1909_v25  ;;  %2315 = vst [vmem:[%s3761_s14 + $0x20] sm:$0x8] %v2314_v3  ;;  %vm5407_vm7 = vcmask 523270   ;;  %v2278_v19 = vmax.f32 %v2276_v36, %v2277_v14  ;;  %v1893_v26 = vpack.c.bf16 %v1873_v46, %v1873_v46 }
 0x22e   : > { %v2373_v27 = vsel %vm5407_vm7, %v4860_v32, -inf  ;;  %1911 = vst [vmem:[%s3761_s14 + $0x20] sm:$0x2] %v1910_v48  ;;  %v2063_v21 = vsel %vm3828_vm9, %v2027_v41, %v2062_v59  ;;  %vm5408_vm10 = vmmov %vm5407_vm7  ;;  %v1336_v38 = vmax.f32 %v1240_v60, %v4905_v39  ;;  %v2162_v37 = vpack.c.bf16 %v2144_v55, %v2144_v55 }
 0x22f   : > { %v2427_v17 = vsel %vm5408_vm10, %v4869_v47, -inf  ;;  %2064 = vst [vmem:[%s3761_s14 + $0x50] sm:$0x4] %v2063_v21  ;;  %v2296_v30 = vpack.c.bf16 %v2278_v19, %v2278_v19  ;;  %v1337_v32 = vmax.f32 %v1241_v5, %v1289_v10  ;;  %v4930_v58 = vmax.f32 %v1264_v28, %v4910_v0  ;;  %vm5411_vm12 = vmmov %vm5407_vm7 }
 0x230   : > { %v1928_v6 = vsel %vm3857_vm13, %v1893_v26, %v1927_v52  ;;  %v2374_v62 = vsel %vm1463_vm6, %v1336_v38, -inf  ;;  %v2523_v47 = vsel %vm1366_vm2, %v1336_v38, -inf  ;;  %v2655_v60 = vsel %vm5409_vm3, %v1336_v38, -inf  ;;  %vm5413_vm7 = vmmov %vm5410_vm5 }
 0x231   : > { %1929 = vst [vmem:[%s3761_s14 + $0x50] sm:$0x2] %v1928_v6  ;;  %v2332_v43 = vsel %vm3840_vm4, %v2296_v30, %v2331_v9  ;;  %v2375_v23 = vmax.f32 %v2373_v27, %v2374_v62  ;;  %v2524_v22 = vrot.slane %v2523_v47, 4  ;;  %v2656_v45 = vrot.slane %v2655_v60, 4 }
 0x232   : > { %2333 = vst [vmem:[%s3761_s14 + $0x50] sm:$0x8] %v2332_v43  ;;  %v2787_v5 = vsel %vm5410_vm5, %v1336_v38, -inf  ;;  %v2927_v42 = vsel %vm5411_vm12, %v1336_v38, -inf  ;;  %v2928_v50 = vsel %vm1463_vm6, %v1337_v32, -inf  ;;  %v2428_v16 = vsel %vm1463_vm6, %v4930_v58, -inf  ;;  %vm5414_vm5 = vmmov %vm5409_vm3 }
 0x233   : > { %v2178_v18 = vld [vmem:[%s3761_s14 + $0x20] sm:$0x4]  ;;  %v2376_v12 = vrot.slane %v2375_v23, 4  ;;  %v2525_v24 = vmax.f32 %v2523_v47, %v2524_v22  ;;  %v2657_v4 = vmax.f32 %v2655_v60, %v2656_v45  ;;  %v2788_v36 = vrot.slane %v2787_v5, 4  ;;  %v1313_v32 = vld [vmem:[#allocation2 + $0x2d8] sm:$0x3]  ;;  %vm5415_vm12 = vmmov %vm5413_vm7 }
 0x234   : > { %v2179_v25 = vsel %vm3914_vm8, %v2156_v13, %v2178_v18  ;;  %v2929_v53 = vmax.f32 %v2927_v42, %v2928_v50  ;;  %v2429_v11 = vmax.f32 %v2427_v17, %v2428_v16  ;;  %v2565_v20 = vsel %vm1366_vm2, %v4930_v58, -inf  ;;  %v2471_v18 = vld [vmem:[%s3761_s14 + $0x20] sm:$0x8] }
 0x235   : > { %2180 = vst [vmem:[%s3761_s14 + $0x20] sm:$0x4] %v2179_v25  ;;  %v2377_v15 = vmax.f32 %v2375_v23, %v2376_v12  ;;  %v2526_v35 = vrot.slane %v2525_v24, 2  ;;  %v2658_v28 = vrot.slane %v2657_v4, 2  ;;  %v2789_v2 = vmax.f32 %v2787_v5, %v2788_v36  ;;  %v2603_v23 = vld [vmem:[%s3761_s14 + $0x24] sm:$0x1] }
 0x236   : > { %v2196_v57 = vld [vmem:[%s3761_s14 + $0x50] sm:$0x4]  ;;  %v2930_v59 = vrot.slane %v2929_v53, 4  ;;  %v2430_v14 = vrot.slane %v2429_v11, 4  ;;  %v2566_v3 = vrot.slane %v2565_v20, 4  ;;  %v2697_v46 = vsel %vm5412_vm15, %v4930_v58, -inf  ;;  %vm5416_vm15 = vmmov %vm5413_vm7 }
 0x237   : > { %v2197_v41 = vsel %vm3914_vm8, %v2162_v37, %v2196_v57  ;;  %v2378_v55 = vrot.slane %v2377_v15, 2  ;;  %v2527_v10 = vmax.f32 %v2525_v24, %v2526_v35  ;;  %v2659_v48 = vmax.f32 %v2657_v4, %v2658_v28  ;;  %v2621_v28 = vld [vmem:[%s3761_s14 + $0x54] sm:$0x1]  ;;  %v1197_v57 = vld [vmem:[#allocation2 + $0x178] sm:$0x3] }
 0x238   : > { %2198 = vst [vmem:[%s3761_s14 + $0x50] sm:$0x4] %v2197_v41  ;;  %v2790_v13 = vrot.slane %v2789_v2, 2  ;;  %v2931_v27 = vmax.f32 %v2929_v53, %v2930_v59  ;;  %v2431_v52 = vmax.f32 %v2429_v11, %v2430_v14  ;;  %v2567_v19 = vmax.f32 %v2565_v20, %v2566_v3  ;;  %v2867_v11 = vld [vmem:[%s3761_s14 + $0x24] sm:$0x2] }
 0x239   : > { %v2379_v26 = vmax.f32 %v2377_v15, %v2378_v55  ;;  %v2528_v21 = vrot.slane %v2527_v10, 1  ;;  %v2698_v9 = vrot.slane %v2697_v46, 4  ;;  %v4960_v17 = vadd.f32 %v4588_v51, %v4549_v54  ;;  %v2489_v14 = vld [vmem:[%s3761_s14 + $0x50] sm:$0x8] }
 0x23a   : > { %v2791_v38 = vmax.f32 %v2789_v2, %v2790_v13  ;;  %v2932_v30 = vrot.slane %v2931_v27, 2  ;;  %v2432_v37 = vrot.slane %v2431_v52, 2  ;;  %v2568_v6 = vrot.slane %v2567_v19, 2  ;;  %v1196_v2 = vld [vmem:[#allocation2 + $0x170] sm:$0xff] }
 0x23b   : > { %v2380_v62 = vrot.slane %v2379_v26, 1  ;;  %v2529_v47 = vmax.f32 %v2527_v10, %v2528_v21  ;;  %v2660_v60 = vrot.slane %v2659_v48, 1  ;;  %v2699_v43 = vmax.f32 %v2697_v46, %v2698_v9 }
 0x23c   : > { %v2792_v22 = vrot.slane %v2791_v38, 1  ;;  %v2933_v45 = vmax.f32 %v2931_v27, %v2932_v30  ;;  %v2433_v5 = vmax.f32 %v2431_v52, %v2432_v37  ;;  %v2569_v42 = vmax.f32 %v2567_v19, %v2568_v6  ;;  %v1220_v27 = vld [vmem:[#allocation2 + $0x2f0] sm:$0xff]  ;;  %v1149_v52 = vld [vmem:[#allocation2 + $0x158] sm:$0x3] }
 0x23d   : > { %v2381_v50 = vmax.f32 %v2379_v26, %v2380_v62  ;;  %v2583_v54 = vpack.c.bf16 %v2529_v47, %v2529_v47  ;;  %v1361_v51 = vmax.f32 %v1265_v29, %v1313_v32  ;;  %v2700_v16 = vrot.slane %v2699_v43, 2  ;;  %v4989_v62 = vld [vmem:[#allocation2 + $0x2f8] sm:$0x3] }
 0x23e   : > { %v2793_v12 = vmax.f32 %v2791_v38, %v2792_v22  ;;  %v2934_v24 = vrot.slane %v2933_v45, 1  ;;  %v2434_v4 = vrot.slane %v2433_v5, 1  ;;  %v2570_v36 = vrot.slane %v2569_v42, 1  ;;  %v1152_v38 = vld [vmem:[#allocation2 + $0x190] sm:$0xff]  ;;  %v1201_v47 = vld [vmem:[#allocation2 + $0x1b8] sm:$0x3] }
 0x23f   : > { %v2449_v25 = vpack.c.bf16 %v2381_v50, %v2381_v50  ;;  %v2604_v53 = vsel %vm3781_vm1, %v2583_v54, %v2603_v23  ;;  %v2701_v20 = vmax.f32 %v2699_v43, %v2700_v16  ;;  %v2829_v15 = vsel %vm5413_vm7, %v4930_v58, -inf  ;;  %v1293_v22 = vld [vmem:[#allocation2 + $0x198] sm:$0x3]  ;;  %vm5417_vm7 = vmmov %vm5408_vm10 }
 0x240   : > { %2605 = vst [vmem:[%s3761_s14 + $0x24] sm:$0x1] %v2604_v53  ;;  %v2661_v61 = vmax.f32 %v2659_v48, %v2660_v60  ;;  %v2847_v56 = vpack.c.bf16 %v2793_v12, %v2793_v12  ;;  %v2435_v29 = vmax.f32 %v2433_v5, %v2434_v4  ;;  %v2571_v35 = vmax.f32 %v2569_v42, %v2570_v36  ;;  %v1200_v60 = vld [vmem:[#allocation2 + $0x1b0] sm:$0xff]  ;;  %v5000_v42 = vld [vmem:[#allocation2 + $0x2d8] sm:$0x3] }
 0x241   : > { %v2472_v59 = vsel %vm3922_vm14, %v2449_v25, %v2471_v18  ;;  %v2702_v3 = vrot.slane %v2701_v20, 1  ;;  %v2830_v46 = vrot.slane %v2829_v15, 4  ;;  %v2981_v41 = vsel %vm5408_vm10, %v4930_v58, -inf  ;;  %v1153_v58 = vld [vmem:[#allocation2 + $0x198] sm:$0x3]  ;;  %v1316_v18 = vld [vmem:[#allocation2 + $0x310] sm:$0xff]  ;;  %vm5418_vm10 = vmmov %vm5417_vm7 }
 0x242   : > { %2473 = vst [vmem:[%s3761_s14 + $0x20] sm:$0x8] %v2472_v59  ;;  %v2868_v55 = vsel %vm3792_vm0, %v2847_v56, %v2867_v11  ;;  %v2935_v10 = vmax.f32 %v2933_v45, %v2934_v24  ;;  %v2455_v48 = vpack.c.bf16 %v2435_v29, %v2435_v29  ;;  %v2589_v13 = vpack.c.bf16 %v2571_v35, %v2571_v35  ;;  %v3364_v45 = vld [vmem:[%s5274_s2] ss:$0 sm:$0xff]  ;;  %v3365_v11 = vld [vmem:[#allocation2 + $0x1d0] sm:$0xff] }
 0x243   : > { %2869 = vst [vmem:[%s3761_s14 + $0x24] sm:$0x2] %v2868_v55  ;;  %v2703_v19 = vmax.f32 %v2701_v20, %v2702_v3  ;;  %v2831_v26 = vmax.f32 %v2829_v15, %v2830_v46  ;;  %v2982_v21 = vsel %vm1463_vm6, %v1361_v51, -inf  ;;  %v1244_v9 = vmax.f32 %v4905_v39, %v1196_v2  ;;  %v1297_v15 = vld [vmem:[#allocation2 + $0x1d8] sm:$0x3] }
 0x244   : > { %v2490_v30 = vsel %vm3922_vm14, %v2455_v48, %v2489_v14  ;;  %v2622_v32 = vsel %vm3781_vm1, %v2589_v13, %v2621_v28  ;;  %v2983_v37 = vmax.f32 %v2981_v41, %v2982_v21  ;;  %v1245_v6 = vmax.f32 %v1149_v52, %v1197_v57  ;;  %v2885_v48 = vld [vmem:[%s3761_s14 + $0x54] sm:$0x2] }
 0x245   : > { %v2715_v43 = vpack.c.bf16 %v2661_v61, %v2661_v61  ;;  %2491 = vst [vmem:[%s3761_s14 + $0x50] sm:$0x8] %v2490_v30  ;;  %2623 = vst [vmem:[%s3761_s14 + $0x54] sm:$0x1] %v2622_v32  ;;  %v2832_v23 = vrot.slane %v2831_v26, 2  ;;  %v1268_v39 = vmax.f32 %v4910_v0, %v1220_v27  ;;  %v4998_v5 = vadd.f32 %v3364_v45, %v4711_v34 }
 0x246   : > { %v2984_v50 = vrot.slane %v2983_v37, 4  ;;  %v1248_v54 = vmax.f32 %v1152_v38, %v1200_v60  ;;  %v1249_v51 = vmax.f32 %v1153_v58, %v1201_v47  ;;  %v5002_v16 = vmax.f32 %v1244_v9, %v1152_v38 }
 0x247   : > { %v2735_v12 = vld [vmem:[%s3761_s14 + $0x24] sm:$0x1]  ;;  %v3003_v0 = vpack.c.bf16 %v2935_v10, %v2935_v10  ;;  %v2721_v24 = vpack.c.bf16 %v2703_v19, %v2703_v19  ;;  %v2833_v4 = vmax.f32 %v2831_v26, %v2832_v23  ;;  %v1269_v36 = vmax.f32 %v5000_v42, %v4989_v62 }
 0x248   : > { %v2736_v34 = vsel %vm3847_vm11, %v2715_v43, %v2735_v12  ;;  %v2985_v25 = vmax.f32 %v2983_v37, %v2984_v50  ;;  %v1341_v53 = vmax.f32 %v1245_v6, %v1293_v22  ;;  %v5009_v20 = vmax.f32 %v1248_v54, %v3365_v11 }
 0x249   : > { %2737 = vst [vmem:[%s3761_s14 + $0x24] sm:$0x1] %v2736_v34  ;;  %v2834_v61 = vrot.slane %v2833_v4, 1  ;;  %v2530_v56 = vsel %vm1366_vm2, %v5002_v16, -inf  ;;  %v2662_v29 = vsel %vm5409_vm3, %v5002_v16, -inf  ;;  %v5016_v35 = vmax.f32 %v1268_v39, %v1316_v18 }
 0x24a   : > { %v3023_v28 = vld [vmem:[%s3761_s14 + $0x24] sm:$0x2]  ;;  %v2986_v2 = vrot.slane %v2985_v25, 2  ;;  %v1345_v57 = vmax.f32 %v1249_v51, %v1297_v15  ;;  %v2531_v59 = vrot.slane %v2530_v56, 4  ;;  %v2537_v14 = vsel %vm1366_vm2, %v5009_v20, -inf }
 0x24b   : > { %v3024_v3 = vsel %vm3857_vm13, %v3003_v0, %v3023_v28  ;;  %v2835_v46 = vmax.f32 %v2833_v4, %v2834_v61  ;;  %v2538_v41 = vrot.slane %v2537_v14, 4  ;;  %v2663_v55 = vrot.slane %v2662_v29, 4 }
 0x24c   : > { %3025 = vst [vmem:[%s3761_s14 + $0x24] sm:$0x2] %v3024_v3  ;;  %v2753_v10 = vld [vmem:[%s3761_s14 + $0x54] sm:$0x1]  ;;  %v2987_v13 = vmax.f32 %v2985_v25, %v2986_v2  ;;  %v2532_v27 = vmax.f32 %v2530_v56, %v2531_v59  ;;  %v2669_v52 = vsel %vm5414_vm5, %v5009_v20, -inf  ;;  %v2794_v19 = vsel %vm5415_vm12, %v5002_v16, -inf  ;;  %vm5419_vm5 = vmmov %vm5415_vm12 }
 0x24d   : > { %v2754_v26 = vsel %vm3847_vm11, %v2721_v24, %v2753_v10  ;;  %v2853_v21 = vpack.c.bf16 %v2835_v46, %v2835_v46  ;;  %v2539_v9 = vmax.f32 %v2537_v14, %v2538_v41  ;;  %v2664_v38 = vmax.f32 %v2662_v29, %v2663_v55  ;;  %v1317_v2 = vld [vmem:[#allocation2 + $0x318] sm:$0x3]  ;;  %v2606_v14 = vld [vmem:[%s3761_s14 + $0x2c] sm:$0x1]  ;;  %v2609_v10 = vld [vmem:[%s3761_s14 + $0x34] sm:$0x1] }
 0x24e   : > { %2755 = vst [vmem:[%s3761_s14 + $0x54] sm:$0x1] %v2754_v26  ;;  %v2988_v58 = vrot.slane %v2987_v13, 1  ;;  %v2533_v30 = vrot.slane %v2532_v27, 2  ;;  %v2670_v32 = vrot.slane %v2669_v52, 4  ;;  %v2795_v37 = vrot.slane %v2794_v19, 4  ;;  %vm5420_vm12 = vmmov %vm5417_vm7 }
 0x24f   : > { %v2886_v6 = vsel %vm3792_vm0, %v2853_v21, %v2885_v48  ;;  %v2540_v47 = vrot.slane %v2539_v9, 2  ;;  %v2665_v60 = vrot.slane %v2664_v38, 2  ;;  %v2801_v43 = vsel %vm5416_vm15, %v5009_v20, -inf }
 0x250   : > { %2887 = vst [vmem:[%s3761_s14 + $0x54] sm:$0x2] %v2886_v6  ;;  %v2989_v23 = vmax.f32 %v2987_v13, %v2988_v58  ;;  %v2534_v39 = vmax.f32 %v2532_v27, %v2533_v30  ;;  %v2671_v22 = vmax.f32 %v2669_v52, %v2670_v32  ;;  %v2796_v45 = vmax.f32 %v2794_v19, %v2795_v37 }
 0x251   : > { %v2541_v50 = vmax.f32 %v2539_v9, %v2540_v47  ;;  %v2666_v54 = vmax.f32 %v2664_v38, %v2665_v60  ;;  %v2802_v51 = vrot.slane %v2801_v43, 4  ;;  %v2936_v18 = vsel %vm5417_vm7, %v5002_v16, -inf }
 0x252   : > { %v3009_v12 = vpack.c.bf16 %v2989_v23, %v2989_v23  ;;  %v2535_v0 = vrot.slane %v2534_v39, 1  ;;  %v2672_v24 = vrot.slane %v2671_v22, 2  ;;  %v2797_v4 = vrot.slane %v2796_v45, 2 }
 0x253   : > { %v2542_v34 = vrot.slane %v2541_v50, 1  ;;  %v2667_v25 = vrot.slane %v2666_v54, 1  ;;  %v2803_v11 = vmax.f32 %v2801_v43, %v2802_v51  ;;  %v2937_v15 = vsel %vm1463_vm6, %v1341_v53, -inf }
 0x254   : > { %v2536_v61 = vmax.f32 %v2534_v39, %v2535_v0  ;;  %v2673_v56 = vmax.f32 %v2671_v22, %v2672_v24  ;;  %v2798_v29 = vmax.f32 %v2796_v45, %v2797_v4  ;;  %v2938_v28 = vmax.f32 %v2936_v18, %v2937_v15 }
 0x255   : > { %v2543_v59 = vmax.f32 %v2541_v50, %v2542_v34  ;;  %v2668_v3 = vmax.f32 %v2666_v54, %v2667_v25  ;;  %v2804_v46 = vrot.slane %v2803_v11, 2  ;;  %v2945_v41 = vsel %vm5418_vm10, %v5009_v20, -inf  ;;  %v2873_v50 = vld [vmem:[%s3761_s14 + $0x34] sm:$0x2]  ;;  %vm5423_vm10 = vmmov %vm5409_vm3 }
 0x256   : > { %v2584_v55 = vpack.c.bf16 %v2536_v61, %v2536_v61  ;;  %v2674_v48 = vrot.slane %v2673_v56, 1  ;;  %v2799_v53 = vrot.slane %v2798_v29, 1  ;;  %v2939_v13 = vrot.slane %v2938_v28, 4 }
 0x257   : > { %v3041_v27 = vld [vmem:[%s3761_s14 + $0x54] sm:$0x2]  ;;  %v2585_v52 = vpack.c.bf16 %v2543_v59, %v2543_v59  ;;  %v2805_v19 = vmax.f32 %v2803_v11, %v2804_v46  ;;  %v2946_v26 = vsel %vm1463_vm6, %v1345_v57, -inf  ;;  %v1365_v21 = vmax.f32 %v1269_v36, %v1317_v2  ;;  %v2870_v57 = vld [vmem:[%s3761_s14 + $0x2c] sm:$0x2] }
 0x258   : > { %v3042_v9 = vsel %vm3857_vm13, %v3009_v12, %v3041_v27  ;;  %v2607_v38 = vsel %vm3781_vm1, %v2584_v55, %v2606_v14  ;;  %v2675_v58 = vmax.f32 %v2673_v56, %v2674_v48  ;;  %v2800_v30 = vmax.f32 %v2798_v29, %v2799_v53  ;;  %v1194_v53 = vld [vmem:[#allocation2 + $0x160] sm:$0xff] }
 0x259   : > { %3043 = vst [vmem:[%s3761_s14 + $0x54] sm:$0x2] %v3042_v9  ;;  %2608 = vst [vmem:[%s3761_s14 + $0x2c] sm:$0x1] %v2607_v38  ;;  %v2610_v32 = vsel %vm3781_vm1, %v2585_v52, %v2609_v10  ;;  %v2806_v37 = vrot.slane %v2805_v19, 1  ;;  %v2940_v6 = vmax.f32 %v2938_v28, %v2939_v13  ;;  %v2947_v47 = vmax.f32 %v2945_v41, %v2946_v26  ;;  %v1195_v26 = vld [vmem:[#allocation2 + $0x168] sm:$0xff] }
 0x25a   : > { %2611 = vst [vmem:[%s3761_s14 + $0x34] sm:$0x1] %v2610_v32  ;;  %v2716_v62 = vpack.c.bf16 %v2668_v3, %v2668_v3  ;;  %v2717_v42 = vpack.c.bf16 %v2675_v58, %v2675_v58  ;;  %v2848_v36 = vpack.c.bf16 %v2800_v30, %v2800_v30  ;;  %v2572_v60 = vsel %vm1366_vm2, %v5016_v35, -inf }
 0x25b   : > { %v2807_v43 = vmax.f32 %v2805_v19, %v2806_v37  ;;  %v2941_v23 = vrot.slane %v2940_v6, 2  ;;  %v2948_v39 = vrot.slane %v2947_v47, 4  ;;  %v2573_v22 = vrot.slane %v2572_v60, 4  ;;  %v3366_v37 = vld [vmem:[#allocation2 + $0x140] sm:$0xff] }
 0x25c   : > { %v2871_v45 = vsel %vm3792_vm0, %v2848_v36, %v2870_v57  ;;  %v2704_v54 = vsel %vm5409_vm3, %v5016_v35, -inf  ;;  %v2836_v51 = vsel %vm5419_vm5, %v5016_v35, -inf  ;;  %v2990_v18 = vsel %vm5420_vm12, %v5016_v35, -inf  ;;  %vm5424_vm12 = vmmov %vm5419_vm5 }
 0x25d   : > { %v2849_v12 = vpack.c.bf16 %v2807_v43, %v2807_v43  ;;  %2872 = vst [vmem:[%s3761_s14 + $0x2c] sm:$0x2] %v2871_v45  ;;  %v2942_v0 = vmax.f32 %v2940_v6, %v2941_v23  ;;  %v2949_v24 = vmax.f32 %v2947_v47, %v2948_v39  ;;  %v2574_v4 = vmax.f32 %v2572_v60, %v2573_v22  ;;  %v2624_v60 = vld [vmem:[%s3761_s14 + $0x5c] sm:$0x1] }
 0x25e   : > { %v2705_v34 = vrot.slane %v2704_v54, 4  ;;  %v2837_v25 = vrot.slane %v2836_v51, 4  ;;  %v2991_v11 = vsel %vm1463_vm6, %v1365_v21, -inf  ;;  %v885_v15 = vmax.f32 %v4960_v17, 0.0 }
 0x25f   : > { %v2874_v61 = vsel %vm3792_vm0, %v2849_v12, %v2873_v50  ;;  %v2943_v56 = vrot.slane %v2942_v0, 1  ;;  %v2950_v29 = vrot.slane %v2949_v24, 2  ;;  %v2575_v28 = vrot.slane %v2574_v4, 2  ;;  %v1199_v12 = vld [vmem:[#allocation2 + $0x1a8] sm:$0xff] }
 0x260   : > { %v2738_v2 = vld [vmem:[%s3761_s14 + $0x2c] sm:$0x1]  ;;  %2875 = vst [vmem:[%s3761_s14 + $0x34] sm:$0x2] %v2874_v61  ;;  %v2706_v59 = vmax.f32 %v2704_v54, %v2705_v34  ;;  %v2838_v14 = vmax.f32 %v2836_v51, %v2837_v25  ;;  %v2992_v3 = vmax.f32 %v2990_v18, %v2991_v11  ;;  %vm5421_vm15 = vcmask 523264  }
 0x261   : > { %1075 = vst.msk [vmem:[#allocation2 + $0x181] sm:$0xff] %vm5421_vm15, %v885_v15  ;;  %v921_v46 = vmax.f32 %v4998_v5, 0.0  ;;  %v2739_v17 = vsel %vm3847_vm11, %v2716_v62, %v2738_v2  ;;  %v2741_v41 = vld [vmem:[%s3761_s14 + $0x34] sm:$0x1]  ;;  %v2944_v55 = vmax.f32 %v2942_v0, %v2943_v56  ;;  %v2951_v10 = vmax.f32 %v2949_v24, %v2950_v29  ;;  %vm5422_vm7 = vmmov %vm5421_vm15  ;;  %v3367_v2 = vld [vmem:[#allocation2 + $0x1c0] sm:$0xff] }
 0x262   : > { %v2576_v48 = vmax.f32 %v2574_v4, %v2575_v28  ;;  %2740 = vst [vmem:[%s3761_s14 + $0x2c] sm:$0x1] %v2739_v17  ;;  %v2742_v13 = vsel %vm3847_vm11, %v2717_v42, %v2741_v41  ;;  %v2707_v27 = vrot.slane %v2706_v59, 2  ;;  %v2839_v52 = vrot.slane %v2838_v14, 2  ;;  %v1198_v42 = vld [vmem:[#allocation2 + $0x1a0] sm:$0xff] }
 0x263   : > { %v2993_v19 = vrot.slane %v2992_v3, 4  ;;  %1123 = vst.msk [vmem:[#allocation2 + $0x301] sm:$0xff] %vm5422_vm7, %v921_v46  ;;  %2743 = vst [vmem:[%s3761_s14 + $0x34] sm:$0x1] %v2742_v13  ;;  %v2952_v5 = vrot.slane %v2951_v10, 1  ;;  %v3004_v21 = vpack.c.bf16 %v2944_v55, %v2944_v55  ;;  %v1242_v57 = vmax.f32 %v3366_v37, %v1194_v53 }
 0x264   : > { %v2577_v9 = vrot.slane %v2576_v48, 1  ;;  %v3026_v38 = vld [vmem:[%s3761_s14 + $0x2c] sm:$0x2]  ;;  %v2708_v58 = vmax.f32 %v2706_v59, %v2707_v27  ;;  %v2840_v30 = vmax.f32 %v2838_v14, %v2839_v52  ;;  %v1243_v36 = vmax.f32 %v4854_v31, %v1195_v26 }
 0x265   : > { %v2994_v32 = vmax.f32 %v2992_v3, %v2993_v19  ;;  %v2953_v6 = vmax.f32 %v2951_v10, %v2952_v5  ;;  %v3027_v47 = vsel %vm3857_vm13, %v3004_v21, %v3026_v38  ;;  %v5096_v22 = vsel %vm1463_vm6, %v5002_v16, -inf  ;;  %v3368_v14 = vld [vmem:[#allocation2 + $0x1c8] sm:$0xff] }
 0x266   : > { %v2578_v62 = vmax.f32 %v2576_v48, %v2577_v9  ;;  %3028 = vst [vmem:[%s3761_s14 + $0x2c] sm:$0x2] %v3027_v47  ;;  %v2709_v43 = vrot.slane %v2708_v58, 1  ;;  %v2841_v23 = vrot.slane %v2840_v30, 1  ;;  %v5100_v45 = vsel %vm1463_vm6, %v5009_v20, -inf }
 0x267   : > { %v2995_v39 = vrot.slane %v2994_v32, 2  ;;  %v3005_v50 = vpack.c.bf16 %v2953_v6, %v2953_v6  ;;  %v3029_v54 = vld [vmem:[%s3761_s14 + $0x34] sm:$0x2]  ;;  %v2888_v20 = vld [vmem:[%s3761_s14 + $0x5c] sm:$0x2]  ;;  %vm5425_vm15 = vcmask 523270  }
 0x268   : > { %v2590_v51 = vpack.c.bf16 %v2578_v62, %v2578_v62  ;;  %v1150_v31 = vld [vmem:[#allocation2 + $0x180] sm:$0xff]  ;;  %v1151_v18 = vld [vmem:[#allocation2 + $0x188] sm:$0xff]  ;;  %v2710_v0 = vmax.f32 %v2708_v58, %v2709_v43  ;;  %v2842_v24 = vmax.f32 %v2840_v30, %v2841_v23  ;;  %vm5426_vm7 = vmmov %vm5425_vm15 }
 0x269   : > { %v2996_v4 = vmax.f32 %v2994_v32, %v2995_v39  ;;  %v1246_v34 = vmax.f32 %v1150_v31, %v1198_v42  ;;  %v3030_v16 = vsel %vm3857_vm13, %v3005_v50, %v3029_v54  ;;  %v1247_v11 = vmax.f32 %v1151_v18, %v1199_v12 }
 0x26a   : > { %v2625_v25 = vsel %vm3781_vm1, %v2590_v51, %v2624_v60  ;;  %v1338_v15 = vmax.f32 %v1242_v57, %v1150_v31  ;;  %3031 = vst [vmem:[%s3761_s14 + $0x34] sm:$0x2] %v3030_v16  ;;  %v2722_v61 = vpack.c.bf16 %v2710_v0, %v2710_v0  ;;  %v2854_v56 = vpack.c.bf16 %v2842_v24, %v2842_v24 }
 0x26b   : > { %2626 = vst [vmem:[%s3761_s14 + $0x5c] sm:$0x1] %v2625_v25  ;;  %v2997_v29 = vrot.slane %v2996_v4, 1  ;;  %v5110_v28 = vmax.f32 %v1243_v36, %v1151_v18  ;;  %v1342_v59 = vmax.f32 %v1246_v34, %v3367_v2  ;;  %v5112_v3 = vmax.f32 %v1247_v11, %v3368_v14  ;;  %v1481_v2 = vld [vmem:[%s3761_s14 + $0x28] sm:$0x1] }
 0x26c   : > { %v1402_v46 = vsel %vm1366_vm2, %v1338_v15, -inf  ;;  %v1538_v17 = vsel %vm5423_vm10, %v1338_v15, -inf  ;;  %v2889_v41 = vsel %vm3792_vm0, %v2854_v56, %v2888_v20  ;;  %v1673_v27 = vsel %vm5419_vm5, %v1338_v15, -inf  ;;  %vm5427_vm10 = vmmov %vm5409_vm3 }
 0x26d   : > { %v2998_v55 = vmax.f32 %v2996_v4, %v2997_v29  ;;  %v1403_v10 = vrot.slane %v1402_v46, 4  ;;  %v1539_v48 = vrot.slane %v1538_v17, 4  ;;  %2890 = vst [vmem:[%s3761_s14 + $0x5c] sm:$0x2] %v2889_v41  ;;  %v1409_v53 = vsel %vm1366_vm2, %v1342_v59, -inf }
 0x26e   : > { %v1545_v13 = vsel %vm5409_vm3, %v1342_v59, -inf  ;;  %v1680_v52 = vsel %vm5424_vm12, %v1342_v59, -inf  ;;  %v1410_v5 = vrot.slane %v1409_v53, 4  ;;  %v1674_v38 = vrot.slane %v1673_v27, 4  ;;  %vm5428_vm12 = vmmov %vm5419_vm5 }
 0x26f   : > { %v3010_v19 = vpack.c.bf16 %v2998_v55, %v2998_v55  ;;  %v1404_v26 = vmax.f32 %v1402_v46, %v1403_v10  ;;  %v1540_v21 = vmax.f32 %v1538_v17, %v1539_v48  ;;  %v1546_v9 = vrot.slane %v1545_v13, 4 }
 0x270   : > { %v1681_v58 = vrot.slane %v1680_v52, 4  ;;  %v1820_v30 = vsel %vm5425_vm15, %v1338_v15, -inf  ;;  %v1411_v37 = vmax.f32 %v1409_v53, %v1410_v5  ;;  %v1821_v6 = vsel %vm1463_vm6, %v5110_v28, -inf  ;;  %v1484_v53 = vld [vmem:[%s3761_s14 + $0x30] sm:$0x1]  ;;  %vm5429_vm15 = vmmov %vm5426_vm7 }
 0x271   : > { %v1405_v32 = vrot.slane %v1404_v26, 2  ;;  %v1541_v57 = vrot.slane %v1540_v21, 2  ;;  %v1547_v62 = vmax.f32 %v1545_v13, %v1546_v9  ;;  %v1675_v42 = vmax.f32 %v1673_v27, %v1674_v38  ;;  %v1755_v9 = vld [vmem:[%s3761_s14 + $0x30] sm:$0x2] }
 0x272   : > { %v2756_v47 = vld [vmem:[%s3761_s14 + $0x5c] sm:$0x1]  ;;  %v1682_v36 = vmax.f32 %v1680_v52, %v1681_v58  ;;  %v1822_v60 = vmax.f32 %v1820_v30, %v1821_v6  ;;  %v1412_v39 = vrot.slane %v1411_v37, 2  ;;  %v1829_v34 = vsel %vm5426_vm7, %v1342_v59, -inf }
 0x273   : > { %v2757_v43 = vsel %vm3847_vm11, %v2722_v61, %v2756_v47  ;;  %v1406_v23 = vmax.f32 %v1404_v26, %v1405_v32  ;;  %v1542_v50 = vmax.f32 %v1540_v21, %v1541_v57  ;;  %v1548_v54 = vrot.slane %v1547_v62, 2  ;;  %v1752_v21 = vld [vmem:[%s3761_s14 + $0x28] sm:$0x2] }
 0x274   : > { %2758 = vst [vmem:[%s3761_s14 + $0x5c] sm:$0x1] %v2757_v43  ;;  %v1676_v51 = vrot.slane %v1675_v42, 2  ;;  %v1683_v31 = vrot.slane %v1682_v36, 2  ;;  %v1823_v18 = vrot.slane %v1822_v60, 4  ;;  %v1413_v24 = vmax.f32 %v1411_v37, %v1412_v39 }
 0x275   : > { %v3044_v12 = vld [vmem:[%s3761_s14 + $0x5c] sm:$0x2]  ;;  %v1407_v0 = vrot.slane %v1406_v23, 1  ;;  %v1543_v4 = vrot.slane %v1542_v50, 1  ;;  %v1549_v25 = vmax.f32 %v1547_v62, %v1548_v54  ;;  %v1830_v59 = vsel %vm1463_vm6, %v5112_v3, -inf }
 0x276   : > { %v3045_v16 = vsel %vm3857_vm13, %v3010_v19, %v3044_v12  ;;  %v1677_v20 = vmax.f32 %v1675_v42, %v1676_v51  ;;  %v1684_v11 = vmax.f32 %v1682_v36, %v1683_v31  ;;  %v1414_v61 = vrot.slane %v1413_v24, 1 }
 0x277   : > { %3046 = vst [vmem:[%s3761_s14 + $0x5c] sm:$0x2] %v3045_v16  ;;  %v1408_v15 = vmax.f32 %v1406_v23, %v1407_v0  ;;  %v1544_v56 = vmax.f32 %v1542_v50, %v1543_v4  ;;  %v1824_v29 = vmax.f32 %v1822_v60, %v1823_v18  ;;  %v1550_v14 = vrot.slane %v1549_v25, 1 }
 0x278   : > { %v1678_v46 = vrot.slane %v1677_v20, 1  ;;  %v1685_v17 = vrot.slane %v1684_v11, 1  ;;  %v1415_v41 = vmax.f32 %v1413_v24, %v1414_v61  ;;  %v1831_v19 = vmax.f32 %v1829_v34, %v1830_v59 }
 0x279   : > { %v1456_v55 = vpack.c.bf16 %v1408_v15, %v1408_v15  ;;  %v1592_v10 = vpack.c.bf16 %v1544_v56, %v1544_v56  ;;  %v1825_v48 = vrot.slane %v1824_v29, 2  ;;  %v1551_v13 = vmax.f32 %v1549_v25, %v1550_v14 }
 0x27a   : > { %v1679_v27 = vmax.f32 %v1677_v20, %v1678_v46  ;;  %v1686_v52 = vmax.f32 %v1684_v11, %v1685_v17  ;;  %v1457_v26 = vpack.c.bf16 %v1415_v41, %v1415_v41  ;;  %v1968_v58 = vsel %vm1366_vm2, %v5110_v28, -inf }
 0x27b   : > { %v1482_v5 = vsel %vm3781_vm1, %v1456_v55, %v1481_v2  ;;  %v1826_v38 = vmax.f32 %v1824_v29, %v1825_v48  ;;  %v1593_v30 = vpack.c.bf16 %v1551_v13, %v1551_v13  ;;  %v1832_v57 = vrot.slane %v1831_v19, 4 }
 0x27c   : > { %1483 = vst [vmem:[%s3761_s14 + $0x28] sm:$0x1] %v1482_v5  ;;  %v1727_v32 = vpack.c.bf16 %v1679_v27, %v1679_v27  ;;  %v1728_v37 = vpack.c.bf16 %v1686_v52, %v1686_v52  ;;  %v1485_v6 = vsel %vm3781_vm1, %v1457_v26, %v1484_v53  ;;  %v1969_v62 = vrot.slane %v1968_v58, 4 }
 0x27d   : > { %v1827_v47 = vrot.slane %v1826_v38, 1  ;;  %v1975_v42 = vsel %vm1366_vm2, %v5112_v3, -inf  ;;  %1486 = vst [vmem:[%s3761_s14 + $0x30] sm:$0x1] %v1485_v6  ;;  %v1833_v43 = vmax.f32 %v1831_v19, %v1832_v57  ;;  %v2103_v54 = vsel %vm5427_vm10, %v5110_v28, -inf  ;;  %vm5430_vm10 = vmmov %vm5409_vm3 }
 0x27e   : > { %v1753_v36 = vsel %vm3792_vm0, %v1727_v32, %v1752_v21  ;;  %v1756_v60 = vsel %vm3792_vm0, %v1728_v37, %v1755_v9  ;;  %v1976_v23 = vrot.slane %v1975_v42, 4  ;;  %v1970_v50 = vmax.f32 %v1968_v58, %v1969_v62  ;;  %v2047_v57 = vld [vmem:[%s3761_s14 + $0x28] sm:$0x4] }
 0x27f   : > { %1754 = vst [vmem:[%s3761_s14 + $0x28] sm:$0x2] %v1753_v36  ;;  %1757 = vst [vmem:[%s3761_s14 + $0x30] sm:$0x2] %v1756_v60  ;;  %v1828_v39 = vmax.f32 %v1826_v38, %v1827_v47  ;;  %v2110_v51 = vsel %vm5409_vm3, %v5112_v3, -inf  ;;  %v1834_v31 = vrot.slane %v1833_v43, 2 }
 0x280   : > { %v1977_v18 = vmax.f32 %v1975_v42, %v1976_v23  ;;  %v2104_v12 = vrot.slane %v2103_v54, 4  ;;  %v2111_v0 = vrot.slane %v2110_v51, 4  ;;  %v1971_v4 = vrot.slane %v1970_v50, 2  ;;  %v1218_v47 = vld [vmem:[#allocation2 + $0x2e0] sm:$0xff]  ;;  %v2050_v42 = vld [vmem:[%s3761_s14 + $0x30] sm:$0x4]  ;;  %vm5431_vm3 = vmmov %vm5419_vm5 }
 0x281   : > { %v1888_v24 = vpack.c.bf16 %v1828_v39, %v1828_v39  ;;  %v2237_v34 = vsel %vm5419_vm5, %v5110_v28, -inf  ;;  %v2244_v16 = vsel %vm5428_vm12, %v5112_v3, -inf  ;;  %v1835_v25 = vmax.f32 %v1833_v43, %v1834_v31  ;;  %v1219_v23 = vld [vmem:[#allocation2 + $0x2e8] sm:$0xff]  ;;  %vm5432_vm5 = vmmov %vm5426_vm7 }
 0x282   : > { %v1978_v20 = vrot.slane %v1977_v18, 2  ;;  %v2105_v11 = vmax.f32 %v2103_v54, %v2104_v12  ;;  %v2112_v15 = vmax.f32 %v2110_v51, %v2111_v0  ;;  %v1972_v56 = vmax.f32 %v1970_v50, %v1971_v4  ;;  %v3369_v4 = vld [vmem:[#allocation2 + $0x2c0] sm:$0xff]  ;;  %vm5433_vm12 = vmmov %vm5430_vm10 }
 0x283   : > { %v1616_v61 = vld [vmem:[%s3761_s14 + $0x28] sm:$0x1]  ;;  %v2238_v29 = vrot.slane %v2237_v34, 4  ;;  %v2245_v2 = vrot.slane %v2244_v16, 4  ;;  %v2382_v14 = vsel %vm5429_vm15, %v5110_v28, -inf  ;;  %v1836_v17 = vrot.slane %v1835_v25, 1 }
 0x284   : > { %v1617_v46 = vsel %vm3847_vm11, %v1592_v10, %v1616_v61  ;;  %v1979_v59 = vmax.f32 %v1977_v18, %v1978_v20  ;;  %v2106_v41 = vrot.slane %v2105_v11, 2  ;;  %v1619_v55 = vld [vmem:[%s3761_s14 + $0x30] sm:$0x1]  ;;  %v1973_v48 = vrot.slane %v1972_v56, 1  ;;  %v1315_v20 = vld [vmem:[#allocation2 + $0x308] sm:$0xff] }
 0x285   : > { %1618 = vst [vmem:[%s3761_s14 + $0x28] sm:$0x1] %v1617_v46  ;;  %v2113_v53 = vrot.slane %v2112_v15, 2  ;;  %v2239_v13 = vmax.f32 %v2237_v34, %v2238_v29  ;;  %v2246_v27 = vmax.f32 %v2244_v16, %v2245_v2  ;;  %v1620_v52 = vsel %vm3847_vm11, %v1593_v30, %v1619_v55  ;;  %v2319_v55 = vld [vmem:[%s3761_s14 + $0x30] sm:$0x8] }
 0x286   : > { %v1837_v28 = vmax.f32 %v1835_v25, %v1836_v17  ;;  %v1912_v19 = vld [vmem:[%s3761_s14 + $0x28] sm:$0x2]  ;;  %v1980_v26 = vrot.slane %v1979_v59, 1  ;;  %v2107_v10 = vmax.f32 %v2105_v11, %v2106_v41  ;;  %1621 = vst [vmem:[%s3761_s14 + $0x30] sm:$0x1] %v1620_v52  ;;  %v1974_v9 = vmax.f32 %v1972_v56, %v1973_v48 }
 0x287   : > { %v1913_v5 = vsel %vm3857_vm13, %v1888_v24, %v1912_v19  ;;  %v1915_v21 = vld [vmem:[%s3761_s14 + $0x30] sm:$0x2]  ;;  %v2114_v38 = vmax.f32 %v2112_v15, %v2113_v53  ;;  %v2240_v58 = vrot.slane %v2239_v13, 2  ;;  %v2247_v30 = vrot.slane %v2246_v27, 2  ;;  %v1314_v24 = vld [vmem:[#allocation2 + $0x300] sm:$0xff]  ;;  %v3370_v11 = vld [vmem:[#allocation2 + $0x2c8] sm:$0xff] }
 0x288   : > { %v1889_v32 = vpack.c.bf16 %v1837_v28, %v1837_v28  ;;  %1914 = vst [vmem:[%s3761_s14 + $0x28] sm:$0x2] %v1913_v5  ;;  %v1981_v37 = vmax.f32 %v1979_v59, %v1980_v26  ;;  %v2108_v6 = vrot.slane %v2107_v10, 1  ;;  %v2022_v62 = vpack.c.bf16 %v1974_v9, %v1974_v9  ;;  %v2316_v17 = vld [vmem:[%s3761_s14 + $0x28] sm:$0x8] }
 0x289   : > { %v2115_v36 = vrot.slane %v2114_v38, 1  ;;  %v2241_v60 = vmax.f32 %v2239_v13, %v2240_v58  ;;  %v2384_v43 = vmax.f32 %v2382_v14, %v5096_v22  ;;  %v2248_v51 = vmax.f32 %v2246_v27, %v2247_v30 }
 0x28a   : > { %v1916_v39 = vsel %vm3857_vm13, %v1889_v32, %v1915_v21  ;;  %v2023_v50 = vpack.c.bf16 %v1981_v37, %v1981_v37  ;;  %v2109_v54 = vmax.f32 %v2107_v10, %v2108_v6  ;;  %v2048_v31 = vsel %vm3828_vm9, %v2022_v62, %v2047_v57 }
 0x28b   : > { %1917 = vst [vmem:[%s3761_s14 + $0x30] sm:$0x2] %v1916_v39  ;;  %v2116_v18 = vmax.f32 %v2114_v38, %v2115_v36  ;;  %v2242_v12 = vrot.slane %v2241_v60, 1  ;;  %v2385_v0 = vrot.slane %v2384_v43, 4  ;;  %v1266_v34 = vmax.f32 %v3369_v4, %v1218_v47  ;;  %2049 = vst [vmem:[%s3761_s14 + $0x28] sm:$0x4] %v2048_v31 }
 0x28c   : > { %v2051_v22 = vsel %vm3828_vm9, %v2023_v50, %v2050_v42  ;;  %v2249_v16 = vrot.slane %v2248_v51, 1  ;;  %v2391_v25 = vsel %vm5426_vm7, %v5112_v3, -inf  ;;  %v1267_v15 = vmax.f32 %v3370_v11, %v1219_v23 }
 0x28d   : > { %2052 = vst [vmem:[%s3761_s14 + $0x30] sm:$0x4] %v2051_v22  ;;  %v2243_v61 = vmax.f32 %v2241_v60, %v2242_v12  ;;  %v2386_v56 = vmax.f32 %v2384_v43, %v2385_v0  ;;  %v2393_v29 = vmax.f32 %v2391_v25, %v5100_v45  ;;  %v2157_v2 = vpack.c.bf16 %v2109_v54, %v2109_v54 }
 0x28e   : > { %v2158_v14 = vpack.c.bf16 %v2116_v18, %v2116_v18  ;;  %v2250_v46 = vmax.f32 %v2248_v51, %v2249_v16  ;;  %v1362_v59 = vmax.f32 %v1266_v34, %v1314_v24  ;;  %v5197_v3 = vmax.f32 %v1267_v15, %v1315_v20 }
 0x28f   : > { %v2291_v41 = vpack.c.bf16 %v2243_v61, %v2243_v61  ;;  %v2387_v48 = vrot.slane %v2386_v56, 2  ;;  %v2394_v53 = vrot.slane %v2393_v29, 4 }
 0x290   : > { %v2292_v13 = vpack.c.bf16 %v2250_v46, %v2250_v46  ;;  %v1444_v27 = vsel %vm1366_vm2, %v1362_v59, -inf  ;;  %v1580_v52 = vsel %vm5430_vm10, %v1362_v59, -inf  ;;  %v1715_v45 = vsel %vm5431_vm3, %v1362_v59, -inf }
 0x291   : > { %v2317_v28 = vsel %vm3840_vm4, %v2291_v41, %v2316_v17  ;;  %v2388_v19 = vmax.f32 %v2386_v56, %v2387_v48  ;;  %v2395_v26 = vmax.f32 %v2393_v29, %v2394_v53  ;;  %v1445_v10 = vrot.slane %v1444_v27, 4  ;;  %v1499_v48 = vld [vmem:[%s3761_s14 + $0x58] sm:$0x1] }
 0x292   : > { %2318 = vst [vmem:[%s3761_s14 + $0x28] sm:$0x8] %v2317_v28  ;;  %v2320_v5 = vsel %vm3840_vm4, %v2292_v13, %v2319_v55  ;;  %v1581_v21 = vrot.slane %v1580_v52, 4  ;;  %v1716_v9 = vrot.slane %v1715_v45, 4  ;;  %v1874_v38 = vsel %vm5432_vm5, %v1362_v59, -inf }
 0x293   : > { %v2181_v58 = vld [vmem:[%s3761_s14 + $0x28] sm:$0x4]  ;;  %2321 = vst [vmem:[%s3761_s14 + $0x30] sm:$0x8] %v2320_v5  ;;  %v2389_v32 = vrot.slane %v2388_v19, 1  ;;  %v2396_v37 = vrot.slane %v2395_v26, 2  ;;  %v1446_v57 = vmax.f32 %v1444_v27, %v1445_v10 }
 0x294   : > { %v1875_v6 = vsel %vm1463_vm6, %v5197_v3, -inf  ;;  %v2182_v30 = vsel %vm3914_vm8, %v2157_v2, %v2181_v58  ;;  %v2184_v47 = vld [vmem:[%s3761_s14 + $0x30] sm:$0x4]  ;;  %v1582_v62 = vmax.f32 %v1580_v52, %v1581_v21  ;;  %v1717_v42 = vmax.f32 %v1715_v45, %v1716_v9  ;;  %v1770_v28 = vld [vmem:[%s3761_s14 + $0x58] sm:$0x2] }
 0x295   : > { %v1876_v36 = vmax.f32 %v1874_v38, %v1875_v6  ;;  %2183 = vst [vmem:[%s3761_s14 + $0x28] sm:$0x4] %v2182_v30  ;;  %v2185_v60 = vsel %vm3914_vm8, %v2158_v14, %v2184_v47  ;;  %v2390_v43 = vmax.f32 %v2388_v19, %v2389_v32  ;;  %v2397_v23 = vmax.f32 %v2395_v26, %v2396_v37 }
 0x296   : > { %v1447_v39 = vrot.slane %v1446_v57, 2  ;;  %2186 = vst [vmem:[%s3761_s14 + $0x30] sm:$0x4] %v2185_v60  ;;  %v1583_v50 = vrot.slane %v1582_v62, 2  ;;  %v1718_v54 = vrot.slane %v1717_v42, 2  ;;  %v2010_v31 = vsel %vm1366_vm2, %v5197_v3, -inf  ;;  %vm5434_vm2 = vmmov %vm5431_vm3 }
 0x297   : > { %v1877_v51 = vrot.slane %v1876_v36, 4  ;;  %v2398_v18 = vrot.slane %v2397_v23, 1  ;;  %v2011_v0 = vrot.slane %v2010_v31, 4  ;;  %v2450_v24 = vpack.c.bf16 %v2390_v43, %v2390_v43 }
 0x298   : > { %v1448_v12 = vmax.f32 %v1446_v57, %v1447_v39  ;;  %v1719_v4 = vmax.f32 %v1717_v42, %v1718_v54  ;;  %v2145_v22 = vsel %vm5433_vm12, %v5197_v3, -inf  ;;  %v1584_v29 = vmax.f32 %v1582_v62, %v1583_v50  ;;  %v2065_v62 = vld [vmem:[%s3761_s14 + $0x58] sm:$0x4] }
 0x299   : > { %v1878_v34 = vmax.f32 %v1876_v36, %v1877_v51  ;;  %v2399_v16 = vmax.f32 %v2397_v23, %v2398_v18  ;;  %v2474_v25 = vld [vmem:[%s3761_s14 + $0x28] sm:$0x8]  ;;  %v2012_v11 = vmax.f32 %v2010_v31, %v2011_v0  ;;  %v2146_v15 = vrot.slane %v2145_v22, 4 }
 0x29a   : > { %v1449_v20 = vrot.slane %v1448_v12, 1  ;;  %v2475_v61 = vsel %vm3922_vm14, %v2450_v24, %v2474_v25  ;;  %v2477_v56 = vld [vmem:[%s3761_s14 + $0x30] sm:$0x8]  ;;  %v1720_v2 = vrot.slane %v1719_v4, 1  ;;  %v2437_v55 = vsel %vm1463_vm6, %v5016_v35, -inf  ;;  %vm5435_vm6 = vmmov %vm5432_vm5 }
 0x29b   : > { %v1879_v14 = vrot.slane %v1878_v34, 2  ;;  %v2451_v46 = vpack.c.bf16 %v2399_v16, %v2399_v16  ;;  %2476 = vst [vmem:[%s3761_s14 + $0x28] sm:$0x8] %v2475_v61  ;;  %v2013_v59 = vrot.slane %v2012_v11, 2  ;;  %v2147_v41 = vmax.f32 %v2145_v22, %v2146_v15 }
 0x29c   : > { %v1450_v17 = vmax.f32 %v1448_v12, %v1449_v20  ;;  %v1721_v53 = vmax.f32 %v1719_v4, %v1720_v2  ;;  %v2279_v27 = vsel %vm5434_vm2, %v5197_v3, -inf  ;;  %v1585_v10 = vrot.slane %v1584_v29, 1 }
 0x29d   : > { %v1880_v13 = vmax.f32 %v1878_v34, %v1879_v14  ;;  %v2478_v52 = vsel %vm3922_vm14, %v2451_v46, %v2477_v56  ;;  %v2014_v19 = vmax.f32 %v2012_v11, %v2013_v59  ;;  %v2148_v26 = vrot.slane %v2147_v41, 2  ;;  %v2334_v34 = vld [vmem:[%s3761_s14 + $0x58] sm:$0x8] }
 0x29e   : > { %v1462_v45 = vpack.c.bf16 %v1450_v17, %v1450_v17  ;;  %2479 = vst [vmem:[%s3761_s14 + $0x30] sm:$0x8] %v2478_v52  ;;  %v1733_v5 = vpack.c.bf16 %v1721_v53, %v1721_v53  ;;  %v2280_v35 = vrot.slane %v2279_v27, 4  ;;  %v2436_v58 = vsel %vm5435_vm6, %v5197_v3, -inf }
 0x29f   : > { %v1881_v9 = vrot.slane %v1880_v13, 1  ;;  %v2015_v38 = vrot.slane %v2014_v19, 1  ;;  %v2149_v37 = vmax.f32 %v2147_v41, %v2148_v26  ;;  %v2438_v6 = vmax.f32 %v2436_v58, %v2437_v55 }
 0x2a0   : > { %v1500_v21 = vsel %vm3781_vm1, %v1462_v45, %v1499_v48  ;;  %v1771_v32 = vsel %vm3792_vm0, %v1733_v5, %v1770_v28  ;;  %v2281_v57 = vmax.f32 %v2279_v27, %v2280_v35  ;;  %v1586_v47 = vmax.f32 %v1584_v29, %v1585_v10 }
 0x2a1   : > { %1501 = vst [vmem:[%s3761_s14 + $0x58] sm:$0x1] %v1500_v21  ;;  %1772 = vst [vmem:[%s3761_s14 + $0x58] sm:$0x2] %v1771_v32  ;;  %v2016_v30 = vmax.f32 %v2014_v19, %v2015_v38  ;;  %v2439_v42 = vrot.slane %v2438_v6, 4  ;;  %v1882_v36 = vmax.f32 %v1880_v13, %v1881_v9  ;;  %v2150_v3 = vrot.slane %v2149_v37, 1 }
 0x2a2   : > { %v2282_v40 = vrot.slane %v2281_v57, 2  ;;  %v1598_v39 = vpack.c.bf16 %v1586_v47, %v1586_v47 }
 0x2a3   : > { %v2028_v60 = vpack.c.bf16 %v2016_v30, %v2016_v30  ;;  %v2440_v49 = vmax.f32 %v2438_v6, %v2439_v42  ;;  %v1894_v31 = vpack.c.bf16 %v1882_v36, %v1882_v36  ;;  %v2151_v0 = vmax.f32 %v2149_v37, %v2150_v3 }
 0x2a4   : > { %v2283_v43 = vmax.f32 %v2281_v57, %v2282_v40 }
 0x2a5   : > { %v2066_v23 = vsel %vm3828_vm9, %v2028_v60, %v2065_v62  ;;  %v2441_v54 = vrot.slane %v2440_v49, 2  ;;  %v2163_v25 = vpack.c.bf16 %v2151_v0, %v2151_v0 }
 0x2a6   : > { %2067 = vst [vmem:[%s3761_s14 + $0x58] sm:$0x4] %v2066_v23  ;;  %v2284_v50 = vrot.slane %v2283_v43, 1 }
 0x2a7   : > { %v2442_v4 = vmax.f32 %v2440_v49, %v2441_v54 }
 0x2a8   : > { %v1634_v51 = vld [vmem:[%s3761_s14 + $0x58] sm:$0x1]  ;;  %v1930_v12 = vld [vmem:[%s3761_s14 + $0x58] sm:$0x2]  ;;  %v2285_v24 = vmax.f32 %v2283_v43, %v2284_v50 }
 0x2a9   : > { %v1635_v18 = vsel %vm3847_vm11, %v1598_v39, %v1634_v51  ;;  %v1931_v33 = vsel %vm3857_vm13, %v1894_v31, %v1930_v12  ;;  %v2443_v16 = vrot.slane %v2442_v4, 1 }
 0x2aa   : > { %1636 = vst [vmem:[%s3761_s14 + $0x58] sm:$0x1] %v1635_v18  ;;  %1932 = vst [vmem:[%s3761_s14 + $0x58] sm:$0x2] %v1931_v33  ;;  %v2297_v22 = vpack.c.bf16 %v2285_v24, %v2285_v24 }
 0x2ab   : > { %v2444_v15 = vmax.f32 %v2442_v4, %v2443_v16 }
 0x2ac   : > { %v2335_v63 = vsel %vm3840_vm4, %v2297_v22, %v2334_v34 }
 0x2ad   : > { %v2199_v20 = vld [vmem:[%s3761_s14 + $0x58] sm:$0x4]  ;;  %2336 = vst [vmem:[%s3761_s14 + $0x58] sm:$0x8] %v2335_v63  ;;  %v2456_v61 = vpack.c.bf16 %v2444_v15, %v2444_v15 }
 0x2ae   : > { %v2200_v11 = vsel %vm3914_vm8, %v2163_v25, %v2199_v20 }
 0x2af   : > { %2201 = vst [vmem:[%s3761_s14 + $0x58] sm:$0x4] %v2200_v11 }
 0x2b4   : > { %v2492_v56 = vld [vmem:[%s3761_s14 + $0x58] sm:$0x8] }
 0x2b5   : > { %v2493_v1 = vsel %vm3922_vm14, %v2456_v61, %v2492_v56 }
 0x2b6   : > { %2494 = vst [vmem:[%s3761_s14 + $0x58] sm:$0x8] %v2493_v1 }
 0x2b7 PF: > { %s13_s12 = sadd.s32 1, %s3377_s12  }
 0x2b8   : > { %p10_p4 = scmp.ge.s32.totalorder %s13_s12, 4  }
 0x2ba   :  { %12 = sbr.rel (!%p10_p4) target bundleno = 1 (0x1), region = 86 }

// kernel: net_forward.4
= control target key start
LH: loop header
LB: loop body
LE: loop exit
PB: predicated region body
PF: predicated region fallthrough
CT: control target
= control target key end

     0   :  { %s4148_s12 = smov 0   ;;  %s5220_s0 = inlined_call_operand.vmem [shape: bf16[2,144,1664], index: 0, kind: input, shape index: {}]   ;;  %s5221_s1 = inlined_call_operand.vmem [shape: bf16[1664,64], index: 1, kind: input, shape index: {}]   ;;  %s5222_s2 = inlined_call_operand.vmem [shape: f32[1,64], index: 2, kind: input, shape index: {}]   ;;  %s5223_s3 = inlined_call_operand.vmem [shape: bf16[2,6,6,64], index: 3, kind: output, shape index: {}]  }
   0x1 LB: > { %s3095_s13 = sadd.s32 4294967295, %s4124_s12   ;;  %p3099_p0 = scmp.ge.s32.totalorder %s4124_s12, 1  ;;  %s4124_s12 = sphi %s4148_s12, %s13_s12  }
   0x2   : > { %p137_p1 = scmp.lt.s32.totalorder %s4124_s12, 3 }
   0x4   : > { %p138_p2 = pnand %p3099_p0, %p137_p1 }
   0x5   : > { %v3843_v0 = vld [vmem:[%s5221_s1 + $0x40] sm:$0xff] (!%p138_p2)   ;;  %v3845_v2 = vld [vmem:[%s5221_s1 + $0x48] sm:$0xff] (!%p138_p2)   ;;  %p161_p3 = scmp.lt.s32.totalorder (!%p138_p2), %s3095_s13, 1  ;;  %v3847_v4 = vld [vmem:[%s5221_s1 + $0x50] sm:$0xff] (!%p138_p2)   ;;  %vm4127_vm0 = vmmov (!%p138_p2), 0   ;;  %vm2484_vm1 = vcmask (!%p138_p2), 523264  }
   0x6   : > { %141 = sbr.rel (%p138_p2) target bundleno = 583 (0x247), region = 32  ;;  %v3844_v1 = vld [vmem:[%s5221_s1] sm:$0xff] (!%p138_p2)   ;;  %3815 = vmatprep.subr.bf16.mxu1 (!%p138_p2), %v3843_v0  ;;  %3326 = vmatprep.subr.bf16.mxu0 (!%p138_p2), %v3843_v0  ;;  %v3846_v3 = vld [vmem:[%s5221_s1 + $0x8] sm:$0xff] (!%p138_p2)   ;;  %v3848_v5 = vld [vmem:[%s5221_s1 + $0x10] sm:$0xff] (!%p138_p2)   ;;  %vm2486_vm2 = vcmask (!%p138_p2), 521216   ;;  %vm2516_vm3 = vcmask (!%p138_p2), 519168  }
   0x7   : > { %3823 = vmatpush3.bf16.msra.mxu1 (!%p138_p2), %v3844_v1  ;;  %3327 = vmatpush3.bf16.msra.mxu0 (!%p138_p2), %v3844_v1  ;;  %v3849_v6 = vld [vmem:[%s5221_s1 + $0x58] sm:$0xff] (!%p138_p2)   ;;  %v3851_v8 = vld [vmem:[%s5221_s1 + $0x60] sm:$0xff] (!%p138_p2)   ;;  %v3853_v10 = vld [vmem:[%s5221_s1 + $0x68] sm:$0xff] (!%p138_p2)   ;;  %vm5224_vm4 = vcmask (!%p138_p2), 523268   ;;  %vm2612_vm5 = vcmask (!%p138_p2), 518144   ;;  %vm2661_vm6 = vcmask (!%p138_p2), 516096  }
   0x8   : > { %3816 = vmatprep.subr.bf16.mxu1 (!%p138_p2), %v3845_v2  ;;  %3328 = vmatprep.subr.bf16.mxu0 (!%p138_p2), %v3845_v2  ;;  %v3850_v7 = vld [vmem:[%s5221_s1 + $0x18] sm:$0xff] (!%p138_p2)   ;;  %v3852_v9 = vld [vmem:[%s5221_s1 + $0x20] sm:$0xff] (!%p138_p2)   ;;  %v3854_v12 = vld [vmem:[%s5221_s1 + $0x28] sm:$0xff] (!%p138_p2)   ;;  %vm2682_vm7 = vcmask (!%p138_p2), 520194   ;;  %vm2751_vm8 = vcmask (!%p138_p2), 522244   ;;  %vm5225_vm9 = vcmask (!%p138_p2), 523270  }
   0x9   : > { %v3855_v13 = vld [vmem:[%s5221_s1 + $0x70] sm:$0xff] (!%p138_p2)   ;;  %v3857_v16 = vld [vmem:[%s5221_s1 + $0x78] sm:$0xff] (!%p138_p2)   ;;  %v3862_v18 = vld [vmem:[%s5221_s1 + $0xc0] sm:$0xff] (!%p138_p2)   ;;  %vm2662_vm10 = vsmask.f32 (!%p138_p2), 256  ;;  %vm2800_vm11 = vcmask (!%p138_p2), 517121  }
   0xa   : > { %v3856_v14 = vld [vmem:[%s5221_s1 + $0x30] sm:$0xff] (!%p138_p2)   ;;  %v3858_v17 = vld [vmem:[%s5221_s1 + $0x38] sm:$0xff] (!%p138_p2)   ;;  %v3873_v20 = vld [vmem:[%s5221_s1 + $0x140] sm:$0xff] (!%p138_p2)   ;;  %vm2801_vm12 = vsmask.f32 (!%p138_p2), 1280  ;;  %vm2951_vm13 = vcmask (!%p138_p2), 518146  }
   0xb   : > { %3824 = vmatpush3.bf16.msra.mxu1 (!%p138_p2), %v3846_v3  ;;  %3329 = vmatpush3.bf16.msra.mxu0 (!%p138_p2), %v3846_v3  ;;  %v3863_v21 = vld [vmem:[%s5221_s1 + $0x80] sm:$0xff] (!%p138_p2)   ;;  %v3864_v22 = vld [vmem:[%s5221_s1 + $0xc8] sm:$0xff] (!%p138_p2)   ;;  %v3872_v29 = vld [vmem:[%s5221_s1 + $0xd0] sm:$0xff] (!%p138_p2)   ;;  %vm2952_vm14 = vsmask.f32 (!%p138_p2), 2304 }
   0xc   : > { %3817 = vmatprep.subr.bf16.mxu1 (!%p138_p2), %v3847_v4  ;;  %3330 = vmatprep.subr.bf16.mxu0 (!%p138_p2), %v3847_v4  ;;  %v3875_v25 = vld [vmem:[%s5221_s1 + $0x100] sm:$0xff] (!%p138_p2)   ;;  %v3876_v26 = vld [vmem:[%s5221_s1 + $0x148] sm:$0xff] (!%p138_p2)   ;;  %v3874_v32 = vld [vmem:[%s5221_s1 + $0x90] sm:$0xff] (!%p138_p2)   ;;  %vm2731_vm15 = vsmask.f32 (!%p138_p2), 7938 }
   0xd   : > { %s5246_s13 = smov (!%p161_p3, %s3095_s13), 1  ;;  %v3865_v27 = vld [vmem:[%s5221_s1 + $0x88] sm:$0xff]   ;;  %v3886_v34 = vld [vmem:[%s5221_s1 + $0x150] sm:$0xff]   ;;  %v3879_v36 = vld [vmem:[%s5221_s1 + $0xd8] sm:$0xff]  }
   0xe   : > { %s3831_s28 = smul.u32 936, %s5246_s13  ;;  %v3880_v31 = vld [vmem:[%s5221_s1 + $0x108] sm:$0xff]   ;;  %v3887_v37 = vld [vmem:[%s5221_s1 + $0x110] sm:$0xff]   ;;  %v3882_v38 = vld [vmem:[%s5221_s1 + $0x98] sm:$0xff]  }
   0xf   : > { %3825 = vmatpush3.bf16.msra.mxu1 %v3848_v5  ;;  %3331 = vmatpush3.bf16.msra.mxu0 %v3848_v5  ;;  %v3890_v39 = vld [vmem:[%s5221_s1 + $0x158] sm:$0xff]   ;;  %v3888_v41 = vld [vmem:[%s5221_s1 + $0xe0] sm:$0xff]   ;;  %v3897_v48 = vld [vmem:[%s5221_s1 + $0xe8] sm:$0xff]  }
  0x10   : > { %3818 = vmatprep.subr.bf16.mxu1 %v3849_v6  ;;  %3332 = vmatprep.subr.bf16.mxu0 %v3849_v6  ;;  %s4189_s8 = scalar_lea.vmem %s5220_s0, %s3831_s28  ;;  %v3893_v43 = vld [vmem:[%s5221_s1 + $0x118] sm:$0xff]   ;;  %v3889_v44 = vld [vmem:[%s5221_s1 + $0xa0] sm:$0xff]   ;;  %v3903_v50 = vld [vmem:[%s5221_s1 + $0x168] sm:$0xff]  }
  0x11   : > { %v3861_v11 = vld [vmem:[%s4189_s8 + $0x1a4] ss:$52 sps:$4 sm:$0xff]   ;;  %v3859_v19 = vld [vmem:[%s4189_s8 + $0x1a0] ss:$52 sps:$4 sm:$0xff]   ;;  %v3868_v30 = vld [vmem:[%s4189_s8 + $0x208] ss:$52 sps:$4 sm:$0xff]  }
  0x12   : > { %1795 = vmatprep.mubr.bf16.mxu1 %v3861_v11  ;;  %v3871_v15 = vld [vmem:[%s4189_s8 + $0x4] ss:$52 sps:$4 sm:$0xff]   ;;  %v3869_v23 = vld [vmem:[%s4189_s8] ss:$52 sps:$4 sm:$0xff]   ;;  %v3885_v35 = vld [vmem:[%s4189_s8 + $0x68] ss:$52 sps:$4 sm:$0xff]  }
  0x13   : > { %3826 = vmatpush3.bf16.msra.mxu1 %v3850_v7  ;;  %3333 = vmatpush3.bf16.msra.mxu0 %v3850_v7  ;;  %v3866_v24 = vld [vmem:[%s4189_s8 + $0x20c] ss:$52 sps:$4 sm:$0xff]   ;;  %v3877_v33 = vld [vmem:[%s4189_s8 + $0x274] ss:$52 sps:$4 sm:$0xff]   ;;  %v3881_v42 = vld [vmem:[%s4189_s8 + $0x270] ss:$52 sps:$4 sm:$0xff]  }
  0x14   : > { %3819 = vmatprep.subr.bf16.mxu1 %v3851_v8  ;;  %3334 = vmatprep.subr.bf16.mxu0 %v3851_v8  ;;  %v3883_v28 = vld [vmem:[%s4189_s8 + $0x6c] ss:$52 sps:$4 sm:$0xff]   ;;  %v3895_v40 = vld [vmem:[%s4189_s8 + $0xd4] ss:$52 sps:$4 sm:$0xff]   ;;  %v3891_v45 = vld [vmem:[%s4189_s8 + $0x2dc] ss:$52 sps:$4 sm:$0xff]  }
  0x15   : > { %1763 = vmatprep.mubr.bf16.mxu0 %v3871_v15  ;;  %v3898_v46 = vld [vmem:[%s4189_s8 + $0xd0] ss:$52 sps:$4 sm:$0xff]   ;;  %v3899_v51 = vld [vmem:[%s5221_s1 + $0xa8] sm:$0xff]   ;;  %v3913_v60 = vld [vmem:[%s5221_s1 + $0xf8] sm:$0xff]  }
  0x16   : > { %v3900_v47 = vld [vmem:[%s5221_s1 + $0x160] sm:$0xff]   ;;  %v3894_v52 = vld [vmem:[%s4189_s8 + $0x2d8] ss:$52 sps:$4 sm:$0xff]   ;;  %v3902_v53 = vld [vmem:[%s5221_s1 + $0xf0] sm:$0xff]  }
  0x17   : > { %3827 = vmatpush3.bf16.msra.mxu1 %v3852_v9  ;;  %3335 = vmatpush3.bf16.msra.mxu0 %v3852_v9  ;;  %v3901_v49 = vld [vmem:[%s5221_s1 + $0x120] sm:$0xff]   ;;  %v3907_v54 = vld [vmem:[%s5221_s1 + $0x128] sm:$0xff]   ;;  %v3906_v56 = vld [vmem:[%s5221_s1 + $0xb0] sm:$0xff]  }
  0x18   : > { %3820 = vmatprep.subr.bf16.mxu1 %v3853_v10  ;;  %3336 = vmatprep.subr.bf16.mxu0 %v3853_v10  ;;  %v3904_v55 = vld [vmem:[%s4189_s8 + $0x344] ss:$52 sps:$4 sm:$0xff]   ;;  %v3909_v57 = vld [vmem:[%s4189_s8 + $0x13c] ss:$52 sps:$4 sm:$0xff]   ;;  %v3908_v0 = vld [vmem:[%s4189_s8 + $0x340] ss:$52 sps:$4 sm:$0xff]  }
  0x19   : > { %v3911_v58 = vld [vmem:[%s4189_s8 + $0x138] ss:$52 sps:$4 sm:$0xff]   ;;  %v3912_v59 = vld [vmem:[%s5221_s1 + $0x170] sm:$0xff]   ;;  %v3921_v3 = vld [vmem:[%s5221_s1 + $0x1c0] sm:$0xff]  }
  0x1a   : > { %v3914_v61 = vld [vmem:[%s5221_s1 + $0x130] sm:$0xff]   ;;  %v3916_v62 = vld [vmem:[%s5221_s1 + $0x178] sm:$0xff]   ;;  %v3919_v1 = vld [vmem:[%s4189_s8 + $0xc] ss:$52 sps:$4 sm:$0xff]  }
  0x1b   : > { %3828 = vmatpush3.bf16.msra.mxu1 %v3854_v12  ;;  %3337 = vmatpush3.bf16.msra.mxu0 %v3854_v12  ;;  %v3915_v63 = vld [vmem:[%s5221_s1 + $0xb8] sm:$0xff]   ;;  %v3922_v4 = vld [vmem:[%s4189_s8 + $0x10] ss:$52 sps:$4 sm:$0xff]   ;;  %v3924_v5 = vld [vmem:[%s4189_s8 + $0x14] ss:$52 sps:$4 sm:$0xff]  }
  0x1c   : > { %3821 = vmatprep.subr.bf16.mxu1 %v3855_v13  ;;  %3338 = vmatprep.subr.bf16.mxu0 %v3855_v13  ;;  %v3920_v2 = vld [vmem:[%s5221_s1 + $0x138] sm:$0xff]   ;;  %v3926_v6 = vld [vmem:[%s5221_s1 + $0x240] sm:$0xff]   ;;  %v3928_v11 = vld [vmem:[%s4189_s8 + $0x74] ss:$52 sps:$4 sm:$0xff]  }
  0x1d   : > { %v3927_v7 = vld [vmem:[%s5221_s1 + $0x200] sm:$0xff]   ;;  %v3917_v8 = vld [vmem:[%s4189_s8 + $0x8] ss:$52 sps:$4 sm:$0xff]   ;;  %v3934_v13 = vld [vmem:[%s4189_s8 + $0x78] ss:$52 sps:$4 sm:$0xff]  }
  0x1e   : > { %v3931_v9 = vld [vmem:[%s4189_s8 + $0x7c] ss:$52 sps:$4 sm:$0xff]   ;;  %v3925_v10 = vld [vmem:[%s5221_s1 + $0x180] sm:$0xff]   ;;  %v3933_v12 = vld [vmem:[%s5221_s1 + $0x1c8] sm:$0xff]  }
  0x1f   : > { %3829 = vmatpush3.bf16.msra.mxu1 %v3856_v14  ;;  %3339 = vmatpush3.bf16.msra.mxu0 %v3856_v14  ;;  %v3936_v14 = vld [vmem:[%s5221_s1 + $0x248] sm:$0xff]  }
  0x20   : > { %3822 = vmatprep.subr.bf16.mxu1 %v3857_v16  ;;  %3340 = vmatprep.subr.bf16.mxu0 %v3857_v16  ;;  %v3939_v15 = vld [vmem:[%s5221_s1 + $0x208] sm:$0xff]  }
  0x21   : > { %v3935_v16 = vld [vmem:[%s5221_s1 + $0x188] sm:$0xff]  }
  0x23   : > { %3830 = vmatpush3.bf16.msra.mxu1 %v3858_v17  ;;  %3341 = vmatpush3.bf16.msra.mxu0 %v3858_v17  ;;  %v3941_v17 = vld [vmem:[%s4189_s8 + $0xe4] ss:$52 sps:$4 sm:$0xff]  }
  0x24   : > { %3396 = vmatprep.subr.bf16.mxu1 %v3862_v18  ;;  %3466 = vmatprep.subr.bf16.mxu0 %v3873_v20  ;;  %v3930_v18 = vld [vmem:[%s4189_s8 + $0x70] ss:$52 sps:$4 sm:$0xff]  }
  0x25   : > { %v3937_v20 = vld [vmem:[%s4189_s8 + $0xdc] ss:$52 sps:$4 sm:$0xff]  }
  0x26   : > { %1796 = vmatmul.mubr.bf16.vlgmr.msra.gmra.mrb[0].mxu1 %v3859_v19  ;;  %1764 = vmatmul.mubr.bf16.vlgmr.msra.gmra.mrb[0].mxu0 %v3869_v23  ;;  %v3944_v19 = vld [vmem:[%s5221_s1 + $0x1d0] sm:$0xff]  }
  0x27   : > { %3397 = vmatpush3.bf16.msra.mxu1 %v3863_v21  ;;  %1803 = vmatprep.mubr.bf16.mxu1 %v3866_v24  ;;  %v3945_v21 = vld [vmem:[%s5221_s1 + $0x190] sm:$0xff]  }
  0x28   : > { %3398 = vmatprep.subr.bf16.mxu1 %v3864_v22  ;;  %3467 = vmatpush3.bf16.msra.mxu0 %v3875_v25  ;;  %v3948_v22 = vld [vmem:[%s5221_s1 + $0x250] sm:$0xff]   ;;  %v3951_v25 = vld [vmem:[%s4189_s8 + $0x14c] ss:$52 sps:$4 sm:$0xff]  }
  0x29   : > { %3468 = vmatprep.subr.bf16.mxu0 %v3876_v26  ;;  %1771 = vmatprep.mubr.bf16.mxu0 %v3883_v28  ;;  %v3943_v23 = vld [vmem:[%s4189_s8 + $0xe0] ss:$52 sps:$4 sm:$0xff]   ;;  %v3954_v26 = vld [vmem:[%s5221_s1 + $0x1d8] sm:$0xff]  }
  0x2a   : > { %v3950_v24 = vld [vmem:[%s5221_s1 + $0x210] sm:$0xff]   ;;  %v3940_v28 = vld [vmem:[%s4189_s8 + $0xd8] ss:$52 sps:$4 sm:$0xff]  }
  0x2b   : > { %3399 = vmatpush3.bf16.msra.mxu1 %v3865_v27  ;;  %v3955_v27 = vld [vmem:[%s5221_s1 + $0x198] sm:$0xff]  }
  0x2c   : > { %3400 = vmatprep.subr.bf16.mxu1 %v3872_v29  ;;  %3469 = vmatpush3.bf16.msra.mxu0 %v3880_v31  ;;  %v3946_v29 = vld [vmem:[%s4189_s8 + $0x144] ss:$52 sps:$4 sm:$0xff]   ;;  %v3953_v31 = vld [vmem:[%s4189_s8 + $0x148] ss:$52 sps:$4 sm:$0xff]  }
  0x2d   : > { %3470 = vmatprep.subr.bf16.mxu0 %v3886_v34  ;;  %v3964_v34 = vld [vmem:[%s5221_s1 + $0x1e0] sm:$0xff]  }
  0x2e   : > { %1804 = vmatmul.mubr.bf16.gmra.mrb[4].mxu1 %v3868_v30  ;;  %1772 = vmatmul.mubr.bf16.gmra.mrb[4].mxu0 %v3885_v35  ;;  %v3959_v30 = vld [vmem:[%s5221_s1 + $0x258] sm:$0xff]   ;;  %v3965_v35 = vld [vmem:[%s5221_s1 + $0x1a0] sm:$0xff]  }
  0x2f   : > { %3401 = vmatpush3.bf16.msra.mxu1 %v3874_v32  ;;  %1811 = vmatprep.mubr.bf16.mxu1 %v3877_v33  ;;  %v3962_v32 = vld [vmem:[%s5221_s1 + $0x218] sm:$0xff]   ;;  %v3960_v33 = vld [vmem:[%s4189_s8 + $0x1b4] ss:$52 sps:$4 sm:$0xff]  }
  0x30   : > { %3402 = vmatprep.subr.bf16.mxu1 %v3879_v36  ;;  %3471 = vmatpush3.bf16.msra.mxu0 %v3887_v37  ;;  %v3949_v36 = vld [vmem:[%s4189_s8 + $0x140] ss:$52 sps:$4 sm:$0xff]  }
  0x31   : > { %3472 = vmatprep.subr.bf16.mxu0 %v3890_v39  ;;  %1779 = vmatprep.mubr.bf16.mxu0 %v3895_v40  ;;  %v3956_v37 = vld [vmem:[%s4189_s8 + $0x1ac] ss:$52 sps:$4 sm:$0xff]   ;;  %v3969_v40 = vld [vmem:[%s4189_s8 + $0x21c] ss:$52 sps:$4 sm:$0xff]  }
  0x32   : > { %v3971_v39 = vld [vmem:[%s5221_s1 + $0x260] sm:$0xff]  }
  0x33   : > { %3403 = vmatpush3.bf16.msra.mxu1 %v3882_v38  ;;  %v3963_v38 = vld [vmem:[%s4189_s8 + $0x1b0] ss:$52 sps:$4 sm:$0xff]  }
  0x34   : > { %3404 = vmatprep.subr.bf16.mxu1 %v3888_v41  ;;  %3473 = vmatpush3.bf16.msra.mxu0 %v3893_v43  ;;  %v3973_v41 = vld [vmem:[%s5221_s1 + $0x220] sm:$0xff]   ;;  %v3975_v43 = vld [vmem:[%s5221_s1 + $0x1a8] sm:$0xff]  }
  0x35   : > { %3474 = vmatprep.subr.bf16.mxu0 %v3900_v47  ;;  %v3983_v47 = vld [vmem:[%s5221_s1 + $0x228] sm:$0xff]  }
  0x36   : > { %1812 = vmatmul.mubr.bf16.gmra.mrb[8].mxu1 %v3881_v42  ;;  %1780 = vmatmul.mubr.bf16.gmra.mrb[8].mxu0 %v3898_v46  ;;  %v3974_v42 = vld [vmem:[%s5221_s1 + $0x1e8] sm:$0xff]  }
  0x37   : > { %3405 = vmatpush3.bf16.msra.mxu1 %v3889_v44  ;;  %1819 = vmatprep.mubr.bf16.mxu1 %v3891_v45  ;;  %v3958_v44 = vld [vmem:[%s4189_s8 + $0x1a8] ss:$52 sps:$4 sm:$0xff]  }
  0x38   : > { %3406 = vmatprep.subr.bf16.mxu1 %v3897_v48  ;;  %3475 = vmatpush3.bf16.msra.mxu0 %v3901_v49  ;;  %v3966_v45 = vld [vmem:[%s4189_s8 + $0x214] ss:$52 sps:$4 sm:$0xff]   ;;  %v3972_v49 = vld [vmem:[%s4189_s8 + $0x218] ss:$52 sps:$4 sm:$0xff]  }
  0x39   : > { %3476 = vmatprep.subr.bf16.mxu0 %v3903_v50  ;;  %1787 = vmatprep.mubr.bf16.mxu0 %v3909_v57  ;;  %v3982_v46 = vld [vmem:[%s5221_s1 + $0x268] sm:$0xff]   ;;  %v3984_v48 = vld [vmem:[%s5221_s1 + $0x1f0] sm:$0xff]   ;;  %v3979_v50 = vld [vmem:[%s4189_s8 + $0x284] ss:$52 sps:$4 sm:$0xff]  }
  0x3a   : > { %v3996_v57 = vld [vmem:[%s5221_s1 + $0x1f8] sm:$0xff]  }
  0x3b   : > { %3407 = vmatpush3.bf16.msra.mxu1 %v3899_v51  ;;  %v3987_v51 = vld [vmem:[%s5221_s1 + $0x1b0] sm:$0xff]  }
  0x3c   : > { %3408 = vmatprep.subr.bf16.mxu1 %v3902_v53  ;;  %3477 = vmatpush3.bf16.msra.mxu0 %v3907_v54  ;;  %v3992_v53 = vld [vmem:[%s5221_s1 + $0x270] sm:$0xff]  }
  0x3d   : > { %3478 = vmatprep.subr.bf16.mxu0 %v3912_v59  ;;  %v3993_v54 = vld [vmem:[%s5221_s1 + $0x230] sm:$0xff]   ;;  %v3989_v59 = vld [vmem:[%s4189_s8 + $0x2ec] ss:$52 sps:$4 sm:$0xff]  }
  0x3e   : > { %1820 = vmatmul.mubr.bf16.gmra.mrb[12].mxu1 %v3894_v52  ;;  %1788 = vmatmul.mubr.bf16.gmra.mrb[12].mxu0 %v3911_v58  ;;  %v3968_v52 = vld [vmem:[%s4189_s8 + $0x210] ss:$52 sps:$4 sm:$0xff]   ;;  %v3998_v58 = vld [vmem:[%s5221_s1 + $0x1b8] sm:$0xff]  }
  0x3f   : > { %1827 = vmatprep.mubr.bf16.mxu1 %v3904_v55  ;;  %3409 = vmatpush3.bf16.msra.mxu1 %v3906_v56  ;;  %v3976_v55 = vld [vmem:[%s4189_s8 + $0x27c] ss:$52 sps:$4 sm:$0xff]   ;;  %v3981_v56 = vld [vmem:[%s4189_s8 + $0x280] ss:$52 sps:$4 sm:$0xff]  }
  0x40   : > { %3410 = vmatprep.subr.bf16.mxu1 %v3913_v60  ;;  %3479 = vmatpush3.bf16.msra.mxu0 %v3914_v61  ;;  %v4002_v60 = vld [vmem:[%s5221_s1 + $0x278] sm:$0xff]  }
  0x41   : > { %3480 = vmatprep.subr.bf16.mxu0 %v3916_v62  ;;  %1973 = vmatprep.mubr.bf16.mxu0 %v3924_v5  ;;  %v4003_v61 = vld [vmem:[%s5221_s1 + $0x238] sm:$0xff]   ;;  %v3994_v5 = vld [vmem:[%s4189_s8 + $0x34c] ss:$52 sps:$4 sm:$0xff]  }
  0x42   : > { %v3978_v62 = vld [vmem:[%s4189_s8 + $0x278] ss:$52 sps:$4 sm:$0xff]  }
  0x43   : > { %3411 = vmatpush3.bf16.msra.mxu1 %v3915_v63  ;;  %v4007_v63 = vld [vmem:[%s5221_s1 + $0x2c0] sm:$0xff]  }
  0x44   : > { %3481 = vmatpush3.bf16.msra.mxu0 %v3920_v2  ;;  %3536 = vmatprep.subr.bf16.mxu1 %v3921_v3  ;;  %v3991_v2 = vld [vmem:[%s4189_s8 + $0x2e8] ss:$52 sps:$4 sm:$0xff]  }
  0x45   : > { %3606 = vmatprep.subr.bf16.mxu0 %v3926_v6  ;;  %v3999_v3 = vld [vmem:[%s4189_s8 + $0x354] ss:$52 sps:$4 sm:$0xff]   ;;  %v4001_v6 = vld [vmem:[%s4189_s8 + $0x350] ss:$52 sps:$4 sm:$0xff]  }
  0x46   : > { %1828 = vmatmul.mubr.bf16.gmra.mrb[16].mxu1 %v3908_v0  ;;  %v4126_v0 = vmov 0.0  }
  0x47   : > { %1868 = vmatprep.mubr.bf16.mxu1 %v3919_v1  ;;  %1974 = vmatmul.mubr.bf16.vlgmr.msra.gmra.mrb[16].mxu0 %v3922_v4  ;;  %v3985_v1 = vld [vmem:[%s4189_s8 + $0x2e4] ss:$52 sps:$4 sm:$0xff]   ;;  %v3988_v4 = vld [vmem:[%s4189_s8 + $0x2e0] ss:$52 sps:$4 sm:$0xff]   ;;  %2487 = vst.msk [vmem:[#allocation2 + $0x8] sm:$0x3f] %vm2486_vm2, %v4126_v0 }
  0x48   : > { %3607 = vmatpush3.bf16.msra.mxu0 %v3927_v7  ;;  %1981 = vmatprep.mubr.bf16.mxu0 %v3931_v9  ;;  %v4010_v7 = vld [vmem:[%s4189_s8 + $0x24] ss:$52 sps:$4 sm:$0xff]   ;;  %v4006_v9 = vld [vmem:[%s4189_s8 + $0x1c] ss:$52 sps:$4 sm:$0xff]   ;;  %2488 = vst.msk [vmem:[#allocation2 + $0x10] sm:$0xff] %vm2484_vm1, %v4126_v0  ;;  %2490 = vst.msk [vmem:[#allocation2 + $0x20] sm:$0xff] %vm2484_vm1, %v4126_v0 }
  0x49   : > { %3608 = vmatprep.subr.bf16.mxu0 %v3936_v14  ;;  %v4023_v14 = vld [vmem:[%s5221_s1 + $0x308] sm:$0xff]   ;;  %2489 = vst.msk [vmem:[#allocation2 + $0x18] sm:$0x3f] %vm2486_vm2, %v4126_v0  ;;  %2491 = vst.msk [vmem:[#allocation2 + $0x28] sm:$0x3f] %vm2486_vm2, %v4126_v0 }
  0x4a   : > { %2485 = vst.msk [vmem:[#allocation2] sm:$0xff] %vm2484_vm1, %v4126_v0  ;;  %2492 = vst.msk [vmem:[#allocation2 + $0x30] sm:$0xff] %vm2484_vm1, %v4126_v0 }
  0x4b   : > { %2493 = vst.msk [vmem:[#allocation2 + $0x38] sm:$0x3f] %vm2486_vm2, %v4126_v0  ;;  %2495 = vst.msk [vmem:[#allocation2 + $0x48] sm:$0x3f] %vm2486_vm2, %v4126_v0 }
  0x4c   : > { %3609 = vmatpush3.bf16.msra.mxu0 %v3939_v15  ;;  %v4011_v15 = vld [vmem:[%s5221_s1 + $0x280] sm:$0xff]   ;;  %2494 = vst.msk [vmem:[#allocation2 + $0x40] sm:$0xff] %vm2484_vm1, %v4126_v0  ;;  %2496 = vst.msk [vmem:[#allocation2 + $0x50] sm:$0xff] %vm2484_vm1, %v4126_v0 }
  0x4d   : > { %3610 = vmatprep.subr.bf16.mxu0 %v3948_v22  ;;  %v4015_v22 = vld [vmem:[%s4189_s8 + $0x80] ss:$52 sps:$4 sm:$0xff]   ;;  %2497 = vst.msk [vmem:[#allocation2 + $0x58] sm:$0x3f] %vm2486_vm2, %v4126_v0  ;;  %2499 = vst.msk [vmem:[#allocation2 + $0x68] sm:$0x3f] %vm2486_vm2, %v4126_v0 }
  0x4e   : > { %1869 = vmatmul.mubr.bf16.vlgmr.msra.gmra.mrb[20].mxu1 %v3917_v8  ;;  %v3997_v8 = vld [vmem:[%s4189_s8 + $0x348] ss:$52 sps:$4 sm:$0xff]   ;;  %2498 = vst.msk [vmem:[#allocation2 + $0x60] sm:$0xff] %vm2484_vm1, %v4126_v0  ;;  %2500 = vst.msk [vmem:[#allocation2 + $0x70] sm:$0xff] %vm2484_vm1, %v4126_v0 }
  0x4f   : > { %3537 = vmatpush3.bf16.msra.mxu1 %v3925_v10  ;;  %1876 = vmatprep.mubr.bf16.mxu1 %v3928_v11  ;;  %v4008_v10 = vld [vmem:[%s4189_s8 + $0x20] ss:$52 sps:$4 sm:$0xff]   ;;  %2501 = vst.msk [vmem:[#allocation2 + $0x78] sm:$0x3f] %vm2486_vm2, %v4126_v0  ;;  %2503 = vst.msk [vmem:[#allocation2 + $0x88] sm:$0x3f] %vm2486_vm2, %v4126_v0 }
  0x50   : > { %3538 = vmatprep.subr.bf16.mxu1 %v3933_v12  ;;  %1982 = vmatmul.mubr.bf16.gmra.mrb[20].mxu0 %v3934_v13  ;;  %v4012_v11 = vld [vmem:[%s5221_s1 + $0x300] sm:$0xff]   ;;  %v4004_v13 = vld [vmem:[%s4189_s8 + $0x18] ss:$52 sps:$4 sm:$0xff]   ;;  %2502 = vst.msk [vmem:[#allocation2 + $0x80] sm:$0xff] %vm2484_vm1, %v4126_v0  ;;  %2504 = vst.msk [vmem:[#allocation2 + $0x90] sm:$0xff] %vm2484_vm1, %v4126_v0 }
  0x51   : > { %1989 = vmatprep.mubr.bf16.mxu0 %v3941_v17  ;;  %3611 = vmatpush3.bf16.msra.mxu0 %v3950_v24  ;;  %v4016_v12 = vld [vmem:[%s4189_s8 + $0x8c] ss:$52 sps:$4 sm:$0xff]   ;;  %2505 = vst.msk [vmem:[#allocation2 + $0x98] sm:$0x3f] %vm2486_vm2, %v4126_v0  ;;  %2507 = vst.msk [vmem:[#allocation2 + $0xa8] sm:$0x3f] %vm2486_vm2, %v4126_v0 }
  0x52   : > { %3612 = vmatprep.subr.bf16.mxu0 %v3959_v30  ;;  %v4018_v17 = vld [vmem:[%s5221_s1 + $0x2c8] sm:$0xff]   ;;  %v4054_v30 = vld [vmem:[%s5221_s1 + $0x320] sm:$0xff]   ;;  %2506 = vst.msk [vmem:[#allocation2 + $0xa0] sm:$0xff] %vm2484_vm1, %v4126_v0  ;;  %2508 = vst.msk [vmem:[#allocation2 + $0xb0] sm:$0xff] %vm2484_vm1, %v4126_v0 }
  0x53   : > { %3539 = vmatpush3.bf16.msra.mxu1 %v3935_v16  ;;  %v4013_v16 = vld [vmem:[%s4189_s8 + $0x84] ss:$52 sps:$4 sm:$0xff]   ;;  %v4021_v24 = vld [vmem:[%s4189_s8 + $0xec] ss:$52 sps:$4 sm:$0xff]   ;;  %2509 = vst.msk [vmem:[#allocation2 + $0xb8] sm:$0x3f] %vm2486_vm2, %v4126_v0 }
  0x54   : > { %3540 = vmatprep.subr.bf16.mxu1 %v3944_v19  ;;  %v4025_v19 = vld [vmem:[%s4189_s8 + $0xf4] ss:$52 sps:$4 sm:$0xff]   ;;  %2510 = vst.msk [vmem:[#allocation2 + $0xc0] sm:$0xff] %vm2484_vm1, %v4126_v0 }
  0x55   : > { %3613 = vmatpush3.bf16.msra.mxu0 %v3962_v32  ;;  %v4024_v32 = vld [vmem:[%s4189_s8 + $0xe8] ss:$52 sps:$4 sm:$0xff]   ;;  %2511 = vst.msk [vmem:[#allocation2 + $0xc8] sm:$0x3f] %vm2486_vm2, %v4126_v0  ;;  %vm4902_vm2 = vmand %vm2661_vm6, %vm2662_vm10 }
  0x56   : > { %1877 = vmatmul.mubr.bf16.gmra.mrb[24].mxu1 %v3930_v18  ;;  %3614 = vmatprep.subr.bf16.mxu0 %v3971_v39  ;;  %v4019_v18 = vld [vmem:[%s4189_s8 + $0x88] ss:$52 sps:$4 sm:$0xff]   ;;  %vm4924_vm10 = vmand %vm2951_vm13, %vm2952_vm14 }
  0x57   : > { %1884 = vmatprep.mubr.bf16.mxu1 %v3937_v20  ;;  %3541 = vmatpush3.bf16.msra.mxu1 %v3945_v21  ;;  %v4033_v20 = vld [vmem:[%s5221_s1 + $0x310] sm:$0xff]   ;;  %v4020_v21 = vld [vmem:[%s5221_s1 + $0x288] sm:$0xff]   ;;  %vm4958_vm14 = vmand %vm2661_vm6, %vm2731_vm15 }
  0x58   : > { %1990 = vmatmul.mubr.bf16.gmra.mrb[24].mxu0 %v3943_v23  ;;  %3542 = vmatprep.subr.bf16.mxu1 %v3954_v26  ;;  %v4028_v23 = vld [vmem:[%s5221_s1 + $0x2d0] sm:$0xff]   ;;  %v4055_v39 = vld [vmem:[%s5221_s1 + $0x2e8] sm:$0xff]  }
  0x59   : > { %1997 = vmatprep.mubr.bf16.mxu0 %v3951_v25  ;;  %3615 = vmatpush3.bf16.msra.mxu0 %v3973_v41  ;;  %v4044_v25 = vld [vmem:[%s5221_s1 + $0x318] sm:$0xff]   ;;  %v4027_v26 = vld [vmem:[%s4189_s8 + $0xf0] ss:$52 sps:$4 sm:$0xff]   ;;  %v4056_v41 = vld [vmem:[%s5221_s1 + $0x2a8] sm:$0xff]  }
  0x5a   : > { %3616 = vmatprep.subr.bf16.mxu0 %v3982_v46  ;;  %v4045_v46 = vld [vmem:[%s4189_s8 + $0x1c0] ss:$52 sps:$4 sm:$0xff]  }
  0x5b   : > { %3543 = vmatpush3.bf16.msra.mxu1 %v3955_v27  ;;  %v4029_v27 = vld [vmem:[%s5221_s1 + $0x290] sm:$0xff]  }
  0x5c   : > { %3544 = vmatprep.subr.bf16.mxu1 %v3964_v34  ;;  %v4030_v34 = vld [vmem:[%s4189_s8 + $0x154] ss:$52 sps:$4 sm:$0xff]  }
  0x5d   : > { %3617 = vmatpush3.bf16.msra.mxu0 %v3983_v47  ;;  %v4067_v47 = vld [vmem:[%s5221_s1 + $0x2b0] sm:$0xff]  }
  0x5e   : > { %1885 = vmatmul.mubr.bf16.gmra.mrb[28].mxu1 %v3940_v28  ;;  %3618 = vmatprep.subr.bf16.mxu0 %v3992_v53  ;;  %v4034_v28 = vld [vmem:[%s4189_s8 + $0x15c] ss:$52 sps:$4 sm:$0xff]  }
  0x5f   : > { %1892 = vmatprep.mubr.bf16.mxu1 %v3946_v29  ;;  %3545 = vmatpush3.bf16.msra.mxu1 %v3965_v35  ;;  %v4037_v29 = vld [vmem:[%s5221_s1 + $0x2d8] sm:$0xff]   ;;  %v4063_v35 = vld [vmem:[%s5221_s1 + $0x328] sm:$0xff]  }
  0x60   : > { %1998 = vmatmul.mubr.bf16.gmra.mrb[28].mxu0 %v3953_v31  ;;  %3546 = vmatprep.subr.bf16.mxu1 %v3974_v42  ;;  %v4038_v31 = vld [vmem:[%s5221_s1 + $0x298] sm:$0xff]   ;;  %v4032_v42 = vld [vmem:[%s4189_s8 + $0x150] ss:$52 sps:$4 sm:$0xff]  }
  0x61   : > { %2005 = vmatprep.mubr.bf16.mxu0 %v3960_v33  ;;  %3619 = vmatpush3.bf16.msra.mxu0 %v3993_v54  ;;  %v4046_v33 = vld [vmem:[%s5221_s1 + $0x2e0] sm:$0xff]   ;;  %v4053_v53 = vld [vmem:[%s4189_s8 + $0x228] ss:$52 sps:$4 sm:$0xff]  }
  0x62   : > { %3620 = vmatprep.subr.bf16.mxu0 %v4002_v60  ;;  %v4060_v54 = vld [vmem:[%s4189_s8 + $0x294] ss:$52 sps:$4 sm:$0xff]  }
  0x63   : > { %3547 = vmatpush3.bf16.msra.mxu1 %v3975_v43  ;;  %v4064_v43 = vld [vmem:[%s5221_s1 + $0x2f0] sm:$0xff]  }
  0x64   : > { %3548 = vmatprep.subr.bf16.mxu1 %v3984_v48  ;;  %v4075_v48 = vld [vmem:[%s5221_s1 + $0x2f8] sm:$0xff]   ;;  %v4065_v60 = vld [vmem:[%s4189_s8 + $0x2f4] ss:$52 sps:$4 sm:$0xff]  }
  0x65   : > { %3621 = vmatpush3.bf16.msra.mxu0 %v4003_v61  ;;  %v4071_v61 = vld [vmem:[%s4189_s8 + $0x2f8] ss:$52 sps:$4 sm:$0xff]  }
  0x66   : > { %1893 = vmatmul.mubr.bf16.gmra.mrb[32].mxu1 %v3949_v36  ;;  %3763 = vmatprep.subr.bf16.mxu0 %v4126_v0  ;;  %v4036_v36 = vld [vmem:[%s4189_s8 + $0x158] ss:$52 sps:$4 sm:$0xff]  }
  0x67   : > { %1900 = vmatprep.mubr.bf16.mxu1 %v3956_v37  ;;  %3549 = vmatpush3.bf16.msra.mxu1 %v3987_v51  ;;  %v4047_v37 = vld [vmem:[%s5221_s1 + $0x2a0] sm:$0xff]   ;;  %v4041_v51 = vld [vmem:[%s4189_s8 + $0x1b8] ss:$52 sps:$4 sm:$0xff]  }
  0x68   : > { %2006 = vmatmul.mubr.bf16.gmra.mrb[32].mxu0 %v3963_v38  ;;  %3550 = vmatprep.subr.bf16.mxu1 %v3996_v57  ;;  %v4042_v38 = vld [vmem:[%s4189_s8 + $0x1c4] ss:$52 sps:$4 sm:$0xff]  }
  0x69   : > { %2013 = vmatprep.mubr.bf16.mxu0 %v3969_v40  ;;  %v4072_v40 = vld [vmem:[%s5221_s1 + $0x330] sm:$0xff]  }
  0x6a   : > { %v4062_v57 = vld [vmem:[%s4189_s8 + $0x290] ss:$52 sps:$4 sm:$0xff]  }
  0x6b   : > { %3551 = vmatpush3.bf16.msra.mxu1 %v3998_v58  ;;  %v4069_v58 = vld [vmem:[%s4189_s8 + $0x2fc] ss:$52 sps:$4 sm:$0xff]  }
  0x6c   : > { %3676 = vmatprep.subr.bf16.mxu1 %v4007_v63  ;;  %v4068_v63 = vld [vmem:[%s4189_s8 + $0x2f0] ss:$52 sps:$4 sm:$0xff]  }
  0x6e   : > { %1901 = vmatmul.mubr.bf16.gmra.mrb[36].mxu1 %v3958_v44  ;;  %v4081_v44 = vld [vmem:[%s5221_s1 + $0x338] sm:$0xff]  }
  0x6f   : > { %1908 = vmatprep.mubr.bf16.mxu1 %v3966_v45  ;;  %v4039_v45 = vld [vmem:[%s4189_s8 + $0x1bc] ss:$52 sps:$4 sm:$0xff]  }
  0x70   : > { %2014 = vmatmul.mubr.bf16.gmra.mrb[36].mxu0 %v3972_v49  ;;  %v4051_v49 = vld [vmem:[%s4189_s8 + $0x22c] ss:$52 sps:$4 sm:$0xff]  }
  0x71   : > { %2021 = vmatprep.mubr.bf16.mxu0 %v3979_v50  ;;  %v4077_v50 = vld [vmem:[%s5221_s1 + $0x2b8] sm:$0xff]  }
  0x76   : > { %1909 = vmatmul.mubr.bf16.gmra.mrb[40].mxu1 %v3968_v52  ;;  %v4048_v52 = vld [vmem:[%s4189_s8 + $0x224] ss:$52 sps:$4 sm:$0xff]  }
  0x77   : > { %1916 = vmatprep.mubr.bf16.mxu1 %v3976_v55  ;;  %v4050_v55 = vld [vmem:[%s4189_s8 + $0x220] ss:$52 sps:$4 sm:$0xff]  }
  0x78   : > { %2022 = vmatmul.mubr.bf16.gmra.mrb[40].mxu0 %v3981_v56  ;;  %v4057_v56 = vld [vmem:[%s4189_s8 + $0x28c] ss:$52 sps:$4 sm:$0xff]  }
  0x79   : > { %2029 = vmatprep.mubr.bf16.mxu0 %v3989_v59  ;;  %v4059_v59 = vld [vmem:[%s4189_s8 + $0x288] ss:$52 sps:$4 sm:$0xff]  }
  0x7e   : > { %1917 = vmatmul.mubr.bf16.gmra.mrb[44].mxu1 %v3978_v62  ;;  %v4078_v62 = vld [vmem:[%s4189_s8 + $0x364] ss:$52 sps:$4 sm:$0xff]  }
  0x7f   : > { %1924 = vmatprep.mubr.bf16.mxu1 %v3985_v1  ;;  %v4073_v1 = vld [vmem:[%s4189_s8 + $0x35c] ss:$52 sps:$4 sm:$0xff]  }
  0x80   : > { %2030 = vmatmul.mubr.bf16.gmra.mrb[44].mxu0 %v3991_v2  ;;  %v4080_v2 = vld [vmem:[%s4189_s8 + $0x360] ss:$52 sps:$4 sm:$0xff]  }
  0x81   : > { %2037 = vmatprep.mubr.bf16.mxu0 %v3999_v3  ;;  %v4076_v3 = vld [vmem:[%s4189_s8 + $0x358] ss:$52 sps:$4 sm:$0xff]  }
  0x86   : > { %1925 = vmatmul.mubr.bf16.gmra.mrb[48].mxu1 %v3988_v4  ;;  %v4084_v4 = vld [vmem:[%s4189_s8 + $0x2c] ss:$52 sps:$4 sm:$0xff]  }
  0x87   : > { %1932 = vmatprep.mubr.bf16.mxu1 %v3994_v5  ;;  %v4085_v5 = vld [vmem:[%s4189_s8 + $0x30] ss:$52 sps:$4 sm:$0xff]  }
  0x88   : > { %2038 = vmatmul.mubr.bf16.gmra.mrb[48].mxu0 %v4001_v6  ;;  %v4082_v6 = vld [vmem:[%s4189_s8 + $0x28] ss:$52 sps:$4 sm:$0xff]  }
  0x89   : > { %2183 = vmatprep.mubr.bf16.mxu0 %v4010_v7  ;;  %v4086_v7 = vld [vmem:[%s4189_s8 + $0x94] ss:$52 sps:$4 sm:$0xff]  }
  0x8e   : > { %1933 = vmatmul.mubr.bf16.gmra.mrb[52].mxu1 %v3997_v8  ;;  %v4089_v8 = vld [vmem:[%s4189_s8 + $0x98] ss:$52 sps:$4 sm:$0xff]  }
  0x8f   : > { %2078 = vmatprep.mubr.bf16.mxu1 %v4006_v9  ;;  %v4088_v9 = vld [vmem:[%s4189_s8 + $0x90] ss:$52 sps:$4 sm:$0xff]  }
  0x90   : > { %2184 = vmatmul.mubr.bf16.vlgmr.msra.gmra.mrb[52].mxu0 %v4008_v10  ;;  %v4090_v10 = vld [vmem:[%s4189_s8 + $0xfc] ss:$52 sps:$4 sm:$0xff]  }
  0x91   : > { %3764 = vmatpush3.bf16.msra.mxu0 %v4012_v11  ;;  %2191 = vmatprep.mubr.bf16.mxu0 %v4016_v12  ;;  %v4093_v11 = vld [vmem:[%s4189_s8 + $0x100] ss:$52 sps:$4 sm:$0xff]   ;;  %v4092_v12 = vld [vmem:[%s4189_s8 + $0xf8] ss:$52 sps:$4 sm:$0xff]  }
  0x92   : > { %3765 = vmatprep.subr.bf16.mxu0 %v4126_v0 }
  0x95   : > { %3766 = vmatpush3.bf16.msra.mxu0 %v4023_v14  ;;  %v4097_v14 = vld [vmem:[%s4189_s8 + $0x168] ss:$52 sps:$4 sm:$0xff]  }
  0x96   : > { %2079 = vmatmul.mubr.bf16.vlgmr.msra.gmra.mrb[56].mxu1 %v4004_v13  ;;  %3767 = vmatprep.subr.bf16.mxu0 %v4126_v0  ;;  %v4094_v13 = vld [vmem:[%s4189_s8 + $0x164] ss:$52 sps:$4 sm:$0xff]  }
  0x97   : > { %3677 = vmatpush3.bf16.msra.mxu1 %v4011_v15  ;;  %2086 = vmatprep.mubr.bf16.mxu1 %v4013_v16  ;;  %v4096_v15 = vld [vmem:[%s4189_s8 + $0x160] ss:$52 sps:$4 sm:$0xff]  }
  0x98   : > { %3678 = vmatprep.subr.bf16.mxu1 %v4018_v17  ;;  %2192 = vmatmul.mubr.bf16.gmra.mrb[56].mxu0 %v4019_v18  ;;  %v4098_v16 = vld [vmem:[%s4189_s8 + $0x1cc] ss:$52 sps:$4 sm:$0xff]   ;;  %v4101_v17 = vld [vmem:[%s4189_s8 + $0x1d0] ss:$52 sps:$4 sm:$0xff]  }
  0x99   : > { %2199 = vmatprep.mubr.bf16.mxu0 %v4025_v19  ;;  %3768 = vmatpush3.bf16.msra.mxu0 %v4033_v20 }
  0x9a   : > { %3769 = vmatprep.subr.bf16.mxu0 %v4126_v0 }
  0x9b   : > { %3679 = vmatpush3.bf16.msra.mxu1 %v4020_v21  ;;  %v4100_v21 = vld [vmem:[%s4189_s8 + $0x1c8] ss:$52 sps:$4 sm:$0xff]  }
  0x9c   : > { %3680 = vmatprep.subr.bf16.mxu1 %v4028_v23 }
  0x9d   : > { %3770 = vmatpush3.bf16.msra.mxu0 %v4044_v25 }
  0x9e   : > { %2087 = vmatmul.mubr.bf16.gmra.mrb[60].mxu1 %v4015_v22  ;;  %3771 = vmatprep.subr.bf16.mxu0 %v4126_v0 }
  0x9f   : > { %2094 = vmatprep.mubr.bf16.mxu1 %v4021_v24  ;;  %3681 = vmatpush3.bf16.msra.mxu1 %v4029_v27 }
  0xa0   : > { %2200 = vmatmul.mubr.bf16.gmra.mrb[60].mxu0 %v4027_v26  ;;  %3682 = vmatprep.subr.bf16.mxu1 %v4037_v29  ;;  %v4102_v26 = vld [vmem:[%s4189_s8 + $0x234] ss:$52 sps:$4 sm:$0xff]  }
  0xa1   : > { %2207 = vmatprep.mubr.bf16.mxu0 %v4034_v28  ;;  %3772 = vmatpush3.bf16.msra.mxu0 %v4054_v30  ;;  %v4105_v30 = vld [vmem:[%s4189_s8 + $0x238] ss:$52 sps:$4 sm:$0xff]  }
  0xa2   : > { %3773 = vmatprep.subr.bf16.mxu0 %v4126_v0 }
  0xa3   : > { %3683 = vmatpush3.bf16.msra.mxu1 %v4038_v31 }
  0xa4   : > { %3684 = vmatprep.subr.bf16.mxu1 %v4046_v33 }
  0xa5   : > { %3774 = vmatpush3.bf16.msra.mxu0 %v4063_v35 }
  0xa6   : > { %2095 = vmatmul.mubr.bf16.gmra.mrb[64].mxu1 %v4024_v32  ;;  %3775 = vmatprep.subr.bf16.mxu0 %v4126_v0 }
  0xa7   : > { %2102 = vmatprep.mubr.bf16.mxu1 %v4030_v34  ;;  %3685 = vmatpush3.bf16.msra.mxu1 %v4047_v37 }
  0xa8   : > { %2208 = vmatmul.mubr.bf16.gmra.mrb[64].mxu0 %v4036_v36  ;;  %3686 = vmatprep.subr.bf16.mxu1 %v4055_v39  ;;  %v4104_v36 = vld [vmem:[%s4189_s8 + $0x230] ss:$52 sps:$4 sm:$0xff]  }
  0xa9   : > { %2215 = vmatprep.mubr.bf16.mxu0 %v4042_v38  ;;  %3776 = vmatpush3.bf16.msra.mxu0 %v4072_v40 }
  0xaa   : > { %3777 = vmatprep.subr.bf16.mxu0 %v4126_v0 }
  0xab   : > { %3687 = vmatpush3.bf16.msra.mxu1 %v4056_v41  ;;  %v4106_v41 = vld [vmem:[%s4189_s8 + $0x29c] ss:$52 sps:$4 sm:$0xff]  }
  0xac   : > { %3688 = vmatprep.subr.bf16.mxu1 %v4064_v43 }
  0xad   : > { %3778 = vmatpush3.bf16.msra.mxu0 %v4081_v44 }
  0xae   : > { %2103 = vmatmul.mubr.bf16.gmra.mrb[68].mxu1 %v4032_v42 }
  0xaf   : > { %2110 = vmatprep.mubr.bf16.mxu1 %v4039_v45  ;;  %3689 = vmatpush3.bf16.msra.mxu1 %v4067_v47  ;;  %v4109_v45 = vld [vmem:[%s4189_s8 + $0x2a0] ss:$52 sps:$4 sm:$0xff]  }
  0xb0   : > { %2216 = vmatmul.mubr.bf16.gmra.mrb[68].mxu0 %v4045_v46  ;;  %3690 = vmatprep.subr.bf16.mxu1 %v4075_v48 }
  0xb1   : > { %2223 = vmatprep.mubr.bf16.mxu0 %v4051_v49 }
  0xb3   : > { %3691 = vmatpush3.bf16.msra.mxu1 %v4077_v50 }
  0xb6   : > { %2111 = vmatmul.mubr.bf16.gmra.mrb[72].mxu1 %v4041_v51  ;;  %v4108_v51 = vld [vmem:[%s4189_s8 + $0x298] ss:$52 sps:$4 sm:$0xff]  }
  0xb7   : > { %2118 = vmatprep.mubr.bf16.mxu1 %v4048_v52 }
  0xb8   : > { %2224 = vmatmul.mubr.bf16.gmra.mrb[72].mxu0 %v4053_v53 }
  0xb9   : > { %2231 = vmatprep.mubr.bf16.mxu0 %v4060_v54 }
  0xbe   : > { %2119 = vmatmul.mubr.bf16.gmra.mrb[76].mxu1 %v4050_v55 }
  0xbf   : > { %2126 = vmatprep.mubr.bf16.mxu1 %v4057_v56  ;;  %v4110_v56 = vld [vmem:[%s4189_s8 + $0x304] ss:$52 sps:$4 sm:$0xff]  }
  0xc0   : > { %2232 = vmatmul.mubr.bf16.gmra.mrb[76].mxu0 %v4062_v57 }
  0xc1   : > { %2239 = vmatprep.mubr.bf16.mxu0 %v4069_v58 }
  0xc6   : > { %2127 = vmatmul.mubr.bf16.gmra.mrb[80].mxu1 %v4059_v59 }
  0xc7   : > { %2134 = vmatprep.mubr.bf16.mxu1 %v4065_v60  ;;  %v4113_v60 = vld [vmem:[%s4189_s8 + $0x308] ss:$52 sps:$4 sm:$0xff]  }
  0xc8   : > { %2240 = vmatmul.mubr.bf16.gmra.mrb[80].mxu0 %v4071_v61 }
  0xc9   : > { %2247 = vmatprep.mubr.bf16.mxu0 %v4078_v62 }
  0xce   : > { %2135 = vmatmul.mubr.bf16.gmra.mrb[84].mxu1 %v4068_v63 }
  0xcf   : > { %2142 = vmatprep.mubr.bf16.mxu1 %v4073_v1 }
  0xd0   : > { %2248 = vmatmul.mubr.bf16.gmra.mrb[84].mxu0 %v4080_v2 }
  0xd1   : > { %3779 = vmatprep.mubr.msk.bf16.mxu0 %vm4127_vm0, %v4126_v0 }
  0xd6   : > { %2143 = vmatmul.mubr.bf16.gmra.mrb[88].mxu1 %v4076_v3  ;;  %v4112_v3 = vld [vmem:[%s4189_s8 + $0x300] ss:$52 sps:$4 sm:$0xff]  }
  0xd7   : > { %2288 = vmatprep.mubr.bf16.mxu1 %v4084_v4 }
  0xd8   : > { %3780 = vmatmul.mubr.bf16.vlgmr.msra.gmra.mrb[88].mxu0 %v4085_v5 }
  0xd9   : > { %3783 = vmatprep.mubr.msk.bf16.mxu0 %vm4127_vm0, %v4126_v0 }
  0xde   : > { %2289 = vmatmul.mubr.bf16.vlgmr.msra.gmra.mrb[92].mxu1 %v4082_v6 }
  0xdf   : > { %2296 = vmatprep.mubr.bf16.mxu1 %v4086_v7 }
  0xe0   : > { %3784 = vmatmul.mubr.bf16.gmra.mrb[92].mxu0 %v4089_v8  ;;  %v4114_v8 = vld [vmem:[%s4189_s8 + $0x36c] ss:$52 sps:$4 sm:$0xff]  }
  0xe1   : > { %3787 = vmatprep.mubr.msk.bf16.mxu0 %vm4127_vm0, %v4126_v0 }
  0xe6   : > { %2297 = vmatmul.mubr.bf16.gmra.mrb[96].mxu1 %v4088_v9 }
  0xe7   : > { %2304 = vmatprep.mubr.bf16.mxu1 %v4090_v10 }
  0xe8   : > { %3788 = vmatmul.mubr.bf16.gmra.mrb[96].mxu0 %v4093_v11 }
  0xe9   : > { %3791 = vmatprep.mubr.msk.bf16.mxu0 %vm4127_vm0, %v4126_v0 }
  0xee   : > { %2305 = vmatmul.mubr.bf16.gmra.mrb[100].mxu1 %v4092_v12  ;;  %v4117_v12 = vld [vmem:[%s4189_s8 + $0x370] ss:$52 sps:$4 sm:$0xff]  }
  0xef   : > { %2312 = vmatprep.mubr.bf16.mxu1 %v4094_v13 }
  0xf0   : > { %3792 = vmatmul.mubr.bf16.gmra.mrb[100].mxu0 %v4097_v14 }
  0xf1   : > { %3795 = vmatprep.mubr.msk.bf16.mxu0 %vm4127_vm0, %v4126_v0 }
  0xf6   : > { %2313 = vmatmul.mubr.bf16.gmra.mrb[104].mxu1 %v4096_v15 }
  0xf7   : > { %2320 = vmatprep.mubr.bf16.mxu1 %v4098_v16 }
  0xf8   : > { %3796 = vmatmul.mubr.bf16.gmra.mrb[104].mxu0 %v4101_v17  ;;  %v4116_v17 = vld [vmem:[%s4189_s8 + $0x368] ss:$52 sps:$4 sm:$0xff]   ;;  %s3832_s8 = smul.u32 24, %s5246_s13 }
  0xf9   : > { %v3366_v18 = vpop.f32.mrb[0].mxu1  ;;  %v3342_v19 = vpop.f32.mrb[0].mxu0  ;;  %3799 = vmatprep.mubr.msk.bf16.mxu0 %vm4127_vm0, %v4126_v0 }
  0xfa   : > { %v3367_v20 = vpop.f32.mrb[1].mxu1  ;;  %v3343_v22 = vpop.f32.mrb[1].mxu0  ;;  %s4891_s10 = scalar_lea.vmem %s5223_s3, %s3832_s8 }
  0xfb   : > { %v4601_v23 = vadd.f32 %v3367_v20, %v3366_v18  ;;  %v3369_v24 = vpop.f32.mrb[2].mxu1  ;;  %v4603_v25 = vadd.f32 %v3343_v22, %v3342_v19  ;;  %v3345_v27 = vpop.f32.mrb[2].mxu0  ;;  %v4654_v22 = vld [vmem:[%s5222_s2] ss:$0 sm:$0xff] }
  0xfc   : > { %v3370_v28 = vpop.f32.mrb[3].mxu1  ;;  %v3346_v29 = vpop.f32.mrb[3].mxu0 }
  0xfd   : > { %v4607_v31 = vadd.f32 %v3370_v28, %v3369_v24  ;;  %v4609_v32 = vadd.f32 %v3346_v29, %v3345_v27 }
  0xfe   : > { %2321 = vmatmul.mubr.bf16.gmra.mrb[108].mxu1 %v4100_v21 }
  0xff   : > { %2328 = vmatprep.mubr.bf16.mxu1 %v4102_v26 }
 0x100   : > { %3800 = vmatmul.mubr.bf16.gmra.mrb[108].mxu0 %v4105_v30 }
 0x101   : > { %v3372_v33 = vpop.f32.mrb[4].mxu1  ;;  %v3348_v34 = vpop.f32.mrb[4].mxu0  ;;  %3803 = vmatprep.mubr.msk.bf16.mxu0 %vm4127_vm0, %v4126_v0 }
 0x102   : > { %v3373_v35 = vpop.f32.mrb[5].mxu1  ;;  %v3349_v37 = vpop.f32.mrb[5].mxu0 }
 0x103   : > { %v4614_v38 = vadd.f32 %v3373_v35, %v3372_v33  ;;  %v3375_v39 = vpop.f32.mrb[6].mxu1  ;;  %v4616_v40 = vadd.f32 %v3349_v37, %v3348_v34  ;;  %v3351_v42 = vpop.f32.mrb[6].mxu0  ;;  %v1766_v37 = vadd.f32 %v4603_v25, %v4654_v22 }
 0x104   : > { %v3376_v43 = vpop.f32.mrb[7].mxu1  ;;  %v3352_v44 = vpop.f32.mrb[7].mxu0 }
 0x105   : > { %v4620_v46 = vadd.f32 %v3376_v43, %v3375_v39  ;;  %v4622_v47 = vadd.f32 %v3352_v44, %v3351_v42 }
 0x106   : > { %2329 = vmatmul.mubr.bf16.gmra.mrb[112].mxu1 %v4104_v36 }
 0x107   : > { %2336 = vmatprep.mubr.bf16.mxu1 %v4106_v41 }
 0x108   : > { %3804 = vmatmul.mubr.bf16.gmra.mrb[112].mxu0 %v4109_v45  ;;  %v1769_v45 = vadd.f32 %v4609_v32, %v4654_v22 }
 0x109   : > { %v3378_v48 = vpop.f32.mrb[8].mxu1  ;;  %v3354_v49 = vpop.f32.mrb[8].mxu0  ;;  %3807 = vmatprep.mubr.msk.bf16.mxu0 %vm4127_vm0, %v4126_v0 }
 0x10a   : > { %v3379_v50 = vpop.f32.mrb[9].mxu1  ;;  %v3355_v52 = vpop.f32.mrb[9].mxu0 }
 0x10b   : > { %v4627_v53 = vadd.f32 %v3379_v50, %v3378_v48  ;;  %v3381_v54 = vpop.f32.mrb[10].mxu1  ;;  %v4629_v55 = vadd.f32 %v3355_v52, %v3354_v49  ;;  %v3357_v57 = vpop.f32.mrb[10].mxu0 }
 0x10c   : > { %v3382_v58 = vpop.f32.mrb[11].mxu1  ;;  %v3358_v59 = vpop.f32.mrb[11].mxu0 }
 0x10d   : > { %v4633_v61 = vadd.f32 %v3382_v58, %v3381_v54  ;;  %v4635_v62 = vadd.f32 %v3358_v59, %v3357_v57 }
 0x10e   : > { %2337 = vmatmul.mubr.bf16.gmra.mrb[116].mxu1 %v4108_v51 }
 0x10f   : > { %2344 = vmatprep.mubr.bf16.mxu1 %v4110_v56 }
 0x110   : > { %3808 = vmatmul.mubr.bf16.gmra.mrb[116].mxu0 %v4113_v60  ;;  %v1774_v60 = vadd.f32 %v4616_v40, %v4654_v22 }
 0x111   : > { %v3384_v63 = vpop.f32.mrb[12].mxu1  ;;  %v3360_v1 = vpop.f32.mrb[12].mxu0  ;;  %3811 = vmatprep.mubr.msk.bf16.mxu0 %vm4127_vm0, %v4126_v0  ;;  %vm2883_vm0 = vsmask.f32 7942 }
 0x112   : > { %v3385_v2 = vpop.f32.mrb[13].mxu1  ;;  %v3361_v4 = vpop.f32.mrb[13].mxu0 }
 0x113   : > { %v4640_v5 = vadd.f32 %v3385_v2, %v3384_v63  ;;  %v3387_v6 = vpop.f32.mrb[14].mxu1  ;;  %v4642_v7 = vadd.f32 %v3361_v4, %v3360_v1  ;;  %v3363_v9 = vpop.f32.mrb[14].mxu0  ;;  %v1777_v4 = vadd.f32 %v4622_v47, %v4654_v22 }
 0x114   : > { %v3388_v10 = vpop.f32.mrb[15].mxu1  ;;  %v3364_v11 = vpop.f32.mrb[15].mxu0 }
 0x115   : > { %v4646_v13 = vadd.f32 %v3388_v10, %v3387_v6  ;;  %v4648_v14 = vadd.f32 %v3364_v11, %v3363_v9 }
 0x116   : > { %2345 = vmatmul.mubr.bf16.gmra.mrb[120].mxu1 %v4112_v3 }
 0x117   : > { %2352 = vmatprep.mubr.bf16.mxu1 %v4114_v8 }
 0x118   : > { %3812 = vmatmul.mubr.bf16.gmra.mrb[120].mxu0 %v4117_v12 }
 0x119   : > { %v3390_v15 = vpop.f32.mrb[16].mxu1 }
 0x11a   : > { %v3391_v16 = vpop.f32.mrb[17].mxu1  ;;  %v3482_v18 = vpop.f32.mrb[16].mxu0 }
 0x11b   : > { %v3392_v19 = vadd.f32 %v3391_v16, %v3390_v15  ;;  %v3393_v20 = vpop.f32.mrb[18].mxu1  ;;  %v3483_v21 = vpop.f32.mrb[17].mxu0 }
 0x11c   : > { %v3394_v24 = vpop.f32.mrb[19].mxu1  ;;  %v3484_v26 = vadd.f32 %v3483_v21, %v3482_v18  ;;  %v3485_v27 = vpop.f32.mrb[18].mxu0 }
 0x11d   : > { %v4657_v28 = vadd.f32 %v3392_v19, %v4654_v22  ;;  %v3395_v29 = vadd.f32 %v3394_v24, %v3393_v20  ;;  %v3486_v30 = vpop.f32.mrb[19].mxu0  ;;  %v1782_v19 = vadd.f32 %v4629_v55, %v4654_v22 }
 0x11e   : > { %2353 = vmatmul.mubr.bf16.gmra.mrb[124].mxu1 %v4116_v17  ;;  %v3487_v33 = vadd.f32 %v3486_v30, %v3485_v27  ;;  %v1785_v27 = vadd.f32 %v4635_v62, %v4654_v22  ;;  %v1790_v62 = vadd.f32 %v4642_v7, %v4654_v22 }
 0x11f   : > { %v4660_v34 = vadd.f32 %v3395_v29, %v4654_v22 }
 0x121   : > { %v3412_v35 = vpop.f32.mrb[20].mxu1 }
 0x122   : > { %v3413_v36 = vpop.f32.mrb[21].mxu1 }
 0x123   : > { %v3414_v39 = vadd.f32 %v3413_v36, %v3412_v35  ;;  %v3415_v41 = vpop.f32.mrb[22].mxu1  ;;  %v3488_v42 = vpop.f32.mrb[20].mxu0 }
 0x124   : > { %v3416_v43 = vpop.f32.mrb[23].mxu1  ;;  %v3489_v44 = vpop.f32.mrb[21].mxu0 }
 0x125   : > { %v1871_v48 = vadd.f32 %v3414_v39, %v1766_v37  ;;  %v3417_v49 = vadd.f32 %v3416_v43, %v3415_v41  ;;  %v3490_v50 = vadd.f32 %v3489_v44, %v3488_v42  ;;  %v3491_v51 = vpop.f32.mrb[22].mxu0 }
 0x126   : > { %v3492_v52 = vpop.f32.mrb[23].mxu0 }
 0x127   : > { %v1874_v54 = vadd.f32 %v3417_v49, %v1769_v45  ;;  %v4666_v56 = vadd.f32 %v3484_v26, %v1871_v48  ;;  %v3493_v57 = vadd.f32 %v3492_v52, %v3491_v51  ;;  %v1793_v51 = vadd.f32 %v4648_v14, %v4654_v22 }
 0x129   : > { %v4668_v58 = vadd.f32 %v3487_v33, %v1874_v54  ;;  %v3418_v25 = vpop.f32.mrb[24].mxu1 }
 0x12a   : > { %v3419_v59 = vpop.f32.mrb[25].mxu1 }
 0x12b   : > { %v3420_v63 = vadd.f32 %v3419_v59, %v3418_v25  ;;  %v3421_v1 = vpop.f32.mrb[26].mxu1  ;;  %v3494_v2 = vpop.f32.mrb[24].mxu0 }
 0x12c   : > { %v3422_v32 = vpop.f32.mrb[27].mxu1  ;;  %v3495_v3 = vpop.f32.mrb[25].mxu0 }
 0x12d   : > { %v1879_v6 = vadd.f32 %v3420_v63, %v1774_v60  ;;  %v3423_v8 = vadd.f32 %v3422_v32, %v3421_v1  ;;  %v3496_v9 = vadd.f32 %v3495_v3, %v3494_v2  ;;  %v3497_v10 = vpop.f32.mrb[26].mxu0  ;;  %v1798_v32 = vadd.f32 %v4601_v23, %v4654_v22 }
 0x12e   : > { %v3498_v11 = vpop.f32.mrb[27].mxu0 }
 0x12f   : > { %v1882_v12 = vadd.f32 %v3423_v8, %v1777_v4  ;;  %v4674_v15 = vadd.f32 %v3490_v50, %v1879_v6  ;;  %v3499_v16 = vadd.f32 %v3498_v11, %v3497_v10 }
 0x131   : > { %v4676_v17 = vadd.f32 %v3493_v57, %v1882_v12  ;;  %v3424_v40 = vpop.f32.mrb[28].mxu1 }
 0x132   : > { %v3425_v18 = vpop.f32.mrb[29].mxu1 }
 0x133   : > { %v3426_v20 = vadd.f32 %v3425_v18, %v3424_v40  ;;  %v3427_v21 = vpop.f32.mrb[30].mxu1  ;;  %v3500_v24 = vpop.f32.mrb[28].mxu0 }
 0x134   : > { %v3428_v47 = vpop.f32.mrb[31].mxu1  ;;  %v3501_v26 = vpop.f32.mrb[29].mxu0 }
 0x135   : > { %v1887_v29 = vadd.f32 %v3426_v20, %v1782_v19  ;;  %v3429_v30 = vadd.f32 %v3428_v47, %v3427_v21  ;;  %v3502_v33 = vadd.f32 %v3501_v26, %v3500_v24  ;;  %v3503_v35 = vpop.f32.mrb[30].mxu0  ;;  %v1806_v47 = vadd.f32 %v4614_v38, %v4654_v22 }
 0x136   : > { %v3504_v36 = vpop.f32.mrb[31].mxu0 }
 0x137   : > { %v1890_v37 = vadd.f32 %v3429_v30, %v1785_v27  ;;  %v4682_v39 = vadd.f32 %v3496_v9, %v1887_v29  ;;  %v3505_v41 = vadd.f32 %v3504_v36, %v3503_v35  ;;  %v1801_v9 = vadd.f32 %v4607_v31, %v4654_v22 }
 0x139   : > { %v4684_v42 = vadd.f32 %v3499_v16, %v1890_v37  ;;  %v3430_v55 = vpop.f32.mrb[32].mxu1 }
 0x13a   : > { %v3431_v43 = vpop.f32.mrb[33].mxu1 }
 0x13b   : > { %v3432_v44 = vadd.f32 %v3431_v43, %v3430_v55  ;;  %v3433_v45 = vpop.f32.mrb[34].mxu1  ;;  %v3506_v48 = vpop.f32.mrb[32].mxu0 }
 0x13c   : > { %v3434_v49 = vpop.f32.mrb[35].mxu1  ;;  %v3507_v50 = vpop.f32.mrb[33].mxu0 }
 0x13d   : > { %v1895_v52 = vadd.f32 %v3432_v44, %v1790_v62  ;;  %v3435_v54 = vadd.f32 %v3434_v49, %v3433_v45  ;;  %v3508_v57 = vadd.f32 %v3507_v50, %v3506_v48  ;;  %v3509_v25 = vpop.f32.mrb[34].mxu0  ;;  %v1814_v49 = vadd.f32 %v4627_v53, %v4654_v22 }
 0x13e   : > { %v3510_v59 = vpop.f32.mrb[35].mxu0 }
 0x13f   : > { %v1898_v60 = vadd.f32 %v3435_v54, %v1793_v51  ;;  %v4742_v63 = vadd.f32 %v3502_v33, %v1895_v52  ;;  %v3511_v0 = vadd.f32 %v3510_v59, %v3509_v25  ;;  %v1809_v33 = vadd.f32 %v4620_v46, %v4654_v22 }
 0x141   : > { %v4744_v1 = vadd.f32 %v3505_v41, %v1898_v60  ;;  %v3436_v7 = vpop.f32.mrb[36].mxu1 }
 0x142   : > { %v3437_v2 = vpop.f32.mrb[37].mxu1 }
 0x143   : > { %v3438_v3 = vadd.f32 %v3437_v2, %v3436_v7  ;;  %v3439_v4 = vpop.f32.mrb[38].mxu1  ;;  %v3512_v6 = vpop.f32.mrb[36].mxu0 }
 0x144   : > { %v3440_v14 = vpop.f32.mrb[39].mxu1  ;;  %v3513_v8 = vpop.f32.mrb[37].mxu0 }
 0x145   : > { %v1903_v10 = vadd.f32 %v3438_v3, %v1798_v32  ;;  %v3441_v11 = vadd.f32 %v3440_v14, %v3439_v4  ;;  %v3514_v12 = vadd.f32 %v3513_v8, %v3512_v6  ;;  %v3515_v16 = vpop.f32.mrb[38].mxu0  ;;  %v1822_v14 = vadd.f32 %v4640_v5, %v4654_v22 }
 0x146   : > { %v3516_v40 = vpop.f32.mrb[39].mxu0 }
 0x147   : > { %v1906_v18 = vadd.f32 %v3441_v11, %v1801_v9  ;;  %v4750_v19 = vadd.f32 %v3508_v57, %v1903_v10  ;;  %v3517_v20 = vadd.f32 %v3516_v40, %v3515_v16  ;;  %v1817_v57 = vadd.f32 %v4633_v61, %v4654_v22 }
 0x149   : > { %v4752_v21 = vadd.f32 %v3511_v0, %v1906_v18  ;;  %v3442_v23 = vpop.f32.mrb[40].mxu1 }
 0x14a   : > { %v3443_v24 = vpop.f32.mrb[41].mxu1 }
 0x14b   : > { %v3444_v26 = vadd.f32 %v3443_v24, %v3442_v23  ;;  %v3445_v27 = vpop.f32.mrb[42].mxu1  ;;  %v3518_v29 = vpop.f32.mrb[40].mxu0 }
 0x14c   : > { %v3446_v31 = vpop.f32.mrb[43].mxu1  ;;  %v3519_v30 = vpop.f32.mrb[41].mxu0 }
 0x14d   : > { %v1911_v35 = vadd.f32 %v3444_v26, %v1806_v47  ;;  %v3447_v36 = vadd.f32 %v3446_v31, %v3445_v27  ;;  %v3520_v37 = vadd.f32 %v3519_v30, %v3518_v29  ;;  %v3521_v41 = vpop.f32.mrb[42].mxu0 }
 0x14e   : > { %v3522_v55 = vpop.f32.mrb[43].mxu0 }
 0x14f   : > { %v1914_v43 = vadd.f32 %v3447_v36, %v1809_v33  ;;  %v4758_v62 = vadd.f32 %v3514_v12, %v1911_v35  ;;  %v3523_v44 = vadd.f32 %v3522_v55, %v3521_v41  ;;  %v1825_v12 = vadd.f32 %v4646_v13, %v4654_v22 }
 0x151   : > { %v4760_v45 = vadd.f32 %v3517_v20, %v1914_v43  ;;  %v3448_v38 = vpop.f32.mrb[44].mxu1 }
 0x152   : > { %v3449_v48 = vpop.f32.mrb[45].mxu1 }
 0x153   : > { %v3450_v50 = vadd.f32 %v3449_v48, %v3448_v38  ;;  %v3451_v51 = vpop.f32.mrb[46].mxu1  ;;  %v3524_v52 = vpop.f32.mrb[44].mxu0 }
 0x154   : > { %v3452_v46 = vpop.f32.mrb[47].mxu1  ;;  %v3525_v54 = vpop.f32.mrb[45].mxu0 }
 0x155   : > { %v1919_v25 = vadd.f32 %v3450_v50, %v1814_v49  ;;  %v3453_v59 = vadd.f32 %v3452_v46, %v3451_v51  ;;  %v3526_v60 = vadd.f32 %v3525_v54, %v3524_v52  ;;  %v3527_v0 = vpop.f32.mrb[46].mxu0 }
 0x156   : > { %v3528_v7 = vpop.f32.mrb[47].mxu0 }
 0x157   : > { %v1922_v2 = vadd.f32 %v3453_v59, %v1817_v57  ;;  %v4766_v32 = vadd.f32 %v3520_v37, %v1919_v25  ;;  %v3529_v3 = vadd.f32 %v3528_v7, %v3527_v0 }
 0x159   : > { %v4768_v4 = vadd.f32 %v3523_v44, %v1922_v2  ;;  %v3454_v53 = vpop.f32.mrb[48].mxu1 }
 0x15a   : > { %v3455_v6 = vpop.f32.mrb[49].mxu1 }
 0x15b   : > { %v3456_v8 = vadd.f32 %v3455_v6, %v3454_v53  ;;  %v3457_v9 = vpop.f32.mrb[50].mxu1  ;;  %v3530_v10 = vpop.f32.mrb[48].mxu0 }
 0x15c   : > { %v3458_v61 = vpop.f32.mrb[51].mxu1  ;;  %v3531_v11 = vpop.f32.mrb[49].mxu0 }
 0x15d   : > { %v1927_v16 = vadd.f32 %v3456_v8, %v1822_v14  ;;  %v3459_v40 = vadd.f32 %v3458_v61, %v3457_v9  ;;  %v3532_v18 = vadd.f32 %v3531_v11, %v3530_v10  ;;  %v3533_v20 = vpop.f32.mrb[50].mxu0 }
 0x15e   : > { %v3534_v23 = vpop.f32.mrb[51].mxu0 }
 0x15f   : > { %v1930_v24 = vadd.f32 %v3459_v40, %v1825_v12  ;;  %v4774_v47 = vadd.f32 %v3526_v60, %v1927_v16  ;;  %v3535_v26 = vadd.f32 %v3534_v23, %v3533_v20 }
 0x161   : > { %v4776_v27 = vadd.f32 %v3529_v3, %v1930_v24  ;;  %v3460_v5 = vpop.f32.mrb[52].mxu1 }
 0x162   : > { %v3461_v29 = vpop.f32.mrb[53].mxu1 }
 0x163   : > { %v3462_v31 = vadd.f32 %v3461_v29, %v3460_v5  ;;  %v3463_v30 = vpop.f32.mrb[54].mxu1  ;;  %v3622_v33 = vpop.f32.mrb[52].mxu0 }
 0x164   : > { %v3464_v35 = vpop.f32.mrb[55].mxu1  ;;  %v3623_v36 = vpop.f32.mrb[53].mxu0 }
 0x165   : > { %v1935_v13 = vadd.f32 %v3462_v31, %v4657_v28  ;;  %v3465_v22 = vadd.f32 %v3464_v35, %v3463_v30  ;;  %v3624_v37 = vadd.f32 %v3623_v36, %v3622_v33  ;;  %v3625_v41 = vpop.f32.mrb[54].mxu0 }
 0x166   : > { %v3626_v55 = vpop.f32.mrb[55].mxu0 }
 0x167   : > { %v1938_v43 = vadd.f32 %v3465_v22, %v4660_v34  ;;  %v4780_v44 = vadd.f32 %v3532_v18, %v1935_v13  ;;  %v3627_v38 = vadd.f32 %v3626_v55, %v3625_v41 }
 0x169   : > { %v4782_v48 = vadd.f32 %v3535_v26, %v1938_v43  ;;  %v3552_v49 = vpop.f32.mrb[56].mxu1 }
 0x16a   : > { %v3553_v50 = vpop.f32.mrb[57].mxu1 }
 0x16b   : > { %v3554_v51 = vadd.f32 %v3553_v50, %v3552_v49  ;;  %v3555_v52 = vpop.f32.mrb[58].mxu1  ;;  %v3628_v46 = vpop.f32.mrb[56].mxu0 }
 0x16c   : > { %v3556_v54 = vpop.f32.mrb[59].mxu1  ;;  %v3629_v57 = vpop.f32.mrb[57].mxu0 }
 0x16d   : > { %v2081_v28 = vadd.f32 %v3554_v51, %v4666_v56  ;;  %v3557_v25 = vadd.f32 %v3556_v54, %v3555_v52  ;;  %v3630_v59 = vadd.f32 %v3629_v57, %v3628_v46  ;;  %v3631_v60 = vpop.f32.mrb[58].mxu0 }
 0x16e   : > { %v3632_v0 = vpop.f32.mrb[59].mxu0 }
 0x16f   : > { %v2084_v34 = vadd.f32 %v3557_v25, %v4668_v58  ;;  %v4786_v7 = vadd.f32 %v3624_v37, %v2081_v28  ;;  %v3633_v2 = vadd.f32 %v3632_v0, %v3631_v60 }
 0x171   : > { %v4788_v3 = vadd.f32 %v3627_v38, %v2084_v34  ;;  %v3558_v53 = vpop.f32.mrb[60].mxu1 }
 0x172   : > { %v3559_v6 = vpop.f32.mrb[61].mxu1 }
 0x173   : > { %v3560_v14 = vadd.f32 %v3559_v6, %v3558_v53  ;;  %v3561_v8 = vpop.f32.mrb[62].mxu1  ;;  %v3634_v9 = vpop.f32.mrb[60].mxu0 }
 0x174   : > { %v3562_v10 = vpop.f32.mrb[63].mxu1  ;;  %v3635_v61 = vpop.f32.mrb[61].mxu0 }
 0x175   : > { %v2089_v56 = vadd.f32 %v3560_v14, %v4674_v15  ;;  %v3563_v11 = vadd.f32 %v3562_v10, %v3561_v8  ;;  %v3636_v12 = vadd.f32 %v3635_v61, %v3634_v9  ;;  %v3637_v16 = vpop.f32.mrb[62].mxu0 }
 0x176   : > { %v3638_v40 = vpop.f32.mrb[63].mxu0 }
 0x177   : > { %v2092_v58 = vadd.f32 %v3563_v11, %v4676_v17  ;;  %v4792_v18 = vadd.f32 %v3630_v59, %v2089_v56  ;;  %v3639_v20 = vadd.f32 %v3638_v40, %v3637_v16 }
 0x179   : > { %v4794_v23 = vadd.f32 %v3633_v2, %v2092_v58  ;;  %v3564_v24 = vpop.f32.mrb[64].mxu1 }
 0x17a   : > { %v3565_v26 = vpop.f32.mrb[65].mxu1 }
 0x17b   : > { %v3566_v5 = vadd.f32 %v3565_v26, %v3564_v24  ;;  %v3567_v29 = vpop.f32.mrb[66].mxu1  ;;  %v3640_v31 = vpop.f32.mrb[64].mxu0 }
 0x17c   : > { %v3568_v30 = vpop.f32.mrb[67].mxu1  ;;  %v3641_v33 = vpop.f32.mrb[65].mxu0 }
 0x17d   : > { %v2097_v15 = vadd.f32 %v3566_v5, %v4682_v39  ;;  %v3569_v35 = vadd.f32 %v3568_v30, %v3567_v29  ;;  %v3642_v36 = vadd.f32 %v3641_v33, %v3640_v31  ;;  %v3643_v13 = vpop.f32.mrb[66].mxu0 }
 0x17e   : > { %v3644_v22 = vpop.f32.mrb[67].mxu0 }
 0x17f   : > { %v2100_v17 = vadd.f32 %v3569_v35, %v4684_v42  ;;  %v4798_v37 = vadd.f32 %v3636_v12, %v2097_v15  ;;  %v3645_v41 = vadd.f32 %v3644_v22, %v3643_v13 }
 0x181   : > { %v4800_v55 = vadd.f32 %v3639_v20, %v2100_v17  ;;  %v3570_v43 = vpop.f32.mrb[68].mxu1 }
 0x182   : > { %v3571_v38 = vpop.f32.mrb[69].mxu1 }
 0x183   : > { %v3572_v49 = vadd.f32 %v3571_v38, %v3570_v43  ;;  %v3573_v50 = vpop.f32.mrb[70].mxu1  ;;  %v3646_v51 = vpop.f32.mrb[68].mxu0 }
 0x184   : > { %v3574_v52 = vpop.f32.mrb[71].mxu1  ;;  %v3647_v46 = vpop.f32.mrb[69].mxu0 }
 0x185   : > { %v2105_v39 = vadd.f32 %v3572_v49, %v4742_v63  ;;  %v3575_v54 = vadd.f32 %v3574_v52, %v3573_v50  ;;  %v3648_v57 = vadd.f32 %v3647_v46, %v3646_v51  ;;  %v3649_v28 = vpop.f32.mrb[70].mxu0 }
 0x186   : > { %v3650_v25 = vpop.f32.mrb[71].mxu0 }
 0x187   : > { %v2108_v42 = vadd.f32 %v3575_v54, %v4744_v1  ;;  %v4804_v59 = vadd.f32 %v3642_v36, %v2105_v39  ;;  %v3651_v60 = vadd.f32 %v3650_v25, %v3649_v28 }
 0x189   : > { %v4806_v0 = vadd.f32 %v3645_v41, %v2108_v42  ;;  %v3576_v34 = vpop.f32.mrb[72].mxu1 }
 0x18a   : > { %v3577_v2 = vpop.f32.mrb[73].mxu1 }
 0x18b   : > { %v3578_v53 = vadd.f32 %v3577_v2, %v3576_v34  ;;  %v3579_v6 = vpop.f32.mrb[74].mxu1  ;;  %v3652_v14 = vpop.f32.mrb[72].mxu0 }
 0x18c   : > { %v3580_v8 = vpop.f32.mrb[75].mxu1  ;;  %v3653_v9 = vpop.f32.mrb[73].mxu0 }
 0x18d   : > { %v2113_v63 = vadd.f32 %v3578_v53, %v4750_v19  ;;  %v3581_v10 = vadd.f32 %v3580_v8, %v3579_v6  ;;  %v3654_v61 = vadd.f32 %v3653_v9, %v3652_v14  ;;  %v3655_v56 = vpop.f32.mrb[74].mxu0 }
 0x18e   : > { %v3656_v11 = vpop.f32.mrb[75].mxu0 }
 0x18f   : > { %v2116_v1 = vadd.f32 %v3581_v10, %v4752_v21  ;;  %v4810_v12 = vadd.f32 %v3648_v57, %v2113_v63  ;;  %v3657_v16 = vadd.f32 %v3656_v11, %v3655_v56 }
 0x191   : > { %v4812_v40 = vadd.f32 %v3651_v60, %v2116_v1  ;;  %v3582_v58 = vpop.f32.mrb[76].mxu1 }
 0x192   : > { %v3583_v20 = vpop.f32.mrb[77].mxu1 }
 0x193   : > { %v3584_v24 = vadd.f32 %v3583_v20, %v3582_v58  ;;  %v3585_v26 = vpop.f32.mrb[78].mxu1  ;;  %v3658_v5 = vpop.f32.mrb[76].mxu0 }
 0x194   : > { %v3586_v29 = vpop.f32.mrb[79].mxu1  ;;  %v3659_v31 = vpop.f32.mrb[77].mxu0 }
 0x195   : > { %v2121_v19 = vadd.f32 %v3584_v24, %v4758_v62  ;;  %v3587_v30 = vadd.f32 %v3586_v29, %v3585_v26  ;;  %v3660_v33 = vadd.f32 %v3659_v31, %v3658_v5  ;;  %v3661_v15 = vpop.f32.mrb[78].mxu0 }
 0x196   : > { %v3662_v35 = vpop.f32.mrb[79].mxu0 }
 0x197   : > { %v2124_v21 = vadd.f32 %v3587_v30, %v4760_v45  ;;  %v4816_v36 = vadd.f32 %v3654_v61, %v2121_v19  ;;  %v3663_v13 = vadd.f32 %v3662_v35, %v3661_v15 }
 0x199   : > { %v4818_v22 = vadd.f32 %v3657_v16, %v2124_v21  ;;  %v3588_v17 = vpop.f32.mrb[80].mxu1 }
 0x19a   : > { %v3589_v41 = vpop.f32.mrb[81].mxu1 }
 0x19b   : > { %v3590_v43 = vadd.f32 %v3589_v41, %v3588_v17  ;;  %v3591_v38 = vpop.f32.mrb[82].mxu1  ;;  %v3664_v49 = vpop.f32.mrb[80].mxu0 }
 0x19c   : > { %v3592_v50 = vpop.f32.mrb[83].mxu1  ;;  %v3665_v51 = vpop.f32.mrb[81].mxu0 }
 0x19d   : > { %v2129_v62 = vadd.f32 %v3590_v43, %v4766_v32  ;;  %v3593_v52 = vadd.f32 %v3592_v50, %v3591_v38  ;;  %v3666_v46 = vadd.f32 %v3665_v51, %v3664_v49  ;;  %v3667_v39 = vpop.f32.mrb[82].mxu0 }
 0x19e   : > { %v3668_v54 = vpop.f32.mrb[83].mxu0 }
 0x19f   : > { %v2132_v45 = vadd.f32 %v3593_v52, %v4768_v4  ;;  %v4822_v57 = vadd.f32 %v3660_v33, %v2129_v62  ;;  %v3669_v28 = vadd.f32 %v3668_v54, %v3667_v39 }
 0x1a1   : > { %v4824_v25 = vadd.f32 %v3663_v13, %v2132_v45  ;;  %v3594_v42 = vpop.f32.mrb[84].mxu1 }
 0x1a2   : > { %v3595_v60 = vpop.f32.mrb[85].mxu1 }
 0x1a3   : > { %v3596_v34 = vadd.f32 %v3595_v60, %v3594_v42  ;;  %v3597_v2 = vpop.f32.mrb[86].mxu1  ;;  %v3670_v53 = vpop.f32.mrb[84].mxu0 }
 0x1a4   : > { %v3598_v6 = vpop.f32.mrb[87].mxu1  ;;  %v3671_v14 = vpop.f32.mrb[85].mxu0 }
 0x1a5   : > { %v2137_v32 = vadd.f32 %v3596_v34, %v4774_v47  ;;  %v3599_v8 = vadd.f32 %v3598_v6, %v3597_v2  ;;  %v3672_v9 = vadd.f32 %v3671_v14, %v3670_v53  ;;  %v3673_v63 = vpop.f32.mrb[86].mxu0 }
 0x1a6   : > { %v3674_v10 = vpop.f32.mrb[87].mxu0 }
 0x1a7   : > { %v2140_v4 = vadd.f32 %v3599_v8, %v4776_v27  ;;  %v4828_v61 = vadd.f32 %v3666_v46, %v2137_v32  ;;  %v3675_v56 = vadd.f32 %v3674_v10, %v3673_v63 }
 0x1a9   : > { %v4830_v11 = vadd.f32 %v3669_v28, %v2140_v4  ;;  %v3600_v1 = vpop.f32.mrb[88].mxu1 }
 0x1aa   : > { %v3601_v16 = vpop.f32.mrb[89].mxu1 }
 0x1ab   : > { %v3602_v58 = vadd.f32 %v3601_v16, %v3600_v1  ;;  %v3603_v20 = vpop.f32.mrb[90].mxu1  ;;  %v2395_v24 = vpop.f32.mrb[88].mxu0 }
 0x1ac   : > { %v3604_v26 = vpop.f32.mrb[91].mxu1  ;;  %v3781_v5 = vpop.f32.mrb[89].mxu0 }
 0x1ad   : > { %v2145_v47 = vadd.f32 %v3602_v58, %v4780_v44  ;;  %v3605_v29 = vadd.f32 %v3604_v26, %v3603_v20  ;;  %v2398_v31 = vpop.f32.mrb[90].mxu0  ;;  %v2553_v20 = vld [vmem:[#allocation2 + $0x8] sm:$0x3f] }
 0x1ae   : > { %v3782_v19 = vpop.f32.mrb[91].mxu0 }
 0x1af   : > { %v2148_v30 = vadd.f32 %v3605_v29, %v4782_v48  ;;  %v4834_v27 = vadd.f32 %v3672_v9, %v2145_v47  ;;  %v2552_v47 = vld [vmem:[#allocation2] sm:$0xff] }
 0x1b1   : > { %v4836_v33 = vadd.f32 %v3675_v56, %v2148_v30  ;;  %v3692_v15 = vpop.f32.mrb[92].mxu1 }
 0x1b2   : > { %v3693_v35 = vpop.f32.mrb[93].mxu1 }
 0x1b3   : > { %v3694_v21 = vadd.f32 %v3693_v35, %v3692_v15  ;;  %v3695_v13 = vpop.f32.mrb[94].mxu1  ;;  %v2403_v17 = vpop.f32.mrb[92].mxu0 }
 0x1b4   : > { %v3696_v41 = vpop.f32.mrb[95].mxu1  ;;  %v3785_v43 = vpop.f32.mrb[93].mxu0 }
 0x1b5   : > { %v3697_v38 = vadd.f32 %v3696_v41, %v3695_v13  ;;  %v2291_v49 = vadd.f32 %v3694_v21, %v4786_v7  ;;  %v2406_v44 = vpop.f32.mrb[94].mxu0 }
 0x1b6   : > { %v3786_v50 = vpop.f32.mrb[95].mxu0 }
 0x1b7   : > { %v2396_v51 = vadd.f32 %v2395_v24, %v2291_v49  ;;  %v2294_v62 = vadd.f32 %v3697_v38, %v4788_v3 }
 0x1b9   : > { %v2466_v48 = vmax.f32 %v2396_v51, 0.0  ;;  %v2399_v52 = vadd.f32 %v2398_v31, %v2294_v62  ;;  %v3698_v46 = vpop.f32.mrb[96].mxu1 }
 0x1ba   : > { %v3699_v39 = vpop.f32.mrb[97].mxu1 }
 0x1bb   : > { %v2467_v54 = vmax.f32 %v2399_v52, 0.0  ;;  %2515 = vst.msk [vmem:[#allocation2 + $0x11] sm:$0xff] %vm2484_vm1, %v2466_v48  ;;  %v3700_v45 = vadd.f32 %v3699_v39, %v3698_v46  ;;  %v3701_v28 = vpop.f32.mrb[98].mxu1  ;;  %v2411_v42 = vpop.f32.mrb[96].mxu0 }
 0x1bc   : > { %v3702_v60 = vpop.f32.mrb[99].mxu1  ;;  %v3789_v34 = vpop.f32.mrb[97].mxu0 }
 0x1bd   : > { %2517 = vst.msk [vmem:[#allocation2 + $0x19] sm:$0xf] %vm2516_vm3, %v2467_v54  ;;  %v3703_v7 = vadd.f32 %v3702_v60, %v3701_v28  ;;  %v2299_v3 = vadd.f32 %v3700_v45, %v4792_v18  ;;  %v2414_v2 = vpop.f32.mrb[98].mxu0 }
 0x1be   : > { %2520 = vst.msk [vmem:[#allocation2 + $0x1d] sm:$0xf0] %vm5224_vm4, %v2467_v54  ;;  %v3790_v53 = vpop.f32.mrb[99].mxu0 }
 0x1bf   : > { %v2404_v6 = vadd.f32 %v2403_v17, %v2299_v3  ;;  %v2302_v14 = vadd.f32 %v3703_v7, %v4794_v23 }
 0x1c1   : > { %v2468_v32 = vmax.f32 %v2404_v6, 0.0  ;;  %v2407_v8 = vadd.f32 %v2406_v44, %v2302_v14  ;;  %v3704_v9 = vpop.f32.mrb[100].mxu1 }
 0x1c2   : > { %v3705_v63 = vpop.f32.mrb[101].mxu1  ;;  %v2564_v26 = vld [vmem:[#allocation2 + $0x10] sm:$0xff] }
 0x1c3   : > { %2521 = vst.msk [vmem:[#allocation2 + $0x25] sm:$0xff] %vm2484_vm1, %v2468_v32  ;;  %v2469_v10 = vmax.f32 %v2407_v8, 0.0  ;;  %v3706_v4 = vadd.f32 %v3705_v63, %v3704_v9  ;;  %v3707_v56 = vpop.f32.mrb[102].mxu1  ;;  %v4846_v1 = vpop.f32.mrb[100].mxu0  ;;  %v2576_v15 = vmax.f32 %v2552_v47, %v2564_v26 }
 0x1c4   : > { %v3708_v16 = vpop.f32.mrb[103].mxu1  ;;  %v3793_v58 = vpop.f32.mrb[101].mxu0  ;;  %v2565_v5 = vld [vmem:[#allocation2 + $0x18] sm:$0x3f] }
 0x1c5   : > { %2523 = vst.msk [vmem:[#allocation2 + $0x31] sm:$0xff] %vm2484_vm1, %v2469_v10  ;;  %v3709_v18 = vadd.f32 %v3708_v16, %v3707_v56  ;;  %v2307_v24 = vadd.f32 %v3706_v4, %v4798_v37  ;;  %v4850_v23 = vpop.f32.mrb[102].mxu0  ;;  %v2577_v30 = vmax.f32 %v2553_v20, %v2565_v5 }
 0x1c6   : > { %v3794_v29 = vpop.f32.mrb[103].mxu0 }
 0x1c7   : > { %v2412_v31 = vadd.f32 %v2411_v42, %v2307_v24  ;;  %v2310_v19 = vadd.f32 %v3709_v18, %v4800_v55 }
 0x1c9   : > { %v2470_v35 = vmax.f32 %v2412_v31, 0.0  ;;  %v2415_v21 = vadd.f32 %v2414_v2, %v2310_v19  ;;  %v3710_v13 = vpop.f32.mrb[104].mxu1 }
 0x1ca   : > { %v4853_v17 = vld [vmem:[#allocation2 + $0x20] sm:$0xff]  ;;  %v2589_v37 = vld [vmem:[#allocation2 + $0x28] sm:$0x3f]  ;;  %v3711_v41 = vpop.f32.mrb[105].mxu1 }
 0x1cb   : > { %v2600_v43 = vmax.f32 %v2576_v15, %v4853_v17  ;;  %v2601_v38 = vmax.f32 %v2577_v30, %v2589_v37  ;;  %2524 = vst.msk [vmem:[#allocation2 + $0x39] sm:$0xf] %vm2516_vm3, %v2470_v35  ;;  %v2471_v55 = vmax.f32 %v2415_v21, 0.0  ;;  %v3712_v49 = vadd.f32 %v3711_v41, %v3710_v13  ;;  %v3713_v44 = vpop.f32.mrb[106].mxu1  ;;  %v4858_v50 = vpop.f32.mrb[104].mxu0 }
 0x1cc   : > { %2526 = vst.msk [vmem:[#allocation2 + $0x3d] sm:$0xf0] %vm5224_vm4, %v2470_v35  ;;  %v3714_v51 = vpop.f32.mrb[107].mxu1  ;;  %v3797_v62 = vpop.f32.mrb[105].mxu0  ;;  %v2566_v8 = vld [vmem:[#allocation2 + $0x30] sm:$0xff]  ;;  %vm4912_vm4 = vmand %vm2800_vm11, %vm2801_vm12 }
 0x1cd   : > { %v2613_v48 = vsel %vm2612_vm5, %v2600_v43, -inf  ;;  %v2683_v52 = vsel %vm2682_vm7, %v2600_v43, -inf  ;;  %v2752_v46 = vsel %vm2751_vm8, %v2600_v43, -inf  ;;  %v2822_v39 = vsel %vm5225_vm9, %v2600_v43, -inf  ;;  %2527 = vst.msk [vmem:[#allocation2 + $0x45] sm:$0xff] %vm2484_vm1, %v2471_v55  ;;  %v4865_v54 = vpop.f32.mrb[106].mxu0 }
 0x1ce   : > { %v2614_v45 = vrot.slane %v2613_v48, 4  ;;  %v2684_v28 = vrot.slane %v2683_v52, 4  ;;  %v2753_v42 = vrot.slane %v2752_v46, 4  ;;  %v2824_v60 = vsel %vm2661_vm6, %v2601_v38, -inf  ;;  %v3798_v34 = vpop.f32.mrb[107].mxu0 }
 0x1cf   : > { %v2825_v7 = vmax.f32 %v2822_v39, %v2824_v60  ;;  %v2903_v3 = vsel %vm2612_vm5, %v2601_v38, -inf  ;;  %v2972_v2 = vsel %vm2682_vm7, %v2601_v38, -inf  ;;  %v4871_v10 = vadd.f32 %v3714_v51, %v3713_v44  ;;  %v2555_v13 = vld [vmem:[#allocation2 + $0x28] sm:$0x3f] }
 0x1d0   : > { %v2615_v53 = vmax.f32 %v2613_v48, %v2614_v45  ;;  %v2685_v6 = vmax.f32 %v2683_v52, %v2684_v28  ;;  %v2754_v14 = vmax.f32 %v2752_v46, %v2753_v42  ;;  %v2904_v32 = vrot.slane %v2903_v3, 4 }
 0x1d1   : > { %v2826_v9 = vrot.slane %v2825_v7, 4  ;;  %v2973_v63 = vrot.slane %v2972_v2, 4  ;;  %v2315_v4 = vadd.f32 %v3712_v49, %v4804_v59  ;;  %v4874_v56 = vpop.f32.mrb[108].mxu1  ;;  %v2578_v29 = vmax.f32 %v4853_v17, %v2566_v8 }
 0x1d2   : > { %v2616_v16 = vrot.slane %v2615_v53, 2  ;;  %v2686_v58 = vrot.slane %v2685_v6, 2  ;;  %v2755_v20 = vrot.slane %v2754_v14, 2  ;;  %v2905_v18 = vmax.f32 %v2903_v3, %v2904_v32  ;;  %v2567_v24 = vld [vmem:[#allocation2 + $0x38] sm:$0x3f]  ;;  %v4876_v26 = vpop.f32.mrb[109].mxu1 }
 0x1d3   : > { %v2827_v5 = vmax.f32 %v2825_v7, %v2826_v9  ;;  %v2974_v47 = vmax.f32 %v2972_v2, %v2973_v63  ;;  %v4880_v31 = vadd.f32 %v4846_v1, %v2315_v4  ;;  %v4882_v19 = vpop.f32.mrb[110].mxu1  ;;  %v4884_v30 = vpop.f32.mrb[108].mxu0  ;;  %v2579_v1 = vmax.f32 %v2555_v13, %v2567_v24  ;;  %v2664_v7 = vld [vmem:[%s4891_s10] sm:$0x1] }
 0x1d4   : > { %v2617_v59 = vmax.f32 %v2615_v53, %v2616_v16  ;;  %v2687_v15 = vmax.f32 %v2685_v6, %v2686_v58  ;;  %v2756_v35 = vmax.f32 %v2754_v14, %v2755_v20  ;;  %v2906_v21 = vrot.slane %v2905_v18, 2  ;;  %v4886_v37 = vld [vmem:[#allocation2 + $0x40] sm:$0xff]  ;;  %v4894_v38 = vpop.f32.mrb[111].mxu1  ;;  %v3801_v55 = vpop.f32.mrb[109].mxu0  ;;  %v2591_v39 = vld [vmem:[#allocation2 + $0x48] sm:$0x3f] }
 0x1d5   : > { %v2828_v17 = vrot.slane %v2827_v5, 2  ;;  %v2975_v41 = vrot.slane %v2974_v47, 2  ;;  %v2602_v43 = vmax.f32 %v2578_v29, %v4886_v37  ;;  %v4896_v48 = vpop.f32.mrb[110].mxu0  ;;  %v2803_v53 = vld [vmem:[%s4891_s10] sm:$0x2] }
 0x1d6   : > { %v2618_v49 = vrot.slane %v2617_v59, 1  ;;  %v2688_v44 = vrot.slane %v2687_v15, 1  ;;  %v2757_v51 = vrot.slane %v2756_v35, 1  ;;  %v2907_v62 = vmax.f32 %v2905_v18, %v2906_v21  ;;  %v3802_v42 = vpop.f32.mrb[111].mxu0  ;;  %v2954_v29 = vld [vmem:[%s4891_s10] sm:$0x4] }
 0x1d7   : > { %v2829_v52 = vmax.f32 %v2827_v5, %v2828_v17  ;;  %v2976_v46 = vmax.f32 %v2974_v47, %v2975_v41  ;;  %v2620_v45 = vsel %vm2612_vm5, %v2602_v43, -inf  ;;  %v2690_v28 = vsel %vm2682_vm7, %v2602_v43, -inf }
 0x1d8   : > { %v2619_v60 = vmax.f32 %v2617_v59, %v2618_v49  ;;  %v4907_v3 = vmax.f32 %v2687_v15, %v2688_v44  ;;  %v2758_v2 = vmax.f32 %v2756_v35, %v2757_v51  ;;  %v2908_v6 = vrot.slane %v2907_v62, 1 }
 0x1d9   : > { %v2830_v32 = vrot.slane %v2829_v52, 1  ;;  %v2977_v8 = vrot.slane %v2976_v46, 1  ;;  %v2621_v9 = vrot.slane %v2620_v45, 4  ;;  %v2691_v63 = vrot.slane %v2690_v28, 4  ;;  %v4916_v4 = vpop.f32.mrb[112].mxu1 }
 0x1da   : > { %v2655_v16 = vpack.c.bf16 %v2619_v60, %v2619_v60  ;;  %v2794_v58 = vpack.c.bf16 %v2758_v2, %v2758_v2  ;;  %v2909_v20 = vmax.f32 %v2907_v62, %v2908_v6  ;;  %v2603_v18 = vmax.f32 %v2579_v1, %v2591_v39  ;;  %v4918_v24 = vpop.f32.mrb[113].mxu1 }
 0x1db   : > { %v4920_v5 = vmax.f32 %v2829_v52, %v2830_v32  ;;  %vm3020_vm12 = vsmask.f32 7946  ;;  %v2622_v59 = vmax.f32 %v2620_v45, %v2621_v9  ;;  %v2692_v15 = vmax.f32 %v2690_v28, %v2691_v63  ;;  %v4929_v35 = vpop.f32.mrb[114].mxu1  ;;  %v4931_v21 = vpop.f32.mrb[112].mxu0 }
 0x1dc   : > { %v2665_v13 = vsel %vm4902_vm2, %v2655_v16, %v2664_v7  ;;  %v2804_v17 = vsel %vm4912_vm4, %v2794_v58, %v2803_v53  ;;  %v2945_v41 = vpack.c.bf16 %v2909_v20, %v2909_v20  ;;  %v2759_v1 = vsel %vm2751_vm8, %v2602_v43, -inf  ;;  %v4938_v55 = vpop.f32.mrb[115].mxu1  ;;  %v3805_v49 = vpop.f32.mrb[113].mxu0 }
 0x1dd   : > { %2666 = vst [vmem:[%s4891_s10] sm:$0x1] %v2665_v13  ;;  %v2725_v44 = vpack.c.bf16 %v4907_v3, %v4907_v3  ;;  %2805 = vst [vmem:[%s4891_s10] sm:$0x2] %v2804_v17  ;;  %v2978_v51 = vmax.f32 %v2976_v46, %v2977_v8  ;;  %v2623_v62 = vrot.slane %v2622_v59, 2  ;;  %v2693_v52 = vrot.slane %v2692_v15, 2  ;;  %v4944_v39 = vpop.f32.mrb[114].mxu0 }
 0x1de   : > { %v2955_v45 = vsel %vm4924_vm10, %v2945_v41, %v2954_v29  ;;  %v2760_v28 = vrot.slane %v2759_v1, 4  ;;  %v2832_v42 = vsel %vm5225_vm9, %v2602_v43, -inf  ;;  %v2833_v60 = vsel %vm2661_vm6, %v2603_v18, -inf  ;;  %v3806_v7 = vpop.f32.mrb[115].mxu0  ;;  %vm4966_vm9 = vmand %vm2800_vm11, %vm2883_vm0 }
 0x1df   : > { %v2877_v2 = vpack.c.bf16 %v4920_v5, %v4920_v5  ;;  %2956 = vst [vmem:[%s4891_s10] sm:$0x4] %v2955_v45  ;;  %v2624_v3 = vmax.f32 %v2622_v59, %v2623_v62  ;;  %v2834_v53 = vmax.f32 %v2832_v42, %v2833_v60  ;;  %v2910_v46 = vsel %vm2612_vm5, %v2603_v18, -inf  ;;  %vm4986_vm11 = vmand %vm2951_vm13, %vm3020_vm12 }
 0x1e0   : > { %v2761_v6 = vmax.f32 %v2759_v1, %v2760_v28  ;;  %v2911_v32 = vrot.slane %v2910_v46, 4  ;;  %v2979_v8 = vsel %vm2682_vm7, %v2603_v18, -inf  ;;  %v2472_v9 = vmax.f32 %v4880_v31, 0.0  ;;  %v2667_v1 = vld [vmem:[%s4891_s10 + $0x4] sm:$0x1] }
 0x1e1   : > { %v2625_v63 = vrot.slane %v2624_v3, 1  ;;  %v2694_v16 = vmax.f32 %v2692_v15, %v2693_v52  ;;  %v2835_v58 = vrot.slane %v2834_v53, 4  ;;  %v2980_v20 = vrot.slane %v2979_v8, 4  ;;  %v4962_v5 = vpop.f32.mrb[116].mxu1 }
 0x1e2   : > { %v2762_v31 = vrot.slane %v2761_v6, 2  ;;  %v2912_v29 = vmax.f32 %v2910_v46, %v2911_v32  ;;  %2529 = vst.msk [vmem:[#allocation2 + $0x51] sm:$0xff] %vm2484_vm1, %v2472_v9  ;;  %v2318_v59 = vadd.f32 %v4871_v10, %v4806_v0  ;;  %v3718_v15 = vadd.f32 %v4876_v26, %v4874_v56  ;;  %v4975_v13 = vpop.f32.mrb[117].mxu1 }
 0x1e3   : > { %v3014_v17 = vpack.c.bf16 %v2978_v51, %v2978_v51  ;;  %v2626_v41 = vmax.f32 %v2624_v3, %v2625_v63  ;;  %v2836_v49 = vmax.f32 %v2834_v53, %v2835_v58  ;;  %v2981_v62 = vmax.f32 %v2979_v8, %v2980_v20  ;;  %v4978_v52 = vpop.f32.mrb[118].mxu1  ;;  %v4980_v45 = vpop.f32.mrb[116].mxu0 }
 0x1e4   : > { %v2733_v28 = vld [vmem:[%s4891_s10] sm:$0x1]  ;;  %v2885_v42 = vld [vmem:[%s4891_s10] sm:$0x2]  ;;  %v2763_v10 = vmax.f32 %v2761_v6, %v2762_v31  ;;  %v2913_v56 = vrot.slane %v2912_v29, 2  ;;  %v2423_v26 = vadd.f32 %v4850_v23, %v2318_v59  ;;  %v3721_v51 = vadd.f32 %v4894_v38, %v4882_v19  ;;  %v3732_v60 = vpop.f32.mrb[119].mxu1 }
 0x1e5   : > { %v2734_v7 = vsel %vm4958_vm14, %v2725_v44, %v2733_v28  ;;  %v2886_v3 = vsel %vm4966_vm9, %v2877_v2, %v2885_v42  ;;  %v2656_v53 = vpack.c.bf16 %v2626_v41, %v2626_v41  ;;  %v2695_v46 = vrot.slane %v2694_v16, 1  ;;  %v3809_v32 = vpop.f32.mrb[117].mxu0  ;;  %v2806_v28 = vld [vmem:[%s4891_s10 + $0x4] sm:$0x2] }
 0x1e6   : > { %2735 = vst [vmem:[%s4891_s10] sm:$0x1] %v2734_v7  ;;  %2887 = vst [vmem:[%s4891_s10] sm:$0x2] %v2886_v3  ;;  %v3022_v6 = vld [vmem:[%s4891_s10] sm:$0x4]  ;;  %v2764_v8 = vrot.slane %v2763_v10, 1  ;;  %v2837_v23 = vrot.slane %v2836_v49, 2  ;;  %v2914_v9 = vmax.f32 %v2912_v29, %v2913_v56  ;;  %v2323_v58 = vadd.f32 %v3718_v15, %v4810_v12 }
 0x1e7   : > { %v2982_v19 = vrot.slane %v2981_v62, 2  ;;  %v5000_v38 = vpop.f32.mrb[118].mxu0  ;;  %v3023_v44 = vsel %vm4986_vm11, %v3014_v17, %v3022_v6  ;;  %v2668_v2 = vsel %vm4902_vm2, %v2656_v53, %v2667_v1  ;;  %v2473_v63 = vmax.f32 %v2423_v26, 0.0  ;;  %v2957_v7 = vld [vmem:[%s4891_s10 + $0x4] sm:$0x4] }
 0x1e8   : > { %v3810_v20 = vpop.f32.mrb[119].mxu0  ;;  %3024 = vst [vmem:[%s4891_s10] sm:$0x4] %v3023_v44  ;;  %2669 = vst [vmem:[%s4891_s10 + $0x4] sm:$0x1] %v2668_v2  ;;  %v2765_v31 = vmax.f32 %v2763_v10, %v2764_v8  ;;  %v2838_v59 = vmax.f32 %v2836_v49, %v2837_v23  ;;  %v2915_v41 = vrot.slane %v2914_v9, 1  ;;  %vm5238_vm13 = vcmask 523268  }
 0x1e9   : > { %v2983_v29 = vmax.f32 %v2981_v62, %v2982_v19  ;;  %2530 = vst.msk [vmem:[#allocation2 + $0x59] sm:$0xf] %vm2516_vm3, %v2473_v63  ;;  %v2428_v17 = vadd.f32 %v4858_v50, %v2323_v58  ;;  %v2326_v1 = vadd.f32 %v3721_v51, %v4812_v40  ;;  %v3724_v12 = vadd.f32 %v4918_v24, %v4916_v4  ;;  %v3734_v42 = vpop.f32.mrb[120].mxu1  ;;  %vm5239_vm15 = vmmov %vm5238_vm13 }
 0x1ea   : > { %2532 = vst.msk [vmem:[#allocation2 + $0x5d] sm:$0xf0] %vm5238_vm13, %v2473_v63  ;;  %v3727_v15 = vadd.f32 %v4938_v55, %v4929_v35  ;;  %v2696_v49 = vmax.f32 %v2694_v16, %v2695_v46  ;;  %v2795_v10 = vpack.c.bf16 %v2765_v31, %v2765_v31  ;;  %v2839_v62 = vrot.slane %v2838_v59, 1  ;;  %v3735_v26 = vpop.f32.mrb[121].mxu1  ;;  %v2568_v63 = vld [vmem:[#allocation2 + $0x50] sm:$0xff]  ;;  %vm5240_vm0 = vmmov %vm5238_vm13 }
 0x1eb   : > { %v2916_v56 = vmax.f32 %v2914_v9, %v2915_v41  ;;  %v2474_v3 = vmax.f32 %v2428_v17, 0.0  ;;  %v2431_v53 = vadd.f32 %v4865_v54, %v2326_v1  ;;  %v2331_v50 = vadd.f32 %v3724_v12, %v4816_v36  ;;  %v3737_v40 = vpop.f32.mrb[122].mxu1  ;;  %v5021_v51 = vpop.f32.mrb[120].mxu0  ;;  %v2557_v17 = vld [vmem:[#allocation2 + $0x48] sm:$0x3f] }
 0x1ec   : > { %v2807_v4 = vsel %vm4912_vm4, %v2795_v10, %v2806_v28  ;;  %v2984_v35 = vrot.slane %v2983_v29, 1  ;;  %v3738_v55 = vpop.f32.mrb[123].mxu1  ;;  %v3813_v16 = vpop.f32.mrb[121].mxu0  ;;  %v2334_v36 = vadd.f32 %v3727_v15, %v4818_v22  ;;  %v3730_v32 = vadd.f32 %v4975_v13, %v4962_v5 }
 0x1ed   : > { %v2946_v24 = vpack.c.bf16 %v2916_v56, %v2916_v56  ;;  %2808 = vst [vmem:[%s4891_s10 + $0x4] sm:$0x2] %v2807_v4  ;;  %2533 = vst.msk [vmem:[#allocation2 + $0x65] sm:$0xff] %vm2484_vm1, %v2474_v3  ;;  %v2475_v46 = vmax.f32 %v2431_v53, 0.0  ;;  %v2436_v54 = vadd.f32 %v4884_v30, %v2331_v50  ;;  %v5031_v6 = vpop.f32.mrb[122].mxu0  ;;  %v2726_v8 = vpack.c.bf16 %v2696_v49, %v2696_v49 }
 0x1ee   : > { %v2840_v23 = vmax.f32 %v2838_v59, %v2839_v62  ;;  %v3733_v19 = vadd.f32 %v3732_v60, %v4978_v52  ;;  %v3814_v44 = vpop.f32.mrb[123].mxu0  ;;  %v2439_v30 = vadd.f32 %v4896_v48, %v2334_v36  ;;  %v2339_v5 = vadd.f32 %v3730_v32, %v4822_v57 }
 0x1ef   : > { %v2958_v9 = vsel %vm4924_vm10, %v2946_v24, %v2957_v7  ;;  %v2736_v2 = vld [vmem:[%s4891_s10 + $0x4] sm:$0x1]  ;;  %2535 = vst.msk [vmem:[#allocation2 + $0x71] sm:$0xff] %vm2484_vm1, %v2475_v46  ;;  %v2476_v22 = vmax.f32 %v2436_v54, 0.0  ;;  %v3736_v13 = vadd.f32 %v3735_v26, %v3734_v42  ;;  %v2985_v20 = vmax.f32 %v2983_v29, %v2984_v35 }
 0x1f0   : > { %2959 = vst [vmem:[%s4891_s10 + $0x4] sm:$0x4] %v2958_v9  ;;  %v2737_v58 = vsel %vm4958_vm14, %v2726_v8, %v2736_v2  ;;  %v2569_v31 = vld [vmem:[#allocation2 + $0x58] sm:$0x3f]  ;;  %v2342_v59 = vadd.f32 %v3733_v19, %v4824_v25  ;;  %v3739_v52 = vadd.f32 %v3738_v55, %v3737_v40  ;;  %v2477_v60 = vmax.f32 %v2439_v30, 0.0 }
 0x1f1   : > { %2738 = vst [vmem:[%s4891_s10 + $0x4] sm:$0x1] %v2737_v58  ;;  %2536 = vst.msk [vmem:[#allocation2 + $0x79] sm:$0xf] %vm2516_vm3, %v2476_v22  ;;  %v2444_v48 = vadd.f32 %v4931_v21, %v2339_v5  ;;  %v2347_v57 = vadd.f32 %v3736_v13, %v4828_v61  ;;  %v3740_v41 = vpop.f32.mrb[124].mxu1  ;;  %v2878_v28 = vpack.c.bf16 %v2840_v23, %v2840_v23  ;;  %vm5241_vm12 = vcmask 523270  }
 0x1f2   : > { %2538 = vst.msk [vmem:[#allocation2 + $0x7d] sm:$0xf0] %vm5239_vm15, %v2476_v22  ;;  %v2580_v29 = vmax.f32 %v4886_v37, %v2568_v63  ;;  %v2447_v1 = vadd.f32 %v4944_v39, %v2342_v59  ;;  %v2350_v25 = vadd.f32 %v3739_v52, %v4830_v11  ;;  %v3741_v12 = vpop.f32.mrb[125].mxu1  ;;  %v2581_v15 = vmax.f32 %v2557_v17, %v2569_v31  ;;  %vm5242_vm13 = vmmov %vm5241_vm12 }
 0x1f3   : > { %2539 = vst.msk [vmem:[#allocation2 + $0x85] sm:$0xff] %vm2484_vm1, %v2477_v60  ;;  %v2478_v42 = vmax.f32 %v2444_v48, 0.0  ;;  %v2452_v49 = vadd.f32 %v4980_v45, %v2347_v57  ;;  %v3742_v21 = vadd.f32 %v3741_v12, %v3740_v41  ;;  %v3743_v61 = vpop.f32.mrb[126].mxu1  ;;  %v3015_v62 = vpack.c.bf16 %v2985_v20, %v2985_v20  ;;  %vm5243_vm15 = vmmov %vm5241_vm12 }
 0x1f4   : > { %v2888_v10 = vld [vmem:[%s4891_s10 + $0x4] sm:$0x2]  ;;  %v2593_v26 = vld [vmem:[#allocation2 + $0x68] sm:$0x3f]  ;;  %v2479_v37 = vmax.f32 %v2447_v1, 0.0  ;;  %v2455_v39 = vadd.f32 %v5000_v38, %v2350_v25  ;;  %v3744_v45 = vpop.f32.mrb[127].mxu1 }
 0x1f5   : > { %v2558_v56 = vld [vmem:[#allocation2 + $0x60] sm:$0xff]  ;;  %v2889_v11 = vsel %vm4966_vm9, %v2878_v28, %v2888_v10  ;;  %v2605_v3 = vmax.f32 %v2581_v15, %v2593_v26  ;;  %2541 = vst.msk [vmem:[#allocation2 + $0x91] sm:$0xff] %vm2484_vm1, %v2478_v42  ;;  %v2480_v53 = vmax.f32 %v2452_v49, 0.0  ;;  %v5063_v4 = vadd.f32 %v3744_v45, %v3743_v61  ;;  %v2559_v46 = vld [vmem:[#allocation2 + $0x68] sm:$0x3f] }
 0x1f6   : > { %v2604_v7 = vmax.f32 %v2580_v29, %v2558_v56  ;;  %2890 = vst [vmem:[%s4891_s10 + $0x4] sm:$0x2] %v2889_v11  ;;  %2542 = vst.msk [vmem:[#allocation2 + $0x99] sm:$0xf] %vm2516_vm3, %v2479_v37  ;;  %v2481_v40 = vmax.f32 %v2455_v39, 0.0  ;;  %v5066_v38 = vadd.f32 %v3742_v21, %v4834_v27  ;;  %v2570_v54 = vld [vmem:[#allocation2 + $0x70] sm:$0xff] }
 0x1f7   : > { %v3025_v50 = vld [vmem:[%s4891_s10 + $0x4] sm:$0x4]  ;;  %2544 = vst.msk [vmem:[#allocation2 + $0x9d] sm:$0xf0] %vm5240_vm0, %v2479_v37  ;;  %v2842_v9 = vsel %vm2661_vm6, %v2605_v3, -inf  ;;  %v2917_v19 = vsel %vm2612_vm5, %v2605_v3, -inf  ;;  %v2582_v59 = vmax.f32 %v2558_v56, %v2570_v54 }
 0x1f8   : > { %v3026_v24 = vsel %vm4986_vm11, %v3015_v62, %v3025_v50  ;;  %v2627_v35 = vsel %vm2612_vm5, %v2604_v7, -inf  ;;  %v2697_v55 = vsel %vm2682_vm7, %v2604_v7, -inf  ;;  %v2766_v16 = vsel %vm2751_vm8, %v2604_v7, -inf  ;;  %2545 = vst.msk [vmem:[#allocation2 + $0xa5] sm:$0xff] %vm2484_vm1, %v2480_v53  ;;  %v2571_v23 = vld [vmem:[#allocation2 + $0x78] sm:$0x3f] }
 0x1f9   : > { %3027 = vst [vmem:[%s4891_s10 + $0x4] sm:$0x4] %v3026_v24  ;;  %v2628_v36 = vrot.slane %v2627_v35, 4  ;;  %v2698_v32 = vrot.slane %v2697_v55, 4  ;;  %v2767_v8 = vrot.slane %v2766_v16, 4  ;;  %v2841_v27 = vsel %vm5241_vm12, %v2604_v7, -inf }
 0x1fa   : > { %2547 = vst.msk [vmem:[#allocation2 + $0xb1] sm:$0xff] %vm2484_vm1, %v2481_v40  ;;  %v2986_v44 = vsel %vm2682_vm7, %v2605_v3, -inf  ;;  %v2583_v2 = vmax.f32 %v2559_v46, %v2571_v23  ;;  %v2843_v5 = vmax.f32 %v2841_v27, %v2842_v9  ;;  %v5080_v13 = vld [vmem:[#allocation2 + $0x80] sm:$0xff]  ;;  %v2595_v58 = vld [vmem:[#allocation2 + $0x88] sm:$0x3f]  ;;  %v2918_v20 = vrot.slane %v2917_v19, 4 }
 0x1fb   : > { %v2629_v63 = vmax.f32 %v2627_v35, %v2628_v36  ;;  %v2699_v22 = vmax.f32 %v2697_v55, %v2698_v32  ;;  %v2768_v30 = vmax.f32 %v2766_v16, %v2767_v8  ;;  %v2987_v31 = vrot.slane %v2986_v44, 4  ;;  %v2670_v50 = vld [vmem:[%s4891_s10 + $0x8] sm:$0x1]  ;;  %v2809_v40 = vld [vmem:[%s4891_s10 + $0x8] sm:$0x2] }
 0x1fc   : > { %v2844_v57 = vrot.slane %v2843_v5, 4  ;;  %v2919_v41 = vmax.f32 %v2917_v19, %v2918_v20  ;;  %v2606_v17 = vmax.f32 %v2582_v59, %v5080_v13  ;;  %v2607_v29 = vmax.f32 %v2583_v2, %v2595_v58  ;;  %v2960_v2 = vld [vmem:[%s4891_s10 + $0x8] sm:$0x4] }
 0x1fd   : > { %v2630_v52 = vrot.slane %v2629_v63, 2  ;;  %v2700_v60 = vrot.slane %v2699_v22, 2  ;;  %v2769_v48 = vrot.slane %v2768_v30, 2  ;;  %v2988_v28 = vmax.f32 %v2986_v44, %v2987_v31 }
 0x1fe   : > { %v2845_v15 = vmax.f32 %v2843_v5, %v2844_v57  ;;  %v2920_v42 = vrot.slane %v2919_v41, 2  ;;  %v2634_v21 = vsel %vm2612_vm5, %v2606_v17, -inf  ;;  %v2704_v61 = vsel %vm2682_vm7, %v2606_v17, -inf }
 0x1ff   : > { %v2631_v1 = vmax.f32 %v2629_v63, %v2630_v52  ;;  %v2701_v25 = vmax.f32 %v2699_v22, %v2700_v60  ;;  %v2770_v12 = vmax.f32 %v2768_v30, %v2769_v48  ;;  %v2989_v49 = vrot.slane %v2988_v28, 2 }
 0x200   : > { %v2846_v26 = vrot.slane %v2845_v15, 2  ;;  %v2921_v37 = vmax.f32 %v2919_v41, %v2920_v42  ;;  %v2635_v11 = vrot.slane %v2634_v21, 4  ;;  %v2705_v7 = vrot.slane %v2704_v61, 4 }
 0x201   : > { %v2632_v10 = vrot.slane %v2631_v1, 1  ;;  %v2702_v62 = vrot.slane %v2701_v25, 1  ;;  %v2771_v56 = vrot.slane %v2770_v12, 1  ;;  %v2990_v39 = vmax.f32 %v2988_v28, %v2989_v49 }
 0x202   : > { %v2847_v45 = vmax.f32 %v2845_v15, %v2846_v26  ;;  %v2922_v24 = vrot.slane %v2921_v37, 1  ;;  %v2636_v55 = vmax.f32 %v2634_v21, %v2635_v11  ;;  %v2706_v16 = vmax.f32 %v2704_v61, %v2705_v7  ;;  %v2597_v26 = vld [vmem:[#allocation2 + $0xa8] sm:$0x3f] }
 0x203   : > { %v2633_v3 = vmax.f32 %v2631_v1, %v2632_v10  ;;  %v2772_v53 = vmax.f32 %v2770_v12, %v2771_v56  ;;  %v2991_v35 = vrot.slane %v2990_v39, 1  ;;  %v2703_v54 = vmax.f32 %v2701_v25, %v2702_v62  ;;  %v2572_v1 = vld [vmem:[#allocation2 + $0x90] sm:$0xff]  ;;  %v2573_v25 = vld [vmem:[#allocation2 + $0x98] sm:$0x3f]  ;;  %v5106_v56 = vld [vmem:[#allocation2 + $0xa0] sm:$0xff] }
 0x204   : > { %v2848_v32 = vrot.slane %v2847_v45, 1  ;;  %v2923_v8 = vmax.f32 %v2921_v37, %v2922_v24  ;;  %v2637_v27 = vrot.slane %v2636_v55, 2  ;;  %v2707_v23 = vrot.slane %v2706_v16, 2  ;;  %v2673_v37 = vld [vmem:[%s4891_s10 + $0xc] sm:$0x1] }
 0x205   : > { %v2657_v46 = vpack.c.bf16 %v2633_v3, %v2633_v3  ;;  %v2796_v36 = vpack.c.bf16 %v2772_v53, %v2772_v53  ;;  %v2851_v9 = vsel %vm2661_vm6, %v2607_v29, -inf  ;;  %v5093_v63 = vmax.f32 %v2990_v39, %v2991_v35 }
 0x206   : > { %v2773_v22 = vsel %vm2751_vm8, %v2606_v17, -inf  ;;  %v2849_v30 = vmax.f32 %v2847_v45, %v2848_v32  ;;  %v2947_v5 = vpack.c.bf16 %v2923_v8, %v2923_v8  ;;  %v2638_v58 = vmax.f32 %v2636_v55, %v2637_v27 }
 0x207   : > { %v2671_v19 = vsel %vm4902_vm2, %v2657_v46, %v2670_v50  ;;  %v2810_v44 = vsel %vm4912_vm4, %v2796_v36, %v2809_v40  ;;  %v2708_v20 = vmax.f32 %v2706_v16, %v2707_v23  ;;  %v2727_v31 = vpack.c.bf16 %v2703_v54, %v2703_v54 }
 0x208   : > { %2672 = vst [vmem:[%s4891_s10 + $0x8] sm:$0x1] %v2671_v19  ;;  %2811 = vst [vmem:[%s4891_s10 + $0x8] sm:$0x2] %v2810_v44  ;;  %v2774_v59 = vrot.slane %v2773_v22, 4  ;;  %v2850_v52 = vsel %vm5242_vm13, %v2606_v17, -inf  ;;  %v2961_v48 = vsel %vm4924_vm10, %v2947_v5, %v2960_v2  ;;  %v3016_v12 = vpack.c.bf16 %v5093_v63, %v5093_v63 }
 0x209   : > { %v2924_v60 = vsel %vm2612_vm5, %v2607_v29, -inf  ;;  %v2639_v57 = vrot.slane %v2638_v58, 1  ;;  %v2709_v41 = vrot.slane %v2708_v20, 1  ;;  %v2852_v28 = vmax.f32 %v2850_v52, %v2851_v9  ;;  %2962 = vst [vmem:[%s4891_s10 + $0x8] sm:$0x4] %v2961_v48 }
 0x20a   : > { %v2775_v15 = vmax.f32 %v2773_v22, %v2774_v59  ;;  %v2925_v42 = vrot.slane %v2924_v60, 4  ;;  %v2993_v49 = vsel %vm2682_vm7, %v2607_v29, -inf  ;;  %v2561_v17 = vld [vmem:[#allocation2 + $0x88] sm:$0x3f]  ;;  %v2879_v21 = vpack.c.bf16 %v2849_v30, %v2849_v30 }
 0x20b   : > { %v2640_v61 = vmax.f32 %v2638_v58, %v2639_v57  ;;  %v2853_v10 = vrot.slane %v2852_v28, 4  ;;  %v2994_v62 = vrot.slane %v2993_v49, 4  ;;  %v2585_v7 = vmax.f32 %v2561_v17, %v2573_v25  ;;  %v2963_v25 = vld [vmem:[%s4891_s10 + $0xc] sm:$0x4] }
 0x20c   : > { %v2776_v39 = vrot.slane %v2775_v15, 2  ;;  %v2926_v11 = vmax.f32 %v2924_v60, %v2925_v42  ;;  %v2584_v3 = vmax.f32 %v5080_v13, %v2572_v1  ;;  %v2710_v29 = vmax.f32 %v2708_v20, %v2709_v41 }
 0x20d   : > { %v2658_v53 = vpack.c.bf16 %v2640_v61, %v2640_v61  ;;  %v2854_v45 = vmax.f32 %v2852_v28, %v2853_v10  ;;  %v2995_v50 = vmax.f32 %v2993_v49, %v2994_v62  ;;  %v2609_v46 = vmax.f32 %v2585_v7, %v2597_v26 }
 0x20e   : > { %v2777_v35 = vmax.f32 %v2775_v15, %v2776_v39  ;;  %v2927_v55 = vrot.slane %v2926_v11, 2  ;;  %v2608_v16 = vmax.f32 %v2584_v3, %v5106_v56  ;;  %v2728_v49 = vpack.c.bf16 %v2710_v29, %v2710_v29 }
 0x20f   : > { %v2739_v40 = vld [vmem:[%s4891_s10 + $0x8] sm:$0x1]  ;;  %v2891_v24 = vld [vmem:[%s4891_s10 + $0x8] sm:$0x2]  ;;  %v2674_v36 = vsel %vm4902_vm2, %v2658_v53, %v2673_v37  ;;  %v2855_v32 = vrot.slane %v2854_v45, 2  ;;  %v2996_v23 = vrot.slane %v2995_v50, 2 }
 0x210   : > { %v2740_v54 = vsel %vm4958_vm14, %v2727_v31, %v2739_v40  ;;  %v2892_v13 = vsel %vm4966_vm9, %v2879_v21, %v2891_v24  ;;  %2675 = vst [vmem:[%s4891_s10 + $0xc] sm:$0x1] %v2674_v36  ;;  %v2778_v8 = vrot.slane %v2777_v35, 1  ;;  %v2928_v27 = vmax.f32 %v2926_v11, %v2927_v55  ;;  %v3028_v19 = vld [vmem:[%s4891_s10 + $0x8] sm:$0x4] }
 0x211   : > { %2741 = vst [vmem:[%s4891_s10 + $0x8] sm:$0x1] %v2740_v54  ;;  %2893 = vst [vmem:[%s4891_s10 + $0x8] sm:$0x2] %v2892_v13  ;;  %v2641_v9 = vsel %vm2612_vm5, %v2608_v16, -inf  ;;  %v2856_v44 = vmax.f32 %v2854_v45, %v2855_v32  ;;  %v2711_v63 = vsel %vm2682_vm7, %v2608_v16, -inf  ;;  %v3029_v30 = vsel %vm4986_vm11, %v3016_v12, %v3028_v19 }
 0x212   : > { %v2642_v2 = vrot.slane %v2641_v9, 4  ;;  %v2780_v22 = vsel %vm2751_vm8, %v2608_v16, -inf  ;;  %v2779_v5 = vmax.f32 %v2777_v35, %v2778_v8  ;;  %v2929_v58 = vrot.slane %v2928_v27, 1  ;;  %3030 = vst [vmem:[%s4891_s10 + $0x8] sm:$0x4] %v3029_v30 }
 0x213   : > { %v2860_v20 = vsel %vm2661_vm6, %v2609_v46, -inf  ;;  %v2812_v31 = vld [vmem:[%s4891_s10 + $0xc] sm:$0x2]  ;;  %v2997_v59 = vmax.f32 %v2995_v50, %v2996_v23  ;;  %v2712_v60 = vrot.slane %v2711_v63, 4  ;;  %v2781_v48 = vrot.slane %v2780_v22, 4 }
 0x214   : > { %v2643_v52 = vmax.f32 %v2641_v9, %v2642_v2  ;;  %v2797_v57 = vpack.c.bf16 %v2779_v5, %v2779_v5  ;;  %v2857_v41 = vrot.slane %v2856_v44, 1  ;;  %v2930_v28 = vmax.f32 %v2928_v27, %v2929_v58  ;;  %v2676_v8 = vld [vmem:[%s4891_s10 + $0x10] sm:$0x1] }
 0x215   : > { %v2859_v1 = vsel %vm5243_vm15, %v2608_v16, -inf  ;;  %v2713_v12 = vmax.f32 %v2711_v63, %v2712_v60  ;;  %v2782_v42 = vmax.f32 %v2780_v22, %v2781_v48  ;;  %v2998_v62 = vrot.slane %v2997_v59, 1  ;;  %v2815_v22 = vld [vmem:[%s4891_s10 + $0x10] sm:$0x2] }
 0x216   : > { %v2644_v15 = vrot.slane %v2643_v52, 2  ;;  %v2813_v17 = vsel %vm4912_vm4, %v2797_v57, %v2812_v31  ;;  %v2948_v21 = vpack.c.bf16 %v2930_v28, %v2930_v28  ;;  %v2861_v61 = vmax.f32 %v2859_v1, %v2860_v20 }
 0x217   : > { %v2742_v10 = vld [vmem:[%s4891_s10 + $0xc] sm:$0x1]  ;;  %2814 = vst [vmem:[%s4891_s10 + $0xc] sm:$0x2] %v2813_v17  ;;  %v2714_v37 = vrot.slane %v2713_v12, 2  ;;  %v2783_v39 = vrot.slane %v2782_v42, 2  ;;  %v2858_v7 = vmax.f32 %v2856_v44, %v2857_v41  ;;  %v2460_v16 = vadd.f32 %v5021_v51, %v5066_v38 }
 0x218   : > { %v2645_v26 = vmax.f32 %v2643_v52, %v2644_v15  ;;  %v2743_v11 = vsel %vm4958_vm14, %v2728_v49, %v2742_v10  ;;  %v2964_v3 = vsel %vm4924_vm10, %v2948_v21, %v2963_v25  ;;  %v2862_v53 = vrot.slane %v2861_v61, 4  ;;  %v2563_v49 = vld [vmem:[#allocation2 + $0xa8] sm:$0x3f]  ;;  %v2574_v17 = vld [vmem:[#allocation2 + $0xb0] sm:$0xff] }
 0x219   : > { %2744 = vst [vmem:[%s4891_s10 + $0xc] sm:$0x1] %v2743_v11  ;;  %2965 = vst [vmem:[%s4891_s10 + $0xc] sm:$0x4] %v2964_v3  ;;  %v2715_v45 = vmax.f32 %v2713_v12, %v2714_v37  ;;  %v2784_v50 = vmax.f32 %v2782_v42, %v2783_v39  ;;  %v2931_v40 = vsel %vm2612_vm5, %v2609_v46, -inf  ;;  %v3000_v55 = vsel %vm2682_vm7, %v2609_v46, -inf }
 0x21a   : > { %v2646_v29 = vrot.slane %v2645_v26, 1  ;;  %v2863_v24 = vmax.f32 %v2861_v61, %v2862_v53  ;;  %v2932_v35 = vrot.slane %v2931_v40, 4  ;;  %v2999_v54 = vmax.f32 %v2997_v59, %v2998_v62  ;;  %v2966_v42 = vld [vmem:[%s4891_s10 + $0x10] sm:$0x4] }
 0x21b   : > { %v2785_v36 = vrot.slane %v2784_v50, 1  ;;  %v3001_v32 = vrot.slane %v3000_v55, 4  ;;  %v2482_v9 = vmax.f32 %v2460_v16, 0.0  ;;  %v2358_v19 = vadd.f32 %v5063_v4, %v4836_v33 }
 0x21c   : > { %v2647_v13 = vmax.f32 %v2645_v26, %v2646_v29  ;;  %v2864_v27 = vrot.slane %v2863_v24, 2  ;;  %v2933_v23 = vmax.f32 %v2931_v40, %v2932_v35  ;;  %v2880_v44 = vpack.c.bf16 %v2858_v7, %v2858_v7 }
 0x21d   : > { %v2786_v46 = vmax.f32 %v2784_v50, %v2785_v36  ;;  %v3002_v63 = vmax.f32 %v3000_v55, %v3001_v32  ;;  %v2716_v38 = vrot.slane %v2715_v45, 1  ;;  %2548 = vst.msk [vmem:[#allocation2 + $0xb9] sm:$0xf] %vm2516_vm3, %v2482_v9  ;;  %v2463_v58 = vadd.f32 %v5031_v6, %v2358_v19 }
 0x21e   : > { %v2659_v2 = vpack.c.bf16 %v2647_v13, %v2647_v13  ;;  %v2894_v51 = vld [vmem:[%s4891_s10 + $0xc] sm:$0x2]  ;;  %v2865_v30 = vmax.f32 %v2863_v24, %v2864_v27  ;;  %v2934_v5 = vrot.slane %v2933_v23, 2  ;;  %2550 = vst.msk [vmem:[#allocation2 + $0xbd] sm:$0xf0] %vm5240_vm0, %v2482_v9  ;;  %v3017_v4 = vpack.c.bf16 %v2999_v54, %v2999_v54 }
 0x21f   : > { %v2895_v33 = vsel %vm4966_vm9, %v2880_v44, %v2894_v51  ;;  %v2798_v31 = vpack.c.bf16 %v2786_v46, %v2786_v46  ;;  %v3003_v48 = vrot.slane %v3002_v63, 2  ;;  %v2483_v57 = vmax.f32 %v2463_v58, 0.0 }
 0x220   : > { %v2677_v20 = vsel %vm4902_vm2, %v2659_v2, %v2676_v8  ;;  %2896 = vst [vmem:[%s4891_s10 + $0xc] sm:$0x2] %v2895_v33  ;;  %v3031_v59 = vld [vmem:[%s4891_s10 + $0xc] sm:$0x4]  ;;  %v2866_v52 = vrot.slane %v2865_v30, 1  ;;  %v2935_v60 = vmax.f32 %v2933_v23, %v2934_v5  ;;  %v2717_v28 = vmax.f32 %v2715_v45, %v2716_v38 }
 0x221   : > { %2678 = vst [vmem:[%s4891_s10 + $0x10] sm:$0x1] %v2677_v20  ;;  %v3032_v6 = vsel %vm4986_vm11, %v3017_v4, %v3031_v59  ;;  %v2816_v41 = vsel %vm4912_vm4, %v2798_v31, %v2815_v22  ;;  %v3004_v25 = vmax.f32 %v3002_v63, %v3003_v48  ;;  %2551 = vst.msk [vmem:[#allocation2 + $0xc5] sm:$0xff] %vm2484_vm1, %v2483_v57 }
 0x222   : > { %3033 = vst [vmem:[%s4891_s10 + $0xc] sm:$0x4] %v3032_v6  ;;  %2817 = vst [vmem:[%s4891_s10 + $0x10] sm:$0x2] %v2816_v41  ;;  %v2936_v1 = vrot.slane %v2935_v60, 1  ;;  %v2867_v15 = vmax.f32 %v2865_v30, %v2866_v52  ;;  %v2729_v61 = vpack.c.bf16 %v2717_v28, %v2717_v28  ;;  %v2586_v3 = vmax.f32 %v5106_v56, %v2574_v17 }
 0x223   : > { %v3005_v62 = vrot.slane %v3004_v25, 1  ;;  %vm5244_vm1 = vmmov %vm5241_vm12 }
 0x224   : > { %v2937_v12 = vmax.f32 %v2935_v60, %v2936_v1  ;;  %v2575_v21 = vld [vmem:[#allocation2 + $0xb8] sm:$0x3f]  ;;  %v2881_v11 = vpack.c.bf16 %v2867_v15, %v2867_v15 }
 0x225   : > { %v2587_v26 = vmax.f32 %v2563_v49, %v2575_v21  ;;  %v3006_v40 = vmax.f32 %v3004_v25, %v3005_v62  ;;  %v2818_v49 = vld [vmem:[%s4891_s10 + $0x14] sm:$0x2] }
 0x226   : > { %v2949_v10 = vpack.c.bf16 %v2937_v12, %v2937_v12 }
 0x227   : > { %v3018_v27 = vpack.c.bf16 %v3006_v40, %v3006_v40 }
 0x228   : > { %v2745_v37 = vld [vmem:[%s4891_s10 + $0x10] sm:$0x1]  ;;  %v2967_v7 = vsel %vm4924_vm10, %v2949_v10, %v2966_v42  ;;  %v2598_v29 = vld [vmem:[#allocation2 + $0xc0] sm:$0xff]  ;;  %v2599_v45 = vld [vmem:[#allocation2 + $0xc8] sm:$0x3f] }
 0x229   : > { %v2746_v39 = vsel %vm4958_vm14, %v2729_v61, %v2745_v37  ;;  %v2897_v53 = vld [vmem:[%s4891_s10 + $0x10] sm:$0x2]  ;;  %2968 = vst [vmem:[%s4891_s10 + $0x10] sm:$0x4] %v2967_v7  ;;  %v2610_v24 = vmax.f32 %v2586_v3, %v2598_v29  ;;  %v2611_v35 = vmax.f32 %v2587_v26, %v2599_v45  ;;  %v2679_v42 = vld [vmem:[%s4891_s10 + $0x14] sm:$0x1] }
 0x22a   : > { %2747 = vst [vmem:[%s4891_s10 + $0x10] sm:$0x1] %v2746_v39  ;;  %v2898_v50 = vsel %vm4966_vm9, %v2881_v11, %v2897_v53  ;;  %v2969_v7 = vld [vmem:[%s4891_s10 + $0x14] sm:$0x4] }
 0x22b   : > { %2899 = vst [vmem:[%s4891_s10 + $0x10] sm:$0x2] %v2898_v50  ;;  %v2648_v55 = vsel %vm2612_vm5, %v2610_v24, -inf  ;;  %v2718_v16 = vsel %vm2682_vm7, %v2610_v24, -inf  ;;  %v2787_v54 = vsel %vm2751_vm8, %v2610_v24, -inf  ;;  %v2868_v56 = vsel %vm5244_vm1, %v2610_v24, -inf }
 0x22c   : > { %v2649_v13 = vrot.slane %v2648_v55, 4  ;;  %v2719_v36 = vrot.slane %v2718_v16, 4  ;;  %v2788_v32 = vrot.slane %v2787_v54, 4  ;;  %v2869_v8 = vsel %vm2661_vm6, %v2611_v35, -inf }
 0x22d   : > { %v2870_v23 = vmax.f32 %v2868_v56, %v2869_v8  ;;  %v2938_v9 = vsel %vm2612_vm5, %v2611_v35, -inf  ;;  %v3007_v19 = vsel %vm2682_vm7, %v2611_v35, -inf }
 0x22e   : > { %v2650_v44 = vmax.f32 %v2648_v55, %v2649_v13  ;;  %v2720_v2 = vmax.f32 %v2718_v16, %v2719_v36  ;;  %v2789_v46 = vmax.f32 %v2787_v54, %v2788_v32  ;;  %v2939_v63 = vrot.slane %v2938_v9, 4 }
 0x22f   : > { %v2871_v38 = vrot.slane %v2870_v23, 4  ;;  %v3008_v22 = vrot.slane %v3007_v19, 4 }
 0x230   : > { %v3034_v51 = vld [vmem:[%s4891_s10 + $0x10] sm:$0x4]  ;;  %v2651_v5 = vrot.slane %v2650_v44, 2  ;;  %v2790_v58 = vrot.slane %v2789_v46, 2  ;;  %v2721_v33 = vrot.slane %v2720_v2, 2  ;;  %v2940_v20 = vmax.f32 %v2938_v9, %v2939_v63 }
 0x231   : > { %v3035_v30 = vsel %vm4986_vm11, %v3018_v27, %v3034_v51  ;;  %v2872_v4 = vmax.f32 %v2870_v23, %v2871_v38  ;;  %v3009_v31 = vmax.f32 %v3007_v19, %v3008_v22 }
 0x232   : > { %3036 = vst [vmem:[%s4891_s10 + $0x10] sm:$0x4] %v3035_v30  ;;  %v2652_v59 = vmax.f32 %v2650_v44, %v2651_v5  ;;  %v2791_v52 = vmax.f32 %v2789_v46, %v2790_v58  ;;  %v2941_v48 = vrot.slane %v2940_v20, 2  ;;  %v2722_v28 = vmax.f32 %v2720_v2, %v2721_v33 }
 0x233   : > { %v2873_v60 = vrot.slane %v2872_v4, 2  ;;  %v3010_v41 = vrot.slane %v3009_v31, 2 }
 0x234   : > { %v2653_v57 = vrot.slane %v2652_v59, 1  ;;  %v2792_v6 = vrot.slane %v2791_v52, 1  ;;  %v2942_v25 = vmax.f32 %v2940_v20, %v2941_v48  ;;  %v2723_v62 = vrot.slane %v2722_v28, 1 }
 0x235   : > { %v2874_v1 = vmax.f32 %v2872_v4, %v2873_v60  ;;  %v3011_v10 = vmax.f32 %v3009_v31, %v3010_v41 }
 0x236   : > { %v2654_v15 = vmax.f32 %v2652_v59, %v2653_v57  ;;  %v2793_v12 = vmax.f32 %v2791_v52, %v2792_v6  ;;  %v2943_v17 = vrot.slane %v2942_v25, 1  ;;  %v2724_v29 = vmax.f32 %v2722_v28, %v2723_v62 }
 0x237   : > { %v2875_v26 = vrot.slane %v2874_v1, 1  ;;  %v3012_v53 = vrot.slane %v3011_v10, 1 }
 0x238   : > { %v2660_v21 = vpack.c.bf16 %v2654_v15, %v2654_v15  ;;  %v2799_v61 = vpack.c.bf16 %v2793_v12, %v2793_v12  ;;  %v2944_v37 = vmax.f32 %v2942_v25, %v2943_v17  ;;  %v2730_v40 = vpack.c.bf16 %v2724_v29, %v2724_v29 }
 0x239   : > { %v2876_v45 = vmax.f32 %v2874_v1, %v2875_v26  ;;  %v3013_v34 = vmax.f32 %v3011_v10, %v3012_v53 }
 0x23a   : > { %v2680_v39 = vsel %vm4902_vm2, %v2660_v21, %v2679_v42  ;;  %v2819_v11 = vsel %vm4912_vm4, %v2799_v61, %v2818_v49  ;;  %v2950_v3 = vpack.c.bf16 %v2944_v37, %v2944_v37 }
 0x23b   : > { %2681 = vst [vmem:[%s4891_s10 + $0x14] sm:$0x1] %v2680_v39  ;;  %2820 = vst [vmem:[%s4891_s10 + $0x14] sm:$0x2] %v2819_v11  ;;  %v2882_v24 = vpack.c.bf16 %v2876_v45, %v2876_v45  ;;  %v3019_v54 = vpack.c.bf16 %v3013_v34, %v3013_v34 }
 0x23c   : > { %v2970_v50 = vsel %vm4924_vm10, %v2950_v3, %v2969_v7 }
 0x23d   : > { %2971 = vst [vmem:[%s4891_s10 + $0x14] sm:$0x4] %v2970_v50 }
 0x242   : > { %v2748_v14 = vld [vmem:[%s4891_s10 + $0x14] sm:$0x1]  ;;  %v2900_v35 = vld [vmem:[%s4891_s10 + $0x14] sm:$0x2] }
 0x243   : > { %v2749_v55 = vsel %vm4958_vm14, %v2730_v40, %v2748_v14  ;;  %v2901_v16 = vsel %vm4966_vm9, %v2882_v24, %v2900_v35 }
 0x244   : > { %2750 = vst [vmem:[%s4891_s10 + $0x14] sm:$0x1] %v2749_v55  ;;  %2902 = vst [vmem:[%s4891_s10 + $0x14] sm:$0x2] %v2901_v16  ;;  %v3037_v56 = vld [vmem:[%s4891_s10 + $0x14] sm:$0x4] }
 0x245   : > { %v3038_v47 = vsel %vm4986_vm11, %v3019_v54, %v3037_v56 }
 0x246   : > { %3039 = vst [vmem:[%s4891_s10 + $0x14] sm:$0x4] %v3038_v47 }
 0x247 PF: > { %s13_s12 = sadd.s32 1, %s4124_s12  }
 0x248   : > { %p10_p4 = scmp.ge.s32.totalorder %s13_s12, 4  }
 0x24a   :  { %12 = sbr.rel (!%p10_p4) target bundleno = 1 (0x1), region = 74 }

// kernel: net_forward.5
= control target key start
LH: loop header
LB: loop body
LE: loop exit
PB: predicated region body
PF: predicated region fallthrough
CT: control target
= control target key end

     0   :  { %v609_v36 = vlaneseq  ;;  %v5773_v37 = vmov 1966171168   ;;  %s7488_s0 = inlined_call_operand.vmem [shape: bf16[2,2304], index: 0, kind: input, shape index: {}]   ;;  %s7489_s1 = inlined_call_operand.vmem [shape: bf16[2304,384], index: 1, kind: input, shape index: {}]   ;;  %s7490_s2 = inlined_call_operand.vmem [shape: f32[1,384], index: 2, kind: input, shape index: {}]   ;;  %s7491_s3 = inlined_call_operand.vmem [shape: bf16[384,192], index: 3, kind: input, shape index: {}]   ;;  %s7492_s4 = inlined_call_operand.vmem [shape: f32[1,192], index: 4, kind: input, shape index: {}]   ;;  %s7493_s5 = inlined_call_operand.vmem [shape: bf16[192,10], index: 5, kind: input, shape index: {}]   ;;  %s7494_s6 = inlined_call_operand.vmem [shape: f32[1,10], index: 6, kind: input, shape index: {}]   ;;  %s7495_s7 = inlined_call_operand.hbm [shape: f32[2,10], index: 7, kind: output, shape index: {}]  }
   0x1   :  { %v5087_v0 = vld [vmem:[%s7489_s1 + $0x4] ss:$12 sps:$4 sm:$0xff]   ;;  %v5091_v2 = vld [vmem:[%s7489_s1] ss:$12 sps:$4 sm:$0xff]   ;;  %v5093_v4 = vld [vmem:[%s7489_s1 + $0x1c] ss:$12 sps:$4 sm:$0xff]   ;;  %v629_v38 = vunpack.c.l.s4 %v5773_v37 }
   0x2   :  { %v5089_v1 = vld [vmem:[%s7489_s1 + $0x184] ss:$12 sps:$4 sm:$0xff]   ;;  %3069 = vmatprep.subr.bf16.mxu1 %v5087_v0  ;;  %v5092_v3 = vld [vmem:[%s7489_s1 + $0x180] ss:$12 sps:$4 sm:$0xff]   ;;  %v5095_v5 = vld [vmem:[%s7489_s1 + $0x19c] ss:$12 sps:$4 sm:$0xff]  }
   0x3   :  { %3110 = vmatprep.subr.bf16.mxu0 %v5089_v1  ;;  %3070 = vmatpush1.bf16.msra.mxu1 %v5091_v2  ;;  %v5097_v6 = vld [vmem:[%s7489_s1 + $0x18] ss:$12 sps:$4 sm:$0xff]   ;;  %v5099_v8 = vld [vmem:[%s7489_s1 + $0x34] ss:$12 sps:$4 sm:$0xff]   ;;  %v5103_v10 = vld [vmem:[%s7489_s1 + $0x30] ss:$12 sps:$4 sm:$0xff]   ;;  %v630_v43 = vunpack.c.0.s8 %v629_v38 }
   0x4   :  { %3111 = vmatpush1.bf16.msra.mxu0 %v5092_v3  ;;  %3071 = vmatprep.subr.bf16.mxu1 %v5093_v4  ;;  %v5098_v7 = vld [vmem:[%s7489_s1 + $0x198] ss:$12 sps:$4 sm:$0xff]   ;;  %v5101_v9 = vld [vmem:[%s7489_s1 + $0x1b4] ss:$12 sps:$4 sm:$0xff]   ;;  %v5104_v11 = vld [vmem:[%s7489_s1 + $0x1b0] ss:$12 sps:$4 sm:$0xff]  }
   0x5   :  { %3112 = vmatprep.subr.bf16.mxu0 %v5095_v5  ;;  %v5105_v12 = vld [vmem:[%s7489_s1 + $0x4c] ss:$12 sps:$4 sm:$0xff]   ;;  %v5109_v14 = vld [vmem:[%s7489_s1 + $0x48] ss:$12 sps:$4 sm:$0xff]   ;;  %v5111_v16 = vld [vmem:[%s7489_s1 + $0x64] ss:$12 sps:$4 sm:$0xff]  }
   0x6   :  { %v5107_v13 = vld [vmem:[%s7489_s1 + $0x1cc] ss:$12 sps:$4 sm:$0xff]   ;;  %v5110_v15 = vld [vmem:[%s7489_s1 + $0x1c8] ss:$12 sps:$4 sm:$0xff]   ;;  %v5113_v17 = vld [vmem:[%s7489_s1 + $0x1e4] ss:$12 sps:$4 sm:$0xff]  }
   0x7   :  { %3072 = vmatpush1.bf16.msra.mxu1 %v5097_v6  ;;  %v5115_v18 = vld [vmem:[%s7489_s1 + $0x60] ss:$12 sps:$4 sm:$0xff]   ;;  %v5117_v20 = vld [vmem:[%s7489_s1 + $0x7c] ss:$12 sps:$4 sm:$0xff]   ;;  %v5121_v22 = vld [vmem:[%s7489_s1 + $0x78] ss:$12 sps:$4 sm:$0xff]  }
   0x8   :  { %3113 = vmatpush1.bf16.msra.mxu0 %v5098_v7  ;;  %3073 = vmatprep.subr.bf16.mxu1 %v5099_v8  ;;  %v5116_v19 = vld [vmem:[%s7489_s1 + $0x1e0] ss:$12 sps:$4 sm:$0xff]   ;;  %v5119_v21 = vld [vmem:[%s7489_s1 + $0x1fc] ss:$12 sps:$4 sm:$0xff]   ;;  %v5122_v23 = vld [vmem:[%s7489_s1 + $0x1f8] ss:$12 sps:$4 sm:$0xff]  }
   0x9   :  { %3114 = vmatprep.subr.bf16.mxu0 %v5101_v9  ;;  %v5123_v24 = vld [vmem:[%s7489_s1 + $0x94] ss:$12 sps:$4 sm:$0xff]   ;;  %v5127_v26 = vld [vmem:[%s7489_s1 + $0x90] ss:$12 sps:$4 sm:$0xff]   ;;  %v5129_v28 = vld [vmem:[%s7489_s1 + $0xac] ss:$12 sps:$4 sm:$0xff]  }
   0xa   :  { %v5125_v25 = vld [vmem:[%s7489_s1 + $0x214] ss:$12 sps:$4 sm:$0xff]   ;;  %v5128_v27 = vld [vmem:[%s7489_s1 + $0x210] ss:$12 sps:$4 sm:$0xff]   ;;  %v5131_v29 = vld [vmem:[%s7489_s1 + $0x22c] ss:$12 sps:$4 sm:$0xff]  }
   0xb   :  { %3074 = vmatpush1.bf16.msra.mxu1 %v5103_v10  ;;  %v5133_v30 = vld [vmem:[%s7489_s1 + $0xa8] ss:$12 sps:$4 sm:$0xff]   ;;  %v5135_v32 = vld [vmem:[%s7489_s1 + $0xc4] ss:$12 sps:$4 sm:$0xff]   ;;  %v5139_v34 = vld [vmem:[%s7489_s1 + $0xc0] ss:$12 sps:$4 sm:$0xff]  }
   0xc   :  { %3115 = vmatpush1.bf16.msra.mxu0 %v5104_v11  ;;  %3075 = vmatprep.subr.bf16.mxu1 %v5105_v12  ;;  %v5134_v31 = vld [vmem:[%s7489_s1 + $0x228] ss:$12 sps:$4 sm:$0xff]   ;;  %v5137_v33 = vld [vmem:[%s7489_s1 + $0x244] ss:$12 sps:$4 sm:$0xff]   ;;  %v5140_v35 = vld [vmem:[%s7489_s1 + $0x240] ss:$12 sps:$4 sm:$0xff]  }
   0xd   :  { %3116 = vmatprep.subr.bf16.mxu0 %v5107_v13  ;;  %v5141_v39 = vld [vmem:[%s7489_s1 + $0xdc] ss:$12 sps:$4 sm:$0xff]   ;;  %v5145_v41 = vld [vmem:[%s7489_s1 + $0xd8] ss:$12 sps:$4 sm:$0xff]   ;;  %v5933_v42 = vshrl.u32 %v609_v36, 7 }
   0xe   :  { %v5143_v40 = vld [vmem:[%s7489_s1 + $0x25c] ss:$12 sps:$4 sm:$0xff]   ;;  %v5146_v44 = vld [vmem:[%s7489_s1 + $0x258] ss:$12 sps:$4 sm:$0xff]   ;;  %v5147_v45 = vld [vmem:[%s7489_s1 + $0xf4] ss:$12 sps:$4 sm:$0xff]  }
   0xf   :  { %3076 = vmatpush1.bf16.msra.mxu1 %v5109_v14  ;;  %v5149_v46 = vld [vmem:[%s7489_s1 + $0x274] ss:$12 sps:$4 sm:$0xff]   ;;  %v5151_v47 = vld [vmem:[%s7489_s1 + $0xf0] ss:$12 sps:$4 sm:$0xff]   ;;  %v5951_v49 = vsub.s32 %v630_v43, %v5933_v42  ;;  %v5153_v50 = vld [vmem:[%s7489_s1 + $0x10c] ss:$12 sps:$4 sm:$0xff]  }
  0x10   :  { %3117 = vmatpush1.bf16.msra.mxu0 %v5110_v15  ;;  %3077 = vmatprep.subr.bf16.mxu1 %v5111_v16  ;;  %v5152_v48 = vld [vmem:[%s7489_s1 + $0x270] ss:$12 sps:$4 sm:$0xff]   ;;  %v5155_v51 = vld [vmem:[%s7489_s1 + $0x28c] ss:$12 sps:$4 sm:$0xff]   ;;  %v5157_v52 = vld [vmem:[%s7489_s1 + $0x108] ss:$12 sps:$4 sm:$0xff]  }
  0x11   :  { %3118 = vmatprep.subr.bf16.mxu0 %v5113_v17  ;;  %v28_v53 = vld [vmem:[%s7488_s0] sm:$0xff]  ;;  %v5158_v54 = vld [vmem:[%s7489_s1 + $0x288] ss:$12 sps:$4 sm:$0xff]   ;;  %v5175_v6 = vld [vmem:[%s7489_s1 + $0x150] ss:$12 sps:$4 sm:$0xff]  }
  0x12   :  { %v634_v55 = vrot.slane %v28_v53, %v5951_v49  ;;  %v5159_v56 = vld [vmem:[%s7489_s1 + $0x124] ss:$12 sps:$4 sm:$0xff]   ;;  %v5163_v59 = vld [vmem:[%s7489_s1 + $0x120] ss:$12 sps:$4 sm:$0xff]   ;;  %v5165_v62 = vld [vmem:[%s7489_s1 + $0x13c] ss:$12 sps:$4 sm:$0xff]   ;;  %v627_v5 = vcombine.high %v28_v53, %v28_v53 }
  0x13   :  { %3078 = vmatpush1.bf16.msra.mxu1 %v5115_v18  ;;  %v5161_v57 = vld [vmem:[%s7489_s1 + $0x2a4] ss:$12 sps:$4 sm:$0xff]   ;;  %v5164_v60 = vld [vmem:[%s7489_s1 + $0x2a0] ss:$12 sps:$4 sm:$0xff]   ;;  %v5167_v63 = vld [vmem:[%s7489_s1 + $0x2bc] ss:$12 sps:$4 sm:$0xff]  }
  0x14   :  { %3119 = vmatpush1.bf16.msra.mxu0 %v5116_v19  ;;  %3079 = vmatprep.subr.bf16.mxu1 %v5117_v20  ;;  %v642_v58 = vcombine.high %v634_v55, %v634_v55  ;;  %v5169_v1 = vld [vmem:[%s7489_s1 + $0x138] ss:$12 sps:$4 sm:$0xff]   ;;  %v5171_v3 = vld [vmem:[%s7489_s1 + $0x154] ss:$12 sps:$4 sm:$0xff]   ;;  %v5176_v7 = vld [vmem:[%s7489_s1 + $0x2d0] ss:$12 sps:$4 sm:$0xff]   ;;  %v6016_v10 = vrot.slane %v627_v5, %v5951_v49  ;;  %v6022_v12 = vrot.slane %v634_v55, %v5951_v49 }
  0x15   :  { %3120 = vmatprep.subr.bf16.mxu0 %v5119_v21  ;;  %v5170_v2 = vld [vmem:[%s7489_s1 + $0x2b8] ss:$12 sps:$4 sm:$0xff]   ;;  %v5173_v4 = vld [vmem:[%s7489_s1 + $0x2d4] ss:$12 sps:$4 sm:$0xff]   ;;  %v5190_v20 = vld [vmem:[%s7489_s1 + $0x31c] ss:$12 sps:$4 sm:$0xff]  }
  0x16   :  { %v664_v61 = vrot.slane %v642_v58, %v5951_v49  ;;  %v5177_v8 = vld [vmem:[%s7489_s1 + $0x16c] ss:$12 sps:$4 sm:$0xff]   ;;  %v5181_v11 = vld [vmem:[%s7489_s1 + $0x168] ss:$12 sps:$4 sm:$0xff]   ;;  %v5185_v14 = vld [vmem:[%s7489_s1 + $0x304] ss:$12 sps:$4 sm:$0xff]   ;;  %v643_v17 = vcombine.high %v6016_v10, %v6016_v10  ;;  %v6040_v18 = vcombine.high %v6022_v12, %v6022_v12 }
  0x17   :  { %3080 = vmatpush1.bf16.msra.mxu1 %v5121_v22  ;;  %v5179_v9 = vld [vmem:[%s7489_s1 + $0x2ec] ss:$12 sps:$4 sm:$0xff]   ;;  %v5182_v13 = vld [vmem:[%s7489_s1 + $0x2e8] ss:$12 sps:$4 sm:$0xff]  }
  0x18   :  { %3121 = vmatpush1.bf16.msra.mxu0 %v5122_v23  ;;  %3081 = vmatprep.subr.bf16.mxu1 %v5123_v24  ;;  %v5988_v0 = vcombine.high %v664_v61, %v664_v61  ;;  %v5186_v15 = vld [vmem:[%s7489_s1 + $0xc8] ss:$12 sps:$4 sm:$0xff]   ;;  %v5183_v16 = vld [vmem:[%s7489_s1 + $0x300] ss:$12 sps:$4 sm:$0xff]   ;;  %v6052_v22 = vrot.slane %v643_v17, %v5951_v49  ;;  %v5188_v23 = vld [vmem:[%s7489_s1 + $0x318] ss:$12 sps:$4 sm:$0xff]  }
  0x19   :  { %3122 = vmatprep.subr.bf16.mxu0 %v5125_v25  ;;  %3101 = vmatprep.mubr.bf16.mxu1 %v664_v61  ;;  %v5187_v19 = vld [vmem:[%s7489_s1 + $0x8] ss:$12 sps:$4 sm:$0xff]   ;;  %v5191_v21 = vld [vmem:[%s7489_s1 + $0xe0] ss:$12 sps:$4 sm:$0xff]   ;;  %v5216_v43 = vld [vmem:[%s7489_s1 + $0x158] ss:$12 sps:$4 sm:$0xff]  }
  0x1a   :  { %3142 = vmatprep.mubr.bf16.mxu0 %v5988_v0  ;;  %v5192_v24 = vld [vmem:[%s7489_s1 + $0x20] ss:$12 sps:$4 sm:$0xff]   ;;  %v5207_v36 = vld [vmem:[%s7489_s1 + $0x68] ss:$12 sps:$4 sm:$0xff]   ;;  %v5261_v17 = vld [vmem:[%s7489_s1 + $0x2f0] ss:$12 sps:$4 sm:$0xff]  }
  0x1b   :  { %3082 = vmatpush1.bf16.msra.mxu1 %v5127_v26  ;;  %v5195_v25 = vld [vmem:[%s7489_s1 + $0x334] ss:$12 sps:$4 sm:$0xff]   ;;  %v5196_v26 = vld [vmem:[%s7489_s1 + $0xf8] ss:$12 sps:$4 sm:$0xff]   ;;  %v5210_v37 = vld [vmem:[%s7489_s1 + $0x37c] ss:$12 sps:$4 sm:$0xff]  }
  0x1c   :  { %3123 = vmatpush1.bf16.msra.mxu0 %v5128_v27  ;;  %3083 = vmatprep.subr.bf16.mxu1 %v5129_v28  ;;  %v5193_v27 = vld [vmem:[%s7489_s1 + $0x330] ss:$12 sps:$4 sm:$0xff]   ;;  %v5197_v28 = vld [vmem:[%s7489_s1 + $0x38] ss:$12 sps:$4 sm:$0xff]   ;;  %v5211_v38 = vld [vmem:[%s7489_s1 + $0x140] ss:$12 sps:$4 sm:$0xff]  }
  0x1d   :  { %3124 = vmatprep.subr.bf16.mxu0 %v5131_v29  ;;  %v5200_v29 = vld [vmem:[%s7489_s1 + $0x34c] ss:$12 sps:$4 sm:$0xff]   ;;  %v5230_v55 = vld [vmem:[%s7489_s1 + $0x3dc] ss:$12 sps:$4 sm:$0xff]  }
  0x1e   :  { %v5223_v53 = vld [vmem:[%s7489_s1 + $0x3c0] ss:$12 sps:$4 sm:$0xff]  }
  0x1f   :  { %3084 = vmatpush1.bf16.msra.mxu1 %v5133_v30  ;;  %v5201_v30 = vld [vmem:[%s7489_s1 + $0x110] ss:$12 sps:$4 sm:$0xff]   ;;  %v5232_v58 = vld [vmem:[%s7489_s1 + $0x1a0] ss:$12 sps:$4 sm:$0xff]  }
  0x20   :  { %3125 = vmatpush1.bf16.msra.mxu0 %v5134_v31  ;;  %3085 = vmatprep.subr.bf16.mxu1 %v5135_v32  ;;  %v5198_v31 = vld [vmem:[%s7489_s1 + $0x348] ss:$12 sps:$4 sm:$0xff]   ;;  %v5202_v32 = vld [vmem:[%s7489_s1 + $0x50] ss:$12 sps:$4 sm:$0xff]   ;;  %v5243_v5 = vld [vmem:[%s7489_s1 + $0x420] ss:$12 sps:$4 sm:$0xff]  }
  0x21   :  { %3126 = vmatprep.subr.bf16.mxu0 %v5137_v33  ;;  %v5205_v33 = vld [vmem:[%s7489_s1 + $0x364] ss:$12 sps:$4 sm:$0xff]  }
  0x23   :  { %3086 = vmatpush1.bf16.msra.mxu1 %v5139_v34  ;;  %v5206_v34 = vld [vmem:[%s7489_s1 + $0x128] ss:$12 sps:$4 sm:$0xff]  }
  0x24   :  { %3127 = vmatpush1.bf16.msra.mxu0 %v5140_v35  ;;  %3087 = vmatprep.subr.bf16.mxu1 %v5141_v39  ;;  %v5203_v35 = vld [vmem:[%s7489_s1 + $0x360] ss:$12 sps:$4 sm:$0xff]   ;;  %v5208_v39 = vld [vmem:[%s7489_s1 + $0x378] ss:$12 sps:$4 sm:$0xff]  }
  0x25   :  { %3128 = vmatprep.subr.bf16.mxu0 %v5143_v40  ;;  %v5212_v40 = vld [vmem:[%s7489_s1 + $0x80] ss:$12 sps:$4 sm:$0xff]  }
  0x27   :  { %3088 = vmatpush1.bf16.msra.mxu1 %v5145_v41  ;;  %v5215_v41 = vld [vmem:[%s7489_s1 + $0x394] ss:$12 sps:$4 sm:$0xff]  }
  0x28   :  { %3129 = vmatpush1.bf16.msra.mxu0 %v5146_v44  ;;  %3089 = vmatprep.subr.bf16.mxu1 %v5147_v45  ;;  %v5213_v44 = vld [vmem:[%s7489_s1 + $0x390] ss:$12 sps:$4 sm:$0xff]   ;;  %v5217_v45 = vld [vmem:[%s7489_s1 + $0x98] ss:$12 sps:$4 sm:$0xff]  }
  0x29   :  { %3130 = vmatprep.subr.bf16.mxu0 %v5149_v46  ;;  %v5220_v46 = vld [vmem:[%s7489_s1 + $0x3ac] ss:$12 sps:$4 sm:$0xff]  }
  0x2b   :  { %3090 = vmatpush1.bf16.msra.mxu1 %v5151_v47  ;;  %v5221_v47 = vld [vmem:[%s7489_s1 + $0x170] ss:$12 sps:$4 sm:$0xff]  }
  0x2c   :  { %3131 = vmatpush1.bf16.msra.mxu0 %v5152_v48  ;;  %3091 = vmatprep.subr.bf16.mxu1 %v5153_v50  ;;  %v5218_v48 = vld [vmem:[%s7489_s1 + $0x3a8] ss:$12 sps:$4 sm:$0xff]   ;;  %v5222_v50 = vld [vmem:[%s7489_s1 + $0xb0] ss:$12 sps:$4 sm:$0xff]  }
  0x2d   :  { %3132 = vmatprep.subr.bf16.mxu0 %v5155_v51  ;;  %v5225_v51 = vld [vmem:[%s7489_s1 + $0x3c4] ss:$12 sps:$4 sm:$0xff]  }
  0x2f   :  { %3092 = vmatpush1.bf16.msra.mxu1 %v5157_v52  ;;  %v5226_v52 = vld [vmem:[%s7489_s1 + $0x248] ss:$12 sps:$4 sm:$0xff]  }
  0x30   :  { %3133 = vmatpush1.bf16.msra.mxu0 %v5158_v54  ;;  %3093 = vmatprep.subr.bf16.mxu1 %v5159_v56  ;;  %v5227_v54 = vld [vmem:[%s7489_s1 + $0x188] ss:$12 sps:$4 sm:$0xff]   ;;  %v5231_v56 = vld [vmem:[%s7489_s1 + $0x260] ss:$12 sps:$4 sm:$0xff]  }
  0x31   :  { %3134 = vmatprep.subr.bf16.mxu0 %v5161_v57  ;;  %v5228_v57 = vld [vmem:[%s7489_s1 + $0x3d8] ss:$12 sps:$4 sm:$0xff]  }
  0x33   :  { %3094 = vmatpush1.bf16.msra.mxu1 %v5163_v59  ;;  %v5235_v59 = vld [vmem:[%s7489_s1 + $0x3f4] ss:$12 sps:$4 sm:$0xff]  }
  0x34   :  { %3135 = vmatpush1.bf16.msra.mxu0 %v5164_v60  ;;  %3095 = vmatprep.subr.bf16.mxu1 %v5165_v62  ;;  %v5236_v60 = vld [vmem:[%s7489_s1 + $0x278] ss:$12 sps:$4 sm:$0xff]  }
  0x35   :  { %3136 = vmatprep.subr.bf16.mxu0 %v5167_v63  ;;  %v5237_v62 = vld [vmem:[%s7489_s1 + $0x1b8] ss:$12 sps:$4 sm:$0xff]  }
  0x36   :  { %v5240_v63 = vld [vmem:[%s7489_s1 + $0x40c] ss:$12 sps:$4 sm:$0xff]  }
  0x37   :  { %3096 = vmatpush1.bf16.msra.mxu1 %v5169_v1  ;;  %v5241_v1 = vld [vmem:[%s7489_s1 + $0x290] ss:$12 sps:$4 sm:$0xff]  }
  0x38   :  { %3137 = vmatpush1.bf16.msra.mxu0 %v5170_v2  ;;  %3097 = vmatprep.subr.bf16.mxu1 %v5171_v3  ;;  %v5242_v2 = vld [vmem:[%s7489_s1 + $0x1d0] ss:$12 sps:$4 sm:$0xff]  }
  0x39   :  { %3138 = vmatprep.subr.bf16.mxu0 %v5173_v4  ;;  %v5245_v3 = vld [vmem:[%s7489_s1 + $0x424] ss:$12 sps:$4 sm:$0xff]   ;;  %v5246_v4 = vld [vmem:[%s7489_s1 + $0x2a8] ss:$12 sps:$4 sm:$0xff]  }
  0x3b   :  { %3098 = vmatpush1.bf16.msra.mxu1 %v5175_v6  ;;  %v5247_v6 = vld [vmem:[%s7489_s1 + $0x1e8] ss:$12 sps:$4 sm:$0xff]  }
  0x3c   :  { %3139 = vmatpush1.bf16.msra.mxu0 %v5176_v7  ;;  %3099 = vmatprep.subr.bf16.mxu1 %v5177_v8  ;;  %v5250_v7 = vld [vmem:[%s7489_s1 + $0x43c] ss:$12 sps:$4 sm:$0xff]   ;;  %v5251_v8 = vld [vmem:[%s7489_s1 + $0x2c0] ss:$12 sps:$4 sm:$0xff]  }
  0x3d   :  { %3140 = vmatprep.subr.bf16.mxu0 %v5179_v9  ;;  %v5248_v9 = vld [vmem:[%s7489_s1 + $0x438] ss:$12 sps:$4 sm:$0xff]  }
  0x3f   :  { %3100 = vmatpush1.bf16.msra.mxu1 %v5181_v11  ;;  %v5252_v11 = vld [vmem:[%s7489_s1 + $0x200] ss:$12 sps:$4 sm:$0xff]  }
  0x40   :  { %3141 = vmatpush1.bf16.msra.mxu0 %v5182_v13  ;;  %4848 = vmatprep.subr.bf16.mxu1 %v5186_v15  ;;  %v5256_v13 = vld [vmem:[%s7489_s1 + $0x2d8] ss:$12 sps:$4 sm:$0xff]  }
  0x41   :  { %3151 = vmatprep.subr.bf16.mxu0 %v5185_v14  ;;  %v5253_v14 = vld [vmem:[%s7489_s1 + $0x450] ss:$12 sps:$4 sm:$0xff]   ;;  %v5257_v15 = vld [vmem:[%s7489_s1 + $0x218] ss:$12 sps:$4 sm:$0xff]  }
  0x42   :  { %3102 = vmatmul.mubr.bf16.vlgmr.msra.gmra.mrb[0].mxu1 %v6022_v12 }
  0x43   :  { %3143 = vmatmul.mubr.bf16.vlgmr.msra.gmra.mrb[0].mxu0 %v6040_v18  ;;  %4849 = vmatpush3.bf16.msra.mxu1 %v5187_v19  ;;  %v5258_v19 = vld [vmem:[%s7489_s1 + $0x468] ss:$12 sps:$4 sm:$0xff]  }
  0x44   :  { %3152 = vmatpush1.bf16.msra.mxu0 %v5183_v16  ;;  %4850 = vmatprep.subr.bf16.mxu1 %v5191_v21  ;;  %v5260_v16 = vld [vmem:[%s7489_s1 + $0x46c] ss:$12 sps:$4 sm:$0xff]   ;;  %v5266_v21 = vld [vmem:[%s7489_s1 + $0x484] ss:$12 sps:$4 sm:$0xff]  }
  0x45   :  { %3153 = vmatprep.subr.bf16.mxu0 %v5190_v20  ;;  %3470 = vmatprep.mubr.bf16.mxu1 %v664_v61  ;;  %v5233_v61 = vld [vmem:[%s7489_s1 + $0x3f0] ss:$12 sps:$4 sm:$0xff]  }
  0x46   :  { %3183 = vmatprep.mubr.bf16.mxu0 %v6052_v22  ;;  %v5262_v20 = vld [vmem:[%s7489_s1 + $0x230] ss:$12 sps:$4 sm:$0xff]  }
  0x47   :  { %4851 = vmatpush3.bf16.msra.mxu1 %v5192_v24  ;;  %v5264_v24 = vld [vmem:[%s7489_s1 + $0x480] ss:$12 sps:$4 sm:$0xff]  }
  0x48   :  { %3154 = vmatpush1.bf16.msra.mxu0 %v5188_v23  ;;  %4852 = vmatprep.subr.bf16.mxu1 %v5196_v26  ;;  %v5267_v23 = vld [vmem:[%s7489_s1 + $0x3c8] ss:$12 sps:$4 sm:$0xff]  }
  0x49   :  { %3155 = vmatprep.subr.bf16.mxu0 %v5195_v25  ;;  %v6244_v25 = vrot.slane %v6016_v10, %v5951_v49  ;;  %v5268_v26 = vld [vmem:[%s7489_s1 + $0x308] ss:$12 sps:$4 sm:$0xff]   ;;  %v5269_v10 = vld [vmem:[%s7489_s1 + $0x498] ss:$12 sps:$4 sm:$0xff]  }
  0x4b   :  { %4853 = vmatpush3.bf16.msra.mxu1 %v5197_v28  ;;  %v5272_v28 = vld [vmem:[%s7489_s1 + $0x3e0] ss:$12 sps:$4 sm:$0xff]  }
  0x4c   :  { %3156 = vmatpush1.bf16.msra.mxu0 %v5193_v27  ;;  %4854 = vmatprep.subr.bf16.mxu1 %v5201_v30  ;;  %v5271_v27 = vld [vmem:[%s7489_s1 + $0x49c] ss:$12 sps:$4 sm:$0xff]   ;;  %v5273_v30 = vld [vmem:[%s7489_s1 + $0x320] ss:$12 sps:$4 sm:$0xff]  }
  0x4d   :  { %3157 = vmatprep.subr.bf16.mxu0 %v5200_v29  ;;  %v6260_v29 = vcombine.high %v6052_v22, %v6052_v22 }
  0x4f   :  { %4855 = vmatpush3.bf16.msra.mxu1 %v5202_v32  ;;  %v5277_v32 = vld [vmem:[%s7489_s1 + $0x3f8] ss:$12 sps:$4 sm:$0xff]  }
  0x50   :  { %3158 = vmatpush1.bf16.msra.mxu0 %v5198_v31  ;;  %4856 = vmatprep.subr.bf16.mxu1 %v5206_v34  ;;  %v5276_v31 = vld [vmem:[%s7489_s1 + $0x4b4] ss:$12 sps:$4 sm:$0xff]   ;;  %v5281_v34 = vld [vmem:[%s7489_s1 + $0x4cc] ss:$12 sps:$4 sm:$0xff]  }
  0x51   :  { %3159 = vmatprep.subr.bf16.mxu0 %v5205_v33  ;;  %v5278_v33 = vld [vmem:[%s7489_s1 + $0x338] ss:$12 sps:$4 sm:$0xff]  }
  0x53   :  { %4857 = vmatpush3.bf16.msra.mxu1 %v5207_v36  ;;  %v5283_v36 = vld [vmem:[%s7489_s1 + $0x350] ss:$12 sps:$4 sm:$0xff]  }
  0x54   :  { %3160 = vmatpush1.bf16.msra.mxu0 %v5203_v35  ;;  %4858 = vmatprep.subr.bf16.mxu1 %v5211_v38  ;;  %v5279_v35 = vld [vmem:[%s7489_s1 + $0x4c8] ss:$12 sps:$4 sm:$0xff]  }
  0x55   :  { %3161 = vmatprep.subr.bf16.mxu0 %v5210_v37  ;;  %v5286_v37 = vld [vmem:[%s7489_s1 + $0x4e4] ss:$12 sps:$4 sm:$0xff]   ;;  %v5287_v38 = vld [vmem:[%s7489_s1 + $0x428] ss:$12 sps:$4 sm:$0xff]  }
  0x57   :  { %4859 = vmatpush3.bf16.msra.mxu1 %v5212_v40  ;;  %v5288_v40 = vld [vmem:[%s7489_s1 + $0x368] ss:$12 sps:$4 sm:$0xff]  }
  0x58   :  { %3162 = vmatpush1.bf16.msra.mxu0 %v5208_v39  ;;  %4860 = vmatprep.subr.bf16.mxu1 %v5216_v43  ;;  %v5284_v39 = vld [vmem:[%s7489_s1 + $0x4e0] ss:$12 sps:$4 sm:$0xff]  }
  0x59   :  { %3163 = vmatprep.subr.bf16.mxu0 %v5215_v41  ;;  %v5291_v41 = vld [vmem:[%s7489_s1 + $0x4fc] ss:$12 sps:$4 sm:$0xff]   ;;  %v5292_v43 = vld [vmem:[%s7489_s1 + $0x440] ss:$12 sps:$4 sm:$0xff]  }
  0x5b   :  { %4861 = vmatpush3.bf16.msra.mxu1 %v5217_v45  ;;  %v5293_v45 = vld [vmem:[%s7489_s1 + $0x380] ss:$12 sps:$4 sm:$0xff]  }
  0x5c   :  { %3164 = vmatpush1.bf16.msra.mxu0 %v5213_v44  ;;  %4862 = vmatprep.subr.bf16.mxu1 %v5221_v47  ;;  %v5289_v44 = vld [vmem:[%s7489_s1 + $0x4f8] ss:$12 sps:$4 sm:$0xff]  }
  0x5d   :  { %3165 = vmatprep.subr.bf16.mxu0 %v5220_v46  ;;  %v5296_v46 = vld [vmem:[%s7489_s1 + $0x514] ss:$12 sps:$4 sm:$0xff]   ;;  %v5297_v47 = vld [vmem:[%s7489_s1 + $0x458] ss:$12 sps:$4 sm:$0xff]  }
  0x5f   :  { %4863 = vmatpush3.bf16.msra.mxu1 %v5222_v50  ;;  %v5298_v50 = vld [vmem:[%s7489_s1 + $0x398] ss:$12 sps:$4 sm:$0xff]  }
  0x60   :  { %3166 = vmatpush1.bf16.msra.mxu0 %v5218_v48  ;;  %4870 = vmatprep.subr.bf16.mxu1 %v5226_v52  ;;  %v5294_v48 = vld [vmem:[%s7489_s1 + $0x510] ss:$12 sps:$4 sm:$0xff]  }
  0x61   :  { %3167 = vmatprep.subr.bf16.mxu0 %v5225_v51  ;;  %v5301_v51 = vld [vmem:[%s7489_s1 + $0x52c] ss:$12 sps:$4 sm:$0xff]   ;;  %v5302_v52 = vld [vmem:[%s7489_s1 + $0x470] ss:$12 sps:$4 sm:$0xff]  }
  0x62   :  { %3471 = vmatmul.mubr.bf16.vlgmr.msra.gmra.mrb[4].mxu1 %v6022_v12  ;;  %v5255_v12 = vld [vmem:[%s7489_s1 + $0x454] ss:$12 sps:$4 sm:$0xff]  }
  0x63   :  { %4871 = vmatpush3.bf16.msra.mxu1 %v5227_v54  ;;  %3510 = vmatprep.mubr.bf16.mxu1 %v5988_v0  ;;  %v5238_v0 = vld [vmem:[%s7489_s1 + $0x408] ss:$12 sps:$4 sm:$0xff]   ;;  %v5303_v54 = vld [vmem:[%s7489_s1 + $0x3b0] ss:$12 sps:$4 sm:$0xff]  }
  0x64   :  { %3168 = vmatpush1.bf16.msra.mxu0 %v5223_v53  ;;  %4872 = vmatprep.subr.bf16.mxu1 %v5231_v56  ;;  %v5299_v53 = vld [vmem:[%s7489_s1 + $0x528] ss:$12 sps:$4 sm:$0xff]  }
  0x65   :  { %3169 = vmatprep.subr.bf16.mxu0 %v5230_v55  ;;  %v5306_v55 = vld [vmem:[%s7489_s1 + $0x544] ss:$12 sps:$4 sm:$0xff]   ;;  %v5307_v56 = vld [vmem:[%s7489_s1 + $0x548] ss:$12 sps:$4 sm:$0xff]  }
  0x67   :  { %4873 = vmatpush3.bf16.msra.mxu1 %v5232_v58  ;;  %v5308_v58 = vld [vmem:[%s7489_s1 + $0x488] ss:$12 sps:$4 sm:$0xff]  }
  0x68   :  { %3170 = vmatpush1.bf16.msra.mxu0 %v5228_v57  ;;  %4874 = vmatprep.subr.bf16.mxu1 %v5236_v60  ;;  %v5304_v57 = vld [vmem:[%s7489_s1 + $0x540] ss:$12 sps:$4 sm:$0xff]  }
  0x69   :  { %3171 = vmatprep.subr.bf16.mxu0 %v5235_v59  ;;  %v5311_v59 = vld [vmem:[%s7489_s1 + $0x55c] ss:$12 sps:$4 sm:$0xff]   ;;  %v5312_v60 = vld [vmem:[%s7489_s1 + $0x560] ss:$12 sps:$4 sm:$0xff]  }
  0x6b   :  { %4875 = vmatpush3.bf16.msra.mxu1 %v5237_v62  ;;  %v5313_v62 = vld [vmem:[%s7489_s1 + $0x4a0] ss:$12 sps:$4 sm:$0xff]  }
  0x6c   :  { %3172 = vmatpush1.bf16.msra.mxu0 %v5233_v61  ;;  %4876 = vmatprep.subr.bf16.mxu1 %v5241_v1  ;;  %v5309_v61 = vld [vmem:[%s7489_s1 + $0x558] ss:$12 sps:$4 sm:$0xff]  }
  0x6d   :  { %3173 = vmatprep.subr.bf16.mxu0 %v5240_v63  ;;  %v5316_v63 = vld [vmem:[%s7489_s1 + $0x574] ss:$12 sps:$4 sm:$0xff]   ;;  %v5317_v1 = vld [vmem:[%s7489_s1 + $0x578] ss:$12 sps:$4 sm:$0xff]  }
  0x6f   :  { %4877 = vmatpush3.bf16.msra.mxu1 %v5242_v2  ;;  %v5318_v2 = vld [vmem:[%s7489_s1 + $0x4b8] ss:$12 sps:$4 sm:$0xff]  }
  0x70   :  { %3174 = vmatpush1.bf16.msra.mxu0 %v5238_v0  ;;  %4878 = vmatprep.subr.bf16.mxu1 %v5246_v4  ;;  %v5314_v0 = vld [vmem:[%s7489_s1 + $0x570] ss:$12 sps:$4 sm:$0xff]  }
  0x71   :  { %3175 = vmatprep.subr.bf16.mxu0 %v5245_v3  ;;  %v5321_v3 = vld [vmem:[%s7489_s1 + $0x58c] ss:$12 sps:$4 sm:$0xff]   ;;  %v5322_v4 = vld [vmem:[%s7489_s1 + $0x590] ss:$12 sps:$4 sm:$0xff]  }
  0x73   :  { %4879 = vmatpush3.bf16.msra.mxu1 %v5247_v6  ;;  %v5323_v6 = vld [vmem:[%s7489_s1 + $0x4d0] ss:$12 sps:$4 sm:$0xff]  }
  0x74   :  { %3176 = vmatpush1.bf16.msra.mxu0 %v5243_v5  ;;  %4880 = vmatprep.subr.bf16.mxu1 %v5251_v8  ;;  %v5319_v5 = vld [vmem:[%s7489_s1 + $0x588] ss:$12 sps:$4 sm:$0xff]  }
  0x75   :  { %3177 = vmatprep.subr.bf16.mxu0 %v5250_v7  ;;  %v5326_v7 = vld [vmem:[%s7489_s1 + $0x5a4] ss:$12 sps:$4 sm:$0xff]   ;;  %v5327_v8 = vld [vmem:[%s7489_s1 + $0x5a8] ss:$12 sps:$4 sm:$0xff]  }
  0x77   :  { %4881 = vmatpush3.bf16.msra.mxu1 %v5252_v11  ;;  %v5328_v11 = vld [vmem:[%s7489_s1 + $0x4e8] ss:$12 sps:$4 sm:$0xff]  }
  0x78   :  { %3178 = vmatpush1.bf16.msra.mxu0 %v5248_v9  ;;  %4882 = vmatprep.subr.bf16.mxu1 %v5256_v13  ;;  %v5324_v9 = vld [vmem:[%s7489_s1 + $0x5a0] ss:$12 sps:$4 sm:$0xff]  }
  0x79   :  { %3179 = vmatprep.subr.bf16.mxu0 %v5255_v12  ;;  %v5331_v12 = vld [vmem:[%s7489_s1 + $0x5bc] ss:$12 sps:$4 sm:$0xff]   ;;  %v5332_v13 = vld [vmem:[%s7489_s1 + $0x5c0] ss:$12 sps:$4 sm:$0xff]  }
  0x7b   :  { %4883 = vmatpush3.bf16.msra.mxu1 %v5257_v15  ;;  %v5333_v15 = vld [vmem:[%s7489_s1 + $0x500] ss:$12 sps:$4 sm:$0xff]  }
  0x7c   :  { %3180 = vmatpush1.bf16.msra.mxu0 %v5253_v14  ;;  %4884 = vmatprep.subr.bf16.mxu1 %v5261_v17  ;;  %v5329_v14 = vld [vmem:[%s7489_s1 + $0x5b8] ss:$12 sps:$4 sm:$0xff]  }
  0x7d   :  { %3181 = vmatprep.subr.bf16.mxu0 %v5260_v16  ;;  %v5336_v16 = vld [vmem:[%s7489_s1 + $0x5d4] ss:$12 sps:$4 sm:$0xff]   ;;  %v5337_v17 = vld [vmem:[%s7489_s1 + $0x5d8] ss:$12 sps:$4 sm:$0xff]  }
  0x7f   :  { %4885 = vmatpush3.bf16.msra.mxu1 %v5262_v20  ;;  %v6427_v20 = vld [vmem:[%s7488_s0 + $0x8] sm:$0xff] }
  0x80   :  { %3182 = vmatpush1.bf16.msra.mxu0 %v5258_v19  ;;  %4892 = vmatprep.subr.bf16.mxu1 %v5267_v23  ;;  %v5334_v19 = vld [vmem:[%s7489_s1 + $0x5d0] ss:$12 sps:$4 sm:$0xff]   ;;  %v5341_v23 = vld [vmem:[%s7489_s1 + $0x5ec] ss:$12 sps:$4 sm:$0xff]  }
  0x81   :  { %3192 = vmatprep.subr.bf16.mxu0 %v5266_v21  ;;  %v5338_v21 = vld [vmem:[%s7489_s1 + $0x518] ss:$12 sps:$4 sm:$0xff]  }
  0x82   :  { %3511 = vmatmul.mubr.bf16.vlgmr.msra.gmra.mrb[8].mxu1 %v6040_v18  ;;  %v5274_v18 = vld [vmem:[%s7489_s1 + $0x4b0] ss:$12 sps:$4 sm:$0xff]  }
  0x83   :  { %3184 = vmatmul.mubr.bf16.vlgmr.msra.gmra.mrb[0].mxu0 %v6244_v25  ;;  %4893 = vmatpush3.bf16.msra.mxu1 %v5268_v26  ;;  %v6440_v26 = vrot.slane %v6427_v20, %v5951_v49 }
  0x84   :  { %3193 = vmatpush1.bf16.msra.mxu0 %v5264_v24  ;;  %4894 = vmatprep.subr.bf16.mxu1 %v5272_v28  ;;  %v5342_v24 = vld [vmem:[%s7489_s1 + $0x5f0] ss:$12 sps:$4 sm:$0xff]  }
  0x85   :  { %3194 = vmatprep.subr.bf16.mxu0 %v5271_v27  ;;  %3550 = vmatprep.mubr.bf16.mxu1 %v6052_v22  ;;  %v5282_v22 = vld [vmem:[%s7489_s1 + $0x410] ss:$12 sps:$4 sm:$0xff]   ;;  %v5339_v27 = vld [vmem:[%s7489_s1 + $0x5e8] ss:$12 sps:$4 sm:$0xff]  }
  0x86   :  { %3224 = vmatprep.mubr.bf16.mxu0 %v6260_v29  ;;  %v5343_v28 = vld [vmem:[%s7489_s1 + $0x530] ss:$12 sps:$4 sm:$0xff]  }
  0x87   :  { %4895 = vmatpush3.bf16.msra.mxu1 %v5273_v30  ;;  %v5344_v30 = vld [vmem:[%s7489_s1 + $0x600] ss:$12 sps:$4 sm:$0xff]  }
  0x88   :  { %3195 = vmatpush1.bf16.msra.mxu0 %v5269_v10  ;;  %4896 = vmatprep.subr.bf16.mxu1 %v5277_v32  ;;  %v5346_v10 = vld [vmem:[%s7489_s1 + $0x604] ss:$12 sps:$4 sm:$0xff]   ;;  %v673_v32 = vcombine.high %v6244_v25, %v6244_v25 }
  0x89   :  { %3196 = vmatprep.subr.bf16.mxu0 %v5276_v31  ;;  %v691_v31 = vcombine.high %v6440_v26, %v6440_v26 }
  0x8b   :  { %4897 = vmatpush3.bf16.msra.mxu1 %v5278_v33  ;;  %v5351_v33 = vld [vmem:[%s7489_s1 + $0x61c] ss:$12 sps:$4 sm:$0xff]  }
  0x8c   :  { %3197 = vmatpush1.bf16.msra.mxu0 %v5274_v18  ;;  %4898 = vmatprep.subr.bf16.mxu1 %v5282_v22  ;;  %v5348_v18 = vld [vmem:[%s7489_s1 + $0x608] ss:$12 sps:$4 sm:$0xff]   ;;  %v6471_v22 = vrot.slane %v691_v31, %v5951_v49  ;;  %v5414_v31 = vld [vmem:[%s7489_s1 + $0x750] ss:$12 sps:$4 sm:$0xff]  }
  0x8d   :  { %3198 = vmatprep.subr.bf16.mxu0 %v5281_v34  ;;  %v5352_v34 = vld [vmem:[%s7489_s1 + $0x6e0] ss:$12 sps:$4 sm:$0xff]  }
  0x8f   :  { %4899 = vmatpush3.bf16.msra.mxu1 %v5283_v36  ;;  %v5356_v36 = vld [vmem:[%s7489_s1 + $0x634] ss:$12 sps:$4 sm:$0xff]  }
  0x90   :  { %3199 = vmatpush1.bf16.msra.mxu0 %v5279_v35  ;;  %4900 = vmatprep.subr.bf16.mxu1 %v5287_v38  ;;  %v5353_v35 = vld [vmem:[%s7489_s1 + $0x620] ss:$12 sps:$4 sm:$0xff]   ;;  %v5354_v38 = vld [vmem:[%s7489_s1 + $0x630] ss:$12 sps:$4 sm:$0xff]  }
  0x91   :  { %3200 = vmatprep.subr.bf16.mxu0 %v5286_v37  ;;  %v5357_v37 = vld [vmem:[%s7489_s1 + $0x6f8] ss:$12 sps:$4 sm:$0xff]  }
  0x93   :  { %4901 = vmatpush3.bf16.msra.mxu1 %v5288_v40  ;;  %v5361_v40 = vld [vmem:[%s7489_s1 + $0x64c] ss:$12 sps:$4 sm:$0xff]  }
  0x94   :  { %3201 = vmatpush1.bf16.msra.mxu0 %v5284_v39  ;;  %4902 = vmatprep.subr.bf16.mxu1 %v5292_v43  ;;  %v5358_v39 = vld [vmem:[%s7489_s1 + $0x638] ss:$12 sps:$4 sm:$0xff]   ;;  %v5359_v43 = vld [vmem:[%s7489_s1 + $0x648] ss:$12 sps:$4 sm:$0xff]  }
  0x95   :  { %3202 = vmatprep.subr.bf16.mxu0 %v5291_v41  ;;  %v5362_v41 = vld [vmem:[%s7489_s1 + $0x710] ss:$12 sps:$4 sm:$0xff]  }
  0x97   :  { %4903 = vmatpush3.bf16.msra.mxu1 %v5293_v45  ;;  %v5366_v45 = vld [vmem:[%s7489_s1 + $0x664] ss:$12 sps:$4 sm:$0xff]  }
  0x98   :  { %3203 = vmatpush1.bf16.msra.mxu0 %v5289_v44  ;;  %4904 = vmatprep.subr.bf16.mxu1 %v5297_v47  ;;  %v5363_v44 = vld [vmem:[%s7489_s1 + $0x650] ss:$12 sps:$4 sm:$0xff]   ;;  %v5364_v47 = vld [vmem:[%s7489_s1 + $0x660] ss:$12 sps:$4 sm:$0xff]  }
  0x99   :  { %3204 = vmatprep.subr.bf16.mxu0 %v5296_v46  ;;  %v5367_v46 = vld [vmem:[%s7489_s1 + $0x728] ss:$12 sps:$4 sm:$0xff]  }
  0x9b   :  { %4905 = vmatpush3.bf16.msra.mxu1 %v5298_v50  ;;  %v5371_v50 = vld [vmem:[%s7489_s1 + $0x67c] ss:$12 sps:$4 sm:$0xff]  }
  0x9c   :  { %3205 = vmatpush1.bf16.msra.mxu0 %v5294_v48  ;;  %4906 = vmatprep.subr.bf16.mxu1 %v5302_v52  ;;  %v5368_v48 = vld [vmem:[%s7489_s1 + $0x668] ss:$12 sps:$4 sm:$0xff]   ;;  %v5369_v52 = vld [vmem:[%s7489_s1 + $0x678] ss:$12 sps:$4 sm:$0xff]  }
  0x9d   :  { %3206 = vmatprep.subr.bf16.mxu0 %v5301_v51  ;;  %v5372_v51 = vld [vmem:[%s7489_s1 + $0x740] ss:$12 sps:$4 sm:$0xff]  }
  0x9f   :  { %4907 = vmatpush3.bf16.msra.mxu1 %v5303_v54  ;;  %v5376_v54 = vld [vmem:[%s7489_s1 + $0x694] ss:$12 sps:$4 sm:$0xff]  }
  0xa0   :  { %3207 = vmatpush1.bf16.msra.mxu0 %v5299_v53  ;;  %4914 = vmatprep.subr.bf16.mxu1 %v5307_v56  ;;  %v5373_v53 = vld [vmem:[%s7489_s1 + $0x680] ss:$12 sps:$4 sm:$0xff]   ;;  %v5374_v56 = vld [vmem:[%s7489_s1 + $0x690] ss:$12 sps:$4 sm:$0xff]  }
  0xa1   :  { %3208 = vmatprep.subr.bf16.mxu0 %v5306_v55  ;;  %v5377_v55 = vld [vmem:[%s7489_s1 + $0x758] ss:$12 sps:$4 sm:$0xff]  }
  0xa2   :  { %3551 = vmatmul.mubr.bf16.vlgmr.msra.gmra.mrb[12].mxu1 %v6244_v25  ;;  %v5349_v25 = vld [vmem:[%s7489_s1 + $0x618] ss:$12 sps:$4 sm:$0xff]  }
  0xa3   :  { %4915 = vmatpush3.bf16.msra.mxu1 %v5308_v58  ;;  %3590 = vmatprep.mubr.bf16.mxu1 %v6260_v29  ;;  %v5347_v29 = vld [vmem:[%s7489_s1 + $0x6c8] ss:$12 sps:$4 sm:$0xff]   ;;  %v5381_v58 = vld [vmem:[%s7489_s1 + $0x6ac] ss:$12 sps:$4 sm:$0xff]  }
  0xa4   :  { %3209 = vmatpush1.bf16.msra.mxu0 %v5304_v57  ;;  %4916 = vmatprep.subr.bf16.mxu1 %v5312_v60  ;;  %v5378_v57 = vld [vmem:[%s7489_s1 + $0x698] ss:$12 sps:$4 sm:$0xff]   ;;  %v5379_v60 = vld [vmem:[%s7489_s1 + $0x6a8] ss:$12 sps:$4 sm:$0xff]  }
  0xa5   :  { %3210 = vmatprep.subr.bf16.mxu0 %v5311_v59  ;;  %v5382_v59 = vld [vmem:[%s7489_s1 + $0x770] ss:$12 sps:$4 sm:$0xff]  }
  0xa7   :  { %4917 = vmatpush3.bf16.msra.mxu1 %v5313_v62  ;;  %v5386_v62 = vld [vmem:[%s7489_s1 + $0x6c4] ss:$12 sps:$4 sm:$0xff]  }
  0xa8   :  { %3211 = vmatpush1.bf16.msra.mxu0 %v5309_v61  ;;  %4918 = vmatprep.subr.bf16.mxu1 %v5317_v1  ;;  %v5383_v61 = vld [vmem:[%s7489_s1 + $0x6b0] ss:$12 sps:$4 sm:$0xff]   ;;  %v5384_v1 = vld [vmem:[%s7489_s1 + $0x6c0] ss:$12 sps:$4 sm:$0xff]  }
  0xa9   :  { %3212 = vmatprep.subr.bf16.mxu0 %v5316_v63  ;;  %v5387_v63 = vld [vmem:[%s7489_s1 + $0x848] ss:$12 sps:$4 sm:$0xff]  }
  0xab   :  { %4919 = vmatpush3.bf16.msra.mxu1 %v5318_v2  ;;  %v5388_v2 = vld [vmem:[%s7489_s1 + $0x788] ss:$12 sps:$4 sm:$0xff]  }
  0xac   :  { %3213 = vmatpush1.bf16.msra.mxu0 %v5314_v0  ;;  %4920 = vmatprep.subr.bf16.mxu1 %v5322_v4  ;;  %v6564_v0 = vrot.slane %v6440_v26, %v5951_v49  ;;  %v5392_v4 = vld [vmem:[%s7489_s1 + $0x860] ss:$12 sps:$4 sm:$0xff]  }
  0xad   :  { %3214 = vmatprep.subr.bf16.mxu0 %v5321_v3  ;;  %v5391_v3 = vld [vmem:[%s7489_s1 + $0x6dc] ss:$12 sps:$4 sm:$0xff]   ;;  %v5412_v26 = vld [vmem:[%s7489_s1 + $0x8c0] ss:$12 sps:$4 sm:$0xff]  }
  0xaf   :  { %4921 = vmatpush3.bf16.msra.mxu1 %v5323_v6  ;;  %v5389_v6 = vld [vmem:[%s7489_s1 + $0x6d8] ss:$12 sps:$4 sm:$0xff]  }
  0xb0   :  { %3215 = vmatpush1.bf16.msra.mxu0 %v5319_v5  ;;  %4922 = vmatprep.subr.bf16.mxu1 %v5327_v8  ;;  %v6577_v5 = vcombine.high %v6471_v22, %v6471_v22  ;;  %v5396_v8 = vld [vmem:[%s7489_s1 + $0x6f4] ss:$12 sps:$4 sm:$0xff]  }
  0xb1   :  { %3216 = vmatprep.subr.bf16.mxu0 %v5326_v7  ;;  %v5393_v7 = vld [vmem:[%s7489_s1 + $0x7a0] ss:$12 sps:$4 sm:$0xff]  }
  0xb3   :  { %4923 = vmatpush3.bf16.msra.mxu1 %v5328_v11  ;;  %v5394_v11 = vld [vmem:[%s7489_s1 + $0x6f0] ss:$12 sps:$4 sm:$0xff]  }
  0xb4   :  { %3217 = vmatpush1.bf16.msra.mxu0 %v5324_v9  ;;  %4924 = vmatprep.subr.bf16.mxu1 %v5332_v13  ;;  %v5397_v9 = vld [vmem:[%s7489_s1 + $0x878] ss:$12 sps:$4 sm:$0xff]  }
  0xb5   :  { %3218 = vmatprep.subr.bf16.mxu0 %v5331_v12  ;;  %v5398_v12 = vld [vmem:[%s7489_s1 + $0x7b8] ss:$12 sps:$4 sm:$0xff]  }
  0xb6   :  { %v5401_v13 = vld [vmem:[%s7489_s1 + $0x70c] ss:$12 sps:$4 sm:$0xff]  }
  0xb7   :  { %4925 = vmatpush3.bf16.msra.mxu1 %v5333_v15  ;;  %v5399_v15 = vld [vmem:[%s7489_s1 + $0x708] ss:$12 sps:$4 sm:$0xff]  }
  0xb8   :  { %3219 = vmatpush1.bf16.msra.mxu0 %v5329_v14  ;;  %4926 = vmatprep.subr.bf16.mxu1 %v5337_v17  ;;  %v5402_v14 = vld [vmem:[%s7489_s1 + $0x890] ss:$12 sps:$4 sm:$0xff]  }
  0xb9   :  { %3220 = vmatprep.subr.bf16.mxu0 %v5336_v16  ;;  %v5403_v16 = vld [vmem:[%s7489_s1 + $0x7d0] ss:$12 sps:$4 sm:$0xff]  }
  0xba   :  { %v5406_v17 = vld [vmem:[%s7489_s1 + $0x724] ss:$12 sps:$4 sm:$0xff]  }
  0xbb   :  { %4927 = vmatpush3.bf16.msra.mxu1 %v5338_v21  ;;  %v5404_v21 = vld [vmem:[%s7489_s1 + $0x720] ss:$12 sps:$4 sm:$0xff]  }
  0xbc   :  { %3221 = vmatpush1.bf16.msra.mxu0 %v5334_v19  ;;  %4928 = vmatprep.subr.bf16.mxu1 %v5342_v24  ;;  %v5407_v19 = vld [vmem:[%s7489_s1 + $0x8a8] ss:$12 sps:$4 sm:$0xff]  }
  0xbd   :  { %3222 = vmatprep.subr.bf16.mxu0 %v5341_v23  ;;  %v5408_v23 = vld [vmem:[%s7489_s1 + $0x7e8] ss:$12 sps:$4 sm:$0xff]  }
  0xbe   :  { %v5411_v24 = vld [vmem:[%s7489_s1 + $0x73c] ss:$12 sps:$4 sm:$0xff]  }
  0xbf   :  { %4929 = vmatpush3.bf16.msra.mxu1 %v5343_v28  ;;  %v5413_v28 = vld [vmem:[%s7489_s1 + $0x800] ss:$12 sps:$4 sm:$0xff]  }
  0xc0   :  { %3223 = vmatpush1.bf16.msra.mxu0 %v5339_v27  ;;  %4936 = vmatprep.subr.bf16.mxu1 %v5347_v29  ;;  %v5409_v27 = vld [vmem:[%s7489_s1 + $0x738] ss:$12 sps:$4 sm:$0xff]  }
  0xc1   :  { %3233 = vmatprep.subr.bf16.mxu0 %v5346_v10  ;;  %v5416_v10 = vld [vmem:[%s7489_s1 + $0x754] ss:$12 sps:$4 sm:$0xff]   ;;  %v5417_v29 = vld [vmem:[%s7489_s1 + $0x8d8] ss:$12 sps:$4 sm:$0xff]  }
  0xc2   :  { %3591 = vmatmul.mubr.bf16.vlgmr.msra.gmra.mrb[16].mxu1 %v673_v32 }
  0xc3   :  { %3225 = vmatmul.mubr.bf16.vlgmr.msra.gmra.mrb[0].mxu0 %v673_v32  ;;  %4937 = vmatpush3.bf16.msra.mxu1 %v5348_v18  ;;  %v5418_v32 = vld [vmem:[%s7489_s1 + $0x818] ss:$12 sps:$4 sm:$0xff]  }
  0xc4   :  { %3234 = vmatpush1.bf16.msra.mxu0 %v5344_v30  ;;  %4938 = vmatprep.subr.bf16.mxu1 %v5352_v34  ;;  %v676_v30 = vcombine.high %v6427_v20, %v6427_v20  ;;  %v5421_v18 = vld [vmem:[%s7489_s1 + $0x76c] ss:$12 sps:$4 sm:$0xff]   ;;  %v5422_v20 = vld [vmem:[%s7489_s1 + $0x8f0] ss:$12 sps:$4 sm:$0xff]  }
  0xc5   :  { %3235 = vmatprep.subr.bf16.mxu0 %v5351_v33  ;;  %3630 = vmatprep.mubr.bf16.mxu1 %v6471_v22  ;;  %v5419_v33 = vld [vmem:[%s7489_s1 + $0x768] ss:$12 sps:$4 sm:$0xff]  }
  0xc6   :  { %3265 = vmatprep.mubr.bf16.mxu0 %v6471_v22  ;;  %v6659_v34 = vrot.slane %v676_v30, %v5951_v49  ;;  %v5423_v22 = vld [vmem:[%s7489_s1 + $0x830] ss:$12 sps:$4 sm:$0xff]   ;;  %v5488_v30 = vld [vmem:[%s7489_s1 + $0xba8] ss:$12 sps:$4 sm:$0xff]  }
  0xc7   :  { %4939 = vmatpush3.bf16.msra.mxu1 %v5353_v35  ;;  %v5427_v35 = vld [vmem:[%s7489_s1 + $0x9c8] ss:$12 sps:$4 sm:$0xff]  }
  0xc8   :  { %3236 = vmatpush1.bf16.msra.mxu0 %v5349_v25  ;;  %4940 = vmatprep.subr.bf16.mxu1 %v5357_v37  ;;  %v5426_v25 = vld [vmem:[%s7489_s1 + $0x784] ss:$12 sps:$4 sm:$0xff]   ;;  %v5424_v37 = vld [vmem:[%s7489_s1 + $0x780] ss:$12 sps:$4 sm:$0xff]  }
  0xc9   :  { %3237 = vmatprep.subr.bf16.mxu0 %v5356_v36  ;;  %v692_v36 = vcombine.high %v6659_v34, %v6659_v34 }
  0xcb   :  { %4941 = vmatpush3.bf16.msra.mxu1 %v5358_v39  ;;  %v5428_v39 = vld [vmem:[%s7489_s1 + $0x908] ss:$12 sps:$4 sm:$0xff]  }
  0xcc   :  { %3238 = vmatpush1.bf16.msra.mxu0 %v5354_v38  ;;  %4942 = vmatprep.subr.bf16.mxu1 %v5362_v41  ;;  %v6677_v38 = vcombine.high %v6564_v0, %v6564_v0  ;;  %v5432_v41 = vld [vmem:[%s7489_s1 + $0x9e0] ss:$12 sps:$4 sm:$0xff]  }
  0xcd   :  { %3239 = vmatprep.subr.bf16.mxu0 %v5361_v40  ;;  %v5431_v40 = vld [vmem:[%s7489_s1 + $0x79c] ss:$12 sps:$4 sm:$0xff]  }
  0xcf   :  { %4943 = vmatpush3.bf16.msra.mxu1 %v5363_v44  ;;  %v6692_v44 = vrot.slane %v692_v36, %v5951_v49  ;;  %v5499_v36 = vld [vmem:[%s7489_s1 + $0xb18] ss:$12 sps:$4 sm:$0xff]  }
  0xd0   :  { %3240 = vmatpush1.bf16.msra.mxu0 %v5359_v43  ;;  %4944 = vmatprep.subr.bf16.mxu1 %v5367_v46  ;;  %v5429_v43 = vld [vmem:[%s7489_s1 + $0x798] ss:$12 sps:$4 sm:$0xff]   ;;  %v5436_v46 = vld [vmem:[%s7489_s1 + $0x7b4] ss:$12 sps:$4 sm:$0xff]  }
  0xd1   :  { %3241 = vmatprep.subr.bf16.mxu0 %v5366_v45  ;;  %v5433_v45 = vld [vmem:[%s7489_s1 + $0x920] ss:$12 sps:$4 sm:$0xff]  }
  0xd3   :  { %4945 = vmatpush3.bf16.msra.mxu1 %v5368_v48  ;;  %v5434_v48 = vld [vmem:[%s7489_s1 + $0x7b0] ss:$12 sps:$4 sm:$0xff]  }
  0xd4   :  { %3242 = vmatpush1.bf16.msra.mxu0 %v5364_v47  ;;  %4946 = vmatprep.subr.bf16.mxu1 %v5372_v51  ;;  %v5437_v47 = vld [vmem:[%s7489_s1 + $0x9f8] ss:$12 sps:$4 sm:$0xff]  }
  0xd5   :  { %3243 = vmatprep.subr.bf16.mxu0 %v5371_v50  ;;  %v5438_v50 = vld [vmem:[%s7489_s1 + $0x938] ss:$12 sps:$4 sm:$0xff]  }
  0xd6   :  { %v5441_v51 = vld [vmem:[%s7489_s1 + $0x7cc] ss:$12 sps:$4 sm:$0xff]  }
  0xd7   :  { %4947 = vmatpush3.bf16.msra.mxu1 %v5373_v53  ;;  %v5439_v53 = vld [vmem:[%s7489_s1 + $0x7c8] ss:$12 sps:$4 sm:$0xff]  }
  0xd8   :  { %3244 = vmatpush1.bf16.msra.mxu0 %v5369_v52  ;;  %4948 = vmatprep.subr.bf16.mxu1 %v5377_v55  ;;  %v5442_v52 = vld [vmem:[%s7489_s1 + $0xa10] ss:$12 sps:$4 sm:$0xff]  }
  0xd9   :  { %3245 = vmatprep.subr.bf16.mxu0 %v5376_v54  ;;  %v5443_v54 = vld [vmem:[%s7489_s1 + $0x950] ss:$12 sps:$4 sm:$0xff]  }
  0xda   :  { %v5446_v55 = vld [vmem:[%s7489_s1 + $0x7e4] ss:$12 sps:$4 sm:$0xff]  }
  0xdb   :  { %4949 = vmatpush3.bf16.msra.mxu1 %v5378_v57  ;;  %v5444_v57 = vld [vmem:[%s7489_s1 + $0x7e0] ss:$12 sps:$4 sm:$0xff]  }
  0xdc   :  { %3246 = vmatpush1.bf16.msra.mxu0 %v5374_v56  ;;  %4950 = vmatprep.subr.bf16.mxu1 %v5382_v59  ;;  %v5447_v56 = vld [vmem:[%s7489_s1 + $0xa28] ss:$12 sps:$4 sm:$0xff]  }
  0xdd   :  { %3247 = vmatprep.subr.bf16.mxu0 %v5381_v58  ;;  %v5448_v58 = vld [vmem:[%s7489_s1 + $0x968] ss:$12 sps:$4 sm:$0xff]  }
  0xde   :  { %v5451_v59 = vld [vmem:[%s7489_s1 + $0x7fc] ss:$12 sps:$4 sm:$0xff]  }
  0xdf   :  { %4951 = vmatpush3.bf16.msra.mxu1 %v5383_v61  ;;  %v5449_v61 = vld [vmem:[%s7489_s1 + $0x7f8] ss:$12 sps:$4 sm:$0xff]  }
  0xe0   :  { %3248 = vmatpush1.bf16.msra.mxu0 %v5379_v60  ;;  %4958 = vmatprep.subr.bf16.mxu1 %v5387_v63  ;;  %v5452_v60 = vld [vmem:[%s7489_s1 + $0xa40] ss:$12 sps:$4 sm:$0xff]  }
  0xe1   :  { %3249 = vmatprep.subr.bf16.mxu0 %v5386_v62  ;;  %v5453_v62 = vld [vmem:[%s7489_s1 + $0x980] ss:$12 sps:$4 sm:$0xff]  }
  0xe2   :  { %3631 = vmatmul.mubr.bf16.vlgmr.msra.gmra.mrb[20].mxu1 %v6564_v0  ;;  %v5456_v63 = vld [vmem:[%s7489_s1 + $0x814] ss:$12 sps:$4 sm:$0xff]  }
  0xe3   :  { %4959 = vmatpush3.bf16.msra.mxu1 %v5388_v2  ;;  %3670 = vmatprep.mubr.bf16.mxu1 %v6577_v5  ;;  %v5458_v2 = vld [vmem:[%s7489_s1 + $0x998] ss:$12 sps:$4 sm:$0xff]  }
  0xe4   :  { %3250 = vmatpush1.bf16.msra.mxu0 %v5384_v1  ;;  %4960 = vmatprep.subr.bf16.mxu1 %v5392_v4  ;;  %v5457_v1 = vld [vmem:[%s7489_s1 + $0xa58] ss:$12 sps:$4 sm:$0xff]   ;;  %v5462_v4 = vld [vmem:[%s7489_s1 + $0xa70] ss:$12 sps:$4 sm:$0xff]  }
  0xe5   :  { %3251 = vmatprep.subr.bf16.mxu0 %v5391_v3  ;;  %v5461_v3 = vld [vmem:[%s7489_s1 + $0x82c] ss:$12 sps:$4 sm:$0xff]  }
  0xe7   :  { %4961 = vmatpush3.bf16.msra.mxu1 %v5393_v7  ;;  %v5466_v7 = vld [vmem:[%s7489_s1 + $0x844] ss:$12 sps:$4 sm:$0xff]  }
  0xe8   :  { %3252 = vmatpush1.bf16.msra.mxu0 %v5389_v6  ;;  %4962 = vmatprep.subr.bf16.mxu1 %v5397_v9  ;;  %v5463_v6 = vld [vmem:[%s7489_s1 + $0x9b0] ss:$12 sps:$4 sm:$0xff]   ;;  %v5464_v9 = vld [vmem:[%s7489_s1 + $0x840] ss:$12 sps:$4 sm:$0xff]  }
  0xe9   :  { %3253 = vmatprep.subr.bf16.mxu0 %v5396_v8  ;;  %v5468_v8 = vld [vmem:[%s7489_s1 + $0xb48] ss:$12 sps:$4 sm:$0xff]  }
  0xeb   :  { %4963 = vmatpush3.bf16.msra.mxu1 %v5398_v12  ;;  %v5469_v12 = vld [vmem:[%s7489_s1 + $0xa88] ss:$12 sps:$4 sm:$0xff]  }
  0xec   :  { %3254 = vmatpush1.bf16.msra.mxu0 %v5394_v11  ;;  %4964 = vmatprep.subr.bf16.mxu1 %v5402_v14  ;;  %v6784_v11 = vrot.slane %v6659_v34, %v5951_v49  ;;  %v5473_v14 = vld [vmem:[%s7489_s1 + $0xb60] ss:$12 sps:$4 sm:$0xff]  }
  0xed   :  { %3255 = vmatprep.subr.bf16.mxu0 %v5401_v13  ;;  %v5472_v13 = vld [vmem:[%s7489_s1 + $0x85c] ss:$12 sps:$4 sm:$0xff]   ;;  %v5494_v34 = vld [vmem:[%s7489_s1 + $0xb00] ss:$12 sps:$4 sm:$0xff]  }
  0xef   :  { %4965 = vmatpush3.bf16.msra.mxu1 %v5403_v16  ;;  %v5470_v16 = vld [vmem:[%s7489_s1 + $0x858] ss:$12 sps:$4 sm:$0xff]  }
  0xf0   :  { %3256 = vmatpush1.bf16.msra.mxu0 %v5399_v15  ;;  %4966 = vmatprep.subr.bf16.mxu1 %v5407_v19  ;;  %v6797_v15 = vcombine.high %v6692_v44, %v6692_v44  ;;  %v5477_v19 = vld [vmem:[%s7489_s1 + $0x874] ss:$12 sps:$4 sm:$0xff]  }
  0xf1   :  { %3257 = vmatprep.subr.bf16.mxu0 %v5406_v17  ;;  %v5474_v17 = vld [vmem:[%s7489_s1 + $0xaa0] ss:$12 sps:$4 sm:$0xff]  }
  0xf3   :  { %4967 = vmatpush3.bf16.msra.mxu1 %v5408_v23  ;;  %v5475_v23 = vld [vmem:[%s7489_s1 + $0x870] ss:$12 sps:$4 sm:$0xff]  }
  0xf4   :  { %3258 = vmatpush1.bf16.msra.mxu0 %v5404_v21  ;;  %4968 = vmatprep.subr.bf16.mxu1 %v5412_v26  ;;  %v5478_v21 = vld [vmem:[%s7489_s1 + $0xb78] ss:$12 sps:$4 sm:$0xff]  }
  0xf5   :  { %3259 = vmatprep.subr.bf16.mxu0 %v5411_v24  ;;  %v5479_v24 = vld [vmem:[%s7489_s1 + $0xab8] ss:$12 sps:$4 sm:$0xff]  }
  0xf6   :  { %v5482_v26 = vld [vmem:[%s7489_s1 + $0x88c] ss:$12 sps:$4 sm:$0xff]  }
  0xf7   :  { %4969 = vmatpush3.bf16.msra.mxu1 %v5413_v28  ;;  %v5480_v28 = vld [vmem:[%s7489_s1 + $0x888] ss:$12 sps:$4 sm:$0xff]  }
  0xf8   :  { %3260 = vmatpush1.bf16.msra.mxu0 %v5409_v27  ;;  %4970 = vmatprep.subr.bf16.mxu1 %v5417_v29  ;;  %v5483_v27 = vld [vmem:[%s7489_s1 + $0xb90] ss:$12 sps:$4 sm:$0xff]  }
  0xf9   :  { %3261 = vmatprep.subr.bf16.mxu0 %v5416_v10  ;;  %v5484_v10 = vld [vmem:[%s7489_s1 + $0xad0] ss:$12 sps:$4 sm:$0xff]  }
  0xfa   :  { %v5487_v29 = vld [vmem:[%s7489_s1 + $0x8a4] ss:$12 sps:$4 sm:$0xff]  }
  0xfb   :  { %4971 = vmatpush3.bf16.msra.mxu1 %v5418_v32  ;;  %v5489_v32 = vld [vmem:[%s7489_s1 + $0xae8] ss:$12 sps:$4 sm:$0xff]  }
  0xfc   :  { %3262 = vmatpush1.bf16.msra.mxu0 %v5414_v31  ;;  %4972 = vmatprep.subr.bf16.mxu1 %v5422_v20  ;;  %v5485_v31 = vld [vmem:[%s7489_s1 + $0x8a0] ss:$12 sps:$4 sm:$0xff]  }
  0xfd   :  { %3263 = vmatprep.subr.bf16.mxu0 %v5421_v18  ;;  %v5492_v18 = vld [vmem:[%s7489_s1 + $0x8bc] ss:$12 sps:$4 sm:$0xff]   ;;  %v5493_v20 = vld [vmem:[%s7489_s1 + $0xbc0] ss:$12 sps:$4 sm:$0xff]  }
  0xff   :  { %4973 = vmatpush3.bf16.msra.mxu1 %v5423_v22  ;;  %v5497_v22 = vld [vmem:[%s7489_s1 + $0x8d4] ss:$12 sps:$4 sm:$0xff]  }
 0x100   :  { %3264 = vmatpush1.bf16.msra.mxu0 %v5419_v33  ;;  %4980 = vmatprep.subr.bf16.mxu1 %v5427_v35  ;;  %v5490_v33 = vld [vmem:[%s7489_s1 + $0x8b8] ss:$12 sps:$4 sm:$0xff]   ;;  %v5495_v35 = vld [vmem:[%s7489_s1 + $0x8d0] ss:$12 sps:$4 sm:$0xff]  }
 0x101   :  { %3274 = vmatprep.subr.bf16.mxu0 %v5426_v25  ;;  %v5498_v25 = vld [vmem:[%s7489_s1 + $0xbd8] ss:$12 sps:$4 sm:$0xff]  }
 0x102   :  { %3671 = vmatmul.mubr.bf16.vlgmr.msra.gmra.mrb[24].mxu1 %v6677_v38 }
 0x103   :  { %3266 = vmatmul.mubr.bf16.vlgmr.msra.gmra.mrb[0].mxu0 %v6564_v0  ;;  %4981 = vmatpush3.bf16.msra.mxu1 %v5428_v39  ;;  %v5454_v0 = vld [vmem:[%s7489_s1 + $0x810] ss:$12 sps:$4 sm:$0xff]  }
 0x104   :  { %3275 = vmatpush1.bf16.msra.mxu0 %v5424_v37  ;;  %4982 = vmatprep.subr.bf16.mxu1 %v5432_v41  ;;  %v5502_v37 = vld [vmem:[%s7489_s1 + $0x8ec] ss:$12 sps:$4 sm:$0xff]   ;;  %v5503_v39 = vld [vmem:[%s7489_s1 + $0xbf0] ss:$12 sps:$4 sm:$0xff]  }
 0x105   :  { %3276 = vmatprep.subr.bf16.mxu0 %v5431_v40  ;;  %3710 = vmatprep.mubr.bf16.mxu1 %v6692_v44  ;;  %v5500_v40 = vld [vmem:[%s7489_s1 + $0x8e8] ss:$12 sps:$4 sm:$0xff]   ;;  %v5504_v41 = vld [vmem:[%s7489_s1 + $0xb30] ss:$12 sps:$4 sm:$0xff]  }
 0x106   :  { %3306 = vmatprep.mubr.bf16.mxu0 %v6577_v5  ;;  %v5459_v5 = vld [vmem:[%s7489_s1 + $0x828] ss:$12 sps:$4 sm:$0xff]  }
 0x107   :  { %4983 = vmatpush3.bf16.msra.mxu1 %v5433_v45  ;;  %v5507_v45 = vld [vmem:[%s7489_s1 + $0x904] ss:$12 sps:$4 sm:$0xff]  }
 0x108   :  { %3277 = vmatpush1.bf16.msra.mxu0 %v5429_v43  ;;  %4984 = vmatprep.subr.bf16.mxu1 %v5437_v47  ;;  %v6882_v43 = vld.sshfl [vmem:[%s7488_s0 + $0x10] sm:$0x11 pattern:$0x75316420]  ;;  %v5505_v47 = vld [vmem:[%s7489_s1 + $0x900] ss:$12 sps:$4 sm:$0xff]  }
 0x109   :  { %3278 = vmatprep.subr.bf16.mxu0 %v5436_v46  ;;  %v5508_v46 = vld [vmem:[%s7489_s1 + $0xcc8] ss:$12 sps:$4 sm:$0xff]  }
 0x10b   :  { %4985 = vmatpush3.bf16.msra.mxu1 %v5438_v50  ;;  %v732_v50 = vcombine.high %v6882_v43, %v6882_v43 }
 0x10c   :  { %3279 = vmatpush1.bf16.msra.mxu0 %v5434_v48  ;;  %4986 = vmatprep.subr.bf16.mxu1 %v5442_v52  ;;  %v5509_v48 = vld [vmem:[%s7489_s1 + $0xc08] ss:$12 sps:$4 sm:$0xff]  }
 0x10d   :  { %3280 = vmatprep.subr.bf16.mxu0 %v5441_v51  ;;  %v6900_v51 = vcombine.high %v6784_v11, %v6784_v11  ;;  %v5512_v52 = vld [vmem:[%s7489_s1 + $0x91c] ss:$12 sps:$4 sm:$0xff]  }
 0x10f   :  { %4987 = vmatpush3.bf16.msra.mxu1 %v5443_v54  ;;  %v5510_v54 = vld [vmem:[%s7489_s1 + $0x918] ss:$12 sps:$4 sm:$0xff]  }
 0x110   :  { %3281 = vmatpush1.bf16.msra.mxu0 %v5439_v53  ;;  %4988 = vmatprep.subr.bf16.mxu1 %v5447_v56  ;;  %v5513_v53 = vld [vmem:[%s7489_s1 + $0xce0] ss:$12 sps:$4 sm:$0xff]   ;;  %v6915_v56 = vrot.slane %v732_v50, %v5951_v49 }
 0x111   :  { %3282 = vmatprep.subr.bf16.mxu0 %v5446_v55  ;;  %v5514_v55 = vld [vmem:[%s7489_s1 + $0xc20] ss:$12 sps:$4 sm:$0xff]  }
 0x113   :  { %4989 = vmatpush3.bf16.msra.mxu1 %v5448_v58  ;;  %v5518_v58 = vld [vmem:[%s7489_s1 + $0xcf8] ss:$12 sps:$4 sm:$0xff]  }
 0x114   :  { %3283 = vmatpush1.bf16.msra.mxu0 %v5444_v57  ;;  %4990 = vmatprep.subr.bf16.mxu1 %v5452_v60  ;;  %v5517_v57 = vld [vmem:[%s7489_s1 + $0x934] ss:$12 sps:$4 sm:$0xff]   ;;  %v5522_v60 = vld [vmem:[%s7489_s1 + $0x94c] ss:$12 sps:$4 sm:$0xff]  }
 0x115   :  { %3284 = vmatprep.subr.bf16.mxu0 %v5451_v59  ;;  %v5515_v59 = vld [vmem:[%s7489_s1 + $0x930] ss:$12 sps:$4 sm:$0xff]  }
 0x117   :  { %4991 = vmatpush3.bf16.msra.mxu1 %v5453_v62  ;;  %v5520_v62 = vld [vmem:[%s7489_s1 + $0x948] ss:$12 sps:$4 sm:$0xff]  }
 0x118   :  { %3285 = vmatpush1.bf16.msra.mxu0 %v5449_v61  ;;  %4992 = vmatprep.subr.bf16.mxu1 %v5457_v1  ;;  %v5523_v61 = vld [vmem:[%s7489_s1 + $0xd10] ss:$12 sps:$4 sm:$0xff]   ;;  %v5528_v1 = vld [vmem:[%s7489_s1 + $0xd28] ss:$12 sps:$4 sm:$0xff]  }
 0x119   :  { %3286 = vmatprep.subr.bf16.mxu0 %v5456_v63  ;;  %v5527_v63 = vld [vmem:[%s7489_s1 + $0x964] ss:$12 sps:$4 sm:$0xff]  }
 0x11b   :  { %4993 = vmatpush3.bf16.msra.mxu1 %v5458_v2  ;;  %v5529_v2 = vld [vmem:[%s7489_s1 + $0xc68] ss:$12 sps:$4 sm:$0xff]  }
 0x11c   :  { %3287 = vmatpush1.bf16.msra.mxu0 %v5454_v0  ;;  %4994 = vmatprep.subr.bf16.mxu1 %v5462_v4  ;;  %v5525_v0 = vld [vmem:[%s7489_s1 + $0x960] ss:$12 sps:$4 sm:$0xff]   ;;  %v5532_v4 = vld [vmem:[%s7489_s1 + $0x97c] ss:$12 sps:$4 sm:$0xff]  }
 0x11d   :  { %3288 = vmatprep.subr.bf16.mxu0 %v5461_v3  ;;  %v6957_v3 = vpop.f32.mrb[0].mxu1 }
 0x11f   :  { %4995 = vmatpush3.bf16.msra.mxu1 %v5463_v6  ;;  %v6965_v6 = vpop.f32.mrb[1].mxu1 }
 0x120   :  { %3289 = vmatpush1.bf16.msra.mxu0 %v5459_v5  ;;  %5002 = vmatprep.subr.bf16.mxu1 %v5468_v8  ;;  %v5533_v5 = vld [vmem:[%s7489_s1 + $0xd40] ss:$12 sps:$4 sm:$0xff]  }
 0x121   :  { %3290 = vmatprep.subr.bf16.mxu0 %v5466_v7  ;;  %v5530_v7 = vld [vmem:[%s7489_s1 + $0x978] ss:$12 sps:$4 sm:$0xff]   ;;  %v5534_v8 = vld [vmem:[%s7489_s1 + $0xc80] ss:$12 sps:$4 sm:$0xff]  }
 0x122   :  { %3711 = vmatmul.mubr.bf16.vlgmr.msra.gmra.mrb[28].mxu1 %v6784_v11 }
 0x123   :  { %5003 = vmatpush3.bf16.msra.mxu1 %v5469_v12  ;;  %3750 = vmatprep.mubr.bf16.mxu1 %v6797_v15 }
 0x124   :  { %3291 = vmatpush1.bf16.msra.mxu0 %v5464_v9  ;;  %5004 = vmatprep.subr.bf16.mxu1 %v5473_v14  ;;  %v3107_v9 = vpop.f32.mrb[2].mxu1  ;;  %v5538_v14 = vld [vmem:[%s7489_s1 + $0xd58] ss:$12 sps:$4 sm:$0xff]  }
 0x125   :  { %3292 = vmatprep.subr.bf16.mxu0 %v5472_v13  ;;  %v3108_v12 = vpop.f32.mrb[3].mxu1  ;;  %v5537_v13 = vld [vmem:[%s7489_s1 + $0x994] ss:$12 sps:$4 sm:$0xff]  }
 0x127   :  { %5005 = vmatpush3.bf16.msra.mxu1 %v5474_v17  ;;  %v5539_v17 = vld [vmem:[%s7489_s1 + $0xc98] ss:$12 sps:$4 sm:$0xff]  }
 0x128   :  { %3293 = vmatpush1.bf16.msra.mxu0 %v5470_v16  ;;  %5006 = vmatprep.subr.bf16.mxu1 %v5478_v21  ;;  %v5535_v16 = vld [vmem:[%s7489_s1 + $0x990] ss:$12 sps:$4 sm:$0xff]  }
 0x129   :  { %3294 = vmatprep.subr.bf16.mxu0 %v5477_v19  ;;  %v5542_v19 = vld [vmem:[%s7489_s1 + $0x9ac] ss:$12 sps:$4 sm:$0xff]   ;;  %v5543_v21 = vld [vmem:[%s7489_s1 + $0xd70] ss:$12 sps:$4 sm:$0xff]  }
 0x12b   :  { %5007 = vmatpush3.bf16.msra.mxu1 %v5479_v24  ;;  %v5544_v24 = vld [vmem:[%s7489_s1 + $0xcb0] ss:$12 sps:$4 sm:$0xff]  }
 0x12c   :  { %3295 = vmatpush1.bf16.msra.mxu0 %v5475_v23  ;;  %5008 = vmatprep.subr.bf16.mxu1 %v5483_v27  ;;  %v5540_v23 = vld [vmem:[%s7489_s1 + $0x9a8] ss:$12 sps:$4 sm:$0xff]   ;;  %v7002_v27 = vrot.slane %v6882_v43, %v5951_v49 }
 0x12d   :  { %3296 = vmatprep.subr.bf16.mxu0 %v5482_v26  ;;  %v5547_v26 = vld [vmem:[%s7489_s1 + $0x9c4] ss:$12 sps:$4 sm:$0xff]   ;;  %v5553_v49 = vld [vmem:[%s7489_s1 + $0x9f4] ss:$12 sps:$4 sm:$0xff]  }
 0x12f   :  { %5009 = vmatpush3.bf16.msra.mxu1 %v5484_v10  ;;  %v5550_v10 = vld [vmem:[%s7489_s1 + $0x9dc] ss:$12 sps:$4 sm:$0xff]  }
 0x130   :  { %3297 = vmatpush1.bf16.msra.mxu0 %v5480_v28  ;;  %5010 = vmatprep.subr.bf16.mxu1 %v5488_v30  ;;  %v5545_v28 = vld [vmem:[%s7489_s1 + $0x9c0] ss:$12 sps:$4 sm:$0xff]  }
 0x131   :  { %3298 = vmatprep.subr.bf16.mxu0 %v5487_v29  ;;  %v5548_v29 = vld [vmem:[%s7489_s1 + $0x9d8] ss:$12 sps:$4 sm:$0xff]  }
 0x133   :  { %5011 = vmatpush3.bf16.msra.mxu1 %v5489_v32 }
 0x134   :  { %3299 = vmatpush1.bf16.msra.mxu0 %v5485_v31  ;;  %5012 = vmatprep.subr.bf16.mxu1 %v5493_v20 }
 0x135   :  { %3300 = vmatprep.subr.bf16.mxu0 %v5492_v18 }
 0x137   :  { %5013 = vmatpush3.bf16.msra.mxu1 %v5494_v34 }
 0x138   :  { %3301 = vmatpush1.bf16.msra.mxu0 %v5490_v33  ;;  %5014 = vmatprep.subr.bf16.mxu1 %v5498_v25 }
 0x139   :  { %3302 = vmatprep.subr.bf16.mxu0 %v5497_v22 }
 0x13b   :  { %5015 = vmatpush3.bf16.msra.mxu1 %v5499_v36 }
 0x13c   :  { %3303 = vmatpush1.bf16.msra.mxu0 %v5495_v35  ;;  %5016 = vmatprep.subr.bf16.mxu1 %v5503_v39 }
 0x13d   :  { %3304 = vmatprep.subr.bf16.mxu0 %v5502_v37 }
 0x13f   :  { %5017 = vmatpush3.bf16.msra.mxu1 %v5504_v41 }
 0x140   :  { %3305 = vmatpush1.bf16.msra.mxu0 %v5500_v40  ;;  %5024 = vmatprep.subr.bf16.mxu1 %v5508_v46 }
 0x141   :  { %3315 = vmatprep.subr.bf16.mxu0 %v5507_v45 }
 0x142   :  { %3751 = vmatmul.mubr.bf16.vlgmr.msra.gmra.mrb[32].mxu1 %v6900_v51 }
 0x143   :  { %3307 = vmatmul.mubr.bf16.vlgmr.msra.gmra.mrb[0].mxu0 %v6677_v38  ;;  %5025 = vmatpush3.bf16.msra.mxu1 %v5509_v48  ;;  %v5519_v38 = vld [vmem:[%s7489_s1 + $0xc38] ss:$12 sps:$4 sm:$0xff]  }
 0x144   :  { %3316 = vmatpush1.bf16.msra.mxu0 %v5505_v47  ;;  %5026 = vmatprep.subr.bf16.mxu1 %v5513_v53 }
 0x145   :  { %3317 = vmatprep.subr.bf16.mxu0 %v5512_v52  ;;  %3790 = vmatprep.mubr.bf16.mxu1 %v6915_v56 }
 0x146   :  { %3347 = vmatprep.mubr.bf16.mxu0 %v6692_v44  ;;  %v5524_v44 = vld [vmem:[%s7489_s1 + $0xc50] ss:$12 sps:$4 sm:$0xff]  }
 0x147   :  { %5027 = vmatpush3.bf16.msra.mxu1 %v5514_v55 }
 0x148   :  { %3318 = vmatpush1.bf16.msra.mxu0 %v5510_v54  ;;  %5028 = vmatprep.subr.bf16.mxu1 %v5518_v58 }
 0x149   :  { %3319 = vmatprep.subr.bf16.mxu0 %v5517_v57 }
 0x14b   :  { %5029 = vmatpush3.bf16.msra.mxu1 %v5519_v38 }
 0x14c   :  { %3320 = vmatpush1.bf16.msra.mxu0 %v5515_v59  ;;  %5030 = vmatprep.subr.bf16.mxu1 %v5523_v61 }
 0x14d   :  { %3321 = vmatprep.subr.bf16.mxu0 %v5522_v60 }
 0x14f   :  { %5031 = vmatpush3.bf16.msra.mxu1 %v5524_v44 }
 0x150   :  { %3322 = vmatpush1.bf16.msra.mxu0 %v5520_v62  ;;  %5032 = vmatprep.subr.bf16.mxu1 %v5528_v1 }
 0x151   :  { %3323 = vmatprep.subr.bf16.mxu0 %v5527_v63 }
 0x153   :  { %5033 = vmatpush3.bf16.msra.mxu1 %v5529_v2 }
 0x154   :  { %3324 = vmatpush1.bf16.msra.mxu0 %v5525_v0  ;;  %5034 = vmatprep.subr.bf16.mxu1 %v5533_v5 }
 0x155   :  { %3325 = vmatprep.subr.bf16.mxu0 %v5532_v4 }
 0x157   :  { %5035 = vmatpush3.bf16.msra.mxu1 %v5534_v8 }
 0x158   :  { %3326 = vmatpush1.bf16.msra.mxu0 %v5530_v7  ;;  %5036 = vmatprep.subr.bf16.mxu1 %v5538_v14 }
 0x159   :  { %3327 = vmatprep.subr.bf16.mxu0 %v5537_v13 }
 0x15b   :  { %5037 = vmatpush3.bf16.msra.mxu1 %v5539_v17 }
 0x15c   :  { %3328 = vmatpush1.bf16.msra.mxu0 %v5535_v16  ;;  %5038 = vmatprep.subr.bf16.mxu1 %v5543_v21 }
 0x15d   :  { %3329 = vmatprep.subr.bf16.mxu0 %v5542_v19 }
 0x15f   :  { %5039 = vmatpush3.bf16.msra.mxu1 %v5544_v24 }
 0x160   :  { %3330 = vmatpush1.bf16.msra.mxu0 %v5540_v23 }
 0x161   :  { %3331 = vmatprep.subr.bf16.mxu0 %v5547_v26 }
 0x162   :  { %3791 = vmatmul.mubr.bf16.vlgmr.msra.gmra.mrb[36].mxu1 %v7002_v27 }
 0x164   :  { %3332 = vmatpush1.bf16.msra.mxu0 %v5545_v28 }
 0x165   :  { %3333 = vmatprep.subr.bf16.mxu0 %v5550_v10 }
 0x166   :  { %12 = vsyncpa [#allocation3], 0  ;;  %v5551_v30 = vld [vmem:[%s7489_s1 + $0x9f0] ss:$12 sps:$4 sm:$0xff]   ;;  %v4864_v31 = vpop.f32.mrb[4].mxu1  ;;  %v619_v32 = vsub.s32 2, %v5933_v42 }
 0x167   :  { %v5556_v18 = vld [vmem:[%s7489_s1 + $0xa0c] ss:$12 sps:$4 sm:$0xff]   ;;  %v7027_v20 = vld [vmem:[%s7490_s2] sm:$0x7]  ;;  %v4865_v33 = vpop.f32.mrb[5].mxu1  ;;  %vm4293_vm0 = vcmask 523264  }
 0x168   :  { %3334 = vmatpush1.bf16.msra.mxu0 %v5548_v29  ;;  %v620_v34 = vrot.slane %v7027_v20, %v619_v32  ;;  %v4866_v22 = vadd.f32 %v4865_v33, %v4864_v31  ;;  %v4867_v25 = vpop.f32.mrb[6].mxu1  ;;  %v5554_v36 = vld [vmem:[%s7489_s1 + $0xa08] ss:$12 sps:$4 sm:$0xff]   ;;  %v5559_v40 = vld [vmem:[%s7489_s1 + $0xa24] ss:$12 sps:$4 sm:$0xff]   ;;  %s5775_s23 = smov [#allocation2]  }
 0x169   :  { %3335 = vmatprep.subr.bf16.mxu0 %v5553_v49  ;;  %v4868_v35 = vpop.f32.mrb[7].mxu1  ;;  %v5557_v47 = vld [vmem:[%s7489_s1 + $0xa20] ss:$12 sps:$4 sm:$0xff]   ;;  %v5562_v50 = vld [vmem:[%s7489_s1 + $0xa3c] ss:$12 sps:$4 sm:$0xff]   ;;  %s4345_s24 = sshll.u32 %s5775_s23, 4  ;;  %s4346_s24 = int_to_ptr.vmem [resolvable:$true] %s4345_s24 }
 0x16a   :  { %v3473_v37 = vadd.f32 %v4866_v22, %v620_v34  ;;  %v4886_v39 = vpop.f32.mrb[8].mxu1  ;;  %v5560_v52 = vld [vmem:[%s7489_s1 + $0xa38] ss:$12 sps:$4 sm:$0xff]   ;;  %v5565_v53 = vld [vmem:[%s7489_s1 + $0xa54] ss:$12 sps:$4 sm:$0xff]   ;;  %vm4337_vm1 = vcmask 74752   ;;  %p5754_p1 = scmp.lt.s32.totalorder %s4346_s24, %s4346_s24 }
 0x16b   :  { %v4887_v41 = vpop.f32.mrb[9].mxu1  ;;  %v5563_v57 = vld [vmem:[%s7489_s1 + $0xa50] ss:$12 sps:$4 sm:$0xff]   ;;  %v5568_v38 = vld [vmem:[%s7489_s1 + $0xa6c] ss:$12 sps:$4 sm:$0xff]   ;;  %s5749_s25 = scalar_lea.vmem %s4346_s24, 32 }
 0x16c   :  { %3336 = vmatpush1.bf16.msra.mxu0 %v5551_v30  ;;  %v4888_v43 = vadd.f32 %v4887_v41, %v4886_v39  ;;  %v4889_v45 = vpop.f32.mrb[10].mxu1  ;;  %v5566_v62 = vld [vmem:[%s7489_s1 + $0xa68] ss:$12 sps:$4 sm:$0xff]   ;;  %v5571_v44 = vld [vmem:[%s7489_s1 + $0xa84] ss:$12 sps:$4 sm:$0xff]   ;;  %p5750_p0 = scmp.ne.s32.totalorder %s4346_s24, %s5749_s25  ;;  %p5755_p2 = scmp.lt.s32.totalorder %s5749_s25, %s5749_s25 }
 0x16d   :  { %3337 = vmatprep.subr.bf16.mxu0 %v5556_v18  ;;  %v4890_v46 = vpop.f32.mrb[11].mxu1  ;;  %v5569_v63 = vld [vmem:[%s7489_s1 + $0xa80] ss:$12 sps:$4 sm:$0xff]   ;;  %v5574_v1 = vld [vmem:[%s7489_s1 + $0xa9c] ss:$12 sps:$4 sm:$0xff]  }
 0x16e   :  { %v3513_v48 = vadd.f32 %v4888_v43, %v3473_v37  ;;  %v5572_v0 = vld [vmem:[%s7489_s1 + $0xa98] ss:$12 sps:$4 sm:$0xff]   ;;  %v5577_v2 = vld [vmem:[%s7489_s1 + $0xab4] ss:$12 sps:$4 sm:$0xff]   ;;  %v5575_v4 = vld [vmem:[%s7489_s1 + $0xab0] ss:$12 sps:$4 sm:$0xff]   ;;  %p5756_p3 = por %p5755_p2, %p5754_p1 }
 0x16f   :  { %v5583_v5 = vld [vmem:[%s7489_s1 + $0xae4] ss:$12 sps:$4 sm:$0xff]   ;;  %v5581_v7 = vld [vmem:[%s7489_s1 + $0xae0] ss:$12 sps:$4 sm:$0xff]   ;;  %v5586_v8 = vld [vmem:[%s7489_s1 + $0xafc] ss:$12 sps:$4 sm:$0xff]  }
 0x170   :  { %3338 = vmatpush1.bf16.msra.mxu0 %v5554_v36  ;;  %v5584_v9 = vld [vmem:[%s7489_s1 + $0xaf8] ss:$12 sps:$4 sm:$0xff]   ;;  %v5589_v12 = vld [vmem:[%s7489_s1 + $0xb14] ss:$12 sps:$4 sm:$0xff]   ;;  %v5587_v16 = vld [vmem:[%s7489_s1 + $0xb10] ss:$12 sps:$4 sm:$0xff]   ;;  %p5757_p4 = pnand %p5756_p3, %p5750_p0 }
 0x171   :  { %3339 = vmatprep.subr.bf16.mxu0 %v5559_v40  ;;  %v5592_v21 = vld [vmem:[%s7489_s1 + $0xb2c] ss:$12 sps:$4 sm:$0xff]   ;;  %v5590_v26 = vld [vmem:[%s7489_s1 + $0xb28] ss:$12 sps:$4 sm:$0xff]   ;;  %v5595_v28 = vld [vmem:[%s7489_s1 + $0xb44] ss:$12 sps:$4 sm:$0xff]  }
 0x172   :  { %v5593_v10 = vld [vmem:[%s7489_s1 + $0xb40] ss:$12 sps:$4 sm:$0xff]   ;;  %v5598_v29 = vld [vmem:[%s7489_s1 + $0xb5c] ss:$12 sps:$4 sm:$0xff]   ;;  %v5596_v49 = vld [vmem:[%s7489_s1 + $0xb58] ss:$12 sps:$4 sm:$0xff]  }
 0x173   :  { %v5601_v30 = vld [vmem:[%s7489_s1 + $0xb74] ss:$12 sps:$4 sm:$0xff]   ;;  %v5599_v31 = vld [vmem:[%s7489_s1 + $0xb70] ss:$12 sps:$4 sm:$0xff]   ;;  %v5604_v32 = vld [vmem:[%s7489_s1 + $0xb8c] ss:$12 sps:$4 sm:$0xff]  }
 0x174   :  { %3340 = vmatpush1.bf16.msra.mxu0 %v5557_v47  ;;  %v5602_v18 = vld [vmem:[%s7489_s1 + $0xb88] ss:$12 sps:$4 sm:$0xff]   ;;  %v5607_v33 = vld [vmem:[%s7489_s1 + $0xba4] ss:$12 sps:$4 sm:$0xff]   ;;  %v5605_v34 = vld [vmem:[%s7489_s1 + $0xba0] ss:$12 sps:$4 sm:$0xff]  }
 0x175   :  { %3341 = vmatprep.subr.bf16.mxu0 %v5562_v50  ;;  %v4908_v54 = vpop.f32.mrb[12].mxu1  ;;  %v5610_v22 = vld [vmem:[%s7489_s1 + $0xbbc] ss:$12 sps:$4 sm:$0xff]   ;;  %v5608_v25 = vld [vmem:[%s7489_s1 + $0xbb8] ss:$12 sps:$4 sm:$0xff]  }
 0x176   :  { %v4909_v55 = vpop.f32.mrb[13].mxu1  ;;  %v5613_v35 = vld [vmem:[%s7489_s1 + $0xbd4] ss:$12 sps:$4 sm:$0xff]   ;;  %v5611_v39 = vld [vmem:[%s7489_s1 + $0xbd0] ss:$12 sps:$4 sm:$0xff]  }
 0x177   :  { %v4910_v58 = vadd.f32 %v4909_v55, %v4908_v54  ;;  %v4911_v59 = vpop.f32.mrb[14].mxu1  ;;  %v5616_v43 = vld [vmem:[%s7489_s1 + $0xbec] ss:$12 sps:$4 sm:$0xff]   ;;  %v5614_v47 = vld [vmem:[%s7489_s1 + $0xbe8] ss:$12 sps:$4 sm:$0xff]  }
 0x178   :  { %3342 = vmatpush1.bf16.msra.mxu0 %v5560_v52  ;;  %v4912_v60 = vpop.f32.mrb[15].mxu1  ;;  %v5665_v50 = vld [vmem:[%s7491_s3] ss:$8 sps:$4 sm:$0xff]   ;;  %v5667_v52 = vld [vmem:[%s7491_s3 + $0x4] ss:$8 sps:$4 sm:$0xff]  }
 0x179   :  { %3343 = vmatprep.subr.bf16.mxu0 %v5565_v53  ;;  %v3553_v61 = vadd.f32 %v4910_v58, %v3513_v48  ;;  %v5619_v48 = vld [vmem:[%s7489_s1 + $0xc04] ss:$12 sps:$4 sm:$0xff]   ;;  %v5670_v53 = vld [vmem:[%s7491_s3 + $0x14] ss:$8 sps:$4 sm:$0xff]   ;;  %v5617_v54 = vld [vmem:[%s7489_s1 + $0xc00] ss:$12 sps:$4 sm:$0xff]   ;;  %4104 = vmatprep.subr.bf16.mxu1 %v5667_v52 }
 0x17a   :  { %v5622_v55 = vld [vmem:[%s7489_s1 + $0xc1c] ss:$12 sps:$4 sm:$0xff]   ;;  %4105 = vmatpush1.bf16.msra.mxu1 %v5665_v50  ;;  %v5673_v58 = vld [vmem:[%s7491_s3 + $0x24] ss:$8 sps:$4 sm:$0xff]   ;;  %v5704_v50 = vld [vmem:[%s7491_s3 + $0xd0] ss:$8 sps:$4 sm:$0xff]  }
 0x17b   :  { %4106 = vmatprep.subr.bf16.mxu1 %v5670_v53  ;;  %v5620_v59 = vld [vmem:[%s7489_s1 + $0xc18] ss:$12 sps:$4 sm:$0xff]   ;;  %v5671_v60 = vld [vmem:[%s7491_s3 + $0x20] ss:$8 sps:$4 sm:$0xff]  }
 0x17c   :  { %3344 = vmatpush1.bf16.msra.mxu0 %v5563_v57  ;;  %v5668_v57 = vld [vmem:[%s7491_s3 + $0x10] ss:$8 sps:$4 sm:$0xff]   ;;  %v5661_v53 = vld [vmem:[%s7489_s1 + $0xd54] ss:$12 sps:$4 sm:$0xff]  }
 0x17d   :  { %3345 = vmatprep.subr.bf16.mxu0 %v5568_v38  ;;  %v5625_v38 = vld [vmem:[%s7489_s1 + $0xc34] ss:$12 sps:$4 sm:$0xff]   ;;  %v5656_v52 = vld [vmem:[%s7489_s1 + $0xd38] ss:$12 sps:$4 sm:$0xff]  }
 0x17e   :  { %4107 = vmatpush1.bf16.msra.mxu1 %v5668_v57  ;;  %v5659_v57 = vld [vmem:[%s7489_s1 + $0xd50] ss:$12 sps:$4 sm:$0xff]  }
 0x17f   :  { %4108 = vmatprep.subr.bf16.mxu1 %v5673_v58 }
 0x180   :  { %3346 = vmatpush1.bf16.msra.mxu0 %v5566_v62  ;;  %v5674_v62 = vld [vmem:[%s7491_s3 + $0x30] ss:$8 sps:$4 sm:$0xff]  }
 0x181   :  { %3356 = vmatprep.subr.bf16.mxu0 %v5571_v44  ;;  %v5679_v44 = vld [vmem:[%s7491_s3 + $0x44] ss:$8 sps:$4 sm:$0xff]  }
 0x182   :  { %4109 = vmatpush1.bf16.msra.mxu1 %v5671_v60 }
 0x183   :  { %3348 = vmatmul.mubr.bf16.vlgmr.msra.gmra.mrb[0].mxu0 %v6784_v11  ;;  %v5580_v11 = vld [vmem:[%s7489_s1 + $0xacc] ss:$12 sps:$4 sm:$0xff]  }
 0x184   :  { %3357 = vmatpush1.bf16.msra.mxu0 %v5569_v63  ;;  %3388 = vmatprep.mubr.bf16.mxu0 %v6797_v15  ;;  %v5578_v15 = vld [vmem:[%s7489_s1 + $0xac8] ss:$12 sps:$4 sm:$0xff]  }
 0x185   :  { %3358 = vmatprep.subr.bf16.mxu0 %v5574_v1  ;;  %v5626_v63 = vld [vmem:[%s7489_s1 + $0xc48] ss:$12 sps:$4 sm:$0xff]   ;;  %v5631_v1 = vld [vmem:[%s7489_s1 + $0xc64] ss:$12 sps:$4 sm:$0xff]  }
 0x188   :  { %3359 = vmatpush1.bf16.msra.mxu0 %v5572_v0  ;;  %v5677_v0 = vld [vmem:[%s7491_s3 + $0x40] ss:$8 sps:$4 sm:$0xff]  }
 0x189   :  { %3360 = vmatprep.subr.bf16.mxu0 %v5577_v2  ;;  %v5682_v2 = vld [vmem:[%s7491_s3 + $0x54] ss:$8 sps:$4 sm:$0xff]  }
 0x18c   :  { %3361 = vmatpush1.bf16.msra.mxu0 %v5575_v4  ;;  %v5629_v4 = vld [vmem:[%s7489_s1 + $0xc60] ss:$12 sps:$4 sm:$0xff]  }
 0x18d   :  { %3362 = vmatprep.subr.bf16.mxu0 %v5580_v11  ;;  %v5634_v11 = vld [vmem:[%s7489_s1 + $0xc7c] ss:$12 sps:$4 sm:$0xff]  }
 0x190   :  { %3363 = vmatpush1.bf16.msra.mxu0 %v5578_v15  ;;  %v5680_v15 = vld [vmem:[%s7491_s3 + $0x50] ss:$8 sps:$4 sm:$0xff]  }
 0x191   :  { %3364 = vmatprep.subr.bf16.mxu0 %v5583_v5  ;;  %v5685_v5 = vld [vmem:[%s7491_s3 + $0x64] ss:$8 sps:$4 sm:$0xff]  }
 0x194   :  { %3365 = vmatpush1.bf16.msra.mxu0 %v5581_v7  ;;  %v5632_v7 = vld [vmem:[%s7489_s1 + $0xc78] ss:$12 sps:$4 sm:$0xff]  }
 0x195   :  { %3366 = vmatprep.subr.bf16.mxu0 %v5586_v8  ;;  %v4930_v13 = vpop.f32.mrb[16].mxu1  ;;  %v5637_v8 = vld [vmem:[%s7489_s1 + $0xc94] ss:$12 sps:$4 sm:$0xff]  }
 0x196   :  { %v4931_v14 = vpop.f32.mrb[17].mxu1 }
 0x197   :  { %v4932_v17 = vadd.f32 %v4931_v14, %v4930_v13  ;;  %v4933_v19 = vpop.f32.mrb[18].mxu1  ;;  %v5688_v13 = vld [vmem:[%s7491_s3 + $0x74] ss:$8 sps:$4 sm:$0xff]  }
 0x198   :  { %3367 = vmatpush1.bf16.msra.mxu0 %v5584_v9  ;;  %v4934_v23 = vpop.f32.mrb[19].mxu1  ;;  %v5683_v9 = vld [vmem:[%s7491_s3 + $0x60] ss:$8 sps:$4 sm:$0xff]  }
 0x199   :  { %3368 = vmatprep.subr.bf16.mxu0 %v5589_v12  ;;  %v3593_v24 = vadd.f32 %v4932_v17, %v3553_v61  ;;  %v5628_v61 = vld [vmem:[%s7489_s1 + $0xc4c] ss:$12 sps:$4 sm:$0xff]  }
 0x19c   :  { %3369 = vmatpush1.bf16.msra.mxu0 %v5587_v16  ;;  %v5635_v16 = vld [vmem:[%s7489_s1 + $0xc90] ss:$12 sps:$4 sm:$0xff]  }
 0x19d   :  { %3370 = vmatprep.subr.bf16.mxu0 %v5592_v21  ;;  %v5640_v21 = vld [vmem:[%s7489_s1 + $0xcac] ss:$12 sps:$4 sm:$0xff]  }
 0x1a0   :  { %3371 = vmatpush1.bf16.msra.mxu0 %v5590_v26 }
 0x1a1   :  { %3372 = vmatprep.subr.bf16.mxu0 %v5595_v28  ;;  %v5691_v28 = vld [vmem:[%s7491_s3 + $0x84] ss:$8 sps:$4 sm:$0xff]  }
 0x1a4   :  { %3373 = vmatpush1.bf16.msra.mxu0 %v5593_v10  ;;  %v5638_v10 = vld [vmem:[%s7489_s1 + $0xca8] ss:$12 sps:$4 sm:$0xff]  }
 0x1a5   :  { %3374 = vmatprep.subr.bf16.mxu0 %v5598_v29  ;;  %v5643_v29 = vld [vmem:[%s7489_s1 + $0xcc4] ss:$12 sps:$4 sm:$0xff]  }
 0x1a8   :  { %3375 = vmatpush1.bf16.msra.mxu0 %v5596_v49  ;;  %v5689_v49 = vld [vmem:[%s7491_s3 + $0x80] ss:$8 sps:$4 sm:$0xff]  }
 0x1a9   :  { %3376 = vmatprep.subr.bf16.mxu0 %v5601_v30  ;;  %v5694_v30 = vld [vmem:[%s7491_s3 + $0x94] ss:$8 sps:$4 sm:$0xff]  }
 0x1ac   :  { %3377 = vmatpush1.bf16.msra.mxu0 %v5599_v31  ;;  %v5641_v31 = vld [vmem:[%s7489_s1 + $0xcc0] ss:$12 sps:$4 sm:$0xff]  }
 0x1ad   :  { %3378 = vmatprep.subr.bf16.mxu0 %v5604_v32  ;;  %v5646_v32 = vld [vmem:[%s7489_s1 + $0xcdc] ss:$12 sps:$4 sm:$0xff]  }
 0x1b0   :  { %3379 = vmatpush1.bf16.msra.mxu0 %v5602_v18  ;;  %v5692_v18 = vld [vmem:[%s7491_s3 + $0x90] ss:$8 sps:$4 sm:$0xff]  }
 0x1b1   :  { %3380 = vmatprep.subr.bf16.mxu0 %v5607_v33  ;;  %v5697_v33 = vld [vmem:[%s7491_s3 + $0xa4] ss:$8 sps:$4 sm:$0xff]  }
 0x1b4   :  { %3381 = vmatpush1.bf16.msra.mxu0 %v5605_v34  ;;  %v5644_v34 = vld [vmem:[%s7489_s1 + $0xcd8] ss:$12 sps:$4 sm:$0xff]  }
 0x1b5   :  { %3382 = vmatprep.subr.bf16.mxu0 %v5610_v22  ;;  %v4952_v36 = vpop.f32.mrb[20].mxu1  ;;  %v5649_v22 = vld [vmem:[%s7489_s1 + $0xcf4] ss:$12 sps:$4 sm:$0xff]  }
 0x1b6   :  { %v4953_v37 = vpop.f32.mrb[21].mxu1 }
 0x1b7   :  { %v4954_v40 = vadd.f32 %v4953_v37, %v4952_v36  ;;  %v4955_v41 = vpop.f32.mrb[22].mxu1  ;;  %v5647_v36 = vld [vmem:[%s7489_s1 + $0xcf0] ss:$12 sps:$4 sm:$0xff]   ;;  %v5652_v37 = vld [vmem:[%s7489_s1 + $0xd0c] ss:$12 sps:$4 sm:$0xff]  }
 0x1b8   :  { %3383 = vmatpush1.bf16.msra.mxu0 %v5608_v25  ;;  %v4956_v45 = vpop.f32.mrb[23].mxu1  ;;  %v5695_v25 = vld [vmem:[%s7491_s3 + $0xa0] ss:$8 sps:$4 sm:$0xff]  }
 0x1b9   :  { %3384 = vmatprep.subr.bf16.mxu0 %v5613_v35  ;;  %v7152_v46 = vadd.f32 %v4954_v40, %v3593_v24  ;;  %v5686_v24 = vld [vmem:[%s7491_s3 + $0x70] ss:$8 sps:$4 sm:$0xff]   ;;  %v5700_v35 = vld [vmem:[%s7491_s3 + $0xb4] ss:$8 sps:$4 sm:$0xff]   ;;  %v5703_v40 = vld [vmem:[%s7491_s3 + $0xc4] ss:$8 sps:$4 sm:$0xff]  }
 0x1ba   :  { %v5650_v41 = vld [vmem:[%s7489_s1 + $0xd08] ss:$12 sps:$4 sm:$0xff]  }
 0x1bb   :  { %v5701_v45 = vld [vmem:[%s7491_s3 + $0xc0] ss:$8 sps:$4 sm:$0xff]  }
 0x1bc   :  { %3385 = vmatpush1.bf16.msra.mxu0 %v5611_v39  ;;  %v5698_v39 = vld [vmem:[%s7491_s3 + $0xb0] ss:$8 sps:$4 sm:$0xff]  }
 0x1bd   :  { %3386 = vmatprep.subr.bf16.mxu0 %v5616_v43  ;;  %v5655_v43 = vld [vmem:[%s7489_s1 + $0xd24] ss:$12 sps:$4 sm:$0xff]  }
 0x1c0   :  { %3387 = vmatpush1.bf16.msra.mxu0 %v5614_v47  ;;  %v5653_v47 = vld [vmem:[%s7489_s1 + $0xd20] ss:$12 sps:$4 sm:$0xff]  }
 0x1c1   :  { %3397 = vmatprep.subr.bf16.mxu0 %v5619_v48  ;;  %v5658_v48 = vld [vmem:[%s7489_s1 + $0xd3c] ss:$12 sps:$4 sm:$0xff]  }
 0x1c3   :  { %3389 = vmatmul.mubr.bf16.vlgmr.msra.gmra.mrb[0].mxu0 %v6900_v51  ;;  %v5676_v51 = vld [vmem:[%s7491_s3 + $0x34] ss:$8 sps:$4 sm:$0xff]  }
 0x1c4   :  { %3398 = vmatpush1.bf16.msra.mxu0 %v5617_v54  ;;  %3429 = vmatprep.mubr.bf16.mxu0 %v6915_v56  ;;  %v5623_v56 = vld [vmem:[%s7489_s1 + $0xc30] ss:$12 sps:$4 sm:$0xff]  }
 0x1c5   :  { %3399 = vmatprep.subr.bf16.mxu0 %v5622_v55  ;;  %4110 = vmatprep.subr.bf16.mxu1 %v5676_v51 }
 0x1c6   :  { %4111 = vmatpush1.bf16.msra.mxu1 %v5674_v62 }
 0x1c7   :  { %4112 = vmatprep.subr.bf16.mxu1 %v5679_v44 }
 0x1c8   :  { %3400 = vmatpush1.bf16.msra.mxu0 %v5620_v59 }
 0x1c9   :  { %3401 = vmatprep.subr.bf16.mxu0 %v5625_v38  ;;  %v5664_v38 = vld [vmem:[%s7489_s1 + $0xd6c] ss:$12 sps:$4 sm:$0xff]  }
 0x1ca   :  { %4113 = vmatpush1.bf16.msra.mxu1 %v5677_v0 }
 0x1cb   :  { %4114 = vmatprep.subr.bf16.mxu1 %v5682_v2 }
 0x1cc   :  { %3402 = vmatpush1.bf16.msra.mxu0 %v5623_v56  ;;  %v5662_v56 = vld [vmem:[%s7489_s1 + $0xd68] ss:$12 sps:$4 sm:$0xff]  }
 0x1cd   :  { %3403 = vmatprep.subr.bf16.mxu0 %v5628_v61 }
 0x1ce   :  { %4115 = vmatpush1.bf16.msra.mxu1 %v5680_v15 }
 0x1cf   :  { %4116 = vmatprep.subr.bf16.mxu1 %v5685_v5 }
 0x1d0   :  { %3404 = vmatpush1.bf16.msra.mxu0 %v5626_v63 }
 0x1d1   :  { %3405 = vmatprep.subr.bf16.mxu0 %v5631_v1 }
 0x1d2   :  { %4117 = vmatpush1.bf16.msra.mxu1 %v5683_v9  ;;  %v5712_v9 = vld [vmem:[%s7491_s3 + $0xf4] ss:$8 sps:$4 sm:$0xff]  }
 0x1d3   :  { %4118 = vmatprep.subr.bf16.mxu1 %v5688_v13  ;;  %v5715_v13 = vld [vmem:[%s7491_s3 + $0x104] ss:$8 sps:$4 sm:$0xff]  }
 0x1d4   :  { %3406 = vmatpush1.bf16.msra.mxu0 %v5629_v4 }
 0x1d5   :  { %3407 = vmatprep.subr.bf16.mxu0 %v5634_v11  ;;  %v4974_v12 = vpop.f32.mrb[24].mxu1 }
 0x1d6   :  { %v4975_v14 = vpop.f32.mrb[25].mxu1  ;;  %4119 = vmatpush1.bf16.msra.mxu1 %v5686_v24 }
 0x1d7   :  { %v4976_v17 = vadd.f32 %v4975_v14, %v4974_v12  ;;  %v4977_v19 = vpop.f32.mrb[26].mxu1  ;;  %4120 = vmatprep.subr.bf16.mxu1 %v5691_v28  ;;  %v5710_v12 = vld [vmem:[%s7491_s3 + $0xf0] ss:$8 sps:$4 sm:$0xff]   ;;  %v611_v14 = vsub.s32 0, %v5933_v42 }
 0x1d8   :  { %3408 = vmatpush1.bf16.msra.mxu0 %v5632_v7  ;;  %v4978_v23 = vpop.f32.mrb[27].mxu1 }
 0x1d9   :  { %3409 = vmatprep.subr.bf16.mxu0 %v5637_v8  ;;  %v7253_v26 = vadd.f32 %v4976_v17, %v7152_v46  ;;  %v5706_v46 = vld [vmem:[%s7491_s3 + $0xd4] ss:$8 sps:$4 sm:$0xff]   ;;  %v5709_v8 = vld [vmem:[%s7491_s3 + $0xe4] ss:$8 sps:$4 sm:$0xff]   ;;  %v612_v17 = vrot.slane %v7027_v20, %v611_v14 }
 0x1da   :  { %4121 = vmatpush1.bf16.msra.mxu1 %v5689_v49 }
 0x1db   :  { %4122 = vmatprep.subr.bf16.mxu1 %v5694_v30 }
 0x1dc   :  { %3410 = vmatpush1.bf16.msra.mxu0 %v5635_v16  ;;  %v615_v16 = vsub.s32 1, %v5933_v42 }
 0x1dd   :  { %3411 = vmatprep.subr.bf16.mxu0 %v5640_v21  ;;  %v3104_v21 = vadd.f32 %v6957_v3, %v612_v17  ;;  %v5718_v3 = vld [vmem:[%s7491_s3 + $0x114] ss:$8 sps:$4 sm:$0xff]  }
 0x1de   :  { %4123 = vmatpush1.bf16.msra.mxu1 %v5692_v18  ;;  %v616_v19 = vrot.slane %v7027_v20, %v615_v16  ;;  %v5713_v18 = vld [vmem:[%s7491_s3 + $0x100] ss:$8 sps:$4 sm:$0xff]   ;;  %v5774_v20 = vmov 0  }
 0x1df   :  { %4124 = vmatprep.subr.bf16.mxu1 %v5697_v33 }
 0x1e0   :  { %3412 = vmatpush1.bf16.msra.mxu0 %v5638_v10  ;;  %v3106_v23 = vadd.f32 %v6965_v6, %v616_v19  ;;  %v5716_v6 = vld [vmem:[%s7491_s3 + $0x110] ss:$8 sps:$4 sm:$0xff]  }
 0x1e1   :  { %3413 = vmatprep.subr.bf16.mxu0 %v5643_v29 }
 0x1e2   :  { %4125 = vmatpush1.bf16.msra.mxu1 %v5695_v25  ;;  %v5724_v25 = vld [vmem:[%s7491_s3 + $0x134] ss:$8 sps:$4 sm:$0xff]  }
 0x1e3   :  { %4126 = vmatprep.subr.bf16.mxu1 %v5700_v35  ;;  %v5722_v35 = vld [vmem:[%s7491_s3 + $0x130] ss:$8 sps:$4 sm:$0xff]  }
 0x1e4   :  { %3414 = vmatpush1.bf16.msra.mxu0 %v5641_v31 }
 0x1e5   :  { %3415 = vmatprep.subr.bf16.mxu0 %v5646_v32 }
 0x1e6   :  { %4127 = vmatpush1.bf16.msra.mxu1 %v5698_v39  ;;  %v5730_v39 = vld [vmem:[%s7491_s3 + $0x154] ss:$8 sps:$4 sm:$0xff]  }
 0x1e7   :  { %4128 = vmatprep.subr.bf16.mxu1 %v5703_v40  ;;  %v5728_v40 = vld [vmem:[%s7491_s3 + $0x150] ss:$8 sps:$4 sm:$0xff]  }
 0x1e8   :  { %3416 = vmatpush1.bf16.msra.mxu0 %v5644_v34  ;;  %v5721_v34 = vld [vmem:[%s7491_s3 + $0x124] ss:$8 sps:$4 sm:$0xff]  }
 0x1e9   :  { %3417 = vmatprep.subr.bf16.mxu0 %v5649_v22  ;;  %v5719_v22 = vld [vmem:[%s7491_s3 + $0x120] ss:$8 sps:$4 sm:$0xff]  }
 0x1ea   :  { %4129 = vmatpush1.bf16.msra.mxu1 %v5701_v45  ;;  %v5736_v45 = vld [vmem:[%s7491_s3 + $0x174] ss:$8 sps:$4 sm:$0xff]  }
 0x1eb   :  { %4130 = vmatprep.subr.bf16.mxu1 %v5706_v46  ;;  %v5734_v46 = vld [vmem:[%s7491_s3 + $0x170] ss:$8 sps:$4 sm:$0xff]  }
 0x1ec   :  { %3418 = vmatpush1.bf16.msra.mxu0 %v5647_v36  ;;  %v5727_v36 = vld [vmem:[%s7491_s3 + $0x144] ss:$8 sps:$4 sm:$0xff]  }
 0x1ed   :  { %3419 = vmatprep.subr.bf16.mxu0 %v5652_v37  ;;  %v5725_v37 = vld [vmem:[%s7491_s3 + $0x140] ss:$8 sps:$4 sm:$0xff]  }
 0x1ee   :  { %4131 = vmatpush1.bf16.msra.mxu1 %v5704_v50 }
 0x1ef   :  { %4132 = vmatprep.subr.bf16.mxu1 %v5709_v8 }
 0x1f0   :  { %3420 = vmatpush1.bf16.msra.mxu0 %v5650_v41  ;;  %v5733_v41 = vld [vmem:[%s7491_s3 + $0x164] ss:$8 sps:$4 sm:$0xff]  }
 0x1f1   :  { %3421 = vmatprep.subr.bf16.mxu0 %v5655_v43  ;;  %v5731_v43 = vld [vmem:[%s7491_s3 + $0x160] ss:$8 sps:$4 sm:$0xff]  }
 0x1f4   :  { %3422 = vmatpush1.bf16.msra.mxu0 %v5653_v47 }
 0x1f5   :  { %3423 = vmatprep.subr.bf16.mxu0 %v5658_v48  ;;  %v4996_v54 = vpop.f32.mrb[28].mxu1  ;;  %v5737_v48 = vld [vmem:[%s7493_s5] sm:$0xff]  }
 0x1f6   :  { %v4997_v55 = vpop.f32.mrb[29].mxu1 }
 0x1f7   :  { %v4998_v58 = vadd.f32 %v4997_v55, %v4996_v54  ;;  %v4999_v59 = vpop.f32.mrb[30].mxu1  ;;  %v5740_v54 = vld [vmem:[%s7493_s5 + $0x18] sm:$0xff]   ;;  %v5741_v55 = vld [vmem:[%s7493_s5 + $0x20] sm:$0xff]  }
 0x1f8   :  { %3424 = vmatpush1.bf16.msra.mxu0 %v5656_v52  ;;  %v5000_v60 = vpop.f32.mrb[31].mxu1  ;;  %v5738_v52 = vld [vmem:[%s7493_s5 + $0x8] sm:$0xff]   ;;  %v5744_v59 = vld [vmem:[%s7493_s5 + $0x38] sm:$0xff]  }
 0x1f9   :  { %3425 = vmatprep.subr.bf16.mxu0 %v5661_v53  ;;  %v3713_v51 = vadd.f32 %v4998_v58, %v7253_v26  ;;  %v5739_v53 = vld [vmem:[%s7493_s5 + $0x10] sm:$0xff]   ;;  %v5746_v60 = vld [vmem:[%s7493_s5 + $0x48] sm:$0xff]  }
 0x1fa   :  { %v5743_v58 = vld [vmem:[%s7493_s5 + $0x30] sm:$0xff]  }
 0x1fc   :  { %3426 = vmatpush1.bf16.msra.mxu0 %v5659_v57  ;;  %v5742_v57 = vld [vmem:[%s7493_s5 + $0x28] sm:$0xff]  }
 0x1fd   :  { %3427 = vmatprep.subr.bf16.mxu0 %v5664_v38  ;;  %v5745_v38 = vld [vmem:[%s7493_s5 + $0x40] sm:$0xff]  }
 0x200   :  { %3428 = vmatpush1.bf16.msra.mxu0 %v5662_v56  ;;  %v5748_v56 = vld [vmem:[%s7493_s5 + $0x58] sm:$0xff]  }
 0x203   :  { %3430 = vmatmul.mubr.bf16.vlgmr.msra.gmra.mrb[0].mxu0 %v7002_v27  ;;  %v5707_v27 = vld [vmem:[%s7491_s3 + $0xe0] ss:$8 sps:$4 sm:$0xff]  }
 0x204   :  { %4133 = vmatpush1.bf16.msra.mxu1 %v5707_v27  ;;  %v4834_v27 = vld [vmem:[%s7494_s6] ss:$0 sm:$0xff] }
 0x205   :  { %4134 = vmatprep.subr.bf16.mxu1 %v5712_v9 }
 0x208   :  { %4135 = vmatpush1.bf16.msra.mxu1 %v5710_v12 }
 0x209   :  { %4145 = vmatprep.subr.bf16.mxu1 %v5715_v13 }
 0x215   :  { %v5018_v61 = vpop.f32.mrb[32].mxu1 }
 0x216   :  { %v5019_v62 = vpop.f32.mrb[33].mxu1 }
 0x217   :  { %v5020_v44 = vadd.f32 %v5019_v62, %v5018_v61  ;;  %v5021_v63 = vpop.f32.mrb[34].mxu1  ;;  %v3852_v61 = vld [vmem:[%s7492_s4] sm:$0x3] }
 0x218   :  { %v5022_v1 = vpop.f32.mrb[35].mxu1  ;;  %v3857_v62 = vrot.slane %v3852_v61, %v611_v14 }
 0x219   :  { %v3753_v0 = vadd.f32 %v5020_v44, %v3713_v51  ;;  %v5747_v51 = vld [vmem:[%s7493_s5 + $0x50] sm:$0xff]   ;;  %v3861_v44 = vrot.slane %v3852_v61, %v615_v16 }
 0x235   :  { %v5040_v2 = vpop.f32.mrb[36].mxu1 }
 0x236   :  { %v5041_v4 = vpop.f32.mrb[37].mxu1 }
 0x237   :  { %v5042_v11 = vadd.f32 %v5041_v4, %v5040_v2  ;;  %v5043_v15 = vpop.f32.mrb[38].mxu1 }
 0x238   :  { %v5044_v5 = vpop.f32.mrb[39].mxu1 }
 0x239   :  { %v7344_v7 = vadd.f32 %v5042_v11, %v3753_v0 }
 0x23b   :  { %v3800_v47 = vmax.f32 %v7344_v7, 0.0 }
 0x23d   :  { %v3803_v50 = vpack.c.bf16 %v3800_v47, %v3800_v47 }
 0x2d6   :  { %v3431_v24 = vpop.f32.mrb[0].mxu0 }
 0x2d7   :  { %v5047_v26 = vadd.f32 %v3431_v24, %v3104_v21  ;;  %v3433_v28 = vpop.f32.mrb[1].mxu0 }
 0x2d8   :  { %v5049_v10 = vadd.f32 %v3433_v28, %v3106_v23  ;;  %v3435_v29 = vpop.f32.mrb[2].mxu0 }
 0x2d9   :  { %v3798_v49 = vmax.f32 %v5047_v26, 0.0  ;;  %v3436_v30 = vpop.f32.mrb[3].mxu0 }
 0x2da   :  { %v3799_v31 = vmax.f32 %v5049_v10, 0.0 }
 0x2db   :  { %v3801_v33 = vpack.c.bf16 %v3798_v49, %v3798_v49 }
 0x2dc   :  { %v3802_v32 = vpack.c.bf16 %v3799_v31, %v3799_v31 }
 0x2de   :  { %4136 = vmatprep.mubr.bf16.mxu1 %v3802_v32 }
 0x2df   :  { %4137 = vmatmul.mubr.bf16.vlgmr.msra.gmra.mrb[40].mxu1 %v3801_v33 }
 0x2e0   :  { %4146 = vmatpush1.bf16.msra.mxu1 %v5713_v18  ;;  %4177 = vmatprep.mubr.bf16.mxu1 %v5774_v20 }
 0x2e1   :  { %4147 = vmatprep.subr.bf16.mxu1 %v5718_v3 }
 0x2e4   :  { %4148 = vmatpush1.bf16.msra.mxu1 %v5716_v6 }
 0x2e5   :  { %4149 = vmatprep.subr.bf16.mxu1 %v5721_v34 }
 0x2e8   :  { %4150 = vmatpush1.bf16.msra.mxu1 %v5719_v22 }
 0x2e9   :  { %4151 = vmatprep.subr.bf16.mxu1 %v5724_v25 }
 0x2ec   :  { %4152 = vmatpush1.bf16.msra.mxu1 %v5722_v35 }
 0x2ed   :  { %4153 = vmatprep.subr.bf16.mxu1 %v5727_v36 }
 0x2f0   :  { %4154 = vmatpush1.bf16.msra.mxu1 %v5725_v37 }
 0x2f1   :  { %4155 = vmatprep.subr.bf16.mxu1 %v5730_v39 }
 0x2f4   :  { %4156 = vmatpush1.bf16.msra.mxu1 %v5728_v40 }
 0x2f5   :  { %4157 = vmatprep.subr.bf16.mxu1 %v5733_v41 }
 0x2f8   :  { %4158 = vmatpush1.bf16.msra.mxu1 %v5731_v43 }
 0x2f9   :  { %4159 = vmatprep.subr.bf16.mxu1 %v5736_v45 }
 0x2fc   :  { %4160 = vmatpush1.bf16.msra.mxu1 %v5734_v46 }
 0x2fd   :  { %4297 = vmatprep.subr.bf16.mxu1 %v5774_v20 }
 0x2ff   :  { %4178 = vmatmul.mubr.bf16.vlgmr.msra.gmra.mrb[40].mxu1 %v3803_v50 }
 0x300   :  { %4298 = vmatpush1.bf16.msra.mxu1 %v5737_v48 }
 0x301   :  { %4299 = vmatprep.subr.bf16.mxu1 %v5774_v20 }
 0x304   :  { %4300 = vmatpush1.bf16.msra.mxu1 %v5738_v52 }
 0x305   :  { %4301 = vmatprep.subr.bf16.mxu1 %v5774_v20 }
 0x308   :  { %4302 = vmatpush1.bf16.msra.mxu1 %v5739_v53 }
 0x309   :  { %4303 = vmatprep.subr.bf16.mxu1 %v5774_v20 }
 0x30c   :  { %4304 = vmatpush1.bf16.msra.mxu1 %v5740_v54 }
 0x30d   :  { %4305 = vmatprep.subr.bf16.mxu1 %v5774_v20 }
 0x310   :  { %4306 = vmatpush1.bf16.msra.mxu1 %v5741_v55 }
 0x311   :  { %4307 = vmatprep.subr.bf16.mxu1 %v5774_v20 }
 0x314   :  { %4308 = vmatpush1.bf16.msra.mxu1 %v5742_v57 }
 0x315   :  { %4309 = vmatprep.subr.bf16.mxu1 %v5774_v20 }
 0x318   :  { %4310 = vmatpush1.bf16.msra.mxu1 %v5743_v58 }
 0x319   :  { %4311 = vmatprep.subr.bf16.mxu1 %v5774_v20 }
 0x31c   :  { %4312 = vmatpush1.bf16.msra.mxu1 %v5744_v59 }
 0x31d   :  { %4313 = vmatprep.subr.bf16.mxu1 %v5774_v20 }
 0x320   :  { %4314 = vmatpush1.bf16.msra.mxu1 %v5745_v38 }
 0x321   :  { %4315 = vmatprep.subr.bf16.mxu1 %v5774_v20 }
 0x324   :  { %4316 = vmatpush1.bf16.msra.mxu1 %v5746_v60 }
 0x325   :  { %4317 = vmatprep.subr.bf16.mxu1 %v5774_v20 }
 0x328   :  { %4318 = vmatpush1.bf16.msra.mxu1 %v5747_v51 }
 0x329   :  { %4319 = vmatprep.subr.bf16.mxu1 %v5774_v20 }
 0x32c   :  { %4320 = vmatpush1.bf16.msra.mxu1 %v5748_v56 }
 0x3d2   :  { %v4179_v63 = vpop.f32.mrb[40].mxu1 }
 0x3d3   :  { %v5050_v1 = vadd.f32 %v4179_v63, %v3857_v62  ;;  %v4181_v0 = vpop.f32.mrb[41].mxu1 }
 0x3d4   :  { %v5051_v2 = vadd.f32 %v4181_v0, %v3861_v44  ;;  %v4183_v4 = vpop.f32.mrb[42].mxu1 }
 0x3d5   :  { %v4186_v11 = vmax.f32 %v5050_v1, 0.0  ;;  %v4184_v15 = vpop.f32.mrb[43].mxu1 }
 0x3d6   :  { %v4187_v5 = vmax.f32 %v5051_v2, 0.0 }
 0x3d7   :  { %v4188_v8 = vpack.c.bf16 %v4186_v11, %v4186_v11 }
 0x3d8   :  { %v4189_v7 = vpack.c.bf16 %v4187_v5, %v4187_v5 }
 0x3da   :  { %4847 = vmatprep.mubr.msk.bf16.mxu1 %vm4293_vm0, %v4189_v7 }
 0x3db   :  { %4330 = vmatmul.mubr.bf16.vlgmr.msra.gmra.mrb[44].mxu1 %v4188_v8 }
 0x4ae   :  { %v4331_v42 = vpop.f32.mrb[44].mxu1 }
 0x4af   :  { %v4332_v9 = vadd.f32 %v4834_v27, %v4331_v42  ;;  %v4333_v12 = vpop.f32.mrb[45].mxu1 }
 0x4b0   :  { %v4334_v13 = vpop.f32.mrb[46].mxu1 }
 0x4b1   :  { %v4335_v14 = vpop.f32.mrb[47].mxu1  ;;  %4338 = vst.msk [vmem:[#allocation2] sm:$0x3] %vm4337_vm1, %v4332_v9 }
 0x4b2   :  { %5760 = shalt.err (!%p5757_p4)
}
 0x4b3   :  { %s5761_s6 = scalar_lea.hbm %s7495_s7, 32 }
 0x4b4   :  { %p5762_p5 = scmp.ne.s32.totalorder %s7495_s7, %s5761_s6  ;;  %p5765_p6 = scmp.lt.u32.totalorder %s5761_s6, %s7495_s7 }
 0x4b6   :  { %p5767_p7 = pnand %p5765_p6, %p5762_p5 }
 0x4b8   :  { %5770 = shalt.err (!%p5767_p7)
}
 0x4b9   :  { %4348 = dma.vmem_to_hbm [thread:$0]  %s4346_s24, 32, %s7495_s7, [#allocation3]  }
 0x4ba   :  { %5771 = dma.done.wait [#allocation3], 32  }
 0x4bb   :  { %5772 = vsyncadd [#allocation3], 4294967264 }
 0x4bc   :  { %4352 = vsyncpa [#allocation3], 1 }

</bundles_post_ra>
